<compile_context>
chip_gen: v5e
topology: v5e:2x2
jax: 0.10.0
libtpu: 0.0.40
codegen_flags: <defaults>
</compile_context>

<pallas_src>
import functools

import jax
import jax.numpy as jnp
from jax.experimental import pallas as pl
from jax.experimental.pallas import tpu as pltpu

EPS = 1e-5


def _compute_vmem_limit():
    # v5e/v6e: 128 MiB VMEM, v7x: 64 MiB per TensorCore -> derive a safe budget.
    try:
        cap = getattr(pltpu.get_tpu_info(), "vmem_capacity_bytes", None)
    except Exception:
        cap = None
    if cap:
        return int(min(cap // 2, 56 * 1024 * 1024))
    return 40 * 1024 * 1024


_VMEM_LIMIT = _compute_vmem_limit()


def _pick_tile(dim, target, mult):
    """Largest tile <= target that divides dim and is a multiple of mult,
    otherwise the full dim (a full-extent block is always legal)."""
    if dim <= target:
        return dim
    t = (target // mult) * mult
    while t >= mult:
        if dim % t == 0:
            return t
        t -= mult
    return dim


def _pick_bh(h_out, w_out, target_rows):
    """Output-image rows handled per grid step (tile = bh * w_out rows)."""
    bh = max(1, min(h_out, target_rows // max(w_out, 1)))
    while h_out % bh:
        bh -= 1
    if bh == h_out and h_out >= 2:   # keep >= 2 row blocks/image for pipelining
        bh = h_out // 2
        while h_out % bh:
            bh -= 1
    return bh


# --------------------------- Pallas kernels --------------------------------

def _mm_kernel(relu, has_res, x_ref, w_ref, s_ref, b_ref, *rest):
    """(M,N,K)-tiled matmul with f32 accumulator and fused BN / res / ReLU."""
    if has_res:
        r_ref, o_ref, acc_ref = rest
    else:
        o_ref, acc_ref = rest
        r_ref = None

    @pl.when(pl.program_id(2) == 0)
    def _():
        acc_ref[...] = jnp.zeros_like(acc_ref)

    acc_ref[...] += jnp.dot(x_ref[...], w_ref[...],
                            preferred_element_type=jnp.float32)

    @pl.when(pl.program_id(2) == pl.num_programs(2) - 1)
    def _():
        acc = acc_ref[...] * s_ref[...] + b_ref[...]
        if has_res:
            acc = acc + r_ref[...].astype(jnp.float32)
        if relu:
            acc = jnp.maximum(acc, 0.0)
        o_ref[...] = acc.astype(o_ref.dtype)


def fused_matmul(x, w, scale, bias, residual=None, relu=True,
                 out_dtype=jnp.float32):
    """out = [relu]((x @ w) * scale + bias [+ residual]); bf16 in, f32 acc."""
    M, K = x.shape
    K2, N = w.shape
    assert K == K2
    x = x.astype(jnp.bfloat16)
    w = w.astype(jnp.bfloat16)

    bytes_per_row = 2 * (K + N)
    tm_target = max(256, min(4096, (2 * 1024 * 1024) // max(bytes_per_row, 1)))
    tm_target = min(tm_target, max(256, M // 4))
    tm = _pick_tile(M, tm_target, 8)
    tn = _pick_tile(N, 256, 128)
    tk = _pick_tile(K, 1536, 128)
    grid = (M // tm, N // tn, K // tk)

    in_specs = [
        pl.BlockSpec((tm, tk), lambda i, j, k: (i, k)),
        pl.BlockSpec((tk, tn), lambda i, j, k: (k, j)),
        pl.BlockSpec((1, tn), lambda i, j, k: (0, j)),
        pl.BlockSpec((1, tn), lambda i, j, k: (0, j)),
    ]
    args = [x, w,
            scale.reshape(1, N).astype(jnp.float32),
            bias.reshape(1, N).astype(jnp.float32)]
    has_res = residual is not None
    if has_res:
        in_specs.append(pl.BlockSpec((tm, tn), lambda i, j, k: (i, j)))
        args.append(residual.astype(jnp.bfloat16))

    return pl.pallas_call(
        functools.partial(_mm_kernel, relu, has_res),
        out_shape=jax.ShapeDtypeStruct((M, N), out_dtype),
        grid=grid,
        in_specs=in_specs,
        out_specs=pl.BlockSpec((tm, tn), lambda i, j, k: (i, j)),
        scratch_shapes=[pltpu.VMEM((tm, tn), jnp.float32)],
        compiler_params=pltpu.CompilerParams(
            dimension_semantics=("parallel", "parallel", "arbitrary"),
            vmem_limit_bytes=_VMEM_LIMIT),
    )(*args)


def _conv3x3_s1_kernel(bh, w_out, relu, has_res,
                       x_ref, w_ref, s_ref, b_ref, *rest):
    """Direct 3x3 stride-1 conv: padded activation resident in VMEM, 9 taps
    accumulated in f32, fused BN affine + optional residual + ReLU."""
    if has_res:
        r_ref, o_ref = rest
    else:
        (o_ref,) = rest
        r_ref = None
    c_in = w_ref.shape[1]
    c_out = w_ref.shape[2]
    i0 = pl.program_id(1) * bh
    acc = jnp.zeros((bh * w_out, c_out), jnp.float32)
    for dy in range(3):
        rows = x_ref[0, pl.ds(i0 + dy, bh), :, :]        # (bh, W+2, C_in)
        for dx in range(3):
            tap = rows[:, dx:dx + w_out, :].reshape(bh * w_out, c_in)
            acc = acc + jnp.dot(tap, w_ref[dy * 3 + dx],
                                preferred_element_type=jnp.float32)
    acc = acc * s_ref[...] + b_ref[...]
    if has_res:
        acc = acc + r_ref[...].astype(jnp.float32)
    if relu:
        acc = jnp.maximum(acc, 0.0)
    # TODO(synk): lane-dense ((M,64)->(M/2,128)) stores for the 64-channel layers.
    o_ref[...] = acc.astype(o_ref.dtype)


def conv3x3_s1_direct(x, w_oihw, scale, bias, relu, residual):
    n, h, wd, c_in = x.shape
    c_out = w_oihw.shape[0]
    hp, wp = h + 2, wd + 2
    xp = jnp.pad(x.astype(jnp.bfloat16), ((0, 0), (1, 1), (1, 1), (0, 0)))
    wt = jnp.transpose(w_oihw, (2, 3, 1, 0)).reshape(9, c_in, c_out)
    wt = wt.astype(jnp.bfloat16)

    target_rows = 512 if c_out <= 128 else 256
    bh = _pick_bh(h, wd, target_rows)
    rb = h // bh
    tm = bh * wd
    m = n * h * wd

    args = [xp, wt,
            scale.reshape(1, c_out).astype(jnp.float32),
            bias.reshape(1, c_out).astype(jnp.float32)]
    in_specs = [
        pl.BlockSpec((1, hp, wp, c_in), lambda ni, ri: (ni, 0, 0, 0)),
        pl.BlockSpec((9, c_in, c_out), lambda ni, ri: (0, 0, 0)),
        pl.BlockSpec((1, c_out), lambda ni, ri: (0, 0)),
        pl.BlockSpec((1, c_out), lambda ni, ri: (0, 0)),
    ]
    has_res = residual is not None
    if has_res:
        args.append(residual.reshape(m, c_out).astype(jnp.bfloat16))
        in_specs.append(
            pl.BlockSpec((tm, c_out), lambda ni, ri: (ni * rb + ri, 0)))

    out = pl.pallas_call(
        functools.partial(_conv3x3_s1_kernel, bh, wd, relu, has_res),
        out_shape=jax.ShapeDtypeStruct((m, c_out), jnp.bfloat16),
        grid=(n, rb),
        in_specs=in_specs,
        out_specs=pl.BlockSpec((tm, c_out), lambda ni, ri: (ni * rb + ri, 0)),
        compiler_params=pltpu.CompilerParams(
            dimension_semantics=("parallel", "parallel"),
            vmem_limit_bytes=_VMEM_LIMIT),
    )(*args)
    return out.reshape(n, h, wd, c_out)


def _maxpool_kernel(bh, w_out, xe_ref, xo_ref, o_ref):
    """3x3/stride-2/pad-1 max pool; inputs are even/odd-column splits of the
    -inf padded activation, so all 9 taps are contiguous in-kernel slices."""
    i0 = pl.program_id(1) * bh
    ce = xe_ref[0, pl.ds(2 * i0, 2 * bh + 2), :, :]      # (2bh+2, Wo+1, C)
    co = xo_ref[0, pl.ds(2 * i0, 2 * bh + 2), :, :]
    c = ce.shape[-1]
    ce = ce.reshape(bh + 1, 2, w_out + 1, c)
    co = co.reshape(bh + 1, 2, w_out + 1, c)
    e_e, o_e = ce[:, 0], ce[:, 1]                        # even/odd padded rows
    e_o, o_o = co[:, 0], co[:, 1]
    m = e_e[0:bh, 0:w_out]
    for tap in (e_o[0:bh, 0:w_out], e_e[0:bh, 1:w_out + 1],
                o_e[0:bh, 0:w_out], o_o[0:bh, 0:w_out], o_e[0:bh, 1:w_out + 1],
                e_e[1:bh + 1, 0:w_out], e_o[1:bh + 1, 0:w_out],
                e_e[1:bh + 1, 1:w_out + 1]):
        m = jnp.maximum(m, tap)
    o_ref[...] = m.reshape(1, bh, w_out, c).astype(o_ref.dtype)


def maxpool_3x3_s2_p1(x):
    """nn.MaxPool2d(3, 2, padding=1) on NHWC input (even H, W)."""
    n, h, wd, c = x.shape
    ho, wo = h // 2, wd // 2
    xp = jnp.pad(x.astype(jnp.bfloat16), ((0, 0), (1, 1), (1, 1), (0, 0)),
                 constant_values=-jnp.inf)
    xe = xp[:, :, 0::2, :]                               # (n, h+2, wo+1, c)
    xo = xp[:, :, 1::2, :]
    bh = _pick_bh(ho, wo, 512)
    rb = ho // bh
    return pl.pallas_call(
        functools.partial(_maxpool_kernel, bh, wo),
        out_shape=jax.ShapeDtypeStruct((n, ho, wo, c), jnp.bfloat16),
        grid=(n, rb),
        in_specs=[
            pl.BlockSpec((1, h + 2, wo + 1, c), lambda ni, ri: (ni, 0, 0, 0)),
            pl.BlockSpec((1, h + 2, wo + 1, c), lambda ni, ri: (ni, 0, 0, 0)),
        ],
        out_specs=pl.BlockSpec((1, bh, wo, c), lambda ni, ri: (ni, ri, 0, 0)),
        compiler_params=pltpu.CompilerParams(
            dimension_semantics=("parallel", "parallel"),
            vmem_limit_bytes=_VMEM_LIMIT),
    )(xe, xo)


def _avgpool_kernel(x_ref, o_ref):
    o_ref[...] = jnp.mean(x_ref[...].astype(jnp.float32), axis=1)


def global_avgpool(x):
    """nn.AvgPool2d((16, 8), 1) when the feature map is exactly 16x8."""
    n, h, wd, c = x.shape
    xf = x.reshape(n, h * wd, c)
    return pl.pallas_call(
        _avgpool_kernel,
        out_shape=jax.ShapeDtypeStruct((n, c), jnp.float32),
        grid=(1,),
        in_specs=[pl.BlockSpec((n, h * wd, c), lambda i: (0, 0, 0))],
        out_specs=pl.BlockSpec((n, c), lambda i: (0, 0)),
        compiler_params=pltpu.CompilerParams(vmem_limit_bytes=_VMEM_LIMIT),
    )(xf)


# ------------------------------ glue (JAX) ---------------------------------

def _im2col(x, k, stride, pad):
    n, h, wd, c = x.shape
    if pad:
        x = jnp.pad(x, ((0, 0), (pad, pad), (pad, pad), (0, 0)))
    ho = (h + 2 * pad - k) // stride + 1
    wo = (wd + 2 * pad - k) // stride + 1
    taps = []
    for dy in range(k):
        for dx in range(k):
            taps.append(x[:, dy:dy + stride * (ho - 1) + 1:stride,
                          dx:dx + stride * (wo - 1) + 1:stride, :])
    patches = jnp.concatenate(taps, axis=-1) if len(taps) > 1 else taps[0]
    return patches.reshape(n * ho * wo, k * k * c), (n, ho, wo)


def bn_scale_bias(bn):
    s = bn['gamma'] / jnp.sqrt(bn['var'] + EPS)
    b = bn['beta'] - bn['mean'] * s
    return s, b


def conv_bn(x, w_oihw, bn, stride, relu, residual=None):
    c_out, c_in, k, _ = w_oihw.shape
    pad = (k - 1) // 2                   # 1 for 3x3, 0 for 1x1 (matches module)
    scale, bias = bn_scale_bias(bn)
    if k == 3 and stride == 1 and c_in % 8 == 0 and x.shape[2] % 8 == 0:
        return conv3x3_s1_direct(x, w_oihw, scale, bias, relu, residual)
    # TODO(synk): stride-2 3x3 convs still build a (small) im2col tensor in JAX.
    patches, (n, ho, wo) = _im2col(x, k, stride, pad)
    w2d = jnp.transpose(w_oihw, (2, 3, 1, 0)).reshape(k * k * c_in, c_out)
    res = None if residual is None else residual.reshape(n * ho * wo, c_out)
    out = fused_matmul(patches, w2d, scale, bias, residual=res, relu=relu,
                       out_dtype=jnp.bfloat16)
    return out.reshape(n, ho, wo, c_out)


def basic_block(x, p):
    stride = p['stride']
    y = conv_bn(x, p['conv1_w'], p['bn1'], stride=stride, relu=True)
    if p['has_downsample']:
        identity = conv_bn(x, p['ds_w'], p['ds_bn'], stride=stride, relu=False)
    else:
        identity = x
    # relu(identity + bn2(conv2(y))) -- residual & relu fused into the conv kernel
    return conv_bn(y, p['conv2_w'], p['bn2'], stride=1, relu=True,
                   residual=identity)


def wide_resnet_forward(params, x_nchw, reid=False):
    x = jnp.transpose(x_nchw, (0, 2, 3, 1)).astype(jnp.bfloat16)  # NCHW -> NHWC
    x = conv_bn(x, params['conv0_w'], params['conv0_bn'], stride=1, relu=True)
    x = maxpool_3x3_s2_p1(x)
    for layer_name in ('layer1', 'layer2', 'layer3', 'layer4'):
        for blk in params[layer_name]:
            x = basic_block(x, blk)
    feat = global_avgpool(x)                 # (N, 512) f32, i.e. x.view(N, -1)
    if reid:
        # TODO(synk): reid branch (L2 normalize) kept in plain JAX; off by default
        return feat / jnp.linalg.norm(feat, axis=1, keepdims=True)
    # classifier: Linear -> BatchNorm1d -> ReLU -> Dropout(eval=identity) -> Linear
    s, b = bn_scale_bias(params['bn_fc'])
    h = fused_matmul(feat, params['fc1_w'].T, s, b + params['fc1_b'] * s,
                     relu=True, out_dtype=jnp.float32)
    n_cls = params['fc2_w'].shape[0]
    logits = fused_matmul(h, params['fc2_w'].T,
                          jnp.ones((n_cls,), jnp.float32), params['fc2_b'],
                          relu=False, out_dtype=jnp.float32)
    return logits


# --------------------------- parameter init --------------------------------

def _bn(c):
    return dict(gamma=jnp.ones((c,), jnp.float32),
                beta=jnp.zeros((c,), jnp.float32),
                mean=jnp.zeros((c,), jnp.float32),
                var=jnp.ones((c,), jnp.float32))


def _conv_w(key, c_out, c_in, k):
    # kaiming_normal_, mode='fan_out', nonlinearity='relu'
    fan_out = c_out * k * k
    std = (2.0 / fan_out) ** 0.5
    return jax.random.normal(key, (c_out, c_in, k, k), jnp.float32) * std


def _linear(key, out_f, in_f):
    k1, k2 = jax.random.split(key)
    bound = 1.0 / (in_f ** 0.5)
    w = jax.random.uniform(k1, (out_f, in_f), jnp.float32, -bound, bound)
    b = jax.random.uniform(k2, (out_f,), jnp.float32, -bound, bound)
    return w, b


def _block_params(key, c_in, c_out, is_downsample):
    k1, k2, k3 = jax.random.split(key, 3)
    has_ds = is_downsample or (c_in != c_out)
    p = dict(conv1_w=_conv_w(k1, c_out, c_in, 3), bn1=_bn(c_out),
             conv2_w=_conv_w(k2, c_out, c_out, 3), bn2=_bn(c_out),
             stride=2 if is_downsample else 1,
             has_downsample=has_ds)
    if has_ds:
        p['ds_w'] = _conv_w(k3, c_out, c_in, 1)
        p['ds_bn'] = _bn(c_out)
    return p


def _make_layer(key, c_in, c_out, repeat, is_downsample):
    keys = jax.random.split(key, repeat)
    blocks = [_block_params(keys[0], c_in, c_out, is_downsample)]
    for i in range(1, repeat):
        blocks.append(_block_params(keys[i], c_out, c_out, False))
    return blocks


def init_params(key, num_classes=751):
    keys = jax.random.split(key, 8)
    params = dict(
        conv0_w=_conv_w(keys[0], 64, 3, 3),
        conv0_bn=_bn(64),
        layer1=_make_layer(keys[1], 64, 64, 2, False),
        layer2=_make_layer(keys[2], 64, 128, 2, True),
        layer3=_make_layer(keys[3], 128, 256, 2, True),
        layer4=_make_layer(keys[4], 256, 512, 2, True),
        bn_fc=_bn(256),
    )
    params['fc1_w'], params['fc1_b'] = _linear(keys[5], 256, 512)
    params['fc2_w'], params['fc2_b'] = _linear(keys[6], num_classes, 256)
    return params


# --------------------------------- main -------------------------------------

if __name__ == "__main__":
    key = jax.random.PRNGKey(0)
    pkey, xkey = jax.random.split(key)
    params = init_params(pkey, num_classes=751)
    # The fixed AvgPool2d((16, 8)) kernel in WideResnet implies a 256x128 input
    # (four spatial halvings -> 16x8).  Batch kept small.
    x = jax.random.normal(xkey, (2, 3, 256, 128), jnp.float32)
    logits = wide_resnet_forward(params, x, reid=False)
    logits = jax.block_until_ready(logits)
    assert logits.shape == (2, 751), logits.shape
    assert bool(jnp.all(jnp.isfinite(logits)))
    print("KERNEL_OK")
</pallas_src>

<mosaic_0001>
module attributes {stable_mosaic.version = 11 : i64} {
  func.func @_mm_kernel(%arg0: i32, %arg1: i32, %arg2: i32, %arg3: memref<4096x27xbf16, #tpu.memory_space<vmem>>, %arg4: memref<27x64xbf16, #tpu.memory_space<vmem>>, %arg5: memref<1x64xf32, #tpu.memory_space<vmem>>, %arg6: memref<1x64xf32, #tpu.memory_space<vmem>>, %arg7: memref<4096x64xbf16, #tpu.memory_space<vmem>>, %arg8: memref<4096x64xf32, #tpu.memory_space<vmem>>) attributes {dimension_semantics = [#tpu.dimension_semantics<parallel>, #tpu.dimension_semantics<parallel>, #tpu.dimension_semantics<arbitrary>], iteration_bounds = array<i64: 16, 1, 1>, scalar_prefetch = 0 : i64, scratch_operands = 1 : i64, tpu.core_type = #tpu.core_type<tc>, window_params = [{transform_indices = @transform_0, window_bounds = array<i64: 4096, 27>}, {transform_indices = @transform_1, window_bounds = array<i64: 27, 64>}, {transform_indices = @transform_2, window_bounds = array<i64: 1, 64>}, {transform_indices = @transform_3, window_bounds = array<i64: 1, 64>}, {transform_indices = @transform_4, window_bounds = array<i64: 4096, 64>}]} {
    %c0_i32 = arith.constant 0 : i32
    %0 = arith.cmpi eq, %arg2, %c0_i32 : i32
    %1 = arith.extui %0 : i1 to i32
    %c0_i32_0 = arith.constant 0 : i32
    %2 = arith.cmpi ne, %1, %c0_i32_0 : i32
    scf.if %2 {
      %cst_10 = arith.constant 0.000000e+00 : f32
      %12 = vector.broadcast %cst_10 : f32 to vector<4096x64xf32>
      %c0_11 = arith.constant 0 : index
      %c0_12 = arith.constant 0 : index
      %13 = vector.load %arg8[%c0_11, %c0_12] : memref<4096x64xf32, #tpu.memory_space<vmem>>, vector<4096x64xf32>
      tpu.vector_store %arg8[%c0_11, %c0_12], %12 {strides = array<i32>} : memref<4096x64xf32, #tpu.memory_space<vmem>>, vector<4096x64xf32>,
    } else {
    }
    %c0 = arith.constant 0 : index
    %c0_1 = arith.constant 0 : index
    %3 = vector.load %arg8[%c0, %c0_1] : memref<4096x64xf32, #tpu.memory_space<vmem>>, vector<4096x64xf32>
    %c0_2 = arith.constant 0 : index
    %c0_3 = arith.constant 0 : index
    %4 = vector.load %arg3[%c0_2, %c0_3] : memref<4096x27xbf16, #tpu.memory_space<vmem>>, vector<4096x27xbf16>
    %c0_4 = arith.constant 0 : index
    %c0_5 = arith.constant 0 : index
    %5 = vector.load %arg4[%c0_4, %c0_5] : memref<27x64xbf16, #tpu.memory_space<vmem>>, vector<27x64xbf16>
    %cst = arith.constant dense<0.000000e+00> : vector<4096x64xf32>
    %6 = tpu.matmul %4, %5, %cst {dimension_numbers = #tpu.dot_dimension_numbers<[1], [0], [0], [1], [0, 0, 1, 1], [], []>} : vector<4096x27xbf16>, vector<27x64xbf16>, vector<4096x64xf32> -> vector<4096x64xf32>
    %7 = arith.addf %3, %6 : vector<4096x64xf32>
    %c0_6 = arith.constant 0 : index
    %c0_7 = arith.constant 0 : index
    %8 = vector.load %arg8[%c0_6, %c0_7] : memref<4096x64xf32, #tpu.memory_space<vmem>>, vector<4096x64xf32>
    tpu.vector_store %arg8[%c0_6, %c0_7], %7 {strides = array<i32>} : memref<4096x64xf32, #tpu.memory_space<vmem>>, vector<4096x64xf32>,
    %c0_i32_8 = arith.constant 0 : i32
    %9 = arith.cmpi eq, %arg2, %c0_i32_8 : i32
    %10 = arith.extui %9 : i1 to i32
    %c0_i32_9 = arith.constant 0 : i32
    %11 = arith.cmpi ne, %10, %c0_i32_9 : i32
    scf.if %11 {
      %c0_10 = arith.constant 0 : index
      %c0_11 = arith.constant 0 : index
      %12 = vector.load %arg8[%c0_10, %c0_11] : memref<4096x64xf32, #tpu.memory_space<vmem>>, vector<4096x64xf32>
      %c0_12 = arith.constant 0 : index
      %c0_13 = arith.constant 0 : index
      %13 = vector.load %arg5[%c0_12, %c0_13] : memref<1x64xf32, #tpu.memory_space<vmem>>, vector<1x64xf32>
      %14 = vector.broadcast %13 : vector<1x64xf32> to vector<4096x64xf32>
      %15 = arith.mulf %12, %14 : vector<4096x64xf32>
      %c0_14 = arith.constant 0 : index
      %c0_15 = arith.constant 0 : index
      %16 = vector.load %arg6[%c0_14, %c0_15] : memref<1x64xf32, #tpu.memory_space<vmem>>, vector<1x64xf32>
      %17 = vector.broadcast %16 : vector<1x64xf32> to vector<4096x64xf32>
      %18 = arith.addf %15, %17 : vector<4096x64xf32>
      %cst_16 = arith.constant 0.000000e+00 : f32
      %19 = vector.broadcast %cst_16 : f32 to vector<4096x64xf32>
      %20 = arith.maximumf %18, %19 : vector<4096x64xf32>
      %21 = arith.truncf %20 : vector<4096x64xf32> to vector<4096x64xbf16>
      %c0_17 = arith.constant 0 : index
      %c0_18 = arith.constant 0 : index
      %22 = vector.load %arg7[%c0_17, %c0_18] : memref<4096x64xbf16, #tpu.memory_space<vmem>>, vector<4096x64xbf16>
      tpu.vector_store %arg7[%c0_17, %c0_18], %21 {strides = array<i32>} : memref<4096x64xbf16, #tpu.memory_space<vmem>>, vector<4096x64xbf16>,
    } else {
    }
    return
  }
  func.func @transform_0(%arg0: i32, %arg1: i32, %arg2: i32) -> (i32, i32) {
    %c0_i32 = arith.constant 0 : i32
    return %arg0, %arg2 : i32, i32
  }
  func.func @transform_1(%arg0: i32, %arg1: i32, %arg2: i32) -> (i32, i32) {
    %c0_i32 = arith.constant 0 : i32
    return %arg2, %arg1 : i32, i32
  }
  func.func @transform_2(%arg0: i32, %arg1: i32, %arg2: i32) -> (i32, i32) {
    %c0_i32 = arith.constant 0 : i32
    %c0_i32_0 = arith.constant 0 : i32
    return %c0_i32, %arg1 : i32, i32
  }
  func.func @transform_3(%arg0: i32, %arg1: i32, %arg2: i32) -> (i32, i32) {
    %c0_i32 = arith.constant 0 : i32
    %c0_i32_0 = arith.constant 0 : i32
    return %c0_i32, %arg1 : i32, i32
  }
  func.func @transform_4(%arg0: i32, %arg1: i32, %arg2: i32) -> (i32, i32) {
    %c0_i32 = arith.constant 0 : i32
    return %arg0, %arg1 : i32, i32
  }
}

</mosaic_0001>

<bundles_post_ra>
// kernel: tpu_custom_call.1
= control target key start
LH: loop header
LB: loop body
LE: loop exit
PB: predicated region body
PF: predicated region fallthrough
CT: control target
= control target key end

     0   :  { %s11101_s15 = smov 0   ;;  %s11103_s16 = smov 0   ;;  %s16855_s0 = inlined_call_operand.vmem [shape: bf16[65536,27], index: 0, kind: input, shape index: {}]   ;;  %s16856_s1 = inlined_call_operand.vmem [shape: bf16[27,64], index: 1, kind: input, shape index: {}]   ;;  %s16857_s2 = inlined_call_operand.vmem [shape: f32[1,64], index: 2, kind: input, shape index: {}]   ;;  %s16858_s3 = inlined_call_operand.vmem [shape: f32[1,64], index: 3, kind: input, shape index: {}]   ;;  %s16859_s4 = inlined_call_operand.vmem [shape: bf16[65536,64], index: 4, kind: output, shape index: {}]  }
   0x1   :  { %s11105_s17 = smov 0  }
   0x2 LB: > { %s33_s18 = sadd.s32 1, %s11068_s16  ;;  %p9441_p0 = scmp.ge.s32.totalorder %s11072_s17, 1  ;;  %s11072_s17 = sphi %s11105_s17, %s14_s17   ;;  %s11068_s16 = sphi %s11103_s16, %s16861_s16   ;;  %s11064_s15 = sphi %s11101_s15, %s16860_s15  }
   0x3   : > { %p35_p1 = scmp.ge.s32.totalorder %s33_s18, 16  ;;  %p221_p2 = scmp.lt.s32.totalorder %s11072_s17, 17 }
   0x5   : > { %s16863_s18 = smov (%p35_p1, %s33_s18), 0  ;;  %p222_p3 = pnand %p9441_p0, %p221_p2 }
   0x6   : > { %s9442_s23 = sshll.u32 (!%p222_p3), %s11064_s15, 9 }
   0x7   : > { %225 = sbr.rel (%p222_p3) target bundleno = 1552 (0x610), region = 36  ;;  %p268_p4 = scmp.lt.s32.totalorder (!%p222_p3), %s9442_s23, 8191 }
   0xc   : > { %v10476_v0 = vld [vmem:[%s16856_s1 + $0x8] sm:$0xf]  ;;  %v10993_v1 = vld [vmem:[%s16856_s1 + $0x8] sm:$0x30]  ;;  %vm3906_vm0 = vcmask 1044480   ;;  %vm3907_vm1 = vcmask 1045504  }
   0xd   : > { %v10477_v2 = vor.u32 %v10993_v1, %v10476_v0  ;;  %v11074_v3 = vmov 65535   ;;  %s16865_s23 = smov (!%p268_p4, %s9442_s23), 8191  ;;  %v10992_v7 = vld [vmem:[%s16856_s1] sm:$0xff]  ;;  %vm3137_vm2 = vcmask 220160   ;;  %vm305_vm3 = vcmask 523264  }
   0xe   : > { %v3908_v4 = vsel %vm3906_vm0, 4294967295, %v11074_v3  ;;  %s9443_s26 = sshll.u32 %s16865_s23, 2  ;;  %v11075_v32 = vmov 0.0   ;;  %v11026_v44 = vld [vmem:[%s16857_s2] ss:$0 sm:$0xff]  ;;  %vm8798_vm4 = vcmask 519168  }
   0xf   : > { %v3909_v5 = vsel %vm3907_vm1, %v3908_v4, 0  ;;  %s11136_s29 = scalar_lea.vmem %s16855_s0, %s9443_s26  ;;  %306 = vst.msk [vmem:[#allocation2] sm:$0xff] %vm305_vm3, %v11075_v32  ;;  %v11027_v45 = vld [vmem:[%s16858_s3] ss:$0 sm:$0xff]  ;;  %s11330_s10 = scalar_lea.vmem %s16859_s4, %s9443_s26 }
  0x10   : > { %v3911_v6 = vand.u32 %v10477_v2, %v3909_v5  ;;  %v10736_v8 = vld [vmem:[%s11136_s29] sm:$0xff]  ;;  %v10737_v12 = vld [vmem:[%s11136_s29 + $0x8] sm:$0xff]  ;;  %v10738_v16 = vld [vmem:[%s11136_s29 + $0x10] sm:$0xff]  ;;  %307 = vst.msk [vmem:[#allocation2 + $0x8] sm:$0xff] %vm305_vm3, %v11075_v32 }
  0x11   : > { %v10800_v9 = vld [vmem:[%s11136_s29 + $0x200] sm:$0xff]  ;;  %v10801_v13 = vld [vmem:[%s11136_s29 + $0x208] sm:$0xff]  ;;  %v10802_v17 = vld [vmem:[%s11136_s29 + $0x210] sm:$0xff]  ;;  %308 = vst.msk [vmem:[#allocation2 + $0x10] sm:$0xff] %vm305_vm3, %v11075_v32 }
  0x12   : > { %3919 = vmatpush.bf16.msra.mxu0 %v3911_v6  ;;  %10994 = vmatpush.bf16.msra.mxu1 %v3911_v6  ;;  %v10864_v10 = vld [vmem:[%s11136_s29 + $0x400] sm:$0xff]  ;;  %v10865_v14 = vld [vmem:[%s11136_s29 + $0x408] sm:$0xff]  ;;  %v10866_v18 = vld [vmem:[%s11136_s29 + $0x410] sm:$0xff]  ;;  %309 = vst.msk [vmem:[#allocation2 + $0x18] sm:$0xff] %vm305_vm3, %v11075_v32 }
  0x13   : > { %10995 = vmatpush.bf16.msra.mxu2 %v3911_v6  ;;  %10996 = vmatpush.bf16.msra.mxu3 %v3911_v6  ;;  %v10928_v11 = vld [vmem:[%s11136_s29 + $0x600] sm:$0xff]  ;;  %v10929_v15 = vld [vmem:[%s11136_s29 + $0x608] sm:$0xff]  ;;  %v10930_v19 = vld [vmem:[%s11136_s29 + $0x610] sm:$0xff]  ;;  %310 = vst.msk [vmem:[#allocation2 + $0x20] sm:$0xff] %vm305_vm3, %v11075_v32 }
  0x14   : > { %v10739_v20 = vld [vmem:[%s11136_s29 + $0x18] sm:$0xff]  ;;  %v10740_v24 = vld [vmem:[%s11136_s29 + $0x20] sm:$0xff]  ;;  %v10741_v28 = vld [vmem:[%s11136_s29 + $0x28] sm:$0xff]  ;;  %311 = vst.msk [vmem:[#allocation2 + $0x28] sm:$0xff] %vm305_vm3, %v11075_v32 }
  0x15   : > { %v10803_v21 = vld [vmem:[%s11136_s29 + $0x218] sm:$0xff]  ;;  %v10804_v25 = vld [vmem:[%s11136_s29 + $0x220] sm:$0xff]  ;;  %v10805_v29 = vld [vmem:[%s11136_s29 + $0x228] sm:$0xff]  ;;  %312 = vst.msk [vmem:[#allocation2 + $0x30] sm:$0xff] %vm305_vm3, %v11075_v32 }
  0x16   : > { %3920 = vmatpush.bf16.msra.mxu0 %v10992_v7  ;;  %10997 = vmatpush.bf16.msra.mxu1 %v10992_v7  ;;  %v10867_v22 = vld [vmem:[%s11136_s29 + $0x418] sm:$0xff]  ;;  %v10868_v26 = vld [vmem:[%s11136_s29 + $0x420] sm:$0xff]  ;;  %v10869_v30 = vld [vmem:[%s11136_s29 + $0x428] sm:$0xff]  ;;  %313 = vst.msk [vmem:[#allocation2 + $0x38] sm:$0xff] %vm305_vm3, %v11075_v32 }
  0x17   : > { %10998 = vmatpush.bf16.msra.mxu2 %v10992_v7  ;;  %10999 = vmatpush.bf16.msra.mxu3 %v10992_v7  ;;  %v10931_v23 = vld [vmem:[%s11136_s29 + $0x618] sm:$0xff]  ;;  %v10932_v27 = vld [vmem:[%s11136_s29 + $0x620] sm:$0xff]  ;;  %v10933_v31 = vld [vmem:[%s11136_s29 + $0x628] sm:$0xff]  ;;  %314 = vst.msk [vmem:[#allocation2 + $0x40] sm:$0xff] %vm305_vm3, %v11075_v32 }
  0x18   : > { %315 = vst.msk [vmem:[#allocation2 + $0x48] sm:$0xff] %vm305_vm3, %v11075_v32  ;;  %v10742_v33 = vld [vmem:[%s11136_s29 + $0x30] sm:$0xff]  ;;  %v10743_v37 = vld [vmem:[%s11136_s29 + $0x38] sm:$0xff]  ;;  %v818_v41 = vld [vmem:[#allocation2] sm:$0xff] }
  0x19   : > { %10478 = vmatmul.msk.bf16.vlgmr.msra.gmra.mxu0 %vm3137_vm2, %v10736_v8  ;;  %10542 = vmatmul.msk.bf16.vlgmr.msra.gmra.mxu1 %vm3137_vm2, %v10800_v9  ;;  %v10806_v34 = vld [vmem:[%s11136_s29 + $0x230] sm:$0xff]  ;;  %316 = vst.msk [vmem:[#allocation2 + $0x50] sm:$0xff] %vm305_vm3, %v11075_v32  ;;  %v10807_v38 = vld [vmem:[%s11136_s29 + $0x238] sm:$0xff]  ;;  %v10744_v52 = vld [vmem:[%s11136_s29 + $0x40] sm:$0xff] }
  0x1a   : > { %10606 = vmatmul.msk.bf16.vlgmr.msra.gmra.mxu2 %vm3137_vm2, %v10864_v10  ;;  %10670 = vmatmul.msk.bf16.vlgmr.msra.gmra.mxu3 %vm3137_vm2, %v10928_v11  ;;  %v10870_v35 = vld [vmem:[%s11136_s29 + $0x430] sm:$0xff]  ;;  %317 = vst.msk [vmem:[#allocation2 + $0x58] sm:$0xff] %vm305_vm3, %v11075_v32  ;;  %v10871_v39 = vld [vmem:[%s11136_s29 + $0x438] sm:$0xff]  ;;  %v10808_v53 = vld [vmem:[%s11136_s29 + $0x240] sm:$0xff] }
  0x1b   : > { %v10934_v36 = vld [vmem:[%s11136_s29 + $0x630] sm:$0xff]  ;;  %318 = vst.msk [vmem:[#allocation2 + $0x60] sm:$0xff] %vm305_vm3, %v11075_v32  ;;  %v10935_v40 = vld [vmem:[%s11136_s29 + $0x638] sm:$0xff]  ;;  %v10872_v54 = vld [vmem:[%s11136_s29 + $0x440] sm:$0xff] }
  0x1c   : > { %319 = vst.msk [vmem:[#allocation2 + $0x68] sm:$0xff] %vm305_vm3, %v11075_v32  ;;  %v10936_v55 = vld [vmem:[%s11136_s29 + $0x640] sm:$0xff]  ;;  %v10745_v0 = vld [vmem:[%s11136_s29 + $0x48] sm:$0xff] }
  0x1d   : > { %320 = vst.msk [vmem:[#allocation2 + $0x70] sm:$0xff] %vm305_vm3, %v11075_v32  ;;  %v10809_v1 = vld [vmem:[%s11136_s29 + $0x248] sm:$0xff] }
  0x1e   : > { %321 = vst.msk [vmem:[#allocation2 + $0x78] sm:$0xff] %vm305_vm3, %v11075_v32  ;;  %v10873_v2 = vld [vmem:[%s11136_s29 + $0x448] sm:$0xff] }
  0x1f   : > { %322 = vst.msk [vmem:[#allocation2 + $0x80] sm:$0xff] %vm305_vm3, %v11075_v32  ;;  %v10937_v3 = vld [vmem:[%s11136_s29 + $0x648] sm:$0xff] }
  0x20   : > { %323 = vst.msk [vmem:[#allocation2 + $0x88] sm:$0xff] %vm305_vm3, %v11075_v32 }
  0x21   : > { %324 = vst.msk [vmem:[#allocation2 + $0x90] sm:$0xff] %vm305_vm3, %v11075_v32 }
  0x22   : > { %325 = vst.msk [vmem:[#allocation2 + $0x98] sm:$0xff] %vm305_vm3, %v11075_v32 }
  0x23   : > { %326 = vst.msk [vmem:[#allocation2 + $0xa0] sm:$0xff] %vm305_vm3, %v11075_v32 }
  0x24   : > { %327 = vst.msk [vmem:[#allocation2 + $0xa8] sm:$0xff] %vm305_vm3, %v11075_v32 }
  0x25   : > { %328 = vst.msk [vmem:[#allocation2 + $0xb0] sm:$0xff] %vm305_vm3, %v11075_v32 }
  0x26   : > { %329 = vst.msk [vmem:[#allocation2 + $0xb8] sm:$0xff] %vm305_vm3, %v11075_v32 }
  0x27   : > { %330 = vst.msk [vmem:[#allocation2 + $0xc0] sm:$0xff] %vm305_vm3, %v11075_v32 }
  0x28   : > { %331 = vst.msk [vmem:[#allocation2 + $0xc8] sm:$0xff] %vm305_vm3, %v11075_v32 }
  0x29   : > { %10479 = vmatmul.msk.bf16.gmra.mxu0 %vm3137_vm2, %v10737_v12  ;;  %10543 = vmatmul.msk.bf16.gmra.mxu1 %vm3137_vm2, %v10801_v13  ;;  %332 = vst.msk [vmem:[#allocation2 + $0xd0] sm:$0xff] %vm305_vm3, %v11075_v32 }
  0x2a   : > { %10607 = vmatmul.msk.bf16.gmra.mxu2 %vm3137_vm2, %v10865_v14  ;;  %10671 = vmatmul.msk.bf16.gmra.mxu3 %vm3137_vm2, %v10929_v15  ;;  %333 = vst.msk [vmem:[#allocation2 + $0xd8] sm:$0xff] %vm305_vm3, %v11075_v32  ;;  %v10746_v14 = vld [vmem:[%s11136_s29 + $0x50] sm:$0xff] }
  0x2b   : > { %334 = vst.msk [vmem:[#allocation2 + $0xe0] sm:$0xff] %vm305_vm3, %v11075_v32  ;;  %v10810_v15 = vld [vmem:[%s11136_s29 + $0x250] sm:$0xff] }
  0x2c   : > { %335 = vst.msk [vmem:[#allocation2 + $0xe8] sm:$0xff] %vm305_vm3, %v11075_v32 }
  0x2d   : > { %336 = vst.msk [vmem:[#allocation2 + $0xf0] sm:$0xff] %vm305_vm3, %v11075_v32 }
  0x2e   : > { %337 = vst.msk [vmem:[#allocation2 + $0xf8] sm:$0xff] %vm305_vm3, %v11075_v32 }
  0x2f   : > { %338 = vst.msk [vmem:[#allocation2 + $0x100] sm:$0xff] %vm305_vm3, %v11075_v32 }
  0x30   : > { %339 = vst.msk [vmem:[#allocation2 + $0x108] sm:$0xff] %vm305_vm3, %v11075_v32 }
  0x31   : > { %340 = vst.msk [vmem:[#allocation2 + $0x110] sm:$0xff] %vm305_vm3, %v11075_v32 }
  0x32   : > { %341 = vst.msk [vmem:[#allocation2 + $0x118] sm:$0xff] %vm305_vm3, %v11075_v32 }
  0x33   : > { %342 = vst.msk [vmem:[#allocation2 + $0x120] sm:$0xff] %vm305_vm3, %v11075_v32 }
  0x34   : > { %343 = vst.msk [vmem:[#allocation2 + $0x128] sm:$0xff] %vm305_vm3, %v11075_v32 }
  0x35   : > { %344 = vst.msk [vmem:[#allocation2 + $0x130] sm:$0xff] %vm305_vm3, %v11075_v32 }
  0x36   : > { %345 = vst.msk [vmem:[#allocation2 + $0x138] sm:$0xff] %vm305_vm3, %v11075_v32 }
  0x37   : > { %346 = vst.msk [vmem:[#allocation2 + $0x140] sm:$0xff] %vm305_vm3, %v11075_v32 }
  0x38   : > { %347 = vst.msk [vmem:[#allocation2 + $0x148] sm:$0xff] %vm305_vm3, %v11075_v32 }
  0x39   : > { %10480 = vmatmul.msk.bf16.gmra.mxu0 %vm3137_vm2, %v10738_v16  ;;  %10544 = vmatmul.msk.bf16.gmra.mxu1 %vm3137_vm2, %v10802_v17  ;;  %348 = vst.msk [vmem:[#allocation2 + $0x150] sm:$0xff] %vm305_vm3, %v11075_v32  ;;  %v10874_v16 = vld [vmem:[%s11136_s29 + $0x450] sm:$0xff] }
  0x3a   : > { %10608 = vmatmul.msk.bf16.gmra.mxu2 %vm3137_vm2, %v10866_v18  ;;  %10672 = vmatmul.msk.bf16.gmra.mxu3 %vm3137_vm2, %v10930_v19  ;;  %349 = vst.msk [vmem:[#allocation2 + $0x158] sm:$0xff] %vm305_vm3, %v11075_v32  ;;  %v10938_v18 = vld [vmem:[%s11136_s29 + $0x650] sm:$0xff] }
  0x3b   : > { %350 = vst.msk [vmem:[#allocation2 + $0x160] sm:$0xff] %vm305_vm3, %v11075_v32 }
  0x3c   : > { %351 = vst.msk [vmem:[#allocation2 + $0x168] sm:$0xff] %vm305_vm3, %v11075_v32 }
  0x3d   : > { %352 = vst.msk [vmem:[#allocation2 + $0x170] sm:$0xff] %vm305_vm3, %v11075_v32 }
  0x3e   : > { %353 = vst.msk [vmem:[#allocation2 + $0x178] sm:$0xff] %vm305_vm3, %v11075_v32 }
  0x3f   : > { %354 = vst.msk [vmem:[#allocation2 + $0x180] sm:$0xff] %vm305_vm3, %v11075_v32 }
  0x40   : > { %355 = vst.msk [vmem:[#allocation2 + $0x188] sm:$0xff] %vm305_vm3, %v11075_v32 }
  0x41   : > { %356 = vst.msk [vmem:[#allocation2 + $0x190] sm:$0xff] %vm305_vm3, %v11075_v32 }
  0x42   : > { %357 = vst.msk [vmem:[#allocation2 + $0x198] sm:$0xff] %vm305_vm3, %v11075_v32 }
  0x43   : > { %358 = vst.msk [vmem:[#allocation2 + $0x1a0] sm:$0xff] %vm305_vm3, %v11075_v32 }
  0x44   : > { %359 = vst.msk [vmem:[#allocation2 + $0x1a8] sm:$0xff] %vm305_vm3, %v11075_v32 }
  0x45   : > { %360 = vst.msk [vmem:[#allocation2 + $0x1b0] sm:$0xff] %vm305_vm3, %v11075_v32 }
  0x46   : > { %361 = vst.msk [vmem:[#allocation2 + $0x1b8] sm:$0xff] %vm305_vm3, %v11075_v32 }
  0x47   : > { %362 = vst.msk [vmem:[#allocation2 + $0x1c0] sm:$0xff] %vm305_vm3, %v11075_v32 }
  0x48   : > { %363 = vst.msk [vmem:[#allocation2 + $0x1c8] sm:$0xff] %vm305_vm3, %v11075_v32 }
  0x49   : > { %10481 = vmatmul.msk.bf16.gmra.mxu0 %vm3137_vm2, %v10739_v20  ;;  %10545 = vmatmul.msk.bf16.gmra.mxu1 %vm3137_vm2, %v10803_v21  ;;  %364 = vst.msk [vmem:[#allocation2 + $0x1d0] sm:$0xff] %vm305_vm3, %v11075_v32  ;;  %v819_v20 = vld [vmem:[#allocation2 + $0x8] sm:$0xff] }
  0x4a   : > { %10609 = vmatmul.msk.bf16.gmra.mxu2 %vm3137_vm2, %v10867_v22  ;;  %10673 = vmatmul.msk.bf16.gmra.mxu3 %vm3137_vm2, %v10931_v23  ;;  %365 = vst.msk [vmem:[#allocation2 + $0x1d8] sm:$0xff] %vm305_vm3, %v11075_v32 }
  0x4b   : > { %366 = vst.msk [vmem:[#allocation2 + $0x1e0] sm:$0xff] %vm305_vm3, %v11075_v32 }
  0x4c   : > { %367 = vst.msk [vmem:[#allocation2 + $0x1e8] sm:$0xff] %vm305_vm3, %v11075_v32 }
  0x4d   : > { %368 = vst.msk [vmem:[#allocation2 + $0x1f0] sm:$0xff] %vm305_vm3, %v11075_v32 }
  0x4e   : > { %369 = vst.msk [vmem:[#allocation2 + $0x1f8] sm:$0xff] %vm305_vm3, %v11075_v32 }
  0x4f   : > { %370 = vst.msk [vmem:[#allocation2 + $0x200] sm:$0xff] %vm305_vm3, %v11075_v32 }
  0x50   : > { %371 = vst.msk [vmem:[#allocation2 + $0x208] sm:$0xff] %vm305_vm3, %v11075_v32 }
  0x51   : > { %372 = vst.msk [vmem:[#allocation2 + $0x210] sm:$0xff] %vm305_vm3, %v11075_v32 }
  0x52   : > { %373 = vst.msk [vmem:[#allocation2 + $0x218] sm:$0xff] %vm305_vm3, %v11075_v32 }
  0x53   : > { %374 = vst.msk [vmem:[#allocation2 + $0x220] sm:$0xff] %vm305_vm3, %v11075_v32 }
  0x54   : > { %375 = vst.msk [vmem:[#allocation2 + $0x228] sm:$0xff] %vm305_vm3, %v11075_v32 }
  0x55   : > { %376 = vst.msk [vmem:[#allocation2 + $0x230] sm:$0xff] %vm305_vm3, %v11075_v32 }
  0x56   : > { %377 = vst.msk [vmem:[#allocation2 + $0x238] sm:$0xff] %vm305_vm3, %v11075_v32 }
  0x57   : > { %378 = vst.msk [vmem:[#allocation2 + $0x240] sm:$0xff] %vm305_vm3, %v11075_v32 }
  0x58   : > { %379 = vst.msk [vmem:[#allocation2 + $0x248] sm:$0xff] %vm305_vm3, %v11075_v32 }
  0x59   : > { %10482 = vmatmul.msk.bf16.gmra.mxu0 %vm3137_vm2, %v10740_v24  ;;  %10546 = vmatmul.msk.bf16.gmra.mxu1 %vm3137_vm2, %v10804_v25  ;;  %380 = vst.msk [vmem:[#allocation2 + $0x250] sm:$0xff] %vm305_vm3, %v11075_v32 }
  0x5a   : > { %10610 = vmatmul.msk.bf16.gmra.mxu2 %vm3137_vm2, %v10868_v26  ;;  %10674 = vmatmul.msk.bf16.gmra.mxu3 %vm3137_vm2, %v10932_v27  ;;  %381 = vst.msk [vmem:[#allocation2 + $0x258] sm:$0xff] %vm305_vm3, %v11075_v32 }
  0x5b   : > { %382 = vst.msk [vmem:[#allocation2 + $0x260] sm:$0xff] %vm305_vm3, %v11075_v32 }
  0x5c   : > { %383 = vst.msk [vmem:[#allocation2 + $0x268] sm:$0xff] %vm305_vm3, %v11075_v32 }
  0x5d   : > { %384 = vst.msk [vmem:[#allocation2 + $0x270] sm:$0xff] %vm305_vm3, %v11075_v32 }
  0x5e   : > { %385 = vst.msk [vmem:[#allocation2 + $0x278] sm:$0xff] %vm305_vm3, %v11075_v32 }
  0x5f   : > { %386 = vst.msk [vmem:[#allocation2 + $0x280] sm:$0xff] %vm305_vm3, %v11075_v32 }
  0x60   : > { %387 = vst.msk [vmem:[#allocation2 + $0x288] sm:$0xff] %vm305_vm3, %v11075_v32 }
  0x61   : > { %388 = vst.msk [vmem:[#allocation2 + $0x290] sm:$0xff] %vm305_vm3, %v11075_v32 }
  0x62   : > { %389 = vst.msk [vmem:[#allocation2 + $0x298] sm:$0xff] %vm305_vm3, %v11075_v32 }
  0x63   : > { %390 = vst.msk [vmem:[#allocation2 + $0x2a0] sm:$0xff] %vm305_vm3, %v11075_v32 }
  0x64   : > { %391 = vst.msk [vmem:[#allocation2 + $0x2a8] sm:$0xff] %vm305_vm3, %v11075_v32 }
  0x65   : > { %392 = vst.msk [vmem:[#allocation2 + $0x2b0] sm:$0xff] %vm305_vm3, %v11075_v32 }
  0x66   : > { %393 = vst.msk [vmem:[#allocation2 + $0x2b8] sm:$0xff] %vm305_vm3, %v11075_v32 }
  0x67   : > { %394 = vst.msk [vmem:[#allocation2 + $0x2c0] sm:$0xff] %vm305_vm3, %v11075_v32 }
  0x68   : > { %395 = vst.msk [vmem:[#allocation2 + $0x2c8] sm:$0xff] %vm305_vm3, %v11075_v32 }
  0x69   : > { %10483 = vmatmul.msk.bf16.gmra.mxu0 %vm3137_vm2, %v10741_v28  ;;  %10547 = vmatmul.msk.bf16.gmra.mxu1 %vm3137_vm2, %v10805_v29  ;;  %396 = vst.msk [vmem:[#allocation2 + $0x2d0] sm:$0xff] %vm305_vm3, %v11075_v32 }
  0x6a   : > { %10611 = vmatmul.msk.bf16.gmra.mxu2 %vm3137_vm2, %v10869_v30  ;;  %10675 = vmatmul.msk.bf16.gmra.mxu3 %vm3137_vm2, %v10933_v31  ;;  %397 = vst.msk [vmem:[#allocation2 + $0x2d8] sm:$0xff] %vm305_vm3, %v11075_v32  ;;  %v820_v30 = vld [vmem:[#allocation2 + $0x10] sm:$0xff] }
  0x6b   : > { %398 = vst.msk [vmem:[#allocation2 + $0x2e0] sm:$0xff] %vm305_vm3, %v11075_v32 }
  0x6c   : > { %399 = vst.msk [vmem:[#allocation2 + $0x2e8] sm:$0xff] %vm305_vm3, %v11075_v32 }
  0x6d   : > { %400 = vst.msk [vmem:[#allocation2 + $0x2f0] sm:$0xff] %vm305_vm3, %v11075_v32 }
  0x6e   : > { %401 = vst.msk [vmem:[#allocation2 + $0x2f8] sm:$0xff] %vm305_vm3, %v11075_v32 }
  0x6f   : > { %402 = vst.msk [vmem:[#allocation2 + $0x300] sm:$0xff] %vm305_vm3, %v11075_v32 }
  0x70   : > { %403 = vst.msk [vmem:[#allocation2 + $0x308] sm:$0xff] %vm305_vm3, %v11075_v32 }
  0x71   : > { %404 = vst.msk [vmem:[#allocation2 + $0x310] sm:$0xff] %vm305_vm3, %v11075_v32 }
  0x72   : > { %405 = vst.msk [vmem:[#allocation2 + $0x318] sm:$0xff] %vm305_vm3, %v11075_v32 }
  0x73   : > { %406 = vst.msk [vmem:[#allocation2 + $0x320] sm:$0xff] %vm305_vm3, %v11075_v32 }
  0x74   : > { %407 = vst.msk [vmem:[#allocation2 + $0x328] sm:$0xff] %vm305_vm3, %v11075_v32 }
  0x75   : > { %408 = vst.msk [vmem:[#allocation2 + $0x330] sm:$0xff] %vm305_vm3, %v11075_v32 }
  0x76   : > { %409 = vst.msk [vmem:[#allocation2 + $0x338] sm:$0xff] %vm305_vm3, %v11075_v32 }
  0x77   : > { %410 = vst.msk [vmem:[#allocation2 + $0x340] sm:$0xff] %vm305_vm3, %v11075_v32 }
  0x78   : > { %411 = vst.msk [vmem:[#allocation2 + $0x348] sm:$0xff] %vm305_vm3, %v11075_v32 }
  0x79   : > { %10484 = vmatmul.msk.bf16.gmra.mxu0 %vm3137_vm2, %v10742_v33  ;;  %10548 = vmatmul.msk.bf16.gmra.mxu1 %vm3137_vm2, %v10806_v34  ;;  %412 = vst.msk [vmem:[#allocation2 + $0x350] sm:$0xff] %vm305_vm3, %v11075_v32 }
  0x7a   : > { %10612 = vmatmul.msk.bf16.gmra.mxu2 %vm3137_vm2, %v10870_v35  ;;  %10676 = vmatmul.msk.bf16.gmra.mxu3 %vm3137_vm2, %v10934_v36  ;;  %413 = vst.msk [vmem:[#allocation2 + $0x358] sm:$0xff] %vm305_vm3, %v11075_v32 }
  0x7b   : > { %414 = vst.msk [vmem:[#allocation2 + $0x360] sm:$0xff] %vm305_vm3, %v11075_v32 }
  0x7c   : > { %415 = vst.msk [vmem:[#allocation2 + $0x368] sm:$0xff] %vm305_vm3, %v11075_v32 }
  0x7d   : > { %416 = vst.msk [vmem:[#allocation2 + $0x370] sm:$0xff] %vm305_vm3, %v11075_v32 }
  0x7e   : > { %417 = vst.msk [vmem:[#allocation2 + $0x378] sm:$0xff] %vm305_vm3, %v11075_v32 }
  0x7f   : > { %418 = vst.msk [vmem:[#allocation2 + $0x380] sm:$0xff] %vm305_vm3, %v11075_v32 }
  0x80   : > { %419 = vst.msk [vmem:[#allocation2 + $0x388] sm:$0xff] %vm305_vm3, %v11075_v32 }
  0x81   : > { %420 = vst.msk [vmem:[#allocation2 + $0x390] sm:$0xff] %vm305_vm3, %v11075_v32 }
  0x82   : > { %421 = vst.msk [vmem:[#allocation2 + $0x398] sm:$0xff] %vm305_vm3, %v11075_v32 }
  0x83   : > { %422 = vst.msk [vmem:[#allocation2 + $0x3a0] sm:$0xff] %vm305_vm3, %v11075_v32 }
  0x84   : > { %423 = vst.msk [vmem:[#allocation2 + $0x3a8] sm:$0xff] %vm305_vm3, %v11075_v32 }
  0x85   : > { %424 = vst.msk [vmem:[#allocation2 + $0x3b0] sm:$0xff] %vm305_vm3, %v11075_v32 }
  0x86   : > { %425 = vst.msk [vmem:[#allocation2 + $0x3b8] sm:$0xff] %vm305_vm3, %v11075_v32 }
  0x87   : > { %426 = vst.msk [vmem:[#allocation2 + $0x3c0] sm:$0xff] %vm305_vm3, %v11075_v32 }
  0x88   : > { %427 = vst.msk [vmem:[#allocation2 + $0x3c8] sm:$0xff] %vm305_vm3, %v11075_v32 }
  0x89   : > { %10485 = vmatmul.msk.bf16.gmra.mxu0 %vm3137_vm2, %v10743_v37  ;;  %10549 = vmatmul.msk.bf16.gmra.mxu1 %vm3137_vm2, %v10807_v38  ;;  %428 = vst.msk [vmem:[#allocation2 + $0x3d0] sm:$0xff] %vm305_vm3, %v11075_v32 }
  0x8a   : > { %10613 = vmatmul.msk.bf16.gmra.mxu2 %vm3137_vm2, %v10871_v39  ;;  %10677 = vmatmul.msk.bf16.gmra.mxu3 %vm3137_vm2, %v10935_v40  ;;  %429 = vst.msk [vmem:[#allocation2 + $0x3d8] sm:$0xff] %vm305_vm3, %v11075_v32  ;;  %v821_v40 = vld [vmem:[#allocation2 + $0x18] sm:$0xff] }
  0x8b   : > { %430 = vst.msk [vmem:[#allocation2 + $0x3e0] sm:$0xff] %vm305_vm3, %v11075_v32 }
  0x8c   : > { %431 = vst.msk [vmem:[#allocation2 + $0x3e8] sm:$0xff] %vm305_vm3, %v11075_v32 }
  0x8d   : > { %432 = vst.msk [vmem:[#allocation2 + $0x3f0] sm:$0xff] %vm305_vm3, %v11075_v32 }
  0x8e   : > { %433 = vst.msk [vmem:[#allocation2 + $0x3f8] sm:$0xff] %vm305_vm3, %v11075_v32 }
  0x8f   : > { %434 = vst.msk [vmem:[#allocation2 + $0x400] sm:$0xff] %vm305_vm3, %v11075_v32 }
  0x90   : > { %435 = vst.msk [vmem:[#allocation2 + $0x408] sm:$0xff] %vm305_vm3, %v11075_v32 }
  0x91   : > { %436 = vst.msk [vmem:[#allocation2 + $0x410] sm:$0xff] %vm305_vm3, %v11075_v32 }
  0x92   : > { %437 = vst.msk [vmem:[#allocation2 + $0x418] sm:$0xff] %vm305_vm3, %v11075_v32 }
  0x93   : > { %438 = vst.msk [vmem:[#allocation2 + $0x420] sm:$0xff] %vm305_vm3, %v11075_v32 }
  0x94   : > { %439 = vst.msk [vmem:[#allocation2 + $0x428] sm:$0xff] %vm305_vm3, %v11075_v32 }
  0x95   : > { %440 = vst.msk [vmem:[#allocation2 + $0x430] sm:$0xff] %vm305_vm3, %v11075_v32 }
  0x96   : > { %v3922_v42 = vpop.f32.mrf.mxu0  ;;  %441 = vst.msk [vmem:[#allocation2 + $0x438] sm:$0xff] %vm305_vm3, %v11075_v32  ;;  %v12162_v51 = vpop.f32.mrf.mxu1  ;;  %v946_v10 = vld [vmem:[#allocation2 + $0x400] sm:$0xff] }
  0x97   : > { %v5202_v43 = vadd.f32 %v3922_v42, %v818_v41  ;;  %442 = vst.msk [vmem:[#allocation2 + $0x440] sm:$0xff] %vm305_vm3, %v11075_v32  ;;  %v5330_v19 = vadd.f32 %v12162_v51, %v946_v10  ;;  %v947_v22 = vld [vmem:[#allocation2 + $0x408] sm:$0xff] }
  0x98   : > { %443 = vst.msk [vmem:[#allocation2 + $0x448] sm:$0xff] %vm305_vm3, %v11075_v32  ;;  %v948_v33 = vld [vmem:[#allocation2 + $0x410] sm:$0xff] }
  0x99   : > { %5715 = vst.msk [vmem:[#allocation2] sm:$0xff] %vm305_vm3, %v5202_v43  ;;  %10486 = vmatmul.msk.bf16.gmra.mxu0 %vm3137_vm2, %v10744_v52  ;;  %10550 = vmatmul.msk.bf16.gmra.mxu1 %vm3137_vm2, %v10808_v53  ;;  %v949_v42 = vld [vmem:[#allocation2 + $0x418] sm:$0xff] }
  0x9a   : > { %444 = vst.msk [vmem:[#allocation2 + $0x450] sm:$0xff] %vm305_vm3, %v11075_v32  ;;  %10614 = vmatmul.msk.bf16.gmra.mxu2 %vm3137_vm2, %v10872_v54  ;;  %10678 = vmatmul.msk.bf16.gmra.mxu3 %vm3137_vm2, %v10936_v55  ;;  %v822_v54 = vld [vmem:[#allocation2 + $0x20] sm:$0xff] }
  0x9b   : > { %445 = vst.msk [vmem:[#allocation2 + $0x458] sm:$0xff] %vm305_vm3, %v11075_v32 }
  0x9c   : > { %446 = vst.msk [vmem:[#allocation2 + $0x460] sm:$0xff] %vm305_vm3, %v11075_v32 }
  0x9d   : > { %447 = vst.msk [vmem:[#allocation2 + $0x468] sm:$0xff] %vm305_vm3, %v11075_v32  ;;  %v12184_v56 = vpop.f32.mrf.mxu2  ;;  %v12188_v57 = vpop.f32.mrf.mxu3 }
  0x9e   : > { %448 = vst.msk [vmem:[#allocation2 + $0x470] sm:$0xff] %vm305_vm3, %v11075_v32  ;;  %v12196_v58 = vpop.f32.mrf.mxu0  ;;  %v12198_v59 = vpop.f32.mrf.mxu1 }
  0x9f   : > { %449 = vst.msk [vmem:[#allocation2 + $0x478] sm:$0xff] %vm305_vm3, %v11075_v32  ;;  %v5203_v25 = vadd.f32 %v12196_v58, %v819_v20  ;;  %v5331_v29 = vadd.f32 %v12198_v59, %v947_v22 }
  0xa0   : > { %v6230_v46 = vld [vmem:[#allocation2] sm:$0xff]  ;;  %450 = vst.msk [vmem:[#allocation2 + $0x480] sm:$0xff] %vm305_vm3, %v11075_v32 }
  0xa1   : > { %v6746_v47 = vmul.f32 %v11026_v44, %v6230_v46  ;;  %451 = vst.msk [vmem:[#allocation2 + $0x488] sm:$0xff] %vm305_vm3, %v11075_v32 }
  0xa2   : > { %452 = vst.msk [vmem:[#allocation2 + $0x490] sm:$0xff] %vm305_vm3, %v11075_v32 }
  0xa3   : > { %v7262_v48 = vadd.f32 %v11027_v45, %v6746_v47  ;;  %453 = vst.msk [vmem:[#allocation2 + $0x498] sm:$0xff] %vm305_vm3, %v11075_v32 }
  0xa4   : > { %454 = vst.msk [vmem:[#allocation2 + $0x4a0] sm:$0xff] %vm305_vm3, %v11075_v32 }
  0xa5   : > { %v7774_v49 = vmax.f32 %v7262_v48, 0.0  ;;  %455 = vst.msk [vmem:[#allocation2 + $0x4a8] sm:$0xff] %vm305_vm3, %v11075_v32  ;;  %v12212_v60 = vpop.f32.mrf.mxu2  ;;  %v12214_v61 = vpop.f32.mrf.mxu3 }
  0xa6   : > { %456 = vst.msk [vmem:[#allocation2 + $0x4b0] sm:$0xff] %vm305_vm3, %v11075_v32  ;;  %v12220_v62 = vpop.f32.mrf.mxu0  ;;  %v12222_v63 = vpop.f32.mrf.mxu1 }
  0xa7   : > { %v8286_v50 = vpack.c.bf16 %v7774_v49, %v7774_v49  ;;  %457 = vst.msk [vmem:[#allocation2 + $0x4b8] sm:$0xff] %vm305_vm3, %v11075_v32  ;;  %v5204_v37 = vadd.f32 %v12220_v62, %v820_v30  ;;  %v5332_v39 = vadd.f32 %v12222_v63, %v948_v33 }
  0xa8   : > { %458 = vst.msk [vmem:[#allocation2 + $0x4c0] sm:$0xff] %vm305_vm3, %v11075_v32 }
  0xa9   : > { %8799 = vst.msk [vmem:[%s11330_s10] sm:$0xf] %vm8798_vm4, %v8286_v50  ;;  %10487 = vmatmul.msk.bf16.gmra.mxu0 %vm3137_vm2, %v10745_v0  ;;  %10551 = vmatmul.msk.bf16.gmra.mxu1 %vm3137_vm2, %v10809_v1  ;;  %v12335_v50 = vld [vmem:[%s16857_s2] ss:$0 sm:$0xff]  ;;  %v10747_v1 = vld [vmem:[%s11136_s29 + $0x58] sm:$0xff] }
  0xaa   : > { %459 = vst.msk [vmem:[#allocation2 + $0x4c8] sm:$0xff] %vm305_vm3, %v11075_v32  ;;  %10615 = vmatmul.msk.bf16.gmra.mxu2 %vm3137_vm2, %v10873_v2  ;;  %10679 = vmatmul.msk.bf16.gmra.mxu3 %vm3137_vm2, %v10937_v3  ;;  %v10811_v2 = vld [vmem:[%s11136_s29 + $0x258] sm:$0xff] }
  0xab   : > { %460 = vst.msk [vmem:[#allocation2 + $0x4d0] sm:$0xff] %vm305_vm3, %v11075_v32 }
  0xac   : > { %461 = vst.msk [vmem:[#allocation2 + $0x4d8] sm:$0xff] %vm305_vm3, %v11075_v32 }
  0xad   : > { %462 = vst.msk [vmem:[#allocation2 + $0x4e0] sm:$0xff] %vm305_vm3, %v11075_v32  ;;  %v12244_v4 = vpop.f32.mrf.mxu2  ;;  %v12246_v5 = vpop.f32.mrf.mxu3 }
  0xae   : > { %463 = vst.msk [vmem:[#allocation2 + $0x4e8] sm:$0xff] %vm305_vm3, %v11075_v32  ;;  %v12252_v6 = vpop.f32.mrf.mxu0  ;;  %v12254_v7 = vpop.f32.mrf.mxu1 }
  0xaf   : > { %464 = vst.msk [vmem:[#allocation2 + $0x4f0] sm:$0xff] %vm305_vm3, %v11075_v32  ;;  %v5205_v46 = vadd.f32 %v12252_v6, %v821_v40  ;;  %v5333_v53 = vadd.f32 %v12254_v7, %v949_v42  ;;  %v10875_v7 = vld [vmem:[%s11136_s29 + $0x458] sm:$0xff] }
  0xb0   : > { %465 = vst.msk [vmem:[#allocation2 + $0x4f8] sm:$0xff] %vm305_vm3, %v11075_v32 }
  0xb1   : > { %466 = vst.msk [vmem:[#allocation2 + $0x500] sm:$0xff] %vm305_vm3, %v11075_v32 }
  0xb2   : > { %467 = vst.msk [vmem:[#allocation2 + $0x508] sm:$0xff] %vm305_vm3, %v11075_v32 }
  0xb3   : > { %468 = vst.msk [vmem:[#allocation2 + $0x510] sm:$0xff] %vm305_vm3, %v11075_v32 }
  0xb4   : > { %469 = vst.msk [vmem:[#allocation2 + $0x518] sm:$0xff] %vm305_vm3, %v11075_v32 }
  0xb5   : > { %470 = vst.msk [vmem:[#allocation2 + $0x520] sm:$0xff] %vm305_vm3, %v11075_v32  ;;  %v12268_v8 = vpop.f32.mrf.mxu2  ;;  %v12270_v9 = vpop.f32.mrf.mxu3 }
  0xb6   : > { %471 = vst.msk [vmem:[#allocation2 + $0x528] sm:$0xff] %vm305_vm3, %v11075_v32  ;;  %v12276_v12 = vpop.f32.mrf.mxu0  ;;  %v12278_v13 = vpop.f32.mrf.mxu1 }
  0xb7   : > { %472 = vst.msk [vmem:[#allocation2 + $0x530] sm:$0xff] %vm305_vm3, %v11075_v32  ;;  %v5206_v6 = vadd.f32 %v12276_v12, %v822_v54 }
  0xb8   : > { %473 = vst.msk [vmem:[#allocation2 + $0x538] sm:$0xff] %vm305_vm3, %v11075_v32 }
  0xb9   : > { %474 = vst.msk [vmem:[#allocation2 + $0x540] sm:$0xff] %vm305_vm3, %v11075_v32  ;;  %10488 = vmatmul.msk.bf16.gmra.mxu0 %vm3137_vm2, %v10746_v14  ;;  %10552 = vmatmul.msk.bf16.gmra.mxu1 %vm3137_vm2, %v10810_v15 }
  0xba   : > { %475 = vst.msk [vmem:[#allocation2 + $0x548] sm:$0xff] %vm305_vm3, %v11075_v32  ;;  %10616 = vmatmul.msk.bf16.gmra.mxu2 %vm3137_vm2, %v10874_v16  ;;  %10680 = vmatmul.msk.bf16.gmra.mxu3 %vm3137_vm2, %v10938_v18 }
  0xbb   : > { %476 = vst.msk [vmem:[#allocation2 + $0x550] sm:$0xff] %vm305_vm3, %v11075_v32 }
  0xbc   : > { %477 = vst.msk [vmem:[#allocation2 + $0x558] sm:$0xff] %vm305_vm3, %v11075_v32 }
  0xbd   : > { %478 = vst.msk [vmem:[#allocation2 + $0x560] sm:$0xff] %vm305_vm3, %v11075_v32  ;;  %v12304_v27 = vpop.f32.mrf.mxu2  ;;  %v12306_v28 = vpop.f32.mrf.mxu3 }
  0xbe   : > { %479 = vst.msk [vmem:[#allocation2 + $0x568] sm:$0xff] %vm305_vm3, %v11075_v32  ;;  %v12312_v34 = vpop.f32.mrf.mxu0 }
  0xbf   : > { %480 = vst.msk [vmem:[#allocation2 + $0x570] sm:$0xff] %vm305_vm3, %v11075_v32 }
  0xc0   : > { %481 = vst.msk [vmem:[#allocation2 + $0x578] sm:$0xff] %vm305_vm3, %v11075_v32 }
  0xc1   : > { %482 = vst.msk [vmem:[#allocation2 + $0x580] sm:$0xff] %vm305_vm3, %v11075_v32 }
  0xc2   : > { %483 = vst.msk [vmem:[#allocation2 + $0x588] sm:$0xff] %vm305_vm3, %v11075_v32 }
  0xc3   : > { %484 = vst.msk [vmem:[#allocation2 + $0x590] sm:$0xff] %vm305_vm3, %v11075_v32 }
  0xc4   : > { %485 = vst.msk [vmem:[#allocation2 + $0x598] sm:$0xff] %vm305_vm3, %v11075_v32 }
  0xc5   : > { %486 = vst.msk [vmem:[#allocation2 + $0x5a0] sm:$0xff] %vm305_vm3, %v11075_v32  ;;  %v12328_v48 = vpop.f32.mrf.mxu2  ;;  %v12330_v49 = vpop.f32.mrf.mxu3 }
  0xc6   : > { %487 = vst.msk [vmem:[#allocation2 + $0x5a8] sm:$0xff] %vm305_vm3, %v11075_v32  ;;  %v12343_v58 = vpop.f32.mrf.mxu0 }
  0xc7   : > { %488 = vst.msk [vmem:[#allocation2 + $0x5b0] sm:$0xff] %vm305_vm3, %v11075_v32 }
  0xc8   : > { %489 = vst.msk [vmem:[#allocation2 + $0x5b8] sm:$0xff] %vm305_vm3, %v11075_v32 }
  0xc9   : > { %490 = vst.msk [vmem:[#allocation2 + $0x5c0] sm:$0xff] %vm305_vm3, %v11075_v32  ;;  %10489 = vmatmul.msk.bf16.gmra.mxu0 %vm3137_vm2, %v10747_v1  ;;  %10553 = vmatmul.msk.bf16.gmra.mxu1 %vm3137_vm2, %v10811_v2 }
  0xca   : > { %491 = vst.msk [vmem:[#allocation2 + $0x5c8] sm:$0xff] %vm305_vm3, %v11075_v32  ;;  %10617 = vmatmul.msk.bf16.gmra.mxu2 %vm3137_vm2, %v10875_v7 }
  0xcb   : > { %492 = vst.msk [vmem:[#allocation2 + $0x5d0] sm:$0xff] %vm305_vm3, %v11075_v32 }
  0xcc   : > { %493 = vst.msk [vmem:[#allocation2 + $0x5d8] sm:$0xff] %vm305_vm3, %v11075_v32 }
  0xcd   : > { %494 = vst.msk [vmem:[#allocation2 + $0x5e0] sm:$0xff] %vm305_vm3, %v11075_v32  ;;  %v12380_v30 = vpop.f32.mrf.mxu2 }
  0xce   : > { %495 = vst.msk [vmem:[#allocation2 + $0x5e8] sm:$0xff] %vm305_vm3, %v11075_v32 }
  0xcf   : > { %496 = vst.msk [vmem:[#allocation2 + $0x5f0] sm:$0xff] %vm305_vm3, %v11075_v32 }
  0xd0   : > { %497 = vst.msk [vmem:[#allocation2 + $0x5f8] sm:$0xff] %vm305_vm3, %v11075_v32 }
  0xd1   : > { %498 = vst.msk [vmem:[#allocation2 + $0x600] sm:$0xff] %vm305_vm3, %v11075_v32 }
  0xd2   : > { %499 = vst.msk [vmem:[#allocation2 + $0x608] sm:$0xff] %vm305_vm3, %v11075_v32 }
  0xd3   : > { %500 = vst.msk [vmem:[#allocation2 + $0x610] sm:$0xff] %vm305_vm3, %v11075_v32 }
  0xd4   : > { %501 = vst.msk [vmem:[#allocation2 + $0x618] sm:$0xff] %vm305_vm3, %v11075_v32 }
  0xd5   : > { %502 = vst.msk [vmem:[#allocation2 + $0x620] sm:$0xff] %vm305_vm3, %v11075_v32 }
  0xd6   : > { %503 = vst.msk [vmem:[#allocation2 + $0x628] sm:$0xff] %vm305_vm3, %v11075_v32 }
  0xd7   : > { %504 = vst.msk [vmem:[#allocation2 + $0x630] sm:$0xff] %vm305_vm3, %v11075_v32 }
  0xd8   : > { %505 = vst.msk [vmem:[#allocation2 + $0x638] sm:$0xff] %vm305_vm3, %v11075_v32 }
  0xd9   : > { %506 = vst.msk [vmem:[#allocation2 + $0x640] sm:$0xff] %vm305_vm3, %v11075_v32 }
  0xda   : > { %507 = vst.msk [vmem:[#allocation2 + $0x648] sm:$0xff] %vm305_vm3, %v11075_v32 }
  0xdb   : > { %508 = vst.msk [vmem:[#allocation2 + $0x650] sm:$0xff] %vm305_vm3, %v11075_v32 }
  0xdc   : > { %509 = vst.msk [vmem:[#allocation2 + $0x658] sm:$0xff] %vm305_vm3, %v11075_v32 }
  0xdd   : > { %510 = vst.msk [vmem:[#allocation2 + $0x660] sm:$0xff] %vm305_vm3, %v11075_v32 }
  0xde   : > { %511 = vst.msk [vmem:[#allocation2 + $0x668] sm:$0xff] %vm305_vm3, %v11075_v32 }
  0xdf   : > { %512 = vst.msk [vmem:[#allocation2 + $0x670] sm:$0xff] %vm305_vm3, %v11075_v32 }
  0xe0   : > { %513 = vst.msk [vmem:[#allocation2 + $0x678] sm:$0xff] %vm305_vm3, %v11075_v32 }
  0xe1   : > { %514 = vst.msk [vmem:[#allocation2 + $0x680] sm:$0xff] %vm305_vm3, %v11075_v32 }
  0xe2   : > { %515 = vst.msk [vmem:[#allocation2 + $0x688] sm:$0xff] %vm305_vm3, %v11075_v32 }
  0xe3   : > { %516 = vst.msk [vmem:[#allocation2 + $0x690] sm:$0xff] %vm305_vm3, %v11075_v32 }
  0xe4   : > { %517 = vst.msk [vmem:[#allocation2 + $0x698] sm:$0xff] %vm305_vm3, %v11075_v32 }
  0xe5   : > { %518 = vst.msk [vmem:[#allocation2 + $0x6a0] sm:$0xff] %vm305_vm3, %v11075_v32 }
  0xe6   : > { %519 = vst.msk [vmem:[#allocation2 + $0x6a8] sm:$0xff] %vm305_vm3, %v11075_v32 }
  0xe7   : > { %520 = vst.msk [vmem:[#allocation2 + $0x6b0] sm:$0xff] %vm305_vm3, %v11075_v32 }
  0xe8   : > { %521 = vst.msk [vmem:[#allocation2 + $0x6b8] sm:$0xff] %vm305_vm3, %v11075_v32 }
  0xe9   : > { %522 = vst.msk [vmem:[#allocation2 + $0x6c0] sm:$0xff] %vm305_vm3, %v11075_v32 }
  0xea   : > { %523 = vst.msk [vmem:[#allocation2 + $0x6c8] sm:$0xff] %vm305_vm3, %v11075_v32 }
  0xeb   : > { %524 = vst.msk [vmem:[#allocation2 + $0x6d0] sm:$0xff] %vm305_vm3, %v11075_v32 }
  0xec   : > { %525 = vst.msk [vmem:[#allocation2 + $0x6d8] sm:$0xff] %vm305_vm3, %v11075_v32 }
  0xed   : > { %526 = vst.msk [vmem:[#allocation2 + $0x6e0] sm:$0xff] %vm305_vm3, %v11075_v32 }
  0xee   : > { %527 = vst.msk [vmem:[#allocation2 + $0x6e8] sm:$0xff] %vm305_vm3, %v11075_v32 }
  0xef   : > { %528 = vst.msk [vmem:[#allocation2 + $0x6f0] sm:$0xff] %vm305_vm3, %v11075_v32 }
  0xf0   : > { %529 = vst.msk [vmem:[#allocation2 + $0x6f8] sm:$0xff] %vm305_vm3, %v11075_v32 }
  0xf1   : > { %530 = vst.msk [vmem:[#allocation2 + $0x700] sm:$0xff] %vm305_vm3, %v11075_v32 }
  0xf2   : > { %531 = vst.msk [vmem:[#allocation2 + $0x708] sm:$0xff] %vm305_vm3, %v11075_v32 }
  0xf3   : > { %532 = vst.msk [vmem:[#allocation2 + $0x710] sm:$0xff] %vm305_vm3, %v11075_v32 }
  0xf4   : > { %533 = vst.msk [vmem:[#allocation2 + $0x718] sm:$0xff] %vm305_vm3, %v11075_v32 }
  0xf5   : > { %534 = vst.msk [vmem:[#allocation2 + $0x720] sm:$0xff] %vm305_vm3, %v11075_v32 }
  0xf6   : > { %535 = vst.msk [vmem:[#allocation2 + $0x728] sm:$0xff] %vm305_vm3, %v11075_v32 }
  0xf7   : > { %536 = vst.msk [vmem:[#allocation2 + $0x730] sm:$0xff] %vm305_vm3, %v11075_v32 }
  0xf8   : > { %537 = vst.msk [vmem:[#allocation2 + $0x738] sm:$0xff] %vm305_vm3, %v11075_v32 }
  0xf9   : > { %538 = vst.msk [vmem:[#allocation2 + $0x740] sm:$0xff] %vm305_vm3, %v11075_v32 }
  0xfa   : > { %539 = vst.msk [vmem:[#allocation2 + $0x748] sm:$0xff] %vm305_vm3, %v11075_v32 }
  0xfb   : > { %540 = vst.msk [vmem:[#allocation2 + $0x750] sm:$0xff] %vm305_vm3, %v11075_v32 }
  0xfc   : > { %541 = vst.msk [vmem:[#allocation2 + $0x758] sm:$0xff] %vm305_vm3, %v11075_v32 }
  0xfd   : > { %542 = vst.msk [vmem:[#allocation2 + $0x760] sm:$0xff] %vm305_vm3, %v11075_v32 }
  0xfe   : > { %543 = vst.msk [vmem:[#allocation2 + $0x768] sm:$0xff] %vm305_vm3, %v11075_v32 }
  0xff   : > { %544 = vst.msk [vmem:[#allocation2 + $0x770] sm:$0xff] %vm305_vm3, %v11075_v32 }
 0x100   : > { %545 = vst.msk [vmem:[#allocation2 + $0x778] sm:$0xff] %vm305_vm3, %v11075_v32 }
 0x101   : > { %546 = vst.msk [vmem:[#allocation2 + $0x780] sm:$0xff] %vm305_vm3, %v11075_v32 }
 0x102   : > { %547 = vst.msk [vmem:[#allocation2 + $0x788] sm:$0xff] %vm305_vm3, %v11075_v32 }
 0x103   : > { %548 = vst.msk [vmem:[#allocation2 + $0x790] sm:$0xff] %vm305_vm3, %v11075_v32 }
 0x104   : > { %549 = vst.msk [vmem:[#allocation2 + $0x798] sm:$0xff] %vm305_vm3, %v11075_v32 }
 0x105   : > { %550 = vst.msk [vmem:[#allocation2 + $0x7a0] sm:$0xff] %vm305_vm3, %v11075_v32 }
 0x106   : > { %551 = vst.msk [vmem:[#allocation2 + $0x7a8] sm:$0xff] %vm305_vm3, %v11075_v32 }
 0x107   : > { %552 = vst.msk [vmem:[#allocation2 + $0x7b0] sm:$0xff] %vm305_vm3, %v11075_v32 }
 0x108   : > { %553 = vst.msk [vmem:[#allocation2 + $0x7b8] sm:$0xff] %vm305_vm3, %v11075_v32 }
 0x109   : > { %554 = vst.msk [vmem:[#allocation2 + $0x7c0] sm:$0xff] %vm305_vm3, %v11075_v32 }
 0x10a   : > { %555 = vst.msk [vmem:[#allocation2 + $0x7c8] sm:$0xff] %vm305_vm3, %v11075_v32 }
 0x10b   : > { %556 = vst.msk [vmem:[#allocation2 + $0x7d0] sm:$0xff] %vm305_vm3, %v11075_v32 }
 0x10c   : > { %557 = vst.msk [vmem:[#allocation2 + $0x7d8] sm:$0xff] %vm305_vm3, %v11075_v32 }
 0x10d   : > { %558 = vst.msk [vmem:[#allocation2 + $0x7e0] sm:$0xff] %vm305_vm3, %v11075_v32 }
 0x10e   : > { %559 = vst.msk [vmem:[#allocation2 + $0x7e8] sm:$0xff] %vm305_vm3, %v11075_v32 }
 0x10f   : > { %560 = vst.msk [vmem:[#allocation2 + $0x7f0] sm:$0xff] %vm305_vm3, %v11075_v32 }
 0x110   : > { %561 = vst.msk [vmem:[#allocation2 + $0x7f8] sm:$0xff] %vm305_vm3, %v11075_v32 }
 0x111   : > { %562 = vst.msk [vmem:[#allocation2 + $0x800] sm:$0xff] %vm305_vm3, %v11075_v32 }
 0x112   : > { %563 = vst.msk [vmem:[#allocation2 + $0x808] sm:$0xff] %vm305_vm3, %v11075_v32 }
 0x113   : > { %564 = vst.msk [vmem:[#allocation2 + $0x810] sm:$0xff] %vm305_vm3, %v11075_v32 }
 0x114   : > { %565 = vst.msk [vmem:[#allocation2 + $0x818] sm:$0xff] %vm305_vm3, %v11075_v32 }
 0x115   : > { %566 = vst.msk [vmem:[#allocation2 + $0x820] sm:$0xff] %vm305_vm3, %v11075_v32 }
 0x116   : > { %567 = vst.msk [vmem:[#allocation2 + $0x828] sm:$0xff] %vm305_vm3, %v11075_v32 }
 0x117   : > { %568 = vst.msk [vmem:[#allocation2 + $0x830] sm:$0xff] %vm305_vm3, %v11075_v32 }
 0x118   : > { %569 = vst.msk [vmem:[#allocation2 + $0x838] sm:$0xff] %vm305_vm3, %v11075_v32  ;;  %v1074_v11 = vld [vmem:[#allocation2 + $0x800] sm:$0xff] }
 0x119   : > { %570 = vst.msk [vmem:[#allocation2 + $0x840] sm:$0xff] %vm305_vm3, %v11075_v32  ;;  %v5458_v21 = vadd.f32 %v12184_v56, %v1074_v11  ;;  %v1075_v24 = vld [vmem:[#allocation2 + $0x808] sm:$0xff] }
 0x11a   : > { %571 = vst.msk [vmem:[#allocation2 + $0x848] sm:$0xff] %vm305_vm3, %v11075_v32  ;;  %v5459_v31 = vadd.f32 %v12212_v60, %v1075_v24  ;;  %v1076_v36 = vld [vmem:[#allocation2 + $0x810] sm:$0xff]  ;;  %v12350_v60 = vld [vmem:[%s16858_s3] ss:$0 sm:$0xff] }
 0x11b   : > { %572 = vst.msk [vmem:[#allocation2 + $0x850] sm:$0xff] %vm305_vm3, %v11075_v32  ;;  %v5460_v41 = vadd.f32 %v12244_v4, %v1076_v36  ;;  %v1077_v44 = vld [vmem:[#allocation2 + $0x818] sm:$0xff] }
 0x11c   : > { %573 = vst.msk [vmem:[#allocation2 + $0x858] sm:$0xff] %vm305_vm3, %v11075_v32 }
 0x11d   : > { %574 = vst.msk [vmem:[#allocation2 + $0x860] sm:$0xff] %vm305_vm3, %v11075_v32 }
 0x11e   : > { %575 = vst.msk [vmem:[#allocation2 + $0x868] sm:$0xff] %vm305_vm3, %v11075_v32 }
 0x11f   : > { %576 = vst.msk [vmem:[#allocation2 + $0x870] sm:$0xff] %vm305_vm3, %v11075_v32 }
 0x120   : > { %577 = vst.msk [vmem:[#allocation2 + $0x878] sm:$0xff] %vm305_vm3, %v11075_v32 }
 0x121   : > { %578 = vst.msk [vmem:[#allocation2 + $0x880] sm:$0xff] %vm305_vm3, %v11075_v32 }
 0x122   : > { %579 = vst.msk [vmem:[#allocation2 + $0x888] sm:$0xff] %vm305_vm3, %v11075_v32 }
 0x123   : > { %580 = vst.msk [vmem:[#allocation2 + $0x890] sm:$0xff] %vm305_vm3, %v11075_v32 }
 0x124   : > { %581 = vst.msk [vmem:[#allocation2 + $0x898] sm:$0xff] %vm305_vm3, %v11075_v32 }
 0x125   : > { %582 = vst.msk [vmem:[#allocation2 + $0x8a0] sm:$0xff] %vm305_vm3, %v11075_v32 }
 0x126   : > { %583 = vst.msk [vmem:[#allocation2 + $0x8a8] sm:$0xff] %vm305_vm3, %v11075_v32 }
 0x127   : > { %584 = vst.msk [vmem:[#allocation2 + $0x8b0] sm:$0xff] %vm305_vm3, %v11075_v32 }
 0x128   : > { %585 = vst.msk [vmem:[#allocation2 + $0x8b8] sm:$0xff] %vm305_vm3, %v11075_v32 }
 0x129   : > { %586 = vst.msk [vmem:[#allocation2 + $0x8c0] sm:$0xff] %vm305_vm3, %v11075_v32 }
 0x12a   : > { %587 = vst.msk [vmem:[#allocation2 + $0x8c8] sm:$0xff] %vm305_vm3, %v11075_v32 }
 0x12b   : > { %588 = vst.msk [vmem:[#allocation2 + $0x8d0] sm:$0xff] %vm305_vm3, %v11075_v32 }
 0x12c   : > { %589 = vst.msk [vmem:[#allocation2 + $0x8d8] sm:$0xff] %vm305_vm3, %v11075_v32 }
 0x12d   : > { %590 = vst.msk [vmem:[#allocation2 + $0x8e0] sm:$0xff] %vm305_vm3, %v11075_v32 }
 0x12e   : > { %591 = vst.msk [vmem:[#allocation2 + $0x8e8] sm:$0xff] %vm305_vm3, %v11075_v32 }
 0x12f   : > { %592 = vst.msk [vmem:[#allocation2 + $0x8f0] sm:$0xff] %vm305_vm3, %v11075_v32 }
 0x130   : > { %593 = vst.msk [vmem:[#allocation2 + $0x8f8] sm:$0xff] %vm305_vm3, %v11075_v32 }
 0x131   : > { %594 = vst.msk [vmem:[#allocation2 + $0x900] sm:$0xff] %vm305_vm3, %v11075_v32 }
 0x132   : > { %595 = vst.msk [vmem:[#allocation2 + $0x908] sm:$0xff] %vm305_vm3, %v11075_v32 }
 0x133   : > { %596 = vst.msk [vmem:[#allocation2 + $0x910] sm:$0xff] %vm305_vm3, %v11075_v32 }
 0x134   : > { %597 = vst.msk [vmem:[#allocation2 + $0x918] sm:$0xff] %vm305_vm3, %v11075_v32 }
 0x135   : > { %598 = vst.msk [vmem:[#allocation2 + $0x920] sm:$0xff] %vm305_vm3, %v11075_v32 }
 0x136   : > { %599 = vst.msk [vmem:[#allocation2 + $0x928] sm:$0xff] %vm305_vm3, %v11075_v32 }
 0x137   : > { %600 = vst.msk [vmem:[#allocation2 + $0x930] sm:$0xff] %vm305_vm3, %v11075_v32 }
 0x138   : > { %601 = vst.msk [vmem:[#allocation2 + $0x938] sm:$0xff] %vm305_vm3, %v11075_v32 }
 0x139   : > { %602 = vst.msk [vmem:[#allocation2 + $0x940] sm:$0xff] %vm305_vm3, %v11075_v32 }
 0x13a   : > { %603 = vst.msk [vmem:[#allocation2 + $0x948] sm:$0xff] %vm305_vm3, %v11075_v32 }
 0x13b   : > { %604 = vst.msk [vmem:[#allocation2 + $0x950] sm:$0xff] %vm305_vm3, %v11075_v32 }
 0x13c   : > { %605 = vst.msk [vmem:[#allocation2 + $0x958] sm:$0xff] %vm305_vm3, %v11075_v32 }
 0x13d   : > { %606 = vst.msk [vmem:[#allocation2 + $0x960] sm:$0xff] %vm305_vm3, %v11075_v32 }
 0x13e   : > { %607 = vst.msk [vmem:[#allocation2 + $0x968] sm:$0xff] %vm305_vm3, %v11075_v32 }
 0x13f   : > { %608 = vst.msk [vmem:[#allocation2 + $0x970] sm:$0xff] %vm305_vm3, %v11075_v32 }
 0x140   : > { %609 = vst.msk [vmem:[#allocation2 + $0x978] sm:$0xff] %vm305_vm3, %v11075_v32 }
 0x141   : > { %610 = vst.msk [vmem:[#allocation2 + $0x980] sm:$0xff] %vm305_vm3, %v11075_v32 }
 0x142   : > { %611 = vst.msk [vmem:[#allocation2 + $0x988] sm:$0xff] %vm305_vm3, %v11075_v32 }
 0x143   : > { %612 = vst.msk [vmem:[#allocation2 + $0x990] sm:$0xff] %vm305_vm3, %v11075_v32 }
 0x144   : > { %613 = vst.msk [vmem:[#allocation2 + $0x998] sm:$0xff] %vm305_vm3, %v11075_v32 }
 0x145   : > { %614 = vst.msk [vmem:[#allocation2 + $0x9a0] sm:$0xff] %vm305_vm3, %v11075_v32 }
 0x146   : > { %615 = vst.msk [vmem:[#allocation2 + $0x9a8] sm:$0xff] %vm305_vm3, %v11075_v32 }
 0x147   : > { %616 = vst.msk [vmem:[#allocation2 + $0x9b0] sm:$0xff] %vm305_vm3, %v11075_v32 }
 0x148   : > { %617 = vst.msk [vmem:[#allocation2 + $0x9b8] sm:$0xff] %vm305_vm3, %v11075_v32 }
 0x149   : > { %618 = vst.msk [vmem:[#allocation2 + $0x9c0] sm:$0xff] %vm305_vm3, %v11075_v32 }
 0x14a   : > { %619 = vst.msk [vmem:[#allocation2 + $0x9c8] sm:$0xff] %vm305_vm3, %v11075_v32 }
 0x14b   : > { %620 = vst.msk [vmem:[#allocation2 + $0x9d0] sm:$0xff] %vm305_vm3, %v11075_v32 }
 0x14c   : > { %621 = vst.msk [vmem:[#allocation2 + $0x9d8] sm:$0xff] %vm305_vm3, %v11075_v32 }
 0x14d   : > { %622 = vst.msk [vmem:[#allocation2 + $0x9e0] sm:$0xff] %vm305_vm3, %v11075_v32 }
 0x14e   : > { %623 = vst.msk [vmem:[#allocation2 + $0x9e8] sm:$0xff] %vm305_vm3, %v11075_v32 }
 0x14f   : > { %624 = vst.msk [vmem:[#allocation2 + $0x9f0] sm:$0xff] %vm305_vm3, %v11075_v32 }
 0x150   : > { %625 = vst.msk [vmem:[#allocation2 + $0x9f8] sm:$0xff] %vm305_vm3, %v11075_v32 }
 0x151   : > { %626 = vst.msk [vmem:[#allocation2 + $0xa00] sm:$0xff] %vm305_vm3, %v11075_v32 }
 0x152   : > { %627 = vst.msk [vmem:[#allocation2 + $0xa08] sm:$0xff] %vm305_vm3, %v11075_v32 }
 0x153   : > { %628 = vst.msk [vmem:[#allocation2 + $0xa10] sm:$0xff] %vm305_vm3, %v11075_v32 }
 0x154   : > { %629 = vst.msk [vmem:[#allocation2 + $0xa18] sm:$0xff] %vm305_vm3, %v11075_v32 }
 0x155   : > { %630 = vst.msk [vmem:[#allocation2 + $0xa20] sm:$0xff] %vm305_vm3, %v11075_v32 }
 0x156   : > { %631 = vst.msk [vmem:[#allocation2 + $0xa28] sm:$0xff] %vm305_vm3, %v11075_v32 }
 0x157   : > { %632 = vst.msk [vmem:[#allocation2 + $0xa30] sm:$0xff] %vm305_vm3, %v11075_v32 }
 0x158   : > { %633 = vst.msk [vmem:[#allocation2 + $0xa38] sm:$0xff] %vm305_vm3, %v11075_v32 }
 0x159   : > { %634 = vst.msk [vmem:[#allocation2 + $0xa40] sm:$0xff] %vm305_vm3, %v11075_v32 }
 0x15a   : > { %635 = vst.msk [vmem:[#allocation2 + $0xa48] sm:$0xff] %vm305_vm3, %v11075_v32 }
 0x15b   : > { %636 = vst.msk [vmem:[#allocation2 + $0xa50] sm:$0xff] %vm305_vm3, %v11075_v32 }
 0x15c   : > { %637 = vst.msk [vmem:[#allocation2 + $0xa58] sm:$0xff] %vm305_vm3, %v11075_v32 }
 0x15d   : > { %638 = vst.msk [vmem:[#allocation2 + $0xa60] sm:$0xff] %vm305_vm3, %v11075_v32 }
 0x15e   : > { %639 = vst.msk [vmem:[#allocation2 + $0xa68] sm:$0xff] %vm305_vm3, %v11075_v32 }
 0x15f   : > { %640 = vst.msk [vmem:[#allocation2 + $0xa70] sm:$0xff] %vm305_vm3, %v11075_v32 }
 0x160   : > { %641 = vst.msk [vmem:[#allocation2 + $0xa78] sm:$0xff] %vm305_vm3, %v11075_v32 }
 0x161   : > { %642 = vst.msk [vmem:[#allocation2 + $0xa80] sm:$0xff] %vm305_vm3, %v11075_v32 }
 0x162   : > { %643 = vst.msk [vmem:[#allocation2 + $0xa88] sm:$0xff] %vm305_vm3, %v11075_v32 }
 0x163   : > { %644 = vst.msk [vmem:[#allocation2 + $0xa90] sm:$0xff] %vm305_vm3, %v11075_v32 }
 0x164   : > { %645 = vst.msk [vmem:[#allocation2 + $0xa98] sm:$0xff] %vm305_vm3, %v11075_v32 }
 0x165   : > { %646 = vst.msk [vmem:[#allocation2 + $0xaa0] sm:$0xff] %vm305_vm3, %v11075_v32 }
 0x166   : > { %647 = vst.msk [vmem:[#allocation2 + $0xaa8] sm:$0xff] %vm305_vm3, %v11075_v32 }
 0x167   : > { %648 = vst.msk [vmem:[#allocation2 + $0xab0] sm:$0xff] %vm305_vm3, %v11075_v32 }
 0x168   : > { %649 = vst.msk [vmem:[#allocation2 + $0xab8] sm:$0xff] %vm305_vm3, %v11075_v32 }
 0x169   : > { %650 = vst.msk [vmem:[#allocation2 + $0xac0] sm:$0xff] %vm305_vm3, %v11075_v32 }
 0x16a   : > { %651 = vst.msk [vmem:[#allocation2 + $0xac8] sm:$0xff] %vm305_vm3, %v11075_v32 }
 0x16b   : > { %652 = vst.msk [vmem:[#allocation2 + $0xad0] sm:$0xff] %vm305_vm3, %v11075_v32 }
 0x16c   : > { %653 = vst.msk [vmem:[#allocation2 + $0xad8] sm:$0xff] %vm305_vm3, %v11075_v32 }
 0x16d   : > { %654 = vst.msk [vmem:[#allocation2 + $0xae0] sm:$0xff] %vm305_vm3, %v11075_v32 }
 0x16e   : > { %655 = vst.msk [vmem:[#allocation2 + $0xae8] sm:$0xff] %vm305_vm3, %v11075_v32 }
 0x16f   : > { %656 = vst.msk [vmem:[#allocation2 + $0xaf0] sm:$0xff] %vm305_vm3, %v11075_v32 }
 0x170   : > { %657 = vst.msk [vmem:[#allocation2 + $0xaf8] sm:$0xff] %vm305_vm3, %v11075_v32 }
 0x171   : > { %658 = vst.msk [vmem:[#allocation2 + $0xb00] sm:$0xff] %vm305_vm3, %v11075_v32 }
 0x172   : > { %659 = vst.msk [vmem:[#allocation2 + $0xb08] sm:$0xff] %vm305_vm3, %v11075_v32 }
 0x173   : > { %660 = vst.msk [vmem:[#allocation2 + $0xb10] sm:$0xff] %vm305_vm3, %v11075_v32 }
 0x174   : > { %661 = vst.msk [vmem:[#allocation2 + $0xb18] sm:$0xff] %vm305_vm3, %v11075_v32 }
 0x175   : > { %662 = vst.msk [vmem:[#allocation2 + $0xb20] sm:$0xff] %vm305_vm3, %v11075_v32 }
 0x176   : > { %663 = vst.msk [vmem:[#allocation2 + $0xb28] sm:$0xff] %vm305_vm3, %v11075_v32 }
 0x177   : > { %664 = vst.msk [vmem:[#allocation2 + $0xb30] sm:$0xff] %vm305_vm3, %v11075_v32 }
 0x178   : > { %665 = vst.msk [vmem:[#allocation2 + $0xb38] sm:$0xff] %vm305_vm3, %v11075_v32 }
 0x179   : > { %666 = vst.msk [vmem:[#allocation2 + $0xb40] sm:$0xff] %vm305_vm3, %v11075_v32 }
 0x17a   : > { %667 = vst.msk [vmem:[#allocation2 + $0xb48] sm:$0xff] %vm305_vm3, %v11075_v32 }
 0x17b   : > { %668 = vst.msk [vmem:[#allocation2 + $0xb50] sm:$0xff] %vm305_vm3, %v11075_v32 }
 0x17c   : > { %669 = vst.msk [vmem:[#allocation2 + $0xb58] sm:$0xff] %vm305_vm3, %v11075_v32 }
 0x17d   : > { %670 = vst.msk [vmem:[#allocation2 + $0xb60] sm:$0xff] %vm305_vm3, %v11075_v32 }
 0x17e   : > { %671 = vst.msk [vmem:[#allocation2 + $0xb68] sm:$0xff] %vm305_vm3, %v11075_v32 }
 0x17f   : > { %672 = vst.msk [vmem:[#allocation2 + $0xb70] sm:$0xff] %vm305_vm3, %v11075_v32 }
 0x180   : > { %673 = vst.msk [vmem:[#allocation2 + $0xb78] sm:$0xff] %vm305_vm3, %v11075_v32 }
 0x181   : > { %674 = vst.msk [vmem:[#allocation2 + $0xb80] sm:$0xff] %vm305_vm3, %v11075_v32 }
 0x182   : > { %675 = vst.msk [vmem:[#allocation2 + $0xb88] sm:$0xff] %vm305_vm3, %v11075_v32 }
 0x183   : > { %676 = vst.msk [vmem:[#allocation2 + $0xb90] sm:$0xff] %vm305_vm3, %v11075_v32 }
 0x184   : > { %677 = vst.msk [vmem:[#allocation2 + $0xb98] sm:$0xff] %vm305_vm3, %v11075_v32 }
 0x185   : > { %678 = vst.msk [vmem:[#allocation2 + $0xba0] sm:$0xff] %vm305_vm3, %v11075_v32 }
 0x186   : > { %679 = vst.msk [vmem:[#allocation2 + $0xba8] sm:$0xff] %vm305_vm3, %v11075_v32 }
 0x187   : > { %680 = vst.msk [vmem:[#allocation2 + $0xbb0] sm:$0xff] %vm305_vm3, %v11075_v32 }
 0x188   : > { %681 = vst.msk [vmem:[#allocation2 + $0xbb8] sm:$0xff] %vm305_vm3, %v11075_v32 }
 0x189   : > { %682 = vst.msk [vmem:[#allocation2 + $0xbc0] sm:$0xff] %vm305_vm3, %v11075_v32 }
 0x18a   : > { %683 = vst.msk [vmem:[#allocation2 + $0xbc8] sm:$0xff] %vm305_vm3, %v11075_v32 }
 0x18b   : > { %684 = vst.msk [vmem:[#allocation2 + $0xbd0] sm:$0xff] %vm305_vm3, %v11075_v32 }
 0x18c   : > { %685 = vst.msk [vmem:[#allocation2 + $0xbd8] sm:$0xff] %vm305_vm3, %v11075_v32 }
 0x18d   : > { %686 = vst.msk [vmem:[#allocation2 + $0xbe0] sm:$0xff] %vm305_vm3, %v11075_v32 }
 0x18e   : > { %687 = vst.msk [vmem:[#allocation2 + $0xbe8] sm:$0xff] %vm305_vm3, %v11075_v32 }
 0x18f   : > { %688 = vst.msk [vmem:[#allocation2 + $0xbf0] sm:$0xff] %vm305_vm3, %v11075_v32 }
 0x190   : > { %689 = vst.msk [vmem:[#allocation2 + $0xbf8] sm:$0xff] %vm305_vm3, %v11075_v32 }
 0x191   : > { %690 = vst.msk [vmem:[#allocation2 + $0xc00] sm:$0xff] %vm305_vm3, %v11075_v32 }
 0x192   : > { %691 = vst.msk [vmem:[#allocation2 + $0xc08] sm:$0xff] %vm305_vm3, %v11075_v32 }
 0x193   : > { %692 = vst.msk [vmem:[#allocation2 + $0xc10] sm:$0xff] %vm305_vm3, %v11075_v32 }
 0x194   : > { %693 = vst.msk [vmem:[#allocation2 + $0xc18] sm:$0xff] %vm305_vm3, %v11075_v32 }
 0x195   : > { %694 = vst.msk [vmem:[#allocation2 + $0xc20] sm:$0xff] %vm305_vm3, %v11075_v32 }
 0x196   : > { %695 = vst.msk [vmem:[#allocation2 + $0xc28] sm:$0xff] %vm305_vm3, %v11075_v32 }
 0x197   : > { %696 = vst.msk [vmem:[#allocation2 + $0xc30] sm:$0xff] %vm305_vm3, %v11075_v32 }
 0x198   : > { %697 = vst.msk [vmem:[#allocation2 + $0xc38] sm:$0xff] %vm305_vm3, %v11075_v32  ;;  %v1202_v17 = vld [vmem:[#allocation2 + $0xc00] sm:$0xff] }
 0x199   : > { %698 = vst.msk [vmem:[#allocation2 + $0xc40] sm:$0xff] %vm305_vm3, %v11075_v32  ;;  %v5586_v23 = vadd.f32 %v12188_v57, %v1202_v17  ;;  %v1203_v26 = vld [vmem:[#allocation2 + $0xc08] sm:$0xff]  ;;  %v5461_v57 = vadd.f32 %v12268_v8, %v1077_v44  ;;  %v10939_v8 = vld [vmem:[%s11136_s29 + $0x658] sm:$0xff]  ;;  %v12392_v44 = vpop.f32.mrf.mxu0 }
 0x19a   : > { %699 = vst.msk [vmem:[#allocation2 + $0xc48] sm:$0xff] %vm305_vm3, %v11075_v32  ;;  %v5587_v35 = vadd.f32 %v12214_v61, %v1203_v26  ;;  %v1204_v38 = vld [vmem:[#allocation2 + $0xc10] sm:$0xff]  ;;  %10681 = vmatmul.msk.bf16.gmra.mxu3 %vm3137_vm2, %v10939_v8 }
 0x19b   : > { %700 = vst.msk [vmem:[#allocation2 + $0xc50] sm:$0xff] %vm305_vm3, %v11075_v32  ;;  %v5588_v43 = vadd.f32 %v12246_v5, %v1204_v38  ;;  %v1205_v47 = vld [vmem:[#allocation2 + $0xc18] sm:$0xff] }
 0x19c   : > { %701 = vst.msk [vmem:[#allocation2 + $0xc58] sm:$0xff] %vm305_vm3, %v11075_v32  ;;  %v5589_v0 = vadd.f32 %v12270_v9, %v1205_v47 }
 0x19d   : > { %702 = vst.msk [vmem:[#allocation2 + $0xc60] sm:$0xff] %vm305_vm3, %v11075_v32 }
 0x19e   : > { %703 = vst.msk [vmem:[#allocation2 + $0xc68] sm:$0xff] %vm305_vm3, %v11075_v32 }
 0x19f   : > { %704 = vst.msk [vmem:[#allocation2 + $0xc70] sm:$0xff] %vm305_vm3, %v11075_v32 }
 0x1a0   : > { %705 = vst.msk [vmem:[#allocation2 + $0xc78] sm:$0xff] %vm305_vm3, %v11075_v32 }
 0x1a1   : > { %706 = vst.msk [vmem:[#allocation2 + $0xc80] sm:$0xff] %vm305_vm3, %v11075_v32 }
 0x1a2   : > { %707 = vst.msk [vmem:[#allocation2 + $0xc88] sm:$0xff] %vm305_vm3, %v11075_v32 }
 0x1a3   : > { %708 = vst.msk [vmem:[#allocation2 + $0xc90] sm:$0xff] %vm305_vm3, %v11075_v32 }
 0x1a4   : > { %709 = vst.msk [vmem:[#allocation2 + $0xc98] sm:$0xff] %vm305_vm3, %v11075_v32 }
 0x1a5   : > { %710 = vst.msk [vmem:[#allocation2 + $0xca0] sm:$0xff] %vm305_vm3, %v11075_v32 }
 0x1a6   : > { %711 = vst.msk [vmem:[#allocation2 + $0xca8] sm:$0xff] %vm305_vm3, %v11075_v32 }
 0x1a7   : > { %712 = vst.msk [vmem:[#allocation2 + $0xcb0] sm:$0xff] %vm305_vm3, %v11075_v32 }
 0x1a8   : > { %713 = vst.msk [vmem:[#allocation2 + $0xcb8] sm:$0xff] %vm305_vm3, %v11075_v32 }
 0x1a9   : > { %714 = vst.msk [vmem:[#allocation2 + $0xcc0] sm:$0xff] %vm305_vm3, %v11075_v32 }
 0x1aa   : > { %715 = vst.msk [vmem:[#allocation2 + $0xcc8] sm:$0xff] %vm305_vm3, %v11075_v32 }
 0x1ab   : > { %716 = vst.msk [vmem:[#allocation2 + $0xcd0] sm:$0xff] %vm305_vm3, %v11075_v32 }
 0x1ac   : > { %717 = vst.msk [vmem:[#allocation2 + $0xcd8] sm:$0xff] %vm305_vm3, %v11075_v32 }
 0x1ad   : > { %718 = vst.msk [vmem:[#allocation2 + $0xce0] sm:$0xff] %vm305_vm3, %v11075_v32 }
 0x1ae   : > { %719 = vst.msk [vmem:[#allocation2 + $0xce8] sm:$0xff] %vm305_vm3, %v11075_v32 }
 0x1af   : > { %720 = vst.msk [vmem:[#allocation2 + $0xcf0] sm:$0xff] %vm305_vm3, %v11075_v32 }
 0x1b0   : > { %721 = vst.msk [vmem:[#allocation2 + $0xcf8] sm:$0xff] %vm305_vm3, %v11075_v32 }
 0x1b1   : > { %722 = vst.msk [vmem:[#allocation2 + $0xd00] sm:$0xff] %vm305_vm3, %v11075_v32 }
 0x1b2   : > { %723 = vst.msk [vmem:[#allocation2 + $0xd08] sm:$0xff] %vm305_vm3, %v11075_v32 }
 0x1b3   : > { %724 = vst.msk [vmem:[#allocation2 + $0xd10] sm:$0xff] %vm305_vm3, %v11075_v32 }
 0x1b4   : > { %725 = vst.msk [vmem:[#allocation2 + $0xd18] sm:$0xff] %vm305_vm3, %v11075_v32 }
 0x1b5   : > { %726 = vst.msk [vmem:[#allocation2 + $0xd20] sm:$0xff] %vm305_vm3, %v11075_v32 }
 0x1b6   : > { %727 = vst.msk [vmem:[#allocation2 + $0xd28] sm:$0xff] %vm305_vm3, %v11075_v32 }
 0x1b7   : > { %728 = vst.msk [vmem:[#allocation2 + $0xd30] sm:$0xff] %vm305_vm3, %v11075_v32 }
 0x1b8   : > { %729 = vst.msk [vmem:[#allocation2 + $0xd38] sm:$0xff] %vm305_vm3, %v11075_v32 }
 0x1b9   : > { %730 = vst.msk [vmem:[#allocation2 + $0xd40] sm:$0xff] %vm305_vm3, %v11075_v32 }
 0x1ba   : > { %731 = vst.msk [vmem:[#allocation2 + $0xd48] sm:$0xff] %vm305_vm3, %v11075_v32 }
 0x1bb   : > { %732 = vst.msk [vmem:[#allocation2 + $0xd50] sm:$0xff] %vm305_vm3, %v11075_v32 }
 0x1bc   : > { %733 = vst.msk [vmem:[#allocation2 + $0xd58] sm:$0xff] %vm305_vm3, %v11075_v32 }
 0x1bd   : > { %734 = vst.msk [vmem:[#allocation2 + $0xd60] sm:$0xff] %vm305_vm3, %v11075_v32 }
 0x1be   : > { %735 = vst.msk [vmem:[#allocation2 + $0xd68] sm:$0xff] %vm305_vm3, %v11075_v32 }
 0x1bf   : > { %736 = vst.msk [vmem:[#allocation2 + $0xd70] sm:$0xff] %vm305_vm3, %v11075_v32 }
 0x1c0   : > { %737 = vst.msk [vmem:[#allocation2 + $0xd78] sm:$0xff] %vm305_vm3, %v11075_v32 }
 0x1c1   : > { %738 = vst.msk [vmem:[#allocation2 + $0xd80] sm:$0xff] %vm305_vm3, %v11075_v32 }
 0x1c2   : > { %739 = vst.msk [vmem:[#allocation2 + $0xd88] sm:$0xff] %vm305_vm3, %v11075_v32 }
 0x1c3   : > { %740 = vst.msk [vmem:[#allocation2 + $0xd90] sm:$0xff] %vm305_vm3, %v11075_v32 }
 0x1c4   : > { %741 = vst.msk [vmem:[#allocation2 + $0xd98] sm:$0xff] %vm305_vm3, %v11075_v32 }
 0x1c5   : > { %742 = vst.msk [vmem:[#allocation2 + $0xda0] sm:$0xff] %vm305_vm3, %v11075_v32 }
 0x1c6   : > { %743 = vst.msk [vmem:[#allocation2 + $0xda8] sm:$0xff] %vm305_vm3, %v11075_v32 }
 0x1c7   : > { %744 = vst.msk [vmem:[#allocation2 + $0xdb0] sm:$0xff] %vm305_vm3, %v11075_v32 }
 0x1c8   : > { %745 = vst.msk [vmem:[#allocation2 + $0xdb8] sm:$0xff] %vm305_vm3, %v11075_v32 }
 0x1c9   : > { %746 = vst.msk [vmem:[#allocation2 + $0xdc0] sm:$0xff] %vm305_vm3, %v11075_v32 }
 0x1ca   : > { %747 = vst.msk [vmem:[#allocation2 + $0xdc8] sm:$0xff] %vm305_vm3, %v11075_v32 }
 0x1cb   : > { %748 = vst.msk [vmem:[#allocation2 + $0xdd0] sm:$0xff] %vm305_vm3, %v11075_v32 }
 0x1cc   : > { %749 = vst.msk [vmem:[#allocation2 + $0xdd8] sm:$0xff] %vm305_vm3, %v11075_v32 }
 0x1cd   : > { %750 = vst.msk [vmem:[#allocation2 + $0xde0] sm:$0xff] %vm305_vm3, %v11075_v32 }
 0x1ce   : > { %751 = vst.msk [vmem:[#allocation2 + $0xde8] sm:$0xff] %vm305_vm3, %v11075_v32 }
 0x1cf   : > { %752 = vst.msk [vmem:[#allocation2 + $0xdf0] sm:$0xff] %vm305_vm3, %v11075_v32 }
 0x1d0   : > { %753 = vst.msk [vmem:[#allocation2 + $0xdf8] sm:$0xff] %vm305_vm3, %v11075_v32 }
 0x1d1   : > { %754 = vst.msk [vmem:[#allocation2 + $0xe00] sm:$0xff] %vm305_vm3, %v11075_v32 }
 0x1d2   : > { %755 = vst.msk [vmem:[#allocation2 + $0xe08] sm:$0xff] %vm305_vm3, %v11075_v32 }
 0x1d3   : > { %756 = vst.msk [vmem:[#allocation2 + $0xe10] sm:$0xff] %vm305_vm3, %v11075_v32 }
 0x1d4   : > { %757 = vst.msk [vmem:[#allocation2 + $0xe18] sm:$0xff] %vm305_vm3, %v11075_v32 }
 0x1d5   : > { %758 = vst.msk [vmem:[#allocation2 + $0xe20] sm:$0xff] %vm305_vm3, %v11075_v32 }
 0x1d6   : > { %759 = vst.msk [vmem:[#allocation2 + $0xe28] sm:$0xff] %vm305_vm3, %v11075_v32 }
 0x1d7   : > { %760 = vst.msk [vmem:[#allocation2 + $0xe30] sm:$0xff] %vm305_vm3, %v11075_v32 }
 0x1d8   : > { %761 = vst.msk [vmem:[#allocation2 + $0xe38] sm:$0xff] %vm305_vm3, %v11075_v32 }
 0x1d9   : > { %762 = vst.msk [vmem:[#allocation2 + $0xe40] sm:$0xff] %vm305_vm3, %v11075_v32 }
 0x1da   : > { %763 = vst.msk [vmem:[#allocation2 + $0xe48] sm:$0xff] %vm305_vm3, %v11075_v32 }
 0x1db   : > { %764 = vst.msk [vmem:[#allocation2 + $0xe50] sm:$0xff] %vm305_vm3, %v11075_v32 }
 0x1dc   : > { %765 = vst.msk [vmem:[#allocation2 + $0xe58] sm:$0xff] %vm305_vm3, %v11075_v32 }
 0x1dd   : > { %766 = vst.msk [vmem:[#allocation2 + $0xe60] sm:$0xff] %vm305_vm3, %v11075_v32 }
 0x1de   : > { %767 = vst.msk [vmem:[#allocation2 + $0xe68] sm:$0xff] %vm305_vm3, %v11075_v32 }
 0x1df   : > { %768 = vst.msk [vmem:[#allocation2 + $0xe70] sm:$0xff] %vm305_vm3, %v11075_v32 }
 0x1e0   : > { %769 = vst.msk [vmem:[#allocation2 + $0xe78] sm:$0xff] %vm305_vm3, %v11075_v32 }
 0x1e1   : > { %770 = vst.msk [vmem:[#allocation2 + $0xe80] sm:$0xff] %vm305_vm3, %v11075_v32 }
 0x1e2   : > { %771 = vst.msk [vmem:[#allocation2 + $0xe88] sm:$0xff] %vm305_vm3, %v11075_v32 }
 0x1e3   : > { %772 = vst.msk [vmem:[#allocation2 + $0xe90] sm:$0xff] %vm305_vm3, %v11075_v32 }
 0x1e4   : > { %773 = vst.msk [vmem:[#allocation2 + $0xe98] sm:$0xff] %vm305_vm3, %v11075_v32 }
 0x1e5   : > { %774 = vst.msk [vmem:[#allocation2 + $0xea0] sm:$0xff] %vm305_vm3, %v11075_v32 }
 0x1e6   : > { %775 = vst.msk [vmem:[#allocation2 + $0xea8] sm:$0xff] %vm305_vm3, %v11075_v32 }
 0x1e7   : > { %776 = vst.msk [vmem:[#allocation2 + $0xeb0] sm:$0xff] %vm305_vm3, %v11075_v32 }
 0x1e8   : > { %777 = vst.msk [vmem:[#allocation2 + $0xeb8] sm:$0xff] %vm305_vm3, %v11075_v32 }
 0x1e9   : > { %778 = vst.msk [vmem:[#allocation2 + $0xec0] sm:$0xff] %vm305_vm3, %v11075_v32 }
 0x1ea   : > { %779 = vst.msk [vmem:[#allocation2 + $0xec8] sm:$0xff] %vm305_vm3, %v11075_v32 }
 0x1eb   : > { %780 = vst.msk [vmem:[#allocation2 + $0xed0] sm:$0xff] %vm305_vm3, %v11075_v32 }
 0x1ec   : > { %781 = vst.msk [vmem:[#allocation2 + $0xed8] sm:$0xff] %vm305_vm3, %v11075_v32 }
 0x1ed   : > { %782 = vst.msk [vmem:[#allocation2 + $0xee0] sm:$0xff] %vm305_vm3, %v11075_v32 }
 0x1ee   : > { %783 = vst.msk [vmem:[#allocation2 + $0xee8] sm:$0xff] %vm305_vm3, %v11075_v32 }
 0x1ef   : > { %784 = vst.msk [vmem:[#allocation2 + $0xef0] sm:$0xff] %vm305_vm3, %v11075_v32 }
 0x1f0   : > { %785 = vst.msk [vmem:[#allocation2 + $0xef8] sm:$0xff] %vm305_vm3, %v11075_v32 }
 0x1f1   : > { %786 = vst.msk [vmem:[#allocation2 + $0xf00] sm:$0xff] %vm305_vm3, %v11075_v32 }
 0x1f2   : > { %787 = vst.msk [vmem:[#allocation2 + $0xf08] sm:$0xff] %vm305_vm3, %v11075_v32 }
 0x1f3   : > { %788 = vst.msk [vmem:[#allocation2 + $0xf10] sm:$0xff] %vm305_vm3, %v11075_v32 }
 0x1f4   : > { %789 = vst.msk [vmem:[#allocation2 + $0xf18] sm:$0xff] %vm305_vm3, %v11075_v32 }
 0x1f5   : > { %790 = vst.msk [vmem:[#allocation2 + $0xf20] sm:$0xff] %vm305_vm3, %v11075_v32 }
 0x1f6   : > { %791 = vst.msk [vmem:[#allocation2 + $0xf28] sm:$0xff] %vm305_vm3, %v11075_v32 }
 0x1f7   : > { %792 = vst.msk [vmem:[#allocation2 + $0xf30] sm:$0xff] %vm305_vm3, %v11075_v32 }
 0x1f8   : > { %793 = vst.msk [vmem:[#allocation2 + $0xf38] sm:$0xff] %vm305_vm3, %v11075_v32 }
 0x1f9   : > { %794 = vst.msk [vmem:[#allocation2 + $0xf40] sm:$0xff] %vm305_vm3, %v11075_v32 }
 0x1fa   : > { %795 = vst.msk [vmem:[#allocation2 + $0xf48] sm:$0xff] %vm305_vm3, %v11075_v32 }
 0x1fb   : > { %796 = vst.msk [vmem:[#allocation2 + $0xf50] sm:$0xff] %vm305_vm3, %v11075_v32 }
 0x1fc   : > { %797 = vst.msk [vmem:[#allocation2 + $0xf58] sm:$0xff] %vm305_vm3, %v11075_v32 }
 0x1fd   : > { %798 = vst.msk [vmem:[#allocation2 + $0xf60] sm:$0xff] %vm305_vm3, %v11075_v32 }
 0x1fe   : > { %799 = vst.msk [vmem:[#allocation2 + $0xf68] sm:$0xff] %vm305_vm3, %v11075_v32 }
 0x1ff   : > { %800 = vst.msk [vmem:[#allocation2 + $0xf70] sm:$0xff] %vm305_vm3, %v11075_v32 }
 0x200   : > { %801 = vst.msk [vmem:[#allocation2 + $0xf78] sm:$0xff] %vm305_vm3, %v11075_v32 }
 0x201   : > { %802 = vst.msk [vmem:[#allocation2 + $0xf80] sm:$0xff] %vm305_vm3, %v11075_v32 }
 0x202   : > { %803 = vst.msk [vmem:[#allocation2 + $0xf88] sm:$0xff] %vm305_vm3, %v11075_v32 }
 0x203   : > { %804 = vst.msk [vmem:[#allocation2 + $0xf90] sm:$0xff] %vm305_vm3, %v11075_v32 }
 0x204   : > { %805 = vst.msk [vmem:[#allocation2 + $0xf98] sm:$0xff] %vm305_vm3, %v11075_v32 }
 0x205   : > { %806 = vst.msk [vmem:[#allocation2 + $0xfa0] sm:$0xff] %vm305_vm3, %v11075_v32 }
 0x206   : > { %807 = vst.msk [vmem:[#allocation2 + $0xfa8] sm:$0xff] %vm305_vm3, %v11075_v32 }
 0x207   : > { %808 = vst.msk [vmem:[#allocation2 + $0xfb0] sm:$0xff] %vm305_vm3, %v11075_v32 }
 0x208   : > { %809 = vst.msk [vmem:[#allocation2 + $0xfb8] sm:$0xff] %vm305_vm3, %v11075_v32 }
 0x209   : > { %810 = vst.msk [vmem:[#allocation2 + $0xfc0] sm:$0xff] %vm305_vm3, %v11075_v32 }
 0x20a   : > { %811 = vst.msk [vmem:[#allocation2 + $0xfc8] sm:$0xff] %vm305_vm3, %v11075_v32 }
 0x20b   : > { %812 = vst.msk [vmem:[#allocation2 + $0xfd0] sm:$0xff] %vm305_vm3, %v11075_v32 }
 0x20c   : > { %813 = vst.msk [vmem:[#allocation2 + $0xfd8] sm:$0xff] %vm305_vm3, %v11075_v32 }
 0x20d   : > { %814 = vst.msk [vmem:[#allocation2 + $0xfe0] sm:$0xff] %vm305_vm3, %v11075_v32 }
 0x20e   : > { %815 = vst.msk [vmem:[#allocation2 + $0xfe8] sm:$0xff] %vm305_vm3, %v11075_v32 }
 0x20f   : > { %816 = vst.msk [vmem:[#allocation2 + $0xff0] sm:$0xff] %vm305_vm3, %v11075_v32 }
 0x210   : > { %817 = vst.msk [vmem:[#allocation2 + $0xff8] sm:$0xff] %vm305_vm3, %v11075_v32  ;;  %v12314_v32 = vpop.f32.mrf.mxu1 }
 0x211   : > { %5843 = vst.msk [vmem:[#allocation2 + $0x400] sm:$0xff] %vm305_vm3, %v5330_v19 }
 0x212   : > { %5971 = vst.msk [vmem:[#allocation2 + $0x800] sm:$0xff] %vm305_vm3, %v5458_v21 }
 0x213   : > { %6099 = vst.msk [vmem:[#allocation2 + $0xc00] sm:$0xff] %vm305_vm3, %v5586_v23 }
 0x214   : > { %5716 = vst.msk [vmem:[#allocation2 + $0x8] sm:$0xff] %vm305_vm3, %v5203_v25 }
 0x215   : > { %5844 = vst.msk [vmem:[#allocation2 + $0x408] sm:$0xff] %vm305_vm3, %v5331_v29 }
 0x216   : > { %5972 = vst.msk [vmem:[#allocation2 + $0x808] sm:$0xff] %vm305_vm3, %v5459_v31  ;;  %v12382_v31 = vpop.f32.mrf.mxu3 }
 0x217   : > { %6100 = vst.msk [vmem:[#allocation2 + $0xc08] sm:$0xff] %vm305_vm3, %v5587_v35 }
 0x218   : > { %v6358_v45 = vld [vmem:[#allocation2 + $0x400] sm:$0xff]  ;;  %5717 = vst.msk [vmem:[#allocation2 + $0x10] sm:$0xff] %vm305_vm3, %v5204_v37  ;;  %v12345_v59 = vpop.f32.mrf.mxu1 }
 0x219   : > { %v6874_v51 = vmul.f32 %v12335_v50, %v6358_v45  ;;  %v6486_v52 = vld [vmem:[#allocation2 + $0x800] sm:$0xff]  ;;  %5845 = vst.msk [vmem:[#allocation2 + $0x410] sm:$0xff] %vm305_vm3, %v5332_v39 }
 0x21a   : > { %v7002_v55 = vmul.f32 %v12335_v50, %v6486_v52  ;;  %v6614_v56 = vld [vmem:[#allocation2 + $0xc00] sm:$0xff]  ;;  %5973 = vst.msk [vmem:[#allocation2 + $0x810] sm:$0xff] %vm305_vm3, %v5460_v41 }
 0x21b   : > { %v7390_v61 = vadd.f32 %v12350_v60, %v6874_v51  ;;  %v7130_v62 = vmul.f32 %v12335_v50, %v6614_v56  ;;  %v6231_v63 = vld [vmem:[#allocation2 + $0x8] sm:$0xff]  ;;  %6101 = vst.msk [vmem:[#allocation2 + $0xc10] sm:$0xff] %vm305_vm3, %v5588_v43 }
 0x21c   : > { %v7518_v3 = vadd.f32 %v12350_v60, %v7002_v55  ;;  %v6747_v4 = vmul.f32 %v12335_v50, %v6231_v63  ;;  %v6359_v5 = vld [vmem:[#allocation2 + $0x408] sm:$0xff]  ;;  %5718 = vst.msk [vmem:[#allocation2 + $0x18] sm:$0xff] %vm305_vm3, %v5205_v46 }
 0x21d   : > { %v7902_v10 = vmax.f32 %v7390_v61, 0.0  ;;  %v7646_v11 = vadd.f32 %v12350_v60, %v7130_v62  ;;  %v6875_v14 = vmul.f32 %v12335_v50, %v6359_v5  ;;  %v6487_v15 = vld [vmem:[#allocation2 + $0x808] sm:$0xff]  ;;  %5846 = vst.msk [vmem:[#allocation2 + $0x418] sm:$0xff] %vm305_vm3, %v5333_v53 }
 0x21e   : > { %v8030_v9 = vmax.f32 %v7518_v3, 0.0  ;;  %v7263_v16 = vadd.f32 %v12350_v60, %v6747_v4  ;;  %v7003_v17 = vmul.f32 %v12335_v50, %v6487_v15  ;;  %v6615_v12 = vld [vmem:[#allocation2 + $0xc08] sm:$0xff]  ;;  %5974 = vst.msk [vmem:[#allocation2 + $0x818] sm:$0xff] %vm305_vm3, %v5461_v57 }
 0x21f   : > { %v8414_v18 = vpack.c.bf16 %v7902_v10, %v7902_v10  ;;  %v8158_v19 = vmax.f32 %v7646_v11, 0.0  ;;  %v7391_v20 = vadd.f32 %v12350_v60, %v6875_v14  ;;  %v7131_v21 = vmul.f32 %v12335_v50, %v6615_v12  ;;  %v6232_v22 = vld [vmem:[#allocation2 + $0x10] sm:$0xff]  ;;  %6102 = vst.msk [vmem:[#allocation2 + $0xc18] sm:$0xff] %vm305_vm3, %v5589_v0 }
 0x220   : > { %v8542_v23 = vpack.c.bf16 %v8030_v9, %v8030_v9  ;;  %v7775_v24 = vmax.f32 %v7263_v16, 0.0  ;;  %v7519_v25 = vadd.f32 %v12350_v60, %v7003_v17  ;;  %v6748_v26 = vmul.f32 %v12335_v50, %v6232_v22  ;;  %v6360_v29 = vld [vmem:[#allocation2 + $0x410] sm:$0xff]  ;;  %5719 = vst.msk [vmem:[#allocation2 + $0x20] sm:$0xff] %vm305_vm3, %v5206_v6  ;;  %v12394_v45 = vpop.f32.mrf.mxu1 }
 0x221   : > { %8927 = vst.msk [vmem:[%s11330_s10 + $0x200] sm:$0xf] %vm8798_vm4, %v8414_v18  ;;  %v8670_v33 = vpack.c.bf16 %v8158_v19, %v8158_v19  ;;  %v7903_v35 = vmax.f32 %v7391_v20, 0.0  ;;  %v7647_v36 = vadd.f32 %v12350_v60, %v7131_v21  ;;  %v6876_v37 = vmul.f32 %v12335_v50, %v6360_v29  ;;  %v6488_v38 = vld [vmem:[#allocation2 + $0x810] sm:$0xff]  ;;  %v12420_v18 = vpop.f32.mrf.mxu2  ;;  %v12422_v19 = vpop.f32.mrf.mxu3  ;;  %v1078_v29 = vld [vmem:[#allocation2 + $0x820] sm:$0xff] }
 0x222   : > { %9055 = vst.msk [vmem:[%s11330_s10 + $0x400] sm:$0xf] %vm8798_vm4, %v8542_v23  ;;  %v8287_v39 = vpack.c.bf16 %v7775_v24, %v7775_v24  ;;  %v8031_v40 = vmax.f32 %v7519_v25, 0.0  ;;  %v7264_v41 = vadd.f32 %v12350_v60, %v6748_v26  ;;  %v7004_v42 = vmul.f32 %v12335_v50, %v6488_v38  ;;  %v6616_v43 = vld [vmem:[#allocation2 + $0xc10] sm:$0xff]  ;;  %v950_v26 = vld [vmem:[#allocation2 + $0x420] sm:$0xff] }
 0x223   : > { %9183 = vst.msk [vmem:[%s11330_s10 + $0x600] sm:$0xf] %vm8798_vm4, %v8670_v33  ;;  %v8415_v46 = vpack.c.bf16 %v7903_v35, %v7903_v35  ;;  %v8159_v47 = vmax.f32 %v7647_v36, 0.0  ;;  %v7392_v51 = vadd.f32 %v12350_v60, %v6876_v37  ;;  %v7132_v52 = vmul.f32 %v12335_v50, %v6616_v43  ;;  %v6233_v53 = vld [vmem:[#allocation2 + $0x18] sm:$0xff]  ;;  %v12430_v33 = vpop.f32.mrf.mxu0  ;;  %v10748_v38 = vld [vmem:[%s11136_s29 + $0x60] sm:$0xff] }
 0x224   : > { %8800 = vst.msk [vmem:[%s11330_s10 + $0x4] sm:$0xf] %vm8798_vm4, %v8287_v39  ;;  %v8543_v54 = vpack.c.bf16 %v8031_v40, %v8031_v40  ;;  %v7776_v55 = vmax.f32 %v7264_v41, 0.0  ;;  %v7520_v56 = vadd.f32 %v12350_v60, %v7004_v42  ;;  %v6749_v57 = vmul.f32 %v12335_v50, %v6233_v53  ;;  %v6361_v61 = vld [vmem:[#allocation2 + $0x418] sm:$0xff]  ;;  %v10812_v39 = vld [vmem:[%s11136_s29 + $0x260] sm:$0xff]  ;;  %10490 = vmatmul.msk.bf16.gmra.mxu0 %vm3137_vm2, %v10748_v38  ;;  %v10877_v38 = vld [vmem:[%s11136_s29 + $0x468] sm:$0xff] }
 0x225   : > { %8928 = vst.msk [vmem:[%s11330_s10 + $0x204] sm:$0xf] %vm8798_vm4, %v8415_v46  ;;  %v8671_v62 = vpack.c.bf16 %v8159_v47, %v8159_v47  ;;  %v7904_v63 = vmax.f32 %v7392_v51, 0.0  ;;  %v7648_v0 = vadd.f32 %v12350_v60, %v7132_v52  ;;  %v6877_v1 = vmul.f32 %v12335_v50, %v6361_v61  ;;  %v6489_v2 = vld [vmem:[#allocation2 + $0x818] sm:$0xff]  ;;  %v10876_v40 = vld [vmem:[%s11136_s29 + $0x460] sm:$0xff]  ;;  %v823_v52 = vld [vmem:[#allocation2 + $0x28] sm:$0xff]  ;;  %10554 = vmatmul.msk.bf16.gmra.mxu1 %vm3137_vm2, %v10812_v39 }
 0x226   : > { %9056 = vst.msk [vmem:[%s11330_s10 + $0x404] sm:$0xf] %vm8798_vm4, %v8543_v54  ;;  %v8288_v3 = vpack.c.bf16 %v7776_v55, %v7776_v55  ;;  %v8032_v4 = vmax.f32 %v7520_v56, 0.0  ;;  %v7265_v5 = vadd.f32 %v12350_v60, %v6749_v57  ;;  %v7005_v6 = vmul.f32 %v12335_v50, %v6489_v2  ;;  %v6617_v7 = vld [vmem:[#allocation2 + $0xc18] sm:$0xff]  ;;  %v1206_v43 = vld [vmem:[#allocation2 + $0xc20] sm:$0xff]  ;;  %v951_v55 = vld [vmem:[#allocation2 + $0x428] sm:$0xff]  ;;  %10618 = vmatmul.msk.bf16.gmra.mxu2 %vm3137_vm2, %v10876_v40 }
 0x227   : > { %9184 = vst.msk [vmem:[%s11330_s10 + $0x604] sm:$0xf] %vm8798_vm4, %v8671_v62  ;;  %v8416_v8 = vpack.c.bf16 %v7904_v63, %v7904_v63  ;;  %v8160_v10 = vmax.f32 %v7648_v0, 0.0  ;;  %v7393_v11 = vadd.f32 %v12350_v60, %v6877_v1  ;;  %v7133_v14 = vmul.f32 %v12335_v50, %v6617_v7  ;;  %v6234_v15 = vld [vmem:[#allocation2 + $0x20] sm:$0xff]  ;;  %v1207_v61 = vld [vmem:[#allocation2 + $0xc28] sm:$0xff]  ;;  %v824_v0 = vld [vmem:[#allocation2 + $0x30] sm:$0xff] }
 0x228   : > { %8801 = vst.msk [vmem:[%s11330_s10 + $0x8] sm:$0xf] %vm8798_vm4, %v8288_v3  ;;  %v8544_v9 = vpack.c.bf16 %v8032_v4, %v8032_v4  ;;  %v7777_v16 = vmax.f32 %v7265_v5, 0.0  ;;  %v7521_v17 = vadd.f32 %v12350_v60, %v7005_v6  ;;  %v6750_v12 = vmul.f32 %v12335_v50, %v6234_v15  ;;  %v12432_v35 = vpop.f32.mrf.mxu1  ;;  %v10940_v46 = vld [vmem:[%s11136_s29 + $0x660] sm:$0xff]  ;;  %v1080_v4 = vld [vmem:[#allocation2 + $0x830] sm:$0xff]  ;;  %v10941_v39 = vld [vmem:[%s11136_s29 + $0x668] sm:$0xff] }
 0x229   : > { %8929 = vst.msk [vmem:[%s11330_s10 + $0x208] sm:$0xf] %vm8798_vm4, %v8416_v8  ;;  %v8672_v20 = vpack.c.bf16 %v8160_v10, %v8160_v10  ;;  %v7905_v21 = vmax.f32 %v7393_v11, 0.0  ;;  %v7649_v22 = vadd.f32 %v12350_v60, %v7133_v14  ;;  %v5334_v51 = vadd.f32 %v12278_v13, %v950_v26  ;;  %10682 = vmatmul.msk.bf16.gmra.mxu3 %vm3137_vm2, %v10940_v46  ;;  %v1079_v13 = vld [vmem:[#allocation2 + $0x828] sm:$0xff]  ;;  %v12458_v62 = vpop.f32.mrf.mxu2  ;;  %v12460_v63 = vpop.f32.mrf.mxu3  ;;  %v953_v8 = vld [vmem:[#allocation2 + $0x438] sm:$0xff] }
 0x22a   : > { %9057 = vst.msk [vmem:[%s11330_s10 + $0x408] sm:$0xf] %vm8798_vm4, %v8544_v9  ;;  %v8289_v23 = vpack.c.bf16 %v7777_v16, %v7777_v16  ;;  %v8033_v24 = vmax.f32 %v7521_v17, 0.0  ;;  %v7266_v25 = vadd.f32 %v12350_v60, %v6750_v12  ;;  %v5462_v54 = vadd.f32 %v12304_v27, %v1078_v29  ;;  %v1081_v10 = vld [vmem:[#allocation2 + $0x838] sm:$0xff]  ;;  %v826_v16 = vld [vmem:[#allocation2 + $0x40] sm:$0xff]  ;;  %v10813_v26 = vld [vmem:[%s11136_s29 + $0x268] sm:$0xff] }
 0x22b   : > { %9185 = vst.msk [vmem:[%s11330_s10 + $0x608] sm:$0xf] %vm8798_vm4, %v8672_v20  ;;  %v8417_v36 = vpack.c.bf16 %v7905_v21, %v7905_v21  ;;  %v8161_v37 = vmax.f32 %v7649_v22, 0.0  ;;  %v5590_v56 = vadd.f32 %v12306_v28, %v1206_v43  ;;  %v5207_v57 = vadd.f32 %v12312_v34, %v823_v52  ;;  %v952_v28 = vld [vmem:[#allocation2 + $0x430] sm:$0xff]  ;;  %v12466_v2 = vpop.f32.mrf.mxu0  ;;  %v1209_v14 = vld [vmem:[#allocation2 + $0xc38] sm:$0xff] }
 0x22c   : > { %8802 = vst.msk [vmem:[%s11330_s10 + $0xc] sm:$0xf] %vm8798_vm4, %v8289_v23  ;;  %v8545_v41 = vpack.c.bf16 %v8033_v24, %v8033_v24  ;;  %v7778_v42 = vmax.f32 %v7266_v25, 0.0  ;;  %v5335_v27 = vadd.f32 %v12314_v32, %v951_v55  ;;  %v5463_v1 = vadd.f32 %v12328_v48, %v1079_v13  ;;  %v1208_v32 = vld [vmem:[#allocation2 + $0xc30] sm:$0xff]  ;;  %v825_v48 = vld [vmem:[#allocation2 + $0x38] sm:$0xff]  ;;  %v10749_v25 = vld [vmem:[%s11136_s29 + $0x68] sm:$0xff] }
 0x22d   : > { %8930 = vst.msk [vmem:[%s11330_s10 + $0x20c] sm:$0xf] %vm8798_vm4, %v8417_v36  ;;  %v8673_v47 = vpack.c.bf16 %v8161_v37, %v8161_v37  ;;  %v5591_v34 = vadd.f32 %v12330_v49, %v1207_v61  ;;  %v5208_v5 = vadd.f32 %v12343_v58, %v824_v0  ;;  %v5336_v6 = vadd.f32 %v12345_v59, %v952_v28 }
 0x22e   : > { %9058 = vst.msk [vmem:[%s11330_s10 + $0x40c] sm:$0xf] %vm8798_vm4, %v8545_v41  ;;  %v8290_v53 = vpack.c.bf16 %v7778_v42, %v7778_v42  ;;  %v5464_v7 = vadd.f32 %v12380_v30, %v1080_v4  ;;  %v5592_v49 = vadd.f32 %v12382_v31, %v1208_v32  ;;  %v5209_v58 = vadd.f32 %v12392_v44, %v825_v48 }
 0x22f   : > { %9186 = vst.msk [vmem:[%s11330_s10 + $0x60c] sm:$0xf] %vm8798_vm4, %v8673_v47  ;;  %v5337_v31 = vadd.f32 %v12394_v45, %v953_v8  ;;  %v5465_v44 = vadd.f32 %v12420_v18, %v1081_v10  ;;  %v5593_v45 = vadd.f32 %v12422_v19, %v1209_v14  ;;  %v5210_v37 = vadd.f32 %v12430_v33, %v826_v16 }
 0x230   : > { %8803 = vst.msk [vmem:[%s11330_s10 + $0x10] sm:$0xf] %vm8798_vm4, %v8290_v53  ;;  %v12468_v3 = vpop.f32.mrf.mxu1 }
 0x231   : > { %5847 = vst.msk [vmem:[#allocation2 + $0x420] sm:$0xff] %vm305_vm3, %v5334_v51  ;;  %v12482_v15 = vpop.f32.mrf.mxu2  ;;  %v12484_v59 = vpop.f32.mrf.mxu3 }
 0x232   : > { %5975 = vst.msk [vmem:[#allocation2 + $0x820] sm:$0xff] %vm305_vm3, %v5462_v54 }
 0x233   : > { %6103 = vst.msk [vmem:[#allocation2 + $0xc20] sm:$0xff] %vm305_vm3, %v5590_v56  ;;  %v12492_v20 = vpop.f32.mrf.mxu0 }
 0x234   : > { %5720 = vst.msk [vmem:[#allocation2 + $0x28] sm:$0xff] %vm305_vm3, %v5207_v57  ;;  %10491 = vmatmul.msk.bf16.gmra.mxu0 %vm3137_vm2, %v10749_v25 }
 0x235   : > { %5848 = vst.msk [vmem:[#allocation2 + $0x428] sm:$0xff] %vm305_vm3, %v5335_v27  ;;  %10555 = vmatmul.msk.bf16.gmra.mxu1 %vm3137_vm2, %v10813_v26 }
 0x236   : > { %5976 = vst.msk [vmem:[#allocation2 + $0x828] sm:$0xff] %vm305_vm3, %v5463_v1  ;;  %10619 = vmatmul.msk.bf16.gmra.mxu2 %vm3137_vm2, %v10877_v38 }
 0x237   : > { %6104 = vst.msk [vmem:[#allocation2 + $0xc28] sm:$0xff] %vm305_vm3, %v5591_v34 }
 0x238   : > { %v6362_v11 = vld [vmem:[#allocation2 + $0x420] sm:$0xff]  ;;  %5721 = vst.msk [vmem:[#allocation2 + $0x30] sm:$0xff] %vm305_vm3, %v5208_v5  ;;  %v12494_v21 = vpop.f32.mrf.mxu1 }
 0x239   : > { %v6878_v9 = vmul.f32 %v12335_v50, %v6362_v11  ;;  %v6490_v30 = vld [vmem:[#allocation2 + $0x820] sm:$0xff]  ;;  %5849 = vst.msk [vmem:[#allocation2 + $0x430] sm:$0xff] %vm305_vm3, %v5336_v6  ;;  %10683 = vmatmul.msk.bf16.gmra.mxu3 %vm3137_vm2, %v10941_v39  ;;  %v12524_v0 = vpop.f32.mrf.mxu2  ;;  %v12526_v1 = vpop.f32.mrf.mxu3 }
 0x23a   : > { %v7006_v17 = vmul.f32 %v12335_v50, %v6490_v30  ;;  %v6618_v12 = vld [vmem:[#allocation2 + $0xc20] sm:$0xff]  ;;  %5977 = vst.msk [vmem:[#allocation2 + $0x830] sm:$0xff] %vm305_vm3, %v5464_v7 }
 0x23b   : > { %v7394_v22 = vadd.f32 %v12350_v60, %v6878_v9  ;;  %v7134_v23 = vmul.f32 %v12335_v50, %v6618_v12  ;;  %v6235_v24 = vld [vmem:[#allocation2 + $0x28] sm:$0xff]  ;;  %6105 = vst.msk [vmem:[#allocation2 + $0xc30] sm:$0xff] %vm305_vm3, %v5592_v49  ;;  %v12536_v10 = vpop.f32.mrf.mxu0 }
 0x23c   : > { %v7522_v29 = vadd.f32 %v12350_v60, %v7006_v17  ;;  %v6751_v18 = vmul.f32 %v12335_v50, %v6235_v24  ;;  %v6363_v36 = vld [vmem:[#allocation2 + $0x428] sm:$0xff]  ;;  %5722 = vst.msk [vmem:[#allocation2 + $0x38] sm:$0xff] %vm305_vm3, %v5209_v58 }
 0x23d   : > { %v7906_v40 = vmax.f32 %v7394_v22, 0.0  ;;  %v7650_v41 = vadd.f32 %v12350_v60, %v7134_v23  ;;  %v6879_v42 = vmul.f32 %v12335_v50, %v6363_v36  ;;  %v6491_v43 = vld [vmem:[#allocation2 + $0x828] sm:$0xff]  ;;  %5850 = vst.msk [vmem:[#allocation2 + $0x438] sm:$0xff] %vm305_vm3, %v5337_v31 }
 0x23e   : > { %v8034_v19 = vmax.f32 %v7522_v29, 0.0  ;;  %v7267_v46 = vadd.f32 %v12350_v60, %v6751_v18  ;;  %v7007_v47 = vmul.f32 %v12335_v50, %v6491_v43  ;;  %v6619_v33 = vld [vmem:[#allocation2 + $0xc28] sm:$0xff]  ;;  %5978 = vst.msk [vmem:[#allocation2 + $0x838] sm:$0xff] %vm305_vm3, %v5465_v44 }
 0x23f   : > { %v8418_v51 = vpack.c.bf16 %v7906_v40, %v7906_v40  ;;  %v8162_v52 = vmax.f32 %v7650_v41, 0.0  ;;  %v7395_v53 = vadd.f32 %v12350_v60, %v6879_v42  ;;  %v7135_v54 = vmul.f32 %v12335_v50, %v6619_v33  ;;  %v6236_v55 = vld [vmem:[#allocation2 + $0x30] sm:$0xff]  ;;  %6106 = vst.msk [vmem:[#allocation2 + $0xc38] sm:$0xff] %vm305_vm3, %v5593_v45 }
 0x240   : > { %v8546_v56 = vpack.c.bf16 %v8034_v19, %v8034_v19  ;;  %v7779_v13 = vmax.f32 %v7267_v46, 0.0  ;;  %v7523_v57 = vadd.f32 %v12350_v60, %v7007_v47  ;;  %v6752_v61 = vmul.f32 %v12335_v50, %v6236_v55  ;;  %v6364_v27 = vld [vmem:[#allocation2 + $0x430] sm:$0xff]  ;;  %5723 = vst.msk [vmem:[#allocation2 + $0x40] sm:$0xff] %vm305_vm3, %v5210_v37  ;;  %v12538_v11 = vpop.f32.mrf.mxu1 }
 0x241   : > { %8931 = vst.msk [vmem:[%s11330_s10 + $0x210] sm:$0xf] %vm8798_vm4, %v8418_v51  ;;  %v8674_v28 = vpack.c.bf16 %v8162_v52, %v8162_v52  ;;  %v7907_v34 = vmax.f32 %v7395_v53, 0.0  ;;  %v7651_v4 = vadd.f32 %v12350_v60, %v7135_v54  ;;  %v6880_v5 = vmul.f32 %v12335_v50, %v6364_v27  ;;  %v6492_v32 = vld [vmem:[#allocation2 + $0x830] sm:$0xff]  ;;  %v12564_v51 = vpop.f32.mrf.mxu2  ;;  %v12566_v52 = vpop.f32.mrf.mxu3  ;;  %v1082_v27 = vld [vmem:[#allocation2 + $0x840] sm:$0xff] }
 0x242   : > { %9059 = vst.msk [vmem:[%s11330_s10 + $0x410] sm:$0xf] %vm8798_vm4, %v8546_v56  ;;  %v8291_v6 = vpack.c.bf16 %v7779_v13, %v7779_v13  ;;  %v8035_v48 = vmax.f32 %v7523_v57, 0.0  ;;  %v7268_v7 = vadd.f32 %v12350_v60, %v6752_v61  ;;  %v7008_v8 = vmul.f32 %v12335_v50, %v6492_v32  ;;  %v6620_v49 = vld [vmem:[#allocation2 + $0xc30] sm:$0xff]  ;;  %v954_v61 = vld [vmem:[#allocation2 + $0x440] sm:$0xff] }
 0x243   : > { %9187 = vst.msk [vmem:[%s11330_s10 + $0x610] sm:$0xf] %vm8798_vm4, %v8674_v28  ;;  %v8419_v58 = vpack.c.bf16 %v7907_v34, %v7907_v34  ;;  %v8163_v14 = vmax.f32 %v7651_v4, 0.0  ;;  %v7396_v9 = vadd.f32 %v12350_v60, %v6880_v5  ;;  %v7136_v30 = vmul.f32 %v12335_v50, %v6620_v49  ;;  %v6237_v31 = vld [vmem:[#allocation2 + $0x38] sm:$0xff]  ;;  %v12574_v28 = vpop.f32.mrf.mxu0  ;;  %v10750_v32 = vld [vmem:[%s11136_s29 + $0x70] sm:$0xff]  ;;  %v1210_v49 = vld [vmem:[#allocation2 + $0xc40] sm:$0xff] }
 0x244   : > { %8804 = vst.msk [vmem:[%s11330_s10 + $0x14] sm:$0xf] %vm8798_vm4, %v8291_v6  ;;  %v8547_v16 = vpack.c.bf16 %v8035_v48, %v8035_v48  ;;  %v7780_v17 = vmax.f32 %v7268_v7, 0.0  ;;  %v7524_v12 = vadd.f32 %v12350_v60, %v7008_v8  ;;  %v6753_v44 = vmul.f32 %v12335_v50, %v6237_v31  ;;  %v6365_v22 = vld [vmem:[#allocation2 + $0x438] sm:$0xff]  ;;  %v10814_v6 = vld [vmem:[%s11136_s29 + $0x270] sm:$0xff]  ;;  %10492 = vmatmul.msk.bf16.gmra.mxu0 %vm3137_vm2, %v10750_v32 }
 0x245   : > { %8932 = vst.msk [vmem:[%s11330_s10 + $0x214] sm:$0xf] %vm8798_vm4, %v8419_v58  ;;  %v8675_v23 = vpack.c.bf16 %v8163_v14, %v8163_v14  ;;  %v7908_v24 = vmax.f32 %v7396_v9, 0.0  ;;  %v7652_v45 = vadd.f32 %v12350_v60, %v7136_v30  ;;  %v6881_v25 = vmul.f32 %v12335_v50, %v6365_v22  ;;  %v6493_v26 = vld [vmem:[#allocation2 + $0x838] sm:$0xff]  ;;  %v10878_v48 = vld [vmem:[%s11136_s29 + $0x470] sm:$0xff]  ;;  %v827_v30 = vld [vmem:[#allocation2 + $0x48] sm:$0xff]  ;;  %10556 = vmatmul.msk.bf16.gmra.mxu1 %vm3137_vm2, %v10814_v6 }
 0x246   : > { %9060 = vst.msk [vmem:[%s11330_s10 + $0x414] sm:$0xf] %vm8798_vm4, %v8547_v16  ;;  %v8292_v29 = vpack.c.bf16 %v7780_v17, %v7780_v17  ;;  %v8036_v18 = vmax.f32 %v7524_v12, 0.0  ;;  %v7269_v36 = vadd.f32 %v12350_v60, %v6753_v44  ;;  %v7009_v37 = vmul.f32 %v12335_v50, %v6493_v26  ;;  %v6621_v38 = vld [vmem:[#allocation2 + $0xc38] sm:$0xff]  ;;  %v10942_v58 = vld [vmem:[%s11136_s29 + $0x670] sm:$0xff]  ;;  %v955_v17 = vld [vmem:[#allocation2 + $0x448] sm:$0xff]  ;;  %10620 = vmatmul.msk.bf16.gmra.mxu2 %vm3137_vm2, %v10878_v48 }
 0x247   : > { %9188 = vst.msk [vmem:[%s11330_s10 + $0x614] sm:$0xf] %vm8798_vm4, %v8675_v23  ;;  %v8420_v39 = vpack.c.bf16 %v7908_v24, %v7908_v24  ;;  %v8164_v40 = vmax.f32 %v7652_v45, 0.0  ;;  %v7397_v41 = vadd.f32 %v12350_v60, %v6881_v25  ;;  %v7137_v42 = vmul.f32 %v12335_v50, %v6621_v38  ;;  %v6238_v43 = vld [vmem:[#allocation2 + $0x40] sm:$0xff]  ;;  %v1211_v22 = vld [vmem:[#allocation2 + $0xc48] sm:$0xff]  ;;  %v828_v45 = vld [vmem:[#allocation2 + $0x50] sm:$0xff] }
 0x248   : > { %8805 = vst.msk [vmem:[%s11330_s10 + $0x18] sm:$0xf] %vm8798_vm4, %v8292_v29  ;;  %v8548_v19 = vpack.c.bf16 %v8036_v18, %v8036_v18  ;;  %v7781_v46 = vmax.f32 %v7269_v36, 0.0  ;;  %v7525_v47 = vadd.f32 %v12350_v60, %v7009_v37  ;;  %v6754_v33 = vmul.f32 %v12335_v50, %v6238_v43  ;;  %v12576_v34 = vpop.f32.mrf.mxu1  ;;  %v1084_v18 = vld [vmem:[#allocation2 + $0x850] sm:$0xff]  ;;  %v10879_v32 = vld [vmem:[%s11136_s29 + $0x478] sm:$0xff] }
 0x249   : > { %8933 = vst.msk [vmem:[%s11330_s10 + $0x218] sm:$0xf] %vm8798_vm4, %v8420_v39  ;;  %v8676_v53 = vpack.c.bf16 %v8164_v40, %v8164_v40  ;;  %v7909_v54 = vmax.f32 %v7397_v41, 0.0  ;;  %v7653_v55 = vadd.f32 %v12350_v60, %v7137_v42  ;;  %v5338_v9 = vadd.f32 %v12432_v35, %v954_v61  ;;  %10684 = vmatmul.msk.bf16.gmra.mxu3 %vm3137_vm2, %v10942_v58  ;;  %v1083_v35 = vld [vmem:[#allocation2 + $0x848] sm:$0xff]  ;;  %v12602_v23 = vpop.f32.mrf.mxu2  ;;  %v12604_v24 = vpop.f32.mrf.mxu3  ;;  %v957_v39 = vld [vmem:[#allocation2 + $0x458] sm:$0xff] }
 0x24a   : > { %9061 = vst.msk [vmem:[%s11330_s10 + $0x418] sm:$0xf] %vm8798_vm4, %v8548_v19  ;;  %v8293_v56 = vpack.c.bf16 %v7781_v46, %v7781_v46  ;;  %v8037_v13 = vmax.f32 %v7525_v47, 0.0  ;;  %v7270_v57 = vadd.f32 %v12350_v60, %v6754_v33  ;;  %v5466_v16 = vadd.f32 %v12458_v62, %v1082_v27  ;;  %v1085_v40 = vld [vmem:[#allocation2 + $0x858] sm:$0xff]  ;;  %v830_v46 = vld [vmem:[#allocation2 + $0x60] sm:$0xff] }
 0x24b   : > { %9189 = vst.msk [vmem:[%s11330_s10 + $0x618] sm:$0xf] %vm8798_vm4, %v8676_v53  ;;  %v8421_v4 = vpack.c.bf16 %v7909_v54, %v7909_v54  ;;  %v8165_v5 = vmax.f32 %v7653_v55, 0.0  ;;  %v5594_v12 = vadd.f32 %v12460_v63, %v1210_v49  ;;  %v5211_v44 = vadd.f32 %v12466_v2, %v827_v30  ;;  %v956_v63 = vld [vmem:[#allocation2 + $0x450] sm:$0xff]  ;;  %v12610_v26 = vpop.f32.mrf.mxu0  ;;  %v1213_v42 = vld [vmem:[#allocation2 + $0xc58] sm:$0xff] }
 0x24c   : > { %8806 = vst.msk [vmem:[%s11330_s10 + $0x1c] sm:$0xf] %vm8798_vm4, %v8293_v56  ;;  %v8549_v7 = vpack.c.bf16 %v8037_v13, %v8037_v13  ;;  %v7782_v8 = vmax.f32 %v7270_v57, 0.0  ;;  %v5339_v62 = vadd.f32 %v12468_v3, %v955_v17  ;;  %v5467_v25 = vadd.f32 %v12482_v15, %v1083_v35  ;;  %v1212_v3 = vld [vmem:[#allocation2 + $0xc50] sm:$0xff]  ;;  %v829_v15 = vld [vmem:[#allocation2 + $0x58] sm:$0xff] }
 0x24d   : > { %8934 = vst.msk [vmem:[%s11330_s10 + $0x21c] sm:$0xf] %vm8798_vm4, %v8421_v4  ;;  %v8677_v14 = vpack.c.bf16 %v8165_v5, %v8165_v5  ;;  %v5595_v2 = vadd.f32 %v12484_v59, %v1211_v22  ;;  %v5212_v36 = vadd.f32 %v12492_v20, %v828_v45  ;;  %v5340_v37 = vadd.f32 %v12494_v21, %v956_v63  ;;  %v10751_v57 = vld [vmem:[%s11136_s29 + $0x78] sm:$0xff] }
 0x24e   : > { %9062 = vst.msk [vmem:[%s11330_s10 + $0x41c] sm:$0xf] %vm8798_vm4, %v8549_v7  ;;  %v8294_v31 = vpack.c.bf16 %v7782_v8, %v7782_v8  ;;  %v5468_v38 = vadd.f32 %v12524_v0, %v1084_v18  ;;  %v5596_v59 = vadd.f32 %v12526_v1, %v1212_v3  ;;  %v5213_v20 = vadd.f32 %v12536_v10, %v829_v15  ;;  %v10815_v61 = vld [vmem:[%s11136_s29 + $0x278] sm:$0xff] }
 0x24f   : > { %9190 = vst.msk [vmem:[%s11330_s10 + $0x61c] sm:$0xf] %vm8798_vm4, %v8677_v14  ;;  %v5341_v1 = vadd.f32 %v12538_v11, %v957_v39  ;;  %v5469_v10 = vadd.f32 %v12564_v51, %v1085_v40  ;;  %v5597_v11 = vadd.f32 %v12566_v52, %v1213_v42  ;;  %v5214_v5 = vadd.f32 %v12574_v28, %v830_v46  ;;  %v10943_v6 = vld [vmem:[%s11136_s29 + $0x678] sm:$0xff] }
 0x250   : > { %8807 = vst.msk [vmem:[%s11330_s10 + $0x20] sm:$0xf] %vm8798_vm4, %v8294_v31  ;;  %v12612_v29 = vpop.f32.mrf.mxu1 }
 0x251   : > { %5851 = vst.msk [vmem:[#allocation2 + $0x440] sm:$0xff] %vm305_vm3, %v5338_v9  ;;  %v12626_v43 = vpop.f32.mrf.mxu2  ;;  %v12628_v21 = vpop.f32.mrf.mxu3 }
 0x252   : > { %5979 = vst.msk [vmem:[#allocation2 + $0x840] sm:$0xff] %vm305_vm3, %v5466_v16 }
 0x253   : > { %6107 = vst.msk [vmem:[#allocation2 + $0xc40] sm:$0xff] %vm305_vm3, %v5594_v12  ;;  %v12636_v53 = vpop.f32.mrf.mxu0 }
 0x254   : > { %5724 = vst.msk [vmem:[#allocation2 + $0x48] sm:$0xff] %vm305_vm3, %v5211_v44  ;;  %10493 = vmatmul.msk.bf16.gmra.mxu0 %vm3137_vm2, %v10751_v57 }
 0x255   : > { %5852 = vst.msk [vmem:[#allocation2 + $0x448] sm:$0xff] %vm305_vm3, %v5339_v62  ;;  %10557 = vmatmul.msk.bf16.gmra.mxu1 %vm3137_vm2, %v10815_v61 }
 0x256   : > { %5980 = vst.msk [vmem:[#allocation2 + $0x848] sm:$0xff] %vm305_vm3, %v5467_v25  ;;  %10621 = vmatmul.msk.bf16.gmra.mxu2 %vm3137_vm2, %v10879_v32 }
 0x257   : > { %6108 = vst.msk [vmem:[#allocation2 + $0xc48] sm:$0xff] %vm305_vm3, %v5595_v2 }
 0x258   : > { %v6366_v41 = vld [vmem:[#allocation2 + $0x440] sm:$0xff]  ;;  %5725 = vst.msk [vmem:[#allocation2 + $0x50] sm:$0xff] %vm305_vm3, %v5212_v36  ;;  %v12638_v54 = vpop.f32.mrf.mxu1 }
 0x259   : > { %v6882_v19 = vmul.f32 %v12335_v50, %v6366_v41  ;;  %v6494_v0 = vld [vmem:[#allocation2 + $0x840] sm:$0xff]  ;;  %5853 = vst.msk [vmem:[#allocation2 + $0x450] sm:$0xff] %vm305_vm3, %v5340_v37  ;;  %10685 = vmatmul.msk.bf16.gmra.mxu3 %vm3137_vm2, %v10943_v6  ;;  %v12668_v45 = vpop.f32.mrf.mxu2  ;;  %v12670_v25 = vpop.f32.mrf.mxu3 }
 0x25a   : > { %v7010_v47 = vmul.f32 %v12335_v50, %v6494_v0  ;;  %v6622_v33 = vld [vmem:[#allocation2 + $0xc40] sm:$0xff]  ;;  %5981 = vst.msk [vmem:[#allocation2 + $0x850] sm:$0xff] %vm305_vm3, %v5468_v38 }
 0x25b   : > { %v7398_v55 = vadd.f32 %v12350_v60, %v6882_v19  ;;  %v7138_v56 = vmul.f32 %v12335_v50, %v6622_v33  ;;  %v6239_v13 = vld [vmem:[#allocation2 + $0x48] sm:$0xff]  ;;  %6109 = vst.msk [vmem:[#allocation2 + $0xc50] sm:$0xff] %vm305_vm3, %v5596_v59  ;;  %v12680_v40 = vpop.f32.mrf.mxu0 }
 0x25c   : > { %v7526_v27 = vadd.f32 %v12350_v60, %v7010_v47  ;;  %v6755_v51 = vmul.f32 %v12335_v50, %v6239_v13  ;;  %v6367_v4 = vld [vmem:[#allocation2 + $0x448] sm:$0xff]  ;;  %5726 = vst.msk [vmem:[#allocation2 + $0x58] sm:$0xff] %vm305_vm3, %v5213_v20 }
 0x25d   : > { %v7910_v48 = vmax.f32 %v7398_v55, 0.0  ;;  %v7654_v7 = vadd.f32 %v12350_v60, %v7138_v56  ;;  %v6883_v8 = vmul.f32 %v12335_v50, %v6367_v4  ;;  %v6495_v49 = vld [vmem:[#allocation2 + $0x848] sm:$0xff]  ;;  %5854 = vst.msk [vmem:[#allocation2 + $0x458] sm:$0xff] %vm305_vm3, %v5341_v1 }
 0x25e   : > { %v8038_v52 = vmax.f32 %v7526_v27, 0.0  ;;  %v7271_v58 = vadd.f32 %v12350_v60, %v6755_v51  ;;  %v7011_v14 = vmul.f32 %v12335_v50, %v6495_v49  ;;  %v6623_v28 = vld [vmem:[#allocation2 + $0xc48] sm:$0xff]  ;;  %5982 = vst.msk [vmem:[#allocation2 + $0x858] sm:$0xff] %vm305_vm3, %v5469_v10 }
 0x25f   : > { %v8422_v9 = vpack.c.bf16 %v7910_v48, %v7910_v48  ;;  %v8166_v30 = vmax.f32 %v7654_v7, 0.0  ;;  %v7399_v31 = vadd.f32 %v12350_v60, %v6883_v8  ;;  %v7139_v16 = vmul.f32 %v12335_v50, %v6623_v28  ;;  %v6240_v17 = vld [vmem:[#allocation2 + $0x50] sm:$0xff]  ;;  %6110 = vst.msk [vmem:[#allocation2 + $0xc58] sm:$0xff] %vm305_vm3, %v5597_v11 }
 0x260   : > { %v8550_v12 = vpack.c.bf16 %v8038_v52, %v8038_v52  ;;  %v7783_v35 = vmax.f32 %v7271_v58, 0.0  ;;  %v7527_v44 = vadd.f32 %v12350_v60, %v7011_v14  ;;  %v6756_v22 = vmul.f32 %v12335_v50, %v6240_v17  ;;  %v6368_v62 = vld [vmem:[#allocation2 + $0x450] sm:$0xff]  ;;  %5727 = vst.msk [vmem:[#allocation2 + $0x60] sm:$0xff] %vm305_vm3, %v5214_v5  ;;  %v12682_v41 = vpop.f32.mrf.mxu1 }
 0x261   : > { %8935 = vst.msk [vmem:[%s11330_s10 + $0x220] sm:$0xf] %vm8798_vm4, %v8422_v9  ;;  %v8678_v63 = vpack.c.bf16 %v8166_v30, %v8166_v30  ;;  %v7911_v2 = vmax.f32 %v7399_v31, 0.0  ;;  %v7655_v18 = vadd.f32 %v12350_v60, %v7139_v16  ;;  %v6884_v36 = vmul.f32 %v12335_v50, %v6368_v62  ;;  %v6496_v3 = vld [vmem:[#allocation2 + $0x850] sm:$0xff]  ;;  %v12708_v9 = vpop.f32.mrf.mxu2  ;;  %v12710_v30 = vpop.f32.mrf.mxu3 }
 0x262   : > { %9063 = vst.msk [vmem:[%s11330_s10 + $0x420] sm:$0xf] %vm8798_vm4, %v8550_v12  ;;  %v8295_v37 = vpack.c.bf16 %v7783_v35, %v7783_v35  ;;  %v8039_v15 = vmax.f32 %v7527_v44, 0.0  ;;  %v7272_v38 = vadd.f32 %v12350_v60, %v6756_v22  ;;  %v7012_v39 = vmul.f32 %v12335_v50, %v6496_v3  ;;  %v6624_v59 = vld [vmem:[#allocation2 + $0xc50] sm:$0xff]  ;;  %v958_v44 = vld [vmem:[#allocation2 + $0x460] sm:$0xff] }
 0x263   : > { %9191 = vst.msk [vmem:[%s11330_s10 + $0x620] sm:$0xf] %vm8798_vm4, %v8678_v63  ;;  %v8423_v20 = vpack.c.bf16 %v7911_v2, %v7911_v2  ;;  %v8167_v42 = vmax.f32 %v7655_v18, 0.0  ;;  %v7400_v19 = vadd.f32 %v12350_v60, %v6884_v36  ;;  %v7140_v0 = vmul.f32 %v12335_v50, %v6624_v59  ;;  %v6241_v1 = vld [vmem:[#allocation2 + $0x58] sm:$0xff]  ;;  %v1086_v22 = vld [vmem:[#allocation2 + $0x860] sm:$0xff]  ;;  %v12718_v62 = vpop.f32.mrf.mxu0 }
 0x264   : > { %8808 = vst.msk [vmem:[%s11330_s10 + $0x24] sm:$0xf] %vm8798_vm4, %v8295_v37  ;;  %v8551_v46 = vpack.c.bf16 %v8039_v15, %v8039_v15  ;;  %v7784_v47 = vmax.f32 %v7272_v38, 0.0  ;;  %v7528_v33 = vadd.f32 %v12350_v60, %v7012_v39  ;;  %v6757_v10 = vmul.f32 %v12335_v50, %v6241_v1  ;;  %v6369_v55 = vld [vmem:[#allocation2 + $0x458] sm:$0xff]  ;;  %v10752_v36 = vld [vmem:[%s11136_s29 + $0x80] sm:$0xff]  ;;  %v959_v1 = vld [vmem:[#allocation2 + $0x468] sm:$0xff] }
 0x265   : > { %8936 = vst.msk [vmem:[%s11330_s10 + $0x224] sm:$0xf] %vm8798_vm4, %v8423_v20  ;;  %v8679_v56 = vpack.c.bf16 %v8167_v42, %v8167_v42  ;;  %v7912_v13 = vmax.f32 %v7400_v19, 0.0  ;;  %v7656_v11 = vadd.f32 %v12350_v60, %v7140_v0  ;;  %v6885_v57 = vmul.f32 %v12335_v50, %v6369_v55  ;;  %v6497_v61 = vld [vmem:[#allocation2 + $0x858] sm:$0xff]  ;;  %v10816_v3 = vld [vmem:[%s11136_s29 + $0x280] sm:$0xff]  ;;  %v831_v42 = vld [vmem:[#allocation2 + $0x68] sm:$0xff]  ;;  %10494 = vmatmul.msk.bf16.gmra.mxu0 %vm3137_vm2, %v10752_v36 }
 0x266   : > { %9064 = vst.msk [vmem:[%s11330_s10 + $0x424] sm:$0xf] %vm8798_vm4, %v8551_v46  ;;  %v8296_v27 = vpack.c.bf16 %v7784_v47, %v7784_v47  ;;  %v8040_v51 = vmax.f32 %v7528_v33, 0.0  ;;  %v7273_v4 = vadd.f32 %v12350_v60, %v6757_v10  ;;  %v7013_v5 = vmul.f32 %v12335_v50, %v6497_v61  ;;  %v6625_v32 = vld [vmem:[#allocation2 + $0xc58] sm:$0xff]  ;;  %v10880_v37 = vld [vmem:[%s11136_s29 + $0x480] sm:$0xff]  ;;  %10558 = vmatmul.msk.bf16.gmra.mxu1 %vm3137_vm2, %v10816_v3  ;;  %v1215_v33 = vld [vmem:[#allocation2 + $0xc68] sm:$0xff] }
 0x267   : > { %9192 = vst.msk [vmem:[%s11330_s10 + $0x624] sm:$0xf] %vm8798_vm4, %v8679_v56  ;;  %v8424_v6 = vpack.c.bf16 %v7912_v13, %v7912_v13  ;;  %v8168_v48 = vmax.f32 %v7656_v11, 0.0  ;;  %v7401_v7 = vadd.f32 %v12350_v60, %v6885_v57  ;;  %v7141_v8 = vmul.f32 %v12335_v50, %v6625_v32  ;;  %v6242_v49 = vld [vmem:[#allocation2 + $0x60] sm:$0xff]  ;;  %10622 = vmatmul.msk.bf16.gmra.mxu2 %vm3137_vm2, %v10880_v37  ;;  %v832_v56 = vld [vmem:[#allocation2 + $0x70] sm:$0xff]  ;;  %v1089_v32 = vld [vmem:[#allocation2 + $0x878] sm:$0xff] }
 0x268   : > { %8809 = vst.msk [vmem:[%s11330_s10 + $0x28] sm:$0xf] %vm8798_vm4, %v8296_v27  ;;  %v8552_v52 = vpack.c.bf16 %v8040_v51, %v8040_v51  ;;  %v7785_v58 = vmax.f32 %v7273_v4, 0.0  ;;  %v7529_v14 = vadd.f32 %v12350_v60, %v7013_v5  ;;  %v6758_v28 = vmul.f32 %v12335_v50, %v6242_v49  ;;  %v12720_v63 = vpop.f32.mrf.mxu1  ;;  %v1214_v38 = vld [vmem:[#allocation2 + $0xc60] sm:$0xff]  ;;  %v1088_v61 = vld [vmem:[#allocation2 + $0x870] sm:$0xff]  ;;  %v961_v5 = vld [vmem:[#allocation2 + $0x478] sm:$0xff] }
 0x269   : > { %8937 = vst.msk [vmem:[%s11330_s10 + $0x228] sm:$0xf] %vm8798_vm4, %v8424_v6  ;;  %v8680_v31 = vpack.c.bf16 %v8168_v48, %v8168_v48  ;;  %v7913_v16 = vmax.f32 %v7401_v7, 0.0  ;;  %v7657_v17 = vadd.f32 %v12350_v60, %v7141_v8  ;;  %v10944_v39 = vld [vmem:[%s11136_s29 + $0x680] sm:$0xff]  ;;  %v5342_v20 = vadd.f32 %v12576_v34, %v958_v44  ;;  %v1087_v34 = vld [vmem:[#allocation2 + $0x868] sm:$0xff]  ;;  %v12746_v10 = vpop.f32.mrf.mxu2  ;;  %v12748_v55 = vpop.f32.mrf.mxu3  ;;  %v1217_v48 = vld [vmem:[#allocation2 + $0xc78] sm:$0xff] }
 0x26a   : > { %9065 = vst.msk [vmem:[%s11330_s10 + $0x428] sm:$0xf] %vm8798_vm4, %v8552_v52  ;;  %v8297_v12 = vpack.c.bf16 %v7785_v58, %v7785_v58  ;;  %v8041_v35 = vmax.f32 %v7529_v14, 0.0  ;;  %v7274_v50 = vadd.f32 %v12350_v60, %v6758_v28  ;;  %v5470_v0 = vadd.f32 %v12602_v23, %v1086_v22  ;;  %10686 = vmatmul.msk.bf16.gmra.mxu3 %vm3137_vm2, %v10944_v39  ;;  %v10881_v36 = vld [vmem:[%s11136_s29 + $0x488] sm:$0xff] }
 0x26b   : > { %9193 = vst.msk [vmem:[%s11330_s10 + $0x628] sm:$0xf] %vm8798_vm4, %v8680_v31  ;;  %v8425_v2 = vpack.c.bf16 %v7913_v16, %v7913_v16  ;;  %v8169_v18 = vmax.f32 %v7657_v17, 0.0  ;;  %v5598_v46 = vadd.f32 %v12604_v24, %v1214_v38  ;;  %v5215_v47 = vadd.f32 %v12610_v26, %v831_v42  ;;  %v960_v24 = vld [vmem:[#allocation2 + $0x470] sm:$0xff]  ;;  %v12754_v11 = vpop.f32.mrf.mxu0  ;;  %v12792_v16 = vld [vmem:[%s16858_s3] ss:$0 sm:$0xff] }
 0x26c   : > { %8810 = vst.msk [vmem:[%s11330_s10 + $0x2c] sm:$0xf] %vm8798_vm4, %v8297_v12  ;;  %v8553_v15 = vpack.c.bf16 %v8041_v35, %v8041_v35  ;;  %v7786_v60 = vmax.f32 %v7274_v50, 0.0  ;;  %v5343_v23 = vadd.f32 %v12612_v29, %v959_v1  ;;  %v5471_v13 = vadd.f32 %v12626_v43, %v1087_v34  ;;  %v1216_v29 = vld [vmem:[#allocation2 + $0xc70] sm:$0xff]  ;;  %v833_v43 = vld [vmem:[#allocation2 + $0x78] sm:$0xff]  ;;  %v10753_v35 = vld [vmem:[%s11136_s29 + $0x88] sm:$0xff] }
 0x26d   : > { %8938 = vst.msk [vmem:[%s11330_s10 + $0x22c] sm:$0xf] %vm8798_vm4, %v8425_v2  ;;  %v8681_v59 = vpack.c.bf16 %v8169_v18, %v8169_v18  ;;  %v5599_v26 = vadd.f32 %v12628_v21, %v1215_v33  ;;  %v5216_v27 = vadd.f32 %v12636_v53, %v832_v56  ;;  %v5344_v51 = vadd.f32 %v12638_v54, %v960_v24  ;;  %v10817_v50 = vld [vmem:[%s11136_s29 + $0x288] sm:$0xff] }
 0x26e   : > { %9066 = vst.msk [vmem:[%s11330_s10 + $0x42c] sm:$0xf] %vm8798_vm4, %v8553_v15  ;;  %v8298_v19 = vpack.c.bf16 %v7786_v60, %v7786_v60  ;;  %v5472_v4 = vadd.f32 %v12668_v45, %v1088_v61  ;;  %v5600_v21 = vadd.f32 %v12670_v25, %v1216_v29  ;;  %v5217_v53 = vadd.f32 %v12680_v40, %v833_v43  ;;  %v12777_v45 = vld [vmem:[%s16857_s2] ss:$0 sm:$0xff]  ;;  %v10945_v3 = vld [vmem:[%s11136_s29 + $0x688] sm:$0xff] }
 0x26f   : > { %9194 = vst.msk [vmem:[%s11330_s10 + $0x62c] sm:$0xf] %vm8798_vm4, %v8681_v59  ;;  %v5345_v25 = vadd.f32 %v12682_v41, %v961_v5  ;;  %v834_v40 = vld [vmem:[#allocation2 + $0x80] sm:$0xff]  ;;  %v5473_v14 = vadd.f32 %v12708_v9, %v1089_v32  ;;  %v5601_v9 = vadd.f32 %v12710_v30, %v1217_v48 }
 0x270   : > { %8811 = vst.msk [vmem:[%s11330_s10 + $0x30] sm:$0xf] %vm8798_vm4, %v8298_v19  ;;  %v12756_v57 = vpop.f32.mrf.mxu1  ;;  %v5218_v18 = vadd.f32 %v12718_v62, %v834_v40 }
 0x271   : > { %5855 = vst.msk [vmem:[#allocation2 + $0x460] sm:$0xff] %vm305_vm3, %v5342_v20  ;;  %v12770_v7 = vpop.f32.mrf.mxu2  ;;  %v12772_v54 = vpop.f32.mrf.mxu3 }
 0x272   : > { %5983 = vst.msk [vmem:[#allocation2 + $0x860] sm:$0xff] %vm305_vm3, %v5470_v0 }
 0x273   : > { %6111 = vst.msk [vmem:[#allocation2 + $0xc60] sm:$0xff] %vm305_vm3, %v5598_v46  ;;  %v12785_v28 = vpop.f32.mrf.mxu0 }
 0x274   : > { %5728 = vst.msk [vmem:[#allocation2 + $0x68] sm:$0xff] %vm305_vm3, %v5215_v47 }
 0x275   : > { %5856 = vst.msk [vmem:[#allocation2 + $0x468] sm:$0xff] %vm305_vm3, %v5343_v23  ;;  %10495 = vmatmul.msk.bf16.gmra.mxu0 %vm3137_vm2, %v10753_v35 }
 0x276   : > { %5984 = vst.msk [vmem:[#allocation2 + $0x868] sm:$0xff] %vm305_vm3, %v5471_v13  ;;  %10559 = vmatmul.msk.bf16.gmra.mxu1 %vm3137_vm2, %v10817_v50 }
 0x277   : > { %6112 = vst.msk [vmem:[#allocation2 + $0xc68] sm:$0xff] %vm305_vm3, %v5599_v26  ;;  %10623 = vmatmul.msk.bf16.gmra.mxu2 %vm3137_vm2, %v10881_v36 }
 0x278   : > { %v6370_v6 = vld [vmem:[#allocation2 + $0x460] sm:$0xff]  ;;  %5729 = vst.msk [vmem:[#allocation2 + $0x70] sm:$0xff] %vm305_vm3, %v5216_v27  ;;  %v12787_v31 = vpop.f32.mrf.mxu1 }
 0x279   : > { %v6886_v8 = vmul.f32 %v12777_v45, %v6370_v6  ;;  %v6498_v49 = vld [vmem:[#allocation2 + $0x860] sm:$0xff]  ;;  %5857 = vst.msk [vmem:[#allocation2 + $0x470] sm:$0xff] %vm305_vm3, %v5344_v51  ;;  %v12826_v27 = vpop.f32.mrf.mxu2  ;;  %v12828_v29 = vpop.f32.mrf.mxu3 }
 0x27a   : > { %v7014_v52 = vmul.f32 %v12777_v45, %v6498_v49  ;;  %v6626_v58 = vld [vmem:[#allocation2 + $0xc60] sm:$0xff]  ;;  %5985 = vst.msk [vmem:[#allocation2 + $0x870] sm:$0xff] %vm305_vm3, %v5472_v4  ;;  %10687 = vmatmul.msk.bf16.gmra.mxu3 %vm3137_vm2, %v10945_v3 }
 0x27b   : > { %v7402_v41 = vadd.f32 %v12792_v16, %v6886_v8  ;;  %v7142_v17 = vmul.f32 %v12777_v45, %v6626_v58  ;;  %v6243_v12 = vld [vmem:[#allocation2 + $0x68] sm:$0xff]  ;;  %6113 = vst.msk [vmem:[#allocation2 + $0xc70] sm:$0xff] %vm305_vm3, %v5600_v21  ;;  %v12834_v32 = vpop.f32.mrf.mxu0 }
 0x27c   : > { %v7530_v44 = vadd.f32 %v12792_v16, %v7014_v52  ;;  %v6759_v22 = vmul.f32 %v12777_v45, %v6243_v12  ;;  %v6371_v2 = vld [vmem:[#allocation2 + $0x468] sm:$0xff]  ;;  %5730 = vst.msk [vmem:[#allocation2 + $0x78] sm:$0xff] %vm305_vm3, %v5217_v53 }
 0x27d   : > { %v7914_v37 = vmax.f32 %v7402_v41, 0.0  ;;  %v7658_v15 = vadd.f32 %v12792_v16, %v7142_v17  ;;  %v6887_v60 = vmul.f32 %v12777_v45, %v6371_v2  ;;  %v6499_v38 = vld [vmem:[#allocation2 + $0x868] sm:$0xff]  ;;  %5858 = vst.msk [vmem:[#allocation2 + $0x478] sm:$0xff] %vm305_vm3, %v5345_v25 }
 0x27e   : > { %v8042_v30 = vmax.f32 %v7530_v44, 0.0  ;;  %v7275_v39 = vadd.f32 %v12792_v16, %v6759_v22  ;;  %v7015_v59 = vmul.f32 %v12777_v45, %v6499_v38  ;;  %v6627_v62 = vld [vmem:[#allocation2 + $0xc68] sm:$0xff]  ;;  %5986 = vst.msk [vmem:[#allocation2 + $0x878] sm:$0xff] %vm305_vm3, %v5473_v14 }
 0x27f   : > { %v8426_v20 = vpack.c.bf16 %v7914_v37, %v7914_v37  ;;  %v8170_v42 = vmax.f32 %v7658_v15, 0.0  ;;  %v7403_v19 = vadd.f32 %v12792_v16, %v6887_v60  ;;  %v7143_v0 = vmul.f32 %v12777_v45, %v6627_v62  ;;  %v6244_v1 = vld [vmem:[#allocation2 + $0x70] sm:$0xff]  ;;  %6114 = vst.msk [vmem:[#allocation2 + $0xc78] sm:$0xff] %vm305_vm3, %v5601_v9 }
 0x280   : > { %v8554_v46 = vpack.c.bf16 %v8042_v30, %v8042_v30  ;;  %v7787_v34 = vmax.f32 %v7275_v39, 0.0  ;;  %v7531_v47 = vadd.f32 %v12792_v16, %v7015_v59  ;;  %v6760_v33 = vmul.f32 %v12777_v45, %v6244_v1  ;;  %v6372_v23 = vld [vmem:[#allocation2 + $0x470] sm:$0xff]  ;;  %5731 = vst.msk [vmem:[#allocation2 + $0x80] sm:$0xff] %vm305_vm3, %v5218_v18  ;;  %v12836_v6 = vpop.f32.mrf.mxu1 }
 0x281   : > { %8939 = vst.msk [vmem:[%s11330_s10 + $0x230] sm:$0xf] %vm8798_vm4, %v8426_v20  ;;  %v8682_v56 = vpack.c.bf16 %v8170_v42, %v8170_v42  ;;  %v7915_v13 = vmax.f32 %v7403_v19, 0.0  ;;  %v7659_v24 = vadd.f32 %v12792_v16, %v7143_v0  ;;  %v6888_v26 = vmul.f32 %v12777_v45, %v6372_v23  ;;  %v6500_v61 = vld [vmem:[#allocation2 + $0x870] sm:$0xff]  ;;  %v12865_v0 = vpop.f32.mrf.mxu2  ;;  %v12867_v1 = vpop.f32.mrf.mxu3  ;;  %v1090_v23 = vld [vmem:[#allocation2 + $0x880] sm:$0xff] }
 0x282   : > { %9067 = vst.msk [vmem:[%s11330_s10 + $0x430] sm:$0xf] %vm8798_vm4, %v8554_v46  ;;  %v8299_v51 = vpack.c.bf16 %v7787_v34, %v7787_v34  ;;  %v8043_v43 = vmax.f32 %v7531_v47, 0.0  ;;  %v7276_v4 = vadd.f32 %v12792_v16, %v6760_v33  ;;  %v7016_v5 = vmul.f32 %v12777_v45, %v6500_v61  ;;  %v6628_v21 = vld [vmem:[#allocation2 + $0xc70] sm:$0xff]  ;;  %v962_v33 = vld [vmem:[#allocation2 + $0x480] sm:$0xff] }
 0x283   : > { %9195 = vst.msk [vmem:[%s11330_s10 + $0x630] sm:$0xf] %vm8798_vm4, %v8682_v56  ;;  %v8427_v53 = vpack.c.bf16 %v7915_v13, %v7915_v13  ;;  %v8171_v48 = vmax.f32 %v7659_v24, 0.0  ;;  %v7404_v8 = vadd.f32 %v12792_v16, %v6888_v26  ;;  %v7144_v49 = vmul.f32 %v12777_v45, %v6628_v21  ;;  %v6245_v25 = vld [vmem:[#allocation2 + $0x78] sm:$0xff]  ;;  %v12872_v56 = vpop.f32.mrf.mxu0  ;;  %v10754_v61 = vld [vmem:[%s11136_s29 + $0x90] sm:$0xff]  ;;  %v1218_v21 = vld [vmem:[#allocation2 + $0xc80] sm:$0xff] }
 0x284   : > { %8812 = vst.msk [vmem:[%s11330_s10 + $0x34] sm:$0xf] %vm8798_vm4, %v8299_v51  ;;  %v8555_v40 = vpack.c.bf16 %v8043_v43, %v8043_v43  ;;  %v7788_v52 = vmax.f32 %v7276_v4, 0.0  ;;  %v7532_v58 = vadd.f32 %v12792_v16, %v7016_v5  ;;  %v6761_v14 = vmul.f32 %v12777_v45, %v6245_v25  ;;  %v6373_v41 = vld [vmem:[#allocation2 + $0x478] sm:$0xff]  ;;  %v10818_v51 = vld [vmem:[%s11136_s29 + $0x290] sm:$0xff] }
 0x285   : > { %8940 = vst.msk [vmem:[%s11330_s10 + $0x234] sm:$0xf] %vm8798_vm4, %v8427_v53  ;;  %v8683_v17 = vpack.c.bf16 %v8171_v48, %v8171_v48  ;;  %v7916_v12 = vmax.f32 %v7404_v8, 0.0  ;;  %v7660_v9 = vadd.f32 %v12792_v16, %v7144_v49  ;;  %v6889_v35 = vmul.f32 %v12777_v45, %v6373_v41  ;;  %v6501_v50 = vld [vmem:[#allocation2 + $0x878] sm:$0xff]  ;;  %v10882_v43 = vld [vmem:[%s11136_s29 + $0x490] sm:$0xff]  ;;  %v835_v49 = vld [vmem:[#allocation2 + $0x88] sm:$0xff]  ;;  %10496 = vmatmul.msk.bf16.gmra.mxu0 %vm3137_vm2, %v10754_v61 }
 0x286   : > { %9068 = vst.msk [vmem:[%s11330_s10 + $0x434] sm:$0xf] %vm8798_vm4, %v8555_v40  ;;  %v8300_v44 = vpack.c.bf16 %v7788_v52, %v7788_v52  ;;  %v8044_v22 = vmax.f32 %v7532_v58, 0.0  ;;  %v7277_v2 = vadd.f32 %v12792_v16, %v6761_v14  ;;  %v7017_v18 = vmul.f32 %v12777_v45, %v6501_v50  ;;  %v6629_v36 = vld [vmem:[#allocation2 + $0xc78] sm:$0xff]  ;;  %v10946_v53 = vld [vmem:[%s11136_s29 + $0x690] sm:$0xff]  ;;  %10560 = vmatmul.msk.bf16.gmra.mxu1 %vm3137_vm2, %v10818_v51  ;;  %v963_v52 = vld [vmem:[#allocation2 + $0x488] sm:$0xff] }
 0x287   : > { %9196 = vst.msk [vmem:[%s11330_s10 + $0x634] sm:$0xf] %vm8798_vm4, %v8683_v17  ;;  %v8428_v3 = vpack.c.bf16 %v7916_v12, %v7916_v12  ;;  %v8172_v37 = vmax.f32 %v7660_v9, 0.0  ;;  %v7405_v15 = vadd.f32 %v12792_v16, %v6889_v35  ;;  %v7145_v60 = vmul.f32 %v12777_v45, %v6629_v36  ;;  %v6246_v38 = vld [vmem:[#allocation2 + $0x80] sm:$0xff]  ;;  %10624 = vmatmul.msk.bf16.gmra.mxu2 %vm3137_vm2, %v10882_v43  ;;  %v1219_v41 = vld [vmem:[#allocation2 + $0xc88] sm:$0xff]  ;;  %v10883_v61 = vld [vmem:[%s11136_s29 + $0x498] sm:$0xff] }
 0x288   : > { %8813 = vst.msk [vmem:[%s11330_s10 + $0x38] sm:$0xf] %vm8798_vm4, %v8300_v44  ;;  %v8556_v30 = vpack.c.bf16 %v8044_v22, %v8044_v22  ;;  %v7789_v39 = vmax.f32 %v7277_v2, 0.0  ;;  %v7533_v59 = vadd.f32 %v12792_v16, %v7017_v18  ;;  %v6762_v62 = vmul.f32 %v12777_v45, %v6246_v38  ;;  %v12874_v13 = vpop.f32.mrf.mxu1  ;;  %v1092_v22 = vld [vmem:[#allocation2 + $0x890] sm:$0xff]  ;;  %v10947_v51 = vld [vmem:[%s11136_s29 + $0x698] sm:$0xff] }
 0x289   : > { %8941 = vst.msk [vmem:[%s11330_s10 + $0x238] sm:$0xf] %vm8798_vm4, %v8428_v3  ;;  %v8684_v20 = vpack.c.bf16 %v8172_v37, %v8172_v37  ;;  %v7917_v42 = vmax.f32 %v7405_v15, 0.0  ;;  %v7661_v19 = vadd.f32 %v12792_v16, %v7145_v60  ;;  %v5346_v8 = vadd.f32 %v12720_v63, %v962_v33  ;;  %v1091_v63 = vld [vmem:[#allocation2 + $0x888] sm:$0xff]  ;;  %v12902_v12 = vpop.f32.mrf.mxu2  ;;  %v12904_v9 = vpop.f32.mrf.mxu3  ;;  %v1220_v2 = vld [vmem:[#allocation2 + $0xc90] sm:$0xff]  ;;  %v965_v3 = vld [vmem:[#allocation2 + $0x498] sm:$0xff] }
 0x28a   : > { %9069 = vst.msk [vmem:[%s11330_s10 + $0x438] sm:$0xf] %vm8798_vm4, %v8556_v30  ;;  %v8301_v46 = vpack.c.bf16 %v7789_v39, %v7789_v39  ;;  %v8045_v34 = vmax.f32 %v7533_v59, 0.0  ;;  %v7278_v47 = vadd.f32 %v12792_v16, %v6762_v62  ;;  %v5474_v40 = vadd.f32 %v12746_v10, %v1090_v23  ;;  %10688 = vmatmul.msk.bf16.gmra.mxu3 %vm3137_vm2, %v10946_v53  ;;  %v836_v10 = vld [vmem:[#allocation2 + $0x90] sm:$0xff]  ;;  %v1093_v37 = vld [vmem:[#allocation2 + $0x898] sm:$0xff]  ;;  %v838_v30 = vld [vmem:[#allocation2 + $0xa0] sm:$0xff] }
 0x28b   : > { %9197 = vst.msk [vmem:[%s11330_s10 + $0x638] sm:$0xf] %vm8798_vm4, %v8684_v20  ;;  %v8429_v24 = vpack.c.bf16 %v7917_v42, %v7917_v42  ;;  %v8173_v26 = vmax.f32 %v7661_v19, 0.0  ;;  %v5602_v58 = vadd.f32 %v12748_v55, %v1218_v21  ;;  %v5219_v14 = vadd.f32 %v12754_v11, %v835_v49  ;;  %v964_v55 = vld [vmem:[#allocation2 + $0x490] sm:$0xff]  ;;  %v12908_v50 = vpop.f32.mrf.mxu0  ;;  %v1221_v60 = vld [vmem:[#allocation2 + $0xc98] sm:$0xff] }
 0x28c   : > { %8814 = vst.msk [vmem:[%s11330_s10 + $0x3c] sm:$0xf] %vm8798_vm4, %v8301_v46  ;;  %v8557_v4 = vpack.c.bf16 %v8045_v34, %v8045_v34  ;;  %v7790_v5 = vmax.f32 %v7278_v47, 0.0  ;;  %v5347_v17 = vadd.f32 %v12756_v57, %v963_v52  ;;  %v5475_v35 = vadd.f32 %v12770_v7, %v1091_v63  ;;  %v837_v7 = vld [vmem:[#allocation2 + $0x98] sm:$0xff] }
 0x28d   : > { %8942 = vst.msk [vmem:[%s11330_s10 + $0x23c] sm:$0xf] %vm8798_vm4, %v8429_v24  ;;  %v8685_v48 = vpack.c.bf16 %v8173_v26, %v8173_v26  ;;  %v5603_v11 = vadd.f32 %v12772_v54, %v1219_v41  ;;  %v5220_v57 = vadd.f32 %v12785_v28, %v836_v10  ;;  %v5348_v18 = vadd.f32 %v12787_v31, %v964_v55  ;;  %v10755_v47 = vld [vmem:[%s11136_s29 + $0x98] sm:$0xff] }
 0x28e   : > { %9070 = vst.msk [vmem:[%s11330_s10 + $0x43c] sm:$0xf] %vm8798_vm4, %v8557_v4  ;;  %v8302_v25 = vpack.c.bf16 %v7790_v5, %v7790_v5  ;;  %v5476_v36 = vadd.f32 %v12826_v27, %v1092_v22  ;;  %v5604_v54 = vadd.f32 %v12828_v29, %v1220_v2  ;;  %v5221_v28 = vadd.f32 %v12834_v32, %v837_v7  ;;  %v10819_v33 = vld [vmem:[%s11136_s29 + $0x298] sm:$0xff] }
 0x28f   : > { %9198 = vst.msk [vmem:[%s11330_s10 + $0x63c] sm:$0xf] %vm8798_vm4, %v8685_v48  ;;  %v5349_v27 = vadd.f32 %v12836_v6, %v965_v3  ;;  %v5477_v32 = vadd.f32 %v12865_v0, %v1093_v37  ;;  %v5605_v34 = vadd.f32 %v12867_v1, %v1221_v60  ;;  %v5222_v26 = vadd.f32 %v12872_v56, %v838_v30 }
 0x290   : > { %8815 = vst.msk [vmem:[%s11330_s10 + $0x40] sm:$0xf] %vm8798_vm4, %v8302_v25  ;;  %v12910_v44 = vpop.f32.mrf.mxu1 }
 0x291   : > { %5859 = vst.msk [vmem:[#allocation2 + $0x480] sm:$0xff] %vm305_vm3, %v5346_v8  ;;  %v12927_v39 = vpop.f32.mrf.mxu2  ;;  %v12929_v29 = vpop.f32.mrf.mxu3 }
 0x292   : > { %5987 = vst.msk [vmem:[#allocation2 + $0x880] sm:$0xff] %vm305_vm3, %v5474_v40 }
 0x293   : > { %6115 = vst.msk [vmem:[#allocation2 + $0xc80] sm:$0xff] %vm305_vm3, %v5602_v58  ;;  %v12934_v20 = vpop.f32.mrf.mxu0 }
 0x294   : > { %5732 = vst.msk [vmem:[#allocation2 + $0x88] sm:$0xff] %vm305_vm3, %v5219_v14 }
 0x295   : > { %5860 = vst.msk [vmem:[#allocation2 + $0x488] sm:$0xff] %vm305_vm3, %v5347_v17  ;;  %10497 = vmatmul.msk.bf16.gmra.mxu0 %vm3137_vm2, %v10755_v47 }
 0x296   : > { %5988 = vst.msk [vmem:[#allocation2 + $0x888] sm:$0xff] %vm305_vm3, %v5475_v35  ;;  %10561 = vmatmul.msk.bf16.gmra.mxu1 %vm3137_vm2, %v10819_v33 }
 0x297   : > { %6116 = vst.msk [vmem:[#allocation2 + $0xc88] sm:$0xff] %vm305_vm3, %v5603_v11  ;;  %10625 = vmatmul.msk.bf16.gmra.mxu2 %vm3137_vm2, %v10883_v61 }
 0x298   : > { %v6374_v15 = vld [vmem:[#allocation2 + $0x480] sm:$0xff]  ;;  %5733 = vst.msk [vmem:[#allocation2 + $0x90] sm:$0xff] %vm305_vm3, %v5220_v57  ;;  %v12936_v42 = vpop.f32.mrf.mxu1 }
 0x299   : > { %v6890_v38 = vmul.f32 %v12777_v45, %v6374_v15  ;;  %v6502_v31 = vld [vmem:[#allocation2 + $0x880] sm:$0xff]  ;;  %5861 = vst.msk [vmem:[#allocation2 + $0x490] sm:$0xff] %vm305_vm3, %v5348_v18  ;;  %v12970_v57 = vpop.f32.mrf.mxu2  ;;  %v12972_v2 = vpop.f32.mrf.mxu3 }
 0x29a   : > { %v7018_v59 = vmul.f32 %v12777_v45, %v6502_v31  ;;  %v6630_v62 = vld [vmem:[#allocation2 + $0xc80] sm:$0xff]  ;;  %5989 = vst.msk [vmem:[#allocation2 + $0x890] sm:$0xff] %vm305_vm3, %v5476_v36  ;;  %10689 = vmatmul.msk.bf16.gmra.mxu3 %vm3137_vm2, %v10947_v51 }
 0x29b   : > { %v7406_v6 = vadd.f32 %v12792_v16, %v6890_v38  ;;  %v7146_v19 = vmul.f32 %v12777_v45, %v6630_v62  ;;  %v6247_v46 = vld [vmem:[#allocation2 + $0x88] sm:$0xff]  ;;  %6117 = vst.msk [vmem:[#allocation2 + $0xc90] sm:$0xff] %vm305_vm3, %v5604_v54  ;;  %v12978_v37 = vpop.f32.mrf.mxu0 }
 0x29c   : > { %v7534_v23 = vadd.f32 %v12792_v16, %v7018_v59  ;;  %v6763_v0 = vmul.f32 %v12777_v45, %v6247_v46  ;;  %v6375_v24 = vld [vmem:[#allocation2 + $0x488] sm:$0xff]  ;;  %5734 = vst.msk [vmem:[#allocation2 + $0x98] sm:$0xff] %vm305_vm3, %v5221_v28 }
 0x29d   : > { %v7918_v43 = vmax.f32 %v7406_v6, 0.0  ;;  %v7662_v4 = vadd.f32 %v12792_v16, %v7146_v19  ;;  %v6891_v5 = vmul.f32 %v12777_v45, %v6375_v24  ;;  %v6503_v21 = vld [vmem:[#allocation2 + $0x888] sm:$0xff]  ;;  %5862 = vst.msk [vmem:[#allocation2 + $0x498] sm:$0xff] %vm305_vm3, %v5349_v27 }
 0x29e   : > { %v8046_v1 = vmax.f32 %v7534_v23, 0.0  ;;  %v7279_v53 = vadd.f32 %v12792_v16, %v6763_v0  ;;  %v7019_v48 = vmul.f32 %v12777_v45, %v6503_v21  ;;  %v6631_v56 = vld [vmem:[#allocation2 + $0xc88] sm:$0xff]  ;;  %5990 = vst.msk [vmem:[#allocation2 + $0x898] sm:$0xff] %vm305_vm3, %v5477_v32 }
 0x29f   : > { %v8430_v8 = vpack.c.bf16 %v7918_v43, %v7918_v43  ;;  %v8174_v49 = vmax.f32 %v7662_v4, 0.0  ;;  %v7407_v25 = vadd.f32 %v12792_v16, %v6891_v5  ;;  %v7147_v40 = vmul.f32 %v12777_v45, %v6631_v56  ;;  %v6248_v52 = vld [vmem:[#allocation2 + $0x90] sm:$0xff]  ;;  %6118 = vst.msk [vmem:[#allocation2 + $0xc98] sm:$0xff] %vm305_vm3, %v5605_v34 }
 0x2a0   : > { %v8558_v58 = vpack.c.bf16 %v8046_v1, %v8046_v1  ;;  %v7791_v63 = vmax.f32 %v7279_v53, 0.0  ;;  %v7535_v14 = vadd.f32 %v12792_v16, %v7019_v48  ;;  %v6764_v41 = vmul.f32 %v12777_v45, %v6248_v52  ;;  %v6376_v17 = vld [vmem:[#allocation2 + $0x490] sm:$0xff]  ;;  %5735 = vst.msk [vmem:[#allocation2 + $0xa0] sm:$0xff] %vm305_vm3, %v5222_v26  ;;  %v12980_v15 = vpop.f32.mrf.mxu1 }
 0x2a1   : > { %8943 = vst.msk [vmem:[%s11330_s10 + $0x240] sm:$0xf] %vm8798_vm4, %v8430_v8  ;;  %v8686_v10 = vpack.c.bf16 %v8174_v49, %v8174_v49  ;;  %v7919_v35 = vmax.f32 %v7407_v25, 0.0  ;;  %v7663_v55 = vadd.f32 %v12792_v16, %v7147_v40  ;;  %v6892_v11 = vmul.f32 %v12777_v45, %v6376_v17  ;;  %v6504_v22 = vld [vmem:[#allocation2 + $0x890] sm:$0xff]  ;;  %v13009_v40 = vpop.f32.mrf.mxu2  ;;  %v13011_v52 = vpop.f32.mrf.mxu3  ;;  %v1094_v17 = vld [vmem:[#allocation2 + $0x8a0] sm:$0xff] }
 0x2a2   : > { %9071 = vst.msk [vmem:[%s11330_s10 + $0x440] sm:$0xf] %vm8798_vm4, %v8558_v58  ;;  %v8303_v18 = vpack.c.bf16 %v7791_v63, %v7791_v63  ;;  %v8047_v7 = vmax.f32 %v7535_v14, 0.0  ;;  %v7280_v36 = vadd.f32 %v12792_v16, %v6764_v41  ;;  %v7020_v3 = vmul.f32 %v12777_v45, %v6504_v22  ;;  %v6632_v54 = vld [vmem:[#allocation2 + $0xc90] sm:$0xff]  ;;  %v966_v41 = vld [vmem:[#allocation2 + $0x4a0] sm:$0xff] }
 0x2a3   : > { %9199 = vst.msk [vmem:[%s11330_s10 + $0x640] sm:$0xf] %vm8798_vm4, %v8686_v10  ;;  %v8431_v28 = vpack.c.bf16 %v7919_v35, %v7919_v35  ;;  %v8175_v60 = vmax.f32 %v7663_v55, 0.0  ;;  %v7408_v38 = vadd.f32 %v12792_v16, %v6892_v11  ;;  %v7148_v31 = vmul.f32 %v12777_v45, %v6632_v54  ;;  %v6249_v27 = vld [vmem:[#allocation2 + $0x98] sm:$0xff]  ;;  %v13016_v10 = vpop.f32.mrf.mxu0  ;;  %v10756_v22 = vld [vmem:[%s11136_s29 + $0xa0] sm:$0xff] }
 0x2a4   : > { %8816 = vst.msk [vmem:[%s11330_s10 + $0x44] sm:$0xf] %vm8798_vm4, %v8303_v18  ;;  %v8559_v30 = vpack.c.bf16 %v8047_v7, %v8047_v7  ;;  %v7792_v59 = vmax.f32 %v7280_v36, 0.0  ;;  %v7536_v62 = vadd.f32 %v12792_v16, %v7020_v3  ;;  %v6765_v32 = vmul.f32 %v12777_v45, %v6249_v27  ;;  %v6377_v6 = vld [vmem:[#allocation2 + $0x498] sm:$0xff]  ;;  %v10820_v18 = vld [vmem:[%s11136_s29 + $0x2a0] sm:$0xff] }
 0x2a5   : > { %8944 = vst.msk [vmem:[%s11330_s10 + $0x244] sm:$0xf] %vm8798_vm4, %v8431_v28  ;;  %v8687_v19 = vpack.c.bf16 %v8175_v60, %v8175_v60  ;;  %v7920_v46 = vmax.f32 %v7408_v38, 0.0  ;;  %v7664_v34 = vadd.f32 %v12792_v16, %v7148_v31  ;;  %v6893_v47 = vmul.f32 %v12777_v45, %v6377_v6  ;;  %v6505_v33 = vld [vmem:[#allocation2 + $0x898] sm:$0xff]  ;;  %v10884_v7 = vld [vmem:[%s11136_s29 + $0x4a0] sm:$0xff]  ;;  %v839_v31 = vld [vmem:[#allocation2 + $0xa8] sm:$0xff]  ;;  %10498 = vmatmul.msk.bf16.gmra.mxu0 %vm3137_vm2, %v10756_v22 }
 0x2a6   : > { %9072 = vst.msk [vmem:[%s11330_s10 + $0x444] sm:$0xf] %vm8798_vm4, %v8559_v30  ;;  %v8304_v23 = vpack.c.bf16 %v7792_v59, %v7792_v59  ;;  %v8048_v0 = vmax.f32 %v7536_v62, 0.0  ;;  %v7281_v24 = vadd.f32 %v12792_v16, %v6765_v32  ;;  %v7021_v26 = vmul.f32 %v12777_v45, %v6505_v33  ;;  %v6633_v61 = vld [vmem:[#allocation2 + $0xc98] sm:$0xff]  ;;  %v1222_v54 = vld [vmem:[#allocation2 + $0xca0] sm:$0xff]  ;;  %10562 = vmatmul.msk.bf16.gmra.mxu1 %vm3137_vm2, %v10820_v18  ;;  %v967_v59 = vld [vmem:[#allocation2 + $0x4a8] sm:$0xff] }
 0x2a7   : > { %9200 = vst.msk [vmem:[%s11330_s10 + $0x644] sm:$0xf] %vm8798_vm4, %v8687_v19  ;;  %v8432_v51 = vpack.c.bf16 %v7920_v46, %v7920_v46  ;;  %v8176_v43 = vmax.f32 %v7664_v34, 0.0  ;;  %v7409_v4 = vadd.f32 %v12792_v16, %v6893_v47  ;;  %v7149_v5 = vmul.f32 %v12777_v45, %v6633_v61  ;;  %v6250_v21 = vld [vmem:[#allocation2 + $0xa0] sm:$0xff]  ;;  %10626 = vmatmul.msk.bf16.gmra.mxu2 %vm3137_vm2, %v10884_v7  ;;  %v1223_v6 = vld [vmem:[#allocation2 + $0xca8] sm:$0xff] }
 0x2a8   : > { %8817 = vst.msk [vmem:[%s11330_s10 + $0x48] sm:$0xf] %vm8798_vm4, %v8304_v23  ;;  %v8560_v1 = vpack.c.bf16 %v8048_v0, %v8048_v0  ;;  %v7793_v53 = vmax.f32 %v7281_v24, 0.0  ;;  %v7537_v48 = vadd.f32 %v12792_v16, %v7021_v26  ;;  %v6766_v56 = vmul.f32 %v12777_v45, %v6250_v21  ;;  %v13018_v35 = vpop.f32.mrf.mxu1  ;;  %v10948_v28 = vld [vmem:[%s11136_s29 + $0x6a0] sm:$0xff]  ;;  %v1096_v0 = vld [vmem:[#allocation2 + $0x8b0] sm:$0xff]  ;;  %v10885_v22 = vld [vmem:[%s11136_s29 + $0x4a8] sm:$0xff] }
 0x2a9   : > { %8945 = vst.msk [vmem:[%s11330_s10 + $0x248] sm:$0xf] %vm8798_vm4, %v8432_v51  ;;  %v8688_v8 = vpack.c.bf16 %v8176_v43, %v8176_v43  ;;  %v7921_v49 = vmax.f32 %v7409_v4, 0.0  ;;  %v7665_v25 = vadd.f32 %v12792_v16, %v7149_v5  ;;  %v5350_v38 = vadd.f32 %v12874_v13, %v966_v41  ;;  %v1095_v13 = vld [vmem:[#allocation2 + $0x8a8] sm:$0xff]  ;;  %v13046_v46 = vpop.f32.mrf.mxu2  ;;  %v1224_v24 = vld [vmem:[#allocation2 + $0xcb0] sm:$0xff]  ;;  %v969_v51 = vld [vmem:[#allocation2 + $0x4b8] sm:$0xff] }
 0x2aa   : > { %9073 = vst.msk [vmem:[%s11330_s10 + $0x448] sm:$0xf] %vm8798_vm4, %v8560_v1  ;;  %v8305_v58 = vpack.c.bf16 %v7793_v53, %v7793_v53  ;;  %v8049_v63 = vmax.f32 %v7537_v48, 0.0  ;;  %v7282_v14 = vadd.f32 %v12792_v16, %v6766_v56  ;;  %v5478_v30 = vadd.f32 %v12902_v12, %v1094_v17  ;;  %10690 = vmatmul.msk.bf16.gmra.mxu3 %vm3137_vm2, %v10948_v28  ;;  %v840_v12 = vld [vmem:[#allocation2 + $0xb0] sm:$0xff]  ;;  %v1097_v43 = vld [vmem:[#allocation2 + $0x8b8] sm:$0xff]  ;;  %v842_v1 = vld [vmem:[#allocation2 + $0xc0] sm:$0xff] }
 0x2ab   : > { %9201 = vst.msk [vmem:[%s11330_s10 + $0x648] sm:$0xf] %vm8798_vm4, %v8688_v8  ;;  %v8433_v55 = vpack.c.bf16 %v7921_v49, %v7921_v49  ;;  %v8177_v11 = vmax.f32 %v7665_v25, 0.0  ;;  %v5606_v62 = vadd.f32 %v12904_v9, %v1222_v54  ;;  %v5223_v32 = vadd.f32 %v12908_v50, %v839_v31  ;;  %v968_v9 = vld [vmem:[#allocation2 + $0x4b0] sm:$0xff]  ;;  %v13052_v33 = vpop.f32.mrf.mxu0  ;;  %v1225_v5 = vld [vmem:[#allocation2 + $0xcb8] sm:$0xff]  ;;  %v10821_v41 = vld [vmem:[%s11136_s29 + $0x2a8] sm:$0xff] }
 0x2ac   : > { %8818 = vst.msk [vmem:[%s11330_s10 + $0x4c] sm:$0xf] %vm8798_vm4, %v8305_v58  ;;  %v8561_v36 = vpack.c.bf16 %v8049_v63, %v8049_v63  ;;  %v7794_v3 = vmax.f32 %v7282_v14, 0.0  ;;  %v5351_v19 = vadd.f32 %v12910_v44, %v967_v59  ;;  %v13048_v34 = vpop.f32.mrf.mxu3  ;;  %v5479_v47 = vadd.f32 %v12927_v39, %v1095_v13  ;;  %v841_v39 = vld [vmem:[#allocation2 + $0xb8] sm:$0xff]  ;;  %v10757_v14 = vld [vmem:[%s11136_s29 + $0xa8] sm:$0xff] }
 0x2ad   : > { %8946 = vst.msk [vmem:[%s11330_s10 + $0x24c] sm:$0xf] %vm8798_vm4, %v8433_v55  ;;  %v8689_v60 = vpack.c.bf16 %v8177_v11, %v8177_v11  ;;  %v5607_v50 = vadd.f32 %v12929_v29, %v1223_v6  ;;  %v5224_v44 = vadd.f32 %v12934_v20, %v840_v12  ;;  %v5352_v26 = vadd.f32 %v12936_v42, %v968_v9  ;;  %v10949_v18 = vld [vmem:[%s11136_s29 + $0x6a8] sm:$0xff] }
 0x2ae   : > { %9074 = vst.msk [vmem:[%s11330_s10 + $0x44c] sm:$0xf] %vm8798_vm4, %v8561_v36  ;;  %v8306_v27 = vpack.c.bf16 %v7794_v3, %v7794_v3  ;;  %v5480_v61 = vadd.f32 %v12970_v57, %v1096_v0  ;;  %v5608_v29 = vadd.f32 %v12972_v2, %v1224_v24  ;;  %v5225_v20 = vadd.f32 %v12978_v37, %v841_v39 }
 0x2af   : > { %9202 = vst.msk [vmem:[%s11330_s10 + $0x64c] sm:$0xf] %vm8798_vm4, %v8689_v60  ;;  %v5353_v57 = vadd.f32 %v12980_v15, %v969_v51  ;;  %v5481_v37 = vadd.f32 %v13009_v40, %v1097_v43  ;;  %v5609_v63 = vadd.f32 %v13011_v52, %v1225_v5  ;;  %v5226_v11 = vadd.f32 %v13016_v10, %v842_v1 }
 0x2b0   : > { %8819 = vst.msk [vmem:[%s11330_s10 + $0x50] sm:$0xf] %vm8798_vm4, %v8306_v27  ;;  %v13054_v23 = vpop.f32.mrf.mxu1 }
 0x2b1   : > { %5863 = vst.msk [vmem:[#allocation2 + $0x4a0] sm:$0xff] %vm305_vm3, %v5350_v38  ;;  %v13071_v53 = vpop.f32.mrf.mxu2 }
 0x2b2   : > { %5991 = vst.msk [vmem:[#allocation2 + $0x8a0] sm:$0xff] %vm305_vm3, %v5478_v30 }
 0x2b3   : > { %6119 = vst.msk [vmem:[#allocation2 + $0xca0] sm:$0xff] %vm305_vm3, %v5606_v62  ;;  %v13078_v8 = vpop.f32.mrf.mxu0 }
 0x2b4   : > { %5736 = vst.msk [vmem:[#allocation2 + $0xa8] sm:$0xff] %vm305_vm3, %v5223_v32  ;;  %v13073_v2 = vpop.f32.mrf.mxu3 }
 0x2b5   : > { %5864 = vst.msk [vmem:[#allocation2 + $0x4a8] sm:$0xff] %vm305_vm3, %v5351_v19  ;;  %10499 = vmatmul.msk.bf16.gmra.mxu0 %vm3137_vm2, %v10757_v14 }
 0x2b6   : > { %5992 = vst.msk [vmem:[#allocation2 + $0x8a8] sm:$0xff] %vm305_vm3, %v5479_v47  ;;  %10563 = vmatmul.msk.bf16.gmra.mxu1 %vm3137_vm2, %v10821_v41 }
 0x2b7   : > { %6120 = vst.msk [vmem:[#allocation2 + $0xca8] sm:$0xff] %vm305_vm3, %v5607_v50  ;;  %10627 = vmatmul.msk.bf16.gmra.mxu2 %vm3137_vm2, %v10885_v22 }
 0x2b8   : > { %v6378_v4 = vld [vmem:[#allocation2 + $0x4a0] sm:$0xff]  ;;  %5737 = vst.msk [vmem:[#allocation2 + $0xb0] sm:$0xff] %vm305_vm3, %v5224_v44  ;;  %v13080_v49 = vpop.f32.mrf.mxu1 }
 0x2b9   : > { %v6894_v21 = vmul.f32 %v12777_v45, %v6378_v4  ;;  %v6506_v42 = vld [vmem:[#allocation2 + $0x8a0] sm:$0xff]  ;;  %5865 = vst.msk [vmem:[#allocation2 + $0x4b0] sm:$0xff] %vm305_vm3, %v5352_v26  ;;  %v13114_v44 = vpop.f32.mrf.mxu2 }
 0x2ba   : > { %v7022_v48 = vmul.f32 %v12777_v45, %v6506_v42  ;;  %v6634_v56 = vld [vmem:[#allocation2 + $0xca0] sm:$0xff]  ;;  %5993 = vst.msk [vmem:[#allocation2 + $0x8b0] sm:$0xff] %vm305_vm3, %v5480_v61  ;;  %10691 = vmatmul.msk.bf16.gmra.mxu3 %vm3137_vm2, %v10949_v18 }
 0x2bb   : > { %v7410_v15 = vadd.f32 %v12792_v16, %v6894_v21  ;;  %v7150_v25 = vmul.f32 %v12777_v45, %v6634_v56  ;;  %v6251_v58 = vld [vmem:[#allocation2 + $0xa8] sm:$0xff]  ;;  %6121 = vst.msk [vmem:[#allocation2 + $0xcb0] sm:$0xff] %vm305_vm3, %v5608_v29  ;;  %v13122_v43 = vpop.f32.mrf.mxu0 }
 0x2bc   : > { %v7538_v17 = vadd.f32 %v12792_v16, %v7022_v48  ;;  %v6767_v40 = vmul.f32 %v12777_v45, %v6251_v58  ;;  %v6379_v55 = vld [vmem:[#allocation2 + $0x4a8] sm:$0xff]  ;;  %5738 = vst.msk [vmem:[#allocation2 + $0xb8] sm:$0xff] %vm305_vm3, %v5225_v20  ;;  %v13116_v24 = vpop.f32.mrf.mxu3 }
 0x2bd   : > { %v7922_v7 = vmax.f32 %v7410_v15, 0.0  ;;  %v7666_v36 = vadd.f32 %v12792_v16, %v7150_v25  ;;  %v6895_v3 = vmul.f32 %v12777_v45, %v6379_v55  ;;  %v6507_v54 = vld [vmem:[#allocation2 + $0x8a8] sm:$0xff]  ;;  %5866 = vst.msk [vmem:[#allocation2 + $0x4b8] sm:$0xff] %vm305_vm3, %v5353_v57 }
 0x2be   : > { %v8050_v52 = vmax.f32 %v7538_v17, 0.0  ;;  %v7283_v28 = vadd.f32 %v12792_v16, %v6767_v40  ;;  %v7023_v60 = vmul.f32 %v12777_v45, %v6507_v54  ;;  %v6635_v10 = vld [vmem:[#allocation2 + $0xca8] sm:$0xff]  ;;  %5994 = vst.msk [vmem:[#allocation2 + $0x8b8] sm:$0xff] %vm305_vm3, %v5481_v37 }
 0x2bf   : > { %v8434_v38 = vpack.c.bf16 %v7922_v7, %v7922_v7  ;;  %v8178_v31 = vmax.f32 %v7666_v36, 0.0  ;;  %v7411_v27 = vadd.f32 %v12792_v16, %v6895_v3  ;;  %v7151_v30 = vmul.f32 %v12777_v45, %v6635_v10  ;;  %v6252_v59 = vld [vmem:[#allocation2 + $0xb0] sm:$0xff]  ;;  %6122 = vst.msk [vmem:[#allocation2 + $0xcb8] sm:$0xff] %vm305_vm3, %v5609_v63 }
 0x2c0   : > { %v8562_v62 = vpack.c.bf16 %v8050_v52, %v8050_v52  ;;  %v7795_v13 = vmax.f32 %v7283_v28, 0.0  ;;  %v7539_v32 = vadd.f32 %v12792_v16, %v7023_v60  ;;  %v6768_v6 = vmul.f32 %v12777_v45, %v6252_v59  ;;  %v6380_v19 = vld [vmem:[#allocation2 + $0x4b0] sm:$0xff]  ;;  %5739 = vst.msk [vmem:[#allocation2 + $0xc0] sm:$0xff] %vm305_vm3, %v5226_v11  ;;  %v13124_v4 = vpop.f32.mrf.mxu1 }
 0x2c1   : > { %8947 = vst.msk [vmem:[%s11330_s10 + $0x250] sm:$0xf] %vm8798_vm4, %v8434_v38  ;;  %v8690_v12 = vpack.c.bf16 %v8178_v31, %v8178_v31  ;;  %v7923_v47 = vmax.f32 %v7411_v27, 0.0  ;;  %v7667_v9 = vadd.f32 %v12792_v16, %v7151_v30  ;;  %v6896_v50 = vmul.f32 %v12777_v45, %v6380_v19  ;;  %v6508_v0 = vld [vmem:[#allocation2 + $0x8b0] sm:$0xff]  ;;  %v13153_v30 = vpop.f32.mrf.mxu2 }
 0x2c2   : > { %9075 = vst.msk [vmem:[%s11330_s10 + $0x450] sm:$0xf] %vm8798_vm4, %v8562_v62  ;;  %v8307_v26 = vpack.c.bf16 %v7795_v13, %v7795_v13  ;;  %v8051_v39 = vmax.f32 %v7539_v32, 0.0  ;;  %v7284_v61 = vadd.f32 %v12792_v16, %v6768_v6  ;;  %v7024_v51 = vmul.f32 %v12777_v45, %v6508_v0  ;;  %v6636_v29 = vld [vmem:[#allocation2 + $0xcb0] sm:$0xff]  ;;  %v970_v32 = vld [vmem:[#allocation2 + $0x4c0] sm:$0xff] }
 0x2c3   : > { %9203 = vst.msk [vmem:[%s11330_s10 + $0x650] sm:$0xf] %vm8798_vm4, %v8690_v12  ;;  %v8435_v20 = vpack.c.bf16 %v7923_v47, %v7923_v47  ;;  %v8179_v5 = vmax.f32 %v7667_v9, 0.0  ;;  %v7412_v21 = vadd.f32 %v12792_v16, %v6896_v50  ;;  %v7152_v42 = vmul.f32 %v12777_v45, %v6636_v29  ;;  %v6253_v57 = vld [vmem:[#allocation2 + $0xb8] sm:$0xff]  ;;  %v1098_v6 = vld [vmem:[#allocation2 + $0x8c0] sm:$0xff]  ;;  %v13160_v19 = vpop.f32.mrf.mxu0  ;;  %v10758_v50 = vld [vmem:[%s11136_s29 + $0xb0] sm:$0xff] }
 0x2c4   : > { %8820 = vst.msk [vmem:[%s11330_s10 + $0x54] sm:$0xf] %vm8798_vm4, %v8307_v26  ;;  %v8563_v1 = vpack.c.bf16 %v8051_v39, %v8051_v39  ;;  %v7796_v48 = vmax.f32 %v7284_v61, 0.0  ;;  %v7540_v56 = vadd.f32 %v12792_v16, %v7024_v51  ;;  %v6769_v37 = vmul.f32 %v12777_v45, %v6253_v57  ;;  %v6381_v15 = vld [vmem:[#allocation2 + $0x4b8] sm:$0xff]  ;;  %v13155_v59 = vpop.f32.mrf.mxu3  ;;  %v10822_v0 = vld [vmem:[%s11136_s29 + $0x2b0] sm:$0xff]  ;;  %v1226_v61 = vld [vmem:[#allocation2 + $0xcc0] sm:$0xff] }
 0x2c5   : > { %8948 = vst.msk [vmem:[%s11330_s10 + $0x254] sm:$0xf] %vm8798_vm4, %v8435_v20  ;;  %v8691_v25 = vpack.c.bf16 %v8179_v5, %v8179_v5  ;;  %v7924_v58 = vmax.f32 %v7412_v21, 0.0  ;;  %v7668_v63 = vadd.f32 %v12792_v16, %v7152_v42  ;;  %v6897_v14 = vmul.f32 %v12777_v45, %v6381_v15  ;;  %v6509_v41 = vld [vmem:[#allocation2 + $0x8b8] sm:$0xff]  ;;  %v10886_v26 = vld [vmem:[%s11136_s29 + $0x4b0] sm:$0xff]  ;;  %v843_v5 = vld [vmem:[#allocation2 + $0xc8] sm:$0xff]  ;;  %10500 = vmatmul.msk.bf16.gmra.mxu0 %vm3137_vm2, %v10758_v50 }
 0x2c6   : > { %9076 = vst.msk [vmem:[%s11330_s10 + $0x454] sm:$0xf] %vm8798_vm4, %v8563_v1  ;;  %v8308_v17 = vpack.c.bf16 %v7796_v48, %v7796_v48  ;;  %v8052_v40 = vmax.f32 %v7540_v56, 0.0  ;;  %v7285_v55 = vadd.f32 %v12792_v16, %v6769_v37  ;;  %v7025_v11 = vmul.f32 %v12777_v45, %v6509_v41  ;;  %v6637_v22 = vld [vmem:[#allocation2 + $0xcb8] sm:$0xff]  ;;  %v10950_v51 = vld [vmem:[%s11136_s29 + $0x6b0] sm:$0xff]  ;;  %10564 = vmatmul.msk.bf16.gmra.mxu1 %vm3137_vm2, %v10822_v0  ;;  %v971_v57 = vld [vmem:[#allocation2 + $0x4c8] sm:$0xff] }
 0x2c7   : > { %9204 = vst.msk [vmem:[%s11330_s10 + $0x654] sm:$0xf] %vm8798_vm4, %v8691_v25  ;;  %v8436_v18 = vpack.c.bf16 %v7924_v58, %v7924_v58  ;;  %v8180_v7 = vmax.f32 %v7668_v63, 0.0  ;;  %v7413_v36 = vadd.f32 %v12792_v16, %v6897_v14  ;;  %v7153_v3 = vmul.f32 %v12777_v45, %v6637_v22  ;;  %v6254_v54 = vld [vmem:[#allocation2 + $0xc0] sm:$0xff]  ;;  %10628 = vmatmul.msk.bf16.gmra.mxu2 %vm3137_vm2, %v10886_v26  ;;  %v1227_v56 = vld [vmem:[#allocation2 + $0xcc8] sm:$0xff]  ;;  %v1100_v41 = vld [vmem:[#allocation2 + $0x8d0] sm:$0xff] }
 0x2c8   : > { %8821 = vst.msk [vmem:[%s11330_s10 + $0x58] sm:$0xf] %vm8798_vm4, %v8308_v17  ;;  %v8564_v52 = vpack.c.bf16 %v8052_v40, %v8052_v40  ;;  %v7797_v28 = vmax.f32 %v7285_v55, 0.0  ;;  %v7541_v60 = vadd.f32 %v12792_v16, %v7025_v11  ;;  %v6770_v10 = vmul.f32 %v12777_v45, %v6254_v54  ;;  %v13162_v12 = vpop.f32.mrf.mxu1  ;;  %v1228_v17 = vld [vmem:[#allocation2 + $0xcd0] sm:$0xff]  ;;  %v973_v11 = vld [vmem:[#allocation2 + $0x4d8] sm:$0xff] }
 0x2c9   : > { %8949 = vst.msk [vmem:[%s11330_s10 + $0x258] sm:$0xf] %vm8798_vm4, %v8436_v18  ;;  %v8692_v38 = vpack.c.bf16 %v8180_v7, %v8180_v7  ;;  %v7925_v31 = vmax.f32 %v7413_v36, 0.0  ;;  %v7669_v27 = vadd.f32 %v12792_v16, %v7153_v3  ;;  %v5354_v20 = vadd.f32 %v13018_v35, %v970_v32  ;;  %v1099_v35 = vld [vmem:[#allocation2 + $0x8c8] sm:$0xff]  ;;  %v13190_v15 = vpop.f32.mrf.mxu2  ;;  %v1101_v22 = vld [vmem:[#allocation2 + $0x8d8] sm:$0xff] }
 0x2ca   : > { %9077 = vst.msk [vmem:[%s11330_s10 + $0x458] sm:$0xf] %vm8798_vm4, %v8564_v52  ;;  %v8309_v62 = vpack.c.bf16 %v7797_v28, %v7797_v28  ;;  %v8053_v13 = vmax.f32 %v7541_v60, 0.0  ;;  %v7286_v45 = vadd.f32 %v12792_v16, %v6770_v10  ;;  %v5482_v42 = vadd.f32 %v13046_v46, %v1098_v6  ;;  %10692 = vmatmul.msk.bf16.gmra.mxu3 %vm3137_vm2, %v10950_v51  ;;  %v844_v46 = vld [vmem:[#allocation2 + $0xd0] sm:$0xff]  ;;  %v1229_v7 = vld [vmem:[#allocation2 + $0xcd8] sm:$0xff] }
 0x2cb   : > { %9205 = vst.msk [vmem:[%s11330_s10 + $0x658] sm:$0xf] %vm8798_vm4, %v8692_v38  ;;  %v8437_v47 = vpack.c.bf16 %v7925_v31, %v7925_v31  ;;  %v8181_v9 = vmax.f32 %v7669_v27, 0.0  ;;  %v5610_v1 = vadd.f32 %v13048_v34, %v1226_v61  ;;  %v5227_v48 = vadd.f32 %v13052_v33, %v843_v5  ;;  %v972_v34 = vld [vmem:[#allocation2 + $0x4d0] sm:$0xff]  ;;  %v13196_v63 = vpop.f32.mrf.mxu0  ;;  %v10887_v50 = vld [vmem:[%s11136_s29 + $0x4b8] sm:$0xff] }
 0x2cc   : > { %8822 = vst.msk [vmem:[%s11330_s10 + $0x5c] sm:$0xf] %vm8798_vm4, %v8309_v62  ;;  %v8565_v39 = vpack.c.bf16 %v8053_v13, %v8053_v13  ;;  %v7798_v16 = vmax.f32 %v7286_v45, 0.0  ;;  %v5355_v37 = vadd.f32 %v13054_v23, %v971_v57  ;;  %v13192_v25 = vpop.f32.mrf.mxu3  ;;  %v5483_v58 = vadd.f32 %v13071_v53, %v1099_v35  ;;  %v845_v53 = vld [vmem:[#allocation2 + $0xd8] sm:$0xff] }
 0x2cd   : > { %8950 = vst.msk [vmem:[%s11330_s10 + $0x25c] sm:$0xf] %vm8798_vm4, %v8437_v47  ;;  %v8693_v29 = vpack.c.bf16 %v8181_v9, %v8181_v9  ;;  %v5611_v33 = vadd.f32 %v13073_v2, %v1227_v56  ;;  %v5228_v23 = vadd.f32 %v13078_v8, %v844_v46  ;;  %v5356_v40 = vadd.f32 %v13080_v49, %v972_v34  ;;  %v13215_v49 = vld [vmem:[%s16857_s2] ss:$0 sm:$0xff]  ;;  %v10759_v13 = vld [vmem:[%s11136_s29 + $0xb8] sm:$0xff] }
 0x2ce   : > { %9078 = vst.msk [vmem:[%s11330_s10 + $0x45c] sm:$0xf] %vm8798_vm4, %v8565_v39  ;;  %v8310_v21 = vpack.c.bf16 %v7798_v16, %v7798_v16  ;;  %v5484_v55 = vadd.f32 %v13114_v44, %v1100_v41  ;;  %v5612_v2 = vadd.f32 %v13116_v24, %v1228_v17  ;;  %v5229_v8 = vadd.f32 %v13122_v43, %v845_v53  ;;  %v846_v24 = vld [vmem:[#allocation2 + $0xe0] sm:$0xff]  ;;  %v10823_v45 = vld [vmem:[%s11136_s29 + $0x2b8] sm:$0xff] }
 0x2cf   : > { %9206 = vst.msk [vmem:[%s11330_s10 + $0x65c] sm:$0xf] %vm8798_vm4, %v8693_v29  ;;  %v5357_v3 = vadd.f32 %v13124_v4, %v973_v11  ;;  %v5485_v60 = vadd.f32 %v13153_v30, %v1101_v22  ;;  %v13234_v4 = vld [vmem:[%s16858_s3] ss:$0 sm:$0xff]  ;;  %v5613_v30 = vadd.f32 %v13155_v59, %v1229_v7  ;;  %v5230_v9 = vadd.f32 %v13160_v19, %v846_v24  ;;  %v10951_v0 = vld [vmem:[%s11136_s29 + $0x6b8] sm:$0xff] }
 0x2d0   : > { %8823 = vst.msk [vmem:[%s11330_s10 + $0x60] sm:$0xf] %vm8798_vm4, %v8310_v21  ;;  %v13198_v14 = vpop.f32.mrf.mxu1 }
 0x2d1   : > { %5867 = vst.msk [vmem:[#allocation2 + $0x4c0] sm:$0xff] %vm305_vm3, %v5354_v20  ;;  %v13220_v54 = vpop.f32.mrf.mxu2 }
 0x2d2   : > { %5995 = vst.msk [vmem:[#allocation2 + $0x8c0] sm:$0xff] %vm305_vm3, %v5482_v42 }
 0x2d3   : > { %6123 = vst.msk [vmem:[#allocation2 + $0xcc0] sm:$0xff] %vm305_vm3, %v5610_v1  ;;  %v13227_v10 = vpop.f32.mrf.mxu0 }
 0x2d4   : > { %5740 = vst.msk [vmem:[#allocation2 + $0xc8] sm:$0xff] %vm305_vm3, %v5227_v48  ;;  %v13222_v52 = vpop.f32.mrf.mxu3 }
 0x2d5   : > { %5868 = vst.msk [vmem:[#allocation2 + $0x4c8] sm:$0xff] %vm305_vm3, %v5355_v37  ;;  %10501 = vmatmul.msk.bf16.gmra.mxu0 %vm3137_vm2, %v10759_v13 }
 0x2d6   : > { %5996 = vst.msk [vmem:[#allocation2 + $0x8c8] sm:$0xff] %vm305_vm3, %v5483_v58  ;;  %10565 = vmatmul.msk.bf16.gmra.mxu1 %vm3137_vm2, %v10823_v45 }
 0x2d7   : > { %6124 = vst.msk [vmem:[#allocation2 + $0xcc8] sm:$0xff] %vm305_vm3, %v5611_v33  ;;  %10629 = vmatmul.msk.bf16.gmra.mxu2 %vm3137_vm2, %v10887_v50 }
 0x2d8   : > { %v6382_v18 = vld [vmem:[#allocation2 + $0x4c0] sm:$0xff]  ;;  %5741 = vst.msk [vmem:[#allocation2 + $0xd0] sm:$0xff] %vm305_vm3, %v5228_v23  ;;  %v13229_v38 = vpop.f32.mrf.mxu1 }
 0x2d9   : > { %v6898_v36 = vmul.f32 %v13215_v49, %v6382_v18  ;;  %v6510_v44 = vld [vmem:[#allocation2 + $0x8c0] sm:$0xff]  ;;  %5869 = vst.msk [vmem:[#allocation2 + $0x4d0] sm:$0xff] %vm305_vm3, %v5356_v40  ;;  %v13268_v23 = vpop.f32.mrf.mxu2 }
 0x2da   : > { %v7026_v43 = vmul.f32 %v13215_v49, %v6510_v44  ;;  %v6638_v28 = vld [vmem:[#allocation2 + $0xcc0] sm:$0xff]  ;;  %5997 = vst.msk [vmem:[#allocation2 + $0x8d0] sm:$0xff] %vm305_vm3, %v5484_v55  ;;  %10693 = vmatmul.msk.bf16.gmra.mxu3 %vm3137_vm2, %v10951_v0 }
 0x2db   : > { %v7414_v31 = vadd.f32 %v13234_v4, %v6898_v36  ;;  %v7154_v27 = vmul.f32 %v13215_v49, %v6638_v28  ;;  %v6255_v62 = vld [vmem:[#allocation2 + $0xc8] sm:$0xff]  ;;  %6125 = vst.msk [vmem:[#allocation2 + $0xcd0] sm:$0xff] %vm305_vm3, %v5612_v2  ;;  %v13276_v22 = vpop.f32.mrf.mxu0 }
 0x2dc   : > { %v7542_v32 = vadd.f32 %v13234_v4, %v7026_v43  ;;  %v6771_v6 = vmul.f32 %v13215_v49, %v6255_v62  ;;  %v6383_v47 = vld [vmem:[#allocation2 + $0x4c8] sm:$0xff]  ;;  %5742 = vst.msk [vmem:[#allocation2 + $0xd8] sm:$0xff] %vm305_vm3, %v5229_v8  ;;  %v13270_v17 = vpop.f32.mrf.mxu3 }
 0x2dd   : > { %v7926_v26 = vmax.f32 %v7414_v31, 0.0  ;;  %v7670_v39 = vadd.f32 %v13234_v4, %v7154_v27  ;;  %v6899_v16 = vmul.f32 %v13215_v49, %v6383_v47  ;;  %v6511_v61 = vld [vmem:[#allocation2 + $0x8c8] sm:$0xff]  ;;  %5870 = vst.msk [vmem:[#allocation2 + $0x4d8] sm:$0xff] %vm305_vm3, %v5357_v3 }
 0x2de   : > { %v8054_v59 = vmax.f32 %v7542_v32, 0.0  ;;  %v7287_v51 = vadd.f32 %v13234_v4, %v6771_v6  ;;  %v7027_v29 = vmul.f32 %v13215_v49, %v6511_v61  ;;  %v6639_v19 = vld [vmem:[#allocation2 + $0xcc8] sm:$0xff]  ;;  %5998 = vst.msk [vmem:[#allocation2 + $0x8d8] sm:$0xff] %vm305_vm3, %v5485_v60 }
 0x2df   : > { %v8438_v20 = vpack.c.bf16 %v7926_v26, %v7926_v26  ;;  %v8182_v5 = vmax.f32 %v7670_v39, 0.0  ;;  %v7415_v21 = vadd.f32 %v13234_v4, %v6899_v16  ;;  %v7155_v42 = vmul.f32 %v13215_v49, %v6639_v19  ;;  %v6256_v57 = vld [vmem:[#allocation2 + $0xd0] sm:$0xff]  ;;  %6126 = vst.msk [vmem:[#allocation2 + $0xcd8] sm:$0xff] %vm305_vm3, %v5613_v30 }
 0x2e0   : > { %v8566_v1 = vpack.c.bf16 %v8054_v59, %v8054_v59  ;;  %v7799_v35 = vmax.f32 %v7287_v51, 0.0  ;;  %v7543_v48 = vadd.f32 %v13234_v4, %v7027_v29  ;;  %v6772_v56 = vmul.f32 %v13215_v49, %v6256_v57  ;;  %v6384_v37 = vld [vmem:[#allocation2 + $0x4d0] sm:$0xff]  ;;  %5743 = vst.msk [vmem:[#allocation2 + $0xe0] sm:$0xff] %vm305_vm3, %v5230_v9  ;;  %v13278_v18 = vpop.f32.mrf.mxu1 }
 0x2e1   : > { %8951 = vst.msk [vmem:[%s11330_s10 + $0x260] sm:$0xf] %vm8798_vm4, %v8438_v20  ;;  %v8694_v46 = vpack.c.bf16 %v8182_v5, %v8182_v5  ;;  %v7927_v58 = vmax.f32 %v7415_v21, 0.0  ;;  %v7671_v34 = vadd.f32 %v13234_v4, %v7155_v42  ;;  %v6900_v33 = vmul.f32 %v13215_v49, %v6384_v37  ;;  %v6512_v41 = vld [vmem:[#allocation2 + $0x8d0] sm:$0xff]  ;;  %v13307_v42 = vpop.f32.mrf.mxu2  ;;  %v1102_v37 = vld [vmem:[#allocation2 + $0x8e0] sm:$0xff] }
 0x2e2   : > { %9079 = vst.msk [vmem:[%s11330_s10 + $0x460] sm:$0xf] %vm8798_vm4, %v8566_v1  ;;  %v8311_v40 = vpack.c.bf16 %v7799_v35, %v7799_v35  ;;  %v8055_v53 = vmax.f32 %v7543_v48, 0.0  ;;  %v7288_v55 = vadd.f32 %v13234_v4, %v6772_v56  ;;  %v7028_v11 = vmul.f32 %v13215_v49, %v6512_v41  ;;  %v6640_v2 = vld [vmem:[#allocation2 + $0xcd0] sm:$0xff]  ;;  %v974_v56 = vld [vmem:[#allocation2 + $0x4e0] sm:$0xff] }
 0x2e3   : > { %9207 = vst.msk [vmem:[%s11330_s10 + $0x660] sm:$0xf] %vm8798_vm4, %v8694_v46  ;;  %v8439_v8 = vpack.c.bf16 %v7927_v58, %v7927_v58  ;;  %v8183_v7 = vmax.f32 %v7671_v34, 0.0  ;;  %v7416_v36 = vadd.f32 %v13234_v4, %v6900_v33  ;;  %v7156_v44 = vmul.f32 %v13215_v49, %v6640_v2  ;;  %v6257_v3 = vld [vmem:[#allocation2 + $0xd8] sm:$0xff]  ;;  %v13314_v46 = vpop.f32.mrf.mxu0  ;;  %v10760_v41 = vld [vmem:[%s11136_s29 + $0xc0] sm:$0xff] }
 0x2e4   : > { %8824 = vst.msk [vmem:[%s11330_s10 + $0x64] sm:$0xf] %vm8798_vm4, %v8311_v40  ;;  %v8567_v24 = vpack.c.bf16 %v8055_v53, %v8055_v53  ;;  %v7800_v43 = vmax.f32 %v7288_v55, 0.0  ;;  %v7544_v28 = vadd.f32 %v13234_v4, %v7028_v11  ;;  %v6773_v60 = vmul.f32 %v13215_v49, %v6257_v3  ;;  %v6385_v31 = vld [vmem:[#allocation2 + $0x4d8] sm:$0xff]  ;;  %v13309_v57 = vpop.f32.mrf.mxu3  ;;  %v10824_v40 = vld [vmem:[%s11136_s29 + $0x2c0] sm:$0xff] }
 0x2e5   : > { %8952 = vst.msk [vmem:[%s11330_s10 + $0x264] sm:$0xf] %vm8798_vm4, %v8439_v8  ;;  %v8695_v27 = vpack.c.bf16 %v8183_v7, %v8183_v7  ;;  %v7928_v62 = vmax.f32 %v7416_v36, 0.0  ;;  %v7672_v30 = vadd.f32 %v13234_v4, %v7156_v44  ;;  %v6901_v13 = vmul.f32 %v13215_v49, %v6385_v31  ;;  %v6513_v45 = vld [vmem:[#allocation2 + $0x8d8] sm:$0xff]  ;;  %v10888_v53 = vld [vmem:[%s11136_s29 + $0x4c0] sm:$0xff]  ;;  %v847_v44 = vld [vmem:[#allocation2 + $0xe8] sm:$0xff]  ;;  %10502 = vmatmul.msk.bf16.gmra.mxu0 %vm3137_vm2, %v10760_v41 }
 0x2e6   : > { %9080 = vst.msk [vmem:[%s11330_s10 + $0x464] sm:$0xf] %vm8798_vm4, %v8567_v24  ;;  %v8312_v32 = vpack.c.bf16 %v7800_v43, %v7800_v43  ;;  %v8056_v6 = vmax.f32 %v7544_v28, 0.0  ;;  %v7289_v47 = vadd.f32 %v13234_v4, %v6773_v60  ;;  %v7029_v9 = vmul.f32 %v13215_v49, %v6513_v45  ;;  %v6641_v50 = vld [vmem:[#allocation2 + $0xcd8] sm:$0xff]  ;;  %v1230_v2 = vld [vmem:[#allocation2 + $0xce0] sm:$0xff]  ;;  %10566 = vmatmul.msk.bf16.gmra.mxu1 %vm3137_vm2, %v10824_v40  ;;  %v975_v43 = vld [vmem:[#allocation2 + $0x4e8] sm:$0xff] }
 0x2e7   : > { %9208 = vst.msk [vmem:[%s11330_s10 + $0x664] sm:$0xf] %vm8798_vm4, %v8695_v27  ;;  %v8440_v0 = vpack.c.bf16 %v7928_v62, %v7928_v62  ;;  %v8184_v26 = vmax.f32 %v7672_v30, 0.0  ;;  %v7417_v39 = vadd.f32 %v13234_v4, %v6901_v13  ;;  %v7157_v16 = vmul.f32 %v13215_v49, %v6641_v50  ;;  %v6258_v61 = vld [vmem:[#allocation2 + $0xe0] sm:$0xff]  ;;  %10630 = vmatmul.msk.bf16.gmra.mxu2 %vm3137_vm2, %v10888_v53  ;;  %v1231_v31 = vld [vmem:[#allocation2 + $0xce8] sm:$0xff] }
 0x2e8   : > { %8825 = vst.msk [vmem:[%s11330_s10 + $0x68] sm:$0xf] %vm8798_vm4, %v8312_v32  ;;  %v8568_v59 = vpack.c.bf16 %v8056_v6, %v8056_v6  ;;  %v7801_v51 = vmax.f32 %v7289_v47, 0.0  ;;  %v7545_v29 = vadd.f32 %v13234_v4, %v7029_v9  ;;  %v6774_v19 = vmul.f32 %v13215_v49, %v6258_v61  ;;  %v13316_v58 = vpop.f32.mrf.mxu1  ;;  %v10952_v8 = vld [vmem:[%s11136_s29 + $0x6c0] sm:$0xff]  ;;  %v1104_v6 = vld [vmem:[#allocation2 + $0x8f0] sm:$0xff]  ;;  %v10889_v41 = vld [vmem:[%s11136_s29 + $0x4c8] sm:$0xff] }
 0x2e9   : > { %8953 = vst.msk [vmem:[%s11330_s10 + $0x268] sm:$0xf] %vm8798_vm4, %v8440_v0  ;;  %v8696_v20 = vpack.c.bf16 %v8184_v26, %v8184_v26  ;;  %v7929_v5 = vmax.f32 %v7417_v39, 0.0  ;;  %v7673_v21 = vadd.f32 %v13234_v4, %v7157_v16  ;;  %v5358_v36 = vadd.f32 %v13162_v12, %v974_v56  ;;  %v1103_v12 = vld [vmem:[#allocation2 + $0x8e8] sm:$0xff]  ;;  %v1232_v47 = vld [vmem:[#allocation2 + $0xcf0] sm:$0xff]  ;;  %v977_v0 = vld [vmem:[#allocation2 + $0x4f8] sm:$0xff] }
 0x2ea   : > { %9081 = vst.msk [vmem:[%s11330_s10 + $0x468] sm:$0xf] %vm8798_vm4, %v8568_v59  ;;  %v8313_v1 = vpack.c.bf16 %v7801_v51, %v7801_v51  ;;  %v8057_v35 = vmax.f32 %v7545_v29, 0.0  ;;  %v7290_v48 = vadd.f32 %v13234_v4, %v6774_v19  ;;  %v5486_v24 = vadd.f32 %v13190_v15, %v1102_v37  ;;  %10694 = vmatmul.msk.bf16.gmra.mxu3 %vm3137_vm2, %v10952_v8  ;;  %v848_v15 = vld [vmem:[#allocation2 + $0xf0] sm:$0xff]  ;;  %v13344_v62 = vpop.f32.mrf.mxu2  ;;  %v1105_v26 = vld [vmem:[#allocation2 + $0x8f8] sm:$0xff]  ;;  %v850_v59 = vld [vmem:[#allocation2 + $0x100] sm:$0xff] }
 0x2eb   : > { %9209 = vst.msk [vmem:[%s11330_s10 + $0x668] sm:$0xf] %vm8798_vm4, %v8696_v20  ;;  %v8441_v34 = vpack.c.bf16 %v7929_v5, %v7929_v5  ;;  %v8185_v33 = vmax.f32 %v7673_v21, 0.0  ;;  %v5614_v28 = vadd.f32 %v13192_v25, %v1230_v2  ;;  %v5231_v60 = vadd.f32 %v13196_v63, %v847_v44  ;;  %v976_v25 = vld [vmem:[#allocation2 + $0x4f0] sm:$0xff]  ;;  %v13350_v45 = vpop.f32.mrf.mxu0  ;;  %v1233_v16 = vld [vmem:[#allocation2 + $0xcf8] sm:$0xff]  ;;  %v10825_v56 = vld [vmem:[%s11136_s29 + $0x2c8] sm:$0xff] }
 0x2ec   : > { %8826 = vst.msk [vmem:[%s11330_s10 + $0x6c] sm:$0xf] %vm8798_vm4, %v8313_v1  ;;  %v8569_v55 = vpack.c.bf16 %v8057_v35, %v8057_v35  ;;  %v7802_v11 = vmax.f32 %v7290_v48, 0.0  ;;  %v5359_v27 = vadd.f32 %v13198_v14, %v975_v43  ;;  %v5487_v13 = vadd.f32 %v13220_v54, %v1103_v12  ;;  %v849_v54 = vld [vmem:[#allocation2 + $0xf8] sm:$0xff]  ;;  %v10761_v48 = vld [vmem:[%s11136_s29 + $0xc8] sm:$0xff] }
 0x2ed   : > { %8954 = vst.msk [vmem:[%s11330_s10 + $0x26c] sm:$0xf] %vm8798_vm4, %v8441_v34  ;;  %v8697_v7 = vpack.c.bf16 %v8185_v33, %v8185_v33  ;;  %v13346_v30 = vpop.f32.mrf.mxu3  ;;  %v5615_v63 = vadd.f32 %v13222_v52, %v1231_v31  ;;  %v5232_v14 = vadd.f32 %v13227_v10, %v848_v15  ;;  %v5360_v9 = vadd.f32 %v13229_v38, %v976_v25  ;;  %v10953_v40 = vld [vmem:[%s11136_s29 + $0x6c8] sm:$0xff] }
 0x2ee   : > { %9082 = vst.msk [vmem:[%s11330_s10 + $0x46c] sm:$0xf] %vm8798_vm4, %v8569_v55  ;;  %v8314_v3 = vpack.c.bf16 %v7802_v11, %v7802_v11  ;;  %v5488_v50 = vadd.f32 %v13268_v23, %v1104_v6  ;;  %v5616_v52 = vadd.f32 %v13270_v17, %v1232_v47  ;;  %v5233_v10 = vadd.f32 %v13276_v22, %v849_v54 }
 0x2ef   : > { %9210 = vst.msk [vmem:[%s11330_s10 + $0x66c] sm:$0xf] %vm8798_vm4, %v8697_v7  ;;  %v5361_v23 = vadd.f32 %v13278_v18, %v977_v0  ;;  %v5489_v22 = vadd.f32 %v13307_v42, %v1105_v26  ;;  %v5617_v35 = vadd.f32 %v13309_v57, %v1233_v16  ;;  %v5234_v33 = vadd.f32 %v13314_v46, %v850_v59 }
 0x2f0   : > { %8827 = vst.msk [vmem:[%s11330_s10 + $0x70] sm:$0xf] %vm8798_vm4, %v8314_v3  ;;  %v13352_v32 = vpop.f32.mrf.mxu1 }
 0x2f1   : > { %5871 = vst.msk [vmem:[#allocation2 + $0x4e0] sm:$0xff] %vm305_vm3, %v5358_v36 }
 0x2f2   : > { %5999 = vst.msk [vmem:[#allocation2 + $0x8e0] sm:$0xff] %vm305_vm3, %v5486_v24  ;;  %v13369_v51 = vpop.f32.mrf.mxu2 }
 0x2f3   : > { %6127 = vst.msk [vmem:[#allocation2 + $0xce0] sm:$0xff] %vm305_vm3, %v5614_v28  ;;  %v13376_v20 = vpop.f32.mrf.mxu0 }
 0x2f4   : > { %5744 = vst.msk [vmem:[#allocation2 + $0xe8] sm:$0xff] %vm305_vm3, %v5231_v60 }
 0x2f5   : > { %5872 = vst.msk [vmem:[#allocation2 + $0x4e8] sm:$0xff] %vm305_vm3, %v5359_v27  ;;  %v13371_v17 = vpop.f32.mrf.mxu3  ;;  %10503 = vmatmul.msk.bf16.gmra.mxu0 %vm3137_vm2, %v10761_v48 }
 0x2f6   : > { %6000 = vst.msk [vmem:[#allocation2 + $0x8e8] sm:$0xff] %vm305_vm3, %v5487_v13  ;;  %10567 = vmatmul.msk.bf16.gmra.mxu1 %vm3137_vm2, %v10825_v56 }
 0x2f7   : > { %6128 = vst.msk [vmem:[#allocation2 + $0xce8] sm:$0xff] %vm305_vm3, %v5615_v63  ;;  %10631 = vmatmul.msk.bf16.gmra.mxu2 %vm3137_vm2, %v10889_v41 }
 0x2f8   : > { %v6386_v39 = vld [vmem:[#allocation2 + $0x4e0] sm:$0xff]  ;;  %5745 = vst.msk [vmem:[#allocation2 + $0xf0] sm:$0xff] %vm305_vm3, %v5232_v14  ;;  %v13378_v5 = vpop.f32.mrf.mxu1 }
 0x2f9   : > { %v6902_v61 = vmul.f32 %v13215_v49, %v6386_v39  ;;  %v6514_v38 = vld [vmem:[#allocation2 + $0x8e0] sm:$0xff]  ;;  %5873 = vst.msk [vmem:[#allocation2 + $0x4f0] sm:$0xff] %vm305_vm3, %v5360_v9 }
 0x2fa   : > { %v7030_v29 = vmul.f32 %v13215_v49, %v6514_v38  ;;  %v6642_v19 = vld [vmem:[#allocation2 + $0xce0] sm:$0xff]  ;;  %6001 = vst.msk [vmem:[#allocation2 + $0x8f0] sm:$0xff] %vm305_vm3, %v5488_v50  ;;  %10695 = vmatmul.msk.bf16.gmra.mxu3 %vm3137_vm2, %v10953_v40  ;;  %v13412_v14 = vpop.f32.mrf.mxu2 }
 0x2fb   : > { %v7418_v18 = vadd.f32 %v13234_v4, %v6902_v61  ;;  %v7158_v21 = vmul.f32 %v13215_v49, %v6642_v19  ;;  %v6259_v1 = vld [vmem:[#allocation2 + $0xe8] sm:$0xff]  ;;  %6129 = vst.msk [vmem:[#allocation2 + $0xcf0] sm:$0xff] %vm305_vm3, %v5616_v52  ;;  %v13420_v26 = vpop.f32.mrf.mxu0 }
 0x2fc   : > { %v7546_v37 = vadd.f32 %v13234_v4, %v7030_v29  ;;  %v6775_v42 = vmul.f32 %v13215_v49, %v6259_v1  ;;  %v6387_v34 = vld [vmem:[#allocation2 + $0x4e8] sm:$0xff]  ;;  %5746 = vst.msk [vmem:[#allocation2 + $0xf8] sm:$0xff] %vm305_vm3, %v5233_v10 }
 0x2fd   : > { %v7930_v53 = vmax.f32 %v7418_v18, 0.0  ;;  %v7674_v55 = vadd.f32 %v13234_v4, %v7158_v21  ;;  %v6903_v11 = vmul.f32 %v13215_v49, %v6387_v34  ;;  %v6515_v2 = vld [vmem:[#allocation2 + $0x8e8] sm:$0xff]  ;;  %5874 = vst.msk [vmem:[#allocation2 + $0x4f8] sm:$0xff] %vm305_vm3, %v5361_v23  ;;  %v13414_v47 = vpop.f32.mrf.mxu3 }
 0x2fe   : > { %v8058_v57 = vmax.f32 %v7546_v37, 0.0  ;;  %v7291_v8 = vadd.f32 %v13234_v4, %v6775_v42  ;;  %v7031_v7 = vmul.f32 %v13215_v49, %v6515_v2  ;;  %v6643_v46 = vld [vmem:[#allocation2 + $0xce8] sm:$0xff]  ;;  %6002 = vst.msk [vmem:[#allocation2 + $0x8f8] sm:$0xff] %vm305_vm3, %v5489_v22 }
 0x2ff   : > { %v8442_v36 = vpack.c.bf16 %v7930_v53, %v7930_v53  ;;  %v8186_v44 = vmax.f32 %v7674_v55, 0.0  ;;  %v7419_v3 = vadd.f32 %v13234_v4, %v6903_v11  ;;  %v7159_v24 = vmul.f32 %v13215_v49, %v6643_v46  ;;  %v6260_v43 = vld [vmem:[#allocation2 + $0xf0] sm:$0xff]  ;;  %6130 = vst.msk [vmem:[#allocation2 + $0xcf8] sm:$0xff] %vm305_vm3, %v5617_v35 }
 0x300   : > { %v8570_v28 = vpack.c.bf16 %v8058_v57, %v8058_v57  ;;  %v7803_v12 = vmax.f32 %v7291_v8, 0.0  ;;  %v7547_v60 = vadd.f32 %v13234_v4, %v7031_v7  ;;  %v6776_v31 = vmul.f32 %v13215_v49, %v6260_v43  ;;  %v6388_v27 = vld [vmem:[#allocation2 + $0x4f0] sm:$0xff]  ;;  %5747 = vst.msk [vmem:[#allocation2 + $0x100] sm:$0xff] %vm305_vm3, %v5234_v33  ;;  %v13422_v39 = vpop.f32.mrf.mxu1 }
 0x301   : > { %8955 = vst.msk [vmem:[%s11330_s10 + $0x270] sm:$0xf] %vm8798_vm4, %v8442_v36  ;;  %v8698_v15 = vpack.c.bf16 %v8186_v44, %v8186_v44  ;;  %v7931_v13 = vmax.f32 %v7419_v3, 0.0  ;;  %v7675_v25 = vadd.f32 %v13234_v4, %v7159_v24  ;;  %v6904_v63 = vmul.f32 %v13215_v49, %v6388_v27  ;;  %v6516_v6 = vld [vmem:[#allocation2 + $0x8f0] sm:$0xff]  ;;  %v1106_v27 = vld [vmem:[#allocation2 + $0x900] sm:$0xff] }
 0x302   : > { %9083 = vst.msk [vmem:[%s11330_s10 + $0x470] sm:$0xf] %vm8798_vm4, %v8570_v28  ;;  %v8315_v9 = vpack.c.bf16 %v7803_v12, %v7803_v12  ;;  %v8059_v54 = vmax.f32 %v7547_v60, 0.0  ;;  %v7292_v50 = vadd.f32 %v13234_v4, %v6776_v31  ;;  %v7032_v0 = vmul.f32 %v13215_v49, %v6516_v6  ;;  %v6644_v52 = vld [vmem:[#allocation2 + $0xcf0] sm:$0xff]  ;;  %v13451_v24 = vpop.f32.mrf.mxu2  ;;  %v978_v31 = vld [vmem:[#allocation2 + $0x500] sm:$0xff] }
 0x303   : > { %9211 = vst.msk [vmem:[%s11330_s10 + $0x670] sm:$0xf] %vm8798_vm4, %v8698_v15  ;;  %v8443_v10 = vpack.c.bf16 %v7931_v13, %v7931_v13  ;;  %v8187_v16 = vmax.f32 %v7675_v25, 0.0  ;;  %v7420_v61 = vadd.f32 %v13234_v4, %v6904_v63  ;;  %v7160_v38 = vmul.f32 %v13215_v49, %v6644_v52  ;;  %v6261_v23 = vld [vmem:[#allocation2 + $0xf8] sm:$0xff]  ;;  %v13458_v15 = vpop.f32.mrf.mxu0  ;;  %v10762_v6 = vld [vmem:[%s11136_s29 + $0xd0] sm:$0xff]  ;;  %v1234_v52 = vld [vmem:[#allocation2 + $0xd00] sm:$0xff] }
 0x304   : > { %8828 = vst.msk [vmem:[%s11330_s10 + $0x74] sm:$0xf] %vm8798_vm4, %v8315_v9  ;;  %v8571_v59 = vpack.c.bf16 %v8059_v54, %v8059_v54  ;;  %v7804_v29 = vmax.f32 %v7292_v50, 0.0  ;;  %v7548_v19 = vadd.f32 %v13234_v4, %v7032_v0  ;;  %v6777_v22 = vmul.f32 %v13215_v49, %v6261_v23  ;;  %v6389_v18 = vld [vmem:[#allocation2 + $0x4f8] sm:$0xff]  ;;  %v10826_v9 = vld [vmem:[%s11136_s29 + $0x2d0] sm:$0xff] }
 0x305   : > { %8956 = vst.msk [vmem:[%s11330_s10 + $0x274] sm:$0xf] %vm8798_vm4, %v8443_v10  ;;  %v8699_v21 = vpack.c.bf16 %v8187_v16, %v8187_v16  ;;  %v7932_v1 = vmax.f32 %v7420_v61, 0.0  ;;  %v7676_v35 = vadd.f32 %v13234_v4, %v7160_v38  ;;  %v6905_v48 = vmul.f32 %v13215_v49, %v6389_v18  ;;  %v6517_v56 = vld [vmem:[#allocation2 + $0x8f8] sm:$0xff]  ;;  %v13453_v43 = vpop.f32.mrf.mxu3  ;;  %v10890_v54 = vld [vmem:[%s11136_s29 + $0x4d0] sm:$0xff]  ;;  %v851_v38 = vld [vmem:[#allocation2 + $0x108] sm:$0xff]  ;;  %10504 = vmatmul.msk.bf16.gmra.mxu0 %vm3137_vm2, %v10762_v6 }
 0x306   : > { %9084 = vst.msk [vmem:[%s11330_s10 + $0x474] sm:$0xf] %vm8798_vm4, %v8571_v59  ;;  %v8316_v37 = vpack.c.bf16 %v7804_v29, %v7804_v29  ;;  %v8060_v42 = vmax.f32 %v7548_v19, 0.0  ;;  %v7293_v34 = vadd.f32 %v13234_v4, %v6777_v22  ;;  %v7033_v33 = vmul.f32 %v13215_v49, %v6517_v56  ;;  %v6645_v41 = vld [vmem:[#allocation2 + $0xcf8] sm:$0xff]  ;;  %v10954_v10 = vld [vmem:[%s11136_s29 + $0x6d0] sm:$0xff]  ;;  %10568 = vmatmul.msk.bf16.gmra.mxu1 %vm3137_vm2, %v10826_v9  ;;  %v979_v29 = vld [vmem:[#allocation2 + $0x508] sm:$0xff] }
 0x307   : > { %9212 = vst.msk [vmem:[%s11330_s10 + $0x674] sm:$0xf] %vm8798_vm4, %v8699_v21  ;;  %v8444_v40 = vpack.c.bf16 %v7932_v1, %v7932_v1  ;;  %v8188_v53 = vmax.f32 %v7676_v35, 0.0  ;;  %v7421_v55 = vadd.f32 %v13234_v4, %v6905_v48  ;;  %v7161_v11 = vmul.f32 %v13215_v49, %v6645_v41  ;;  %v6262_v2 = vld [vmem:[#allocation2 + $0x100] sm:$0xff]  ;;  %10632 = vmatmul.msk.bf16.gmra.mxu2 %vm3137_vm2, %v10890_v54  ;;  %v1235_v18 = vld [vmem:[#allocation2 + $0xd08] sm:$0xff]  ;;  %v10891_v6 = vld [vmem:[%s11136_s29 + $0x4d8] sm:$0xff] }
 0x308   : > { %8829 = vst.msk [vmem:[%s11330_s10 + $0x78] sm:$0xf] %vm8798_vm4, %v8316_v37  ;;  %v8572_v57 = vpack.c.bf16 %v8060_v42, %v8060_v42  ;;  %v7805_v8 = vmax.f32 %v7293_v34, 0.0  ;;  %v7549_v7 = vadd.f32 %v13234_v4, %v7033_v33  ;;  %v6778_v46 = vmul.f32 %v13215_v49, %v6262_v2  ;;  %v13460_v13 = vpop.f32.mrf.mxu1  ;;  %v1108_v42 = vld [vmem:[#allocation2 + $0x910] sm:$0xff]  ;;  %v10955_v9 = vld [vmem:[%s11136_s29 + $0x6d8] sm:$0xff] }
 0x309   : > { %8957 = vst.msk [vmem:[%s11330_s10 + $0x278] sm:$0xf] %vm8798_vm4, %v8444_v40  ;;  %v8700_v36 = vpack.c.bf16 %v8188_v53, %v8188_v53  ;;  %v7933_v44 = vmax.f32 %v7421_v55, 0.0  ;;  %v7677_v3 = vadd.f32 %v13234_v4, %v7161_v11  ;;  %v5362_v61 = vadd.f32 %v13316_v58, %v978_v31  ;;  %v1107_v58 = vld [vmem:[#allocation2 + $0x908] sm:$0xff]  ;;  %v1236_v34 = vld [vmem:[#allocation2 + $0xd10] sm:$0xff]  ;;  %v981_v40 = vld [vmem:[#allocation2 + $0x518] sm:$0xff] }
 0x30a   : > { %9085 = vst.msk [vmem:[%s11330_s10 + $0x478] sm:$0xf] %vm8798_vm4, %v8572_v57  ;;  %v8317_v28 = vpack.c.bf16 %v7805_v8, %v7805_v8  ;;  %v8061_v12 = vmax.f32 %v7549_v7, 0.0  ;;  %v7294_v60 = vadd.f32 %v13234_v4, %v6778_v46  ;;  %v5490_v59 = vadd.f32 %v13344_v62, %v1106_v27  ;;  %10696 = vmatmul.msk.bf16.gmra.mxu3 %vm3137_vm2, %v10954_v10  ;;  %v852_v62 = vld [vmem:[#allocation2 + $0x110] sm:$0xff]  ;;  %v13488_v1 = vpop.f32.mrf.mxu2  ;;  %v1109_v53 = vld [vmem:[#allocation2 + $0x918] sm:$0xff]  ;;  %v854_v57 = vld [vmem:[#allocation2 + $0x120] sm:$0xff] }
 0x30b   : > { %9213 = vst.msk [vmem:[%s11330_s10 + $0x678] sm:$0xf] %vm8798_vm4, %v8700_v36  ;;  %v8445_v25 = vpack.c.bf16 %v7933_v44, %v7933_v44  ;;  %v8189_v63 = vmax.f32 %v7677_v3, 0.0  ;;  %v5618_v19 = vadd.f32 %v13346_v30, %v1234_v52  ;;  %v5235_v22 = vadd.f32 %v13350_v45, %v851_v38  ;;  %v980_v30 = vld [vmem:[#allocation2 + $0x510] sm:$0xff]  ;;  %v13494_v56 = vpop.f32.mrf.mxu0  ;;  %v1237_v11 = vld [vmem:[#allocation2 + $0xd18] sm:$0xff] }
 0x30c   : > { %8830 = vst.msk [vmem:[%s11330_s10 + $0x7c] sm:$0xf] %vm8798_vm4, %v8317_v28  ;;  %v8573_v50 = vpack.c.bf16 %v8061_v12, %v8061_v12  ;;  %v7806_v0 = vmax.f32 %v7294_v60, 0.0  ;;  %v5363_v21 = vadd.f32 %v13352_v32, %v979_v29  ;;  %v5491_v48 = vadd.f32 %v13369_v51, %v1107_v58  ;;  %v853_v51 = vld [vmem:[#allocation2 + $0x118] sm:$0xff] }
 0x30d   : > { %8958 = vst.msk [vmem:[%s11330_s10 + $0x27c] sm:$0xf] %vm8798_vm4, %v8445_v25  ;;  %v8701_v16 = vpack.c.bf16 %v8189_v63, %v8189_v63  ;;  %v13490_v35 = vpop.f32.mrf.mxu3  ;;  %v5619_v45 = vadd.f32 %v13371_v17, %v1235_v18  ;;  %v5236_v32 = vadd.f32 %v13376_v20, %v852_v62  ;;  %v5364_v33 = vadd.f32 %v13378_v5, %v980_v30  ;;  %v10763_v60 = vld [vmem:[%s11136_s29 + $0xd8] sm:$0xff] }
 0x30e   : > { %9086 = vst.msk [vmem:[%s11330_s10 + $0x47c] sm:$0xf] %vm8798_vm4, %v8573_v50  ;;  %v8318_v23 = vpack.c.bf16 %v7806_v0, %v7806_v0  ;;  %v5492_v41 = vadd.f32 %v13412_v14, %v1108_v42  ;;  %v5620_v17 = vadd.f32 %v13414_v47, %v1236_v34  ;;  %v5237_v20 = vadd.f32 %v13420_v26, %v853_v51  ;;  %v10827_v31 = vld [vmem:[%s11136_s29 + $0x2d8] sm:$0xff] }
 0x30f   : > { %9214 = vst.msk [vmem:[%s11330_s10 + $0x67c] sm:$0xf] %vm8798_vm4, %v8701_v16  ;;  %v5365_v14 = vadd.f32 %v13422_v39, %v981_v40  ;;  %v5493_v26 = vadd.f32 %v13451_v24, %v1109_v53  ;;  %v5621_v12 = vadd.f32 %v13453_v43, %v1237_v11  ;;  %v5238_v63 = vadd.f32 %v13458_v15, %v854_v57 }
 0x310   : > { %8831 = vst.msk [vmem:[%s11330_s10 + $0x80] sm:$0xf] %vm8798_vm4, %v8318_v23  ;;  %v13496_v37 = vpop.f32.mrf.mxu1 }
 0x311   : > { %5875 = vst.msk [vmem:[#allocation2 + $0x500] sm:$0xff] %vm305_vm3, %v5362_v61 }
 0x312   : > { %6003 = vst.msk [vmem:[#allocation2 + $0x900] sm:$0xff] %vm305_vm3, %v5490_v59  ;;  %v13513_v8 = vpop.f32.mrf.mxu2 }
 0x313   : > { %6131 = vst.msk [vmem:[#allocation2 + $0xd00] sm:$0xff] %vm305_vm3, %v5618_v19  ;;  %v13520_v36 = vpop.f32.mrf.mxu0 }
 0x314   : > { %5748 = vst.msk [vmem:[#allocation2 + $0x108] sm:$0xff] %vm305_vm3, %v5235_v22 }
 0x315   : > { %5876 = vst.msk [vmem:[#allocation2 + $0x508] sm:$0xff] %vm305_vm3, %v5363_v21  ;;  %v13515_v47 = vpop.f32.mrf.mxu3  ;;  %10505 = vmatmul.msk.bf16.gmra.mxu0 %vm3137_vm2, %v10763_v60 }
 0x316   : > { %6004 = vst.msk [vmem:[#allocation2 + $0x908] sm:$0xff] %vm305_vm3, %v5491_v48  ;;  %10569 = vmatmul.msk.bf16.gmra.mxu1 %vm3137_vm2, %v10827_v31 }
 0x317   : > { %6132 = vst.msk [vmem:[#allocation2 + $0xd08] sm:$0xff] %vm305_vm3, %v5619_v45  ;;  %10633 = vmatmul.msk.bf16.gmra.mxu2 %vm3137_vm2, %v10891_v6 }
 0x318   : > { %v6390_v55 = vld [vmem:[#allocation2 + $0x500] sm:$0xff]  ;;  %5749 = vst.msk [vmem:[#allocation2 + $0x110] sm:$0xff] %vm305_vm3, %v5236_v32  ;;  %v13522_v44 = vpop.f32.mrf.mxu1 }
 0x319   : > { %v6906_v2 = vmul.f32 %v13215_v49, %v6390_v55  ;;  %v6518_v5 = vld [vmem:[#allocation2 + $0x900] sm:$0xff]  ;;  %5877 = vst.msk [vmem:[#allocation2 + $0x510] sm:$0xff] %vm305_vm3, %v5364_v33 }
 0x31a   : > { %v7034_v7 = vmul.f32 %v13215_v49, %v6518_v5  ;;  %v6646_v46 = vld [vmem:[#allocation2 + $0xd00] sm:$0xff]  ;;  %6005 = vst.msk [vmem:[#allocation2 + $0x910] sm:$0xff] %vm305_vm3, %v5492_v41  ;;  %10697 = vmatmul.msk.bf16.gmra.mxu3 %vm3137_vm2, %v10955_v9  ;;  %v13556_v32 = vpop.f32.mrf.mxu2 }
 0x31b   : > { %v7422_v39 = vadd.f32 %v13234_v4, %v6906_v2  ;;  %v7162_v3 = vmul.f32 %v13215_v49, %v6646_v46  ;;  %v6263_v28 = vld [vmem:[#allocation2 + $0x108] sm:$0xff]  ;;  %6133 = vst.msk [vmem:[#allocation2 + $0xd10] sm:$0xff] %vm305_vm3, %v5620_v17  ;;  %v13564_v53 = vpop.f32.mrf.mxu0 }
 0x31c   : > { %v7550_v27 = vadd.f32 %v13234_v4, %v7034_v7  ;;  %v6779_v24 = vmul.f32 %v13215_v49, %v6263_v28  ;;  %v6391_v25 = vld [vmem:[#allocation2 + $0x508] sm:$0xff]  ;;  %5750 = vst.msk [vmem:[#allocation2 + $0x118] sm:$0xff] %vm305_vm3, %v5237_v20 }
 0x31d   : > { %v7934_v54 = vmax.f32 %v7422_v39, 0.0  ;;  %v7678_v50 = vadd.f32 %v13234_v4, %v7162_v3  ;;  %v6907_v0 = vmul.f32 %v13215_v49, %v6391_v25  ;;  %v6519_v52 = vld [vmem:[#allocation2 + $0x908] sm:$0xff]  ;;  %5878 = vst.msk [vmem:[#allocation2 + $0x518] sm:$0xff] %vm305_vm3, %v5365_v14  ;;  %v13558_v34 = vpop.f32.mrf.mxu3 }
 0x31e   : > { %v8062_v43 = vmax.f32 %v7550_v27, 0.0  ;;  %v7295_v10 = vadd.f32 %v13234_v4, %v6779_v24  ;;  %v7035_v16 = vmul.f32 %v13215_v49, %v6519_v52  ;;  %v6647_v15 = vld [vmem:[#allocation2 + $0xd08] sm:$0xff]  ;;  %6006 = vst.msk [vmem:[#allocation2 + $0x918] sm:$0xff] %vm305_vm3, %v5493_v26 }
 0x31f   : > { %v8446_v61 = vpack.c.bf16 %v7934_v54, %v7934_v54  ;;  %v8190_v38 = vmax.f32 %v7678_v50, 0.0  ;;  %v7423_v23 = vadd.f32 %v13234_v4, %v6907_v0  ;;  %v7163_v59 = vmul.f32 %v13215_v49, %v6647_v15  ;;  %v6264_v29 = vld [vmem:[#allocation2 + $0x110] sm:$0xff]  ;;  %6134 = vst.msk [vmem:[#allocation2 + $0xd18] sm:$0xff] %vm305_vm3, %v5621_v12 }
 0x320   : > { %v8574_v19 = vpack.c.bf16 %v8062_v43, %v8062_v43  ;;  %v7807_v58 = vmax.f32 %v7295_v10, 0.0  ;;  %v7551_v22 = vadd.f32 %v13234_v4, %v7035_v16  ;;  %v6780_v18 = vmul.f32 %v13215_v49, %v6264_v29  ;;  %v6392_v21 = vld [vmem:[#allocation2 + $0x510] sm:$0xff]  ;;  %5751 = vst.msk [vmem:[#allocation2 + $0x120] sm:$0xff] %vm305_vm3, %v5238_v63  ;;  %v13566_v55 = vpop.f32.mrf.mxu1 }
 0x321   : > { %8959 = vst.msk [vmem:[%s11330_s10 + $0x280] sm:$0xf] %vm8798_vm4, %v8446_v61  ;;  %v8702_v62 = vpack.c.bf16 %v8190_v38, %v8190_v38  ;;  %v7935_v48 = vmax.f32 %v7423_v23, 0.0  ;;  %v7679_v30 = vadd.f32 %v13234_v4, %v7163_v59  ;;  %v6908_v45 = vmul.f32 %v13215_v49, %v6392_v21  ;;  %v6520_v42 = vld [vmem:[#allocation2 + $0x910] sm:$0xff] }
 0x322   : > { %9087 = vst.msk [vmem:[%s11330_s10 + $0x480] sm:$0xf] %vm8798_vm4, %v8574_v19  ;;  %v8319_v33 = vpack.c.bf16 %v7807_v58, %v7807_v58  ;;  %v8063_v51 = vmax.f32 %v7551_v22, 0.0  ;;  %v7296_v41 = vadd.f32 %v13234_v4, %v6780_v18  ;;  %v7036_v40 = vmul.f32 %v13215_v49, %v6520_v42  ;;  %v6648_v17 = vld [vmem:[#allocation2 + $0xd10] sm:$0xff]  ;;  %v13595_v59 = vpop.f32.mrf.mxu2  ;;  %v982_v22 = vld [vmem:[#allocation2 + $0x520] sm:$0xff] }
 0x323   : > { %9215 = vst.msk [vmem:[%s11330_s10 + $0x680] sm:$0xf] %vm8798_vm4, %v8702_v62  ;;  %v8447_v20 = vpack.c.bf16 %v7935_v48, %v7935_v48  ;;  %v8191_v11 = vmax.f32 %v7679_v30, 0.0  ;;  %v7424_v2 = vadd.f32 %v13234_v4, %v6908_v45  ;;  %v7164_v5 = vmul.f32 %v13215_v49, %v6648_v17  ;;  %v6265_v14 = vld [vmem:[#allocation2 + $0x118] sm:$0xff]  ;;  %v1110_v18 = vld [vmem:[#allocation2 + $0x920] sm:$0xff]  ;;  %v13602_v21 = vpop.f32.mrf.mxu0 }
 0x324   : > { %8832 = vst.msk [vmem:[%s11330_s10 + $0x84] sm:$0xf] %vm8798_vm4, %v8319_v33  ;;  %v8575_v57 = vpack.c.bf16 %v8063_v51, %v8063_v51  ;;  %v7808_v7 = vmax.f32 %v7296_v41, 0.0  ;;  %v7552_v46 = vadd.f32 %v13234_v4, %v7036_v40  ;;  %v6781_v26 = vmul.f32 %v13215_v49, %v6265_v14  ;;  %v6393_v39 = vld [vmem:[#allocation2 + $0x518] sm:$0xff]  ;;  %v10764_v45 = vld [vmem:[%s11136_s29 + $0xe0] sm:$0xff]  ;;  %v983_v14 = vld [vmem:[#allocation2 + $0x528] sm:$0xff] }
 0x325   : > { %8960 = vst.msk [vmem:[%s11330_s10 + $0x284] sm:$0xf] %vm8798_vm4, %v8447_v20  ;;  %v8703_v3 = vpack.c.bf16 %v8191_v11, %v8191_v11  ;;  %v7936_v28 = vmax.f32 %v7424_v2, 0.0  ;;  %v7680_v12 = vadd.f32 %v13234_v4, %v7164_v5  ;;  %v6909_v60 = vmul.f32 %v13215_v49, %v6393_v39  ;;  %v6521_v31 = vld [vmem:[#allocation2 + $0x918] sm:$0xff]  ;;  %v13597_v29 = vpop.f32.mrf.mxu3  ;;  %v10828_v42 = vld [vmem:[%s11136_s29 + $0x2e0] sm:$0xff]  ;;  %v855_v11 = vld [vmem:[#allocation2 + $0x128] sm:$0xff]  ;;  %10506 = vmatmul.msk.bf16.gmra.mxu0 %vm3137_vm2, %v10764_v45 }
 0x326   : > { %9088 = vst.msk [vmem:[%s11330_s10 + $0x484] sm:$0xf] %vm8798_vm4, %v8575_v57  ;;  %v8320_v27 = vpack.c.bf16 %v7808_v7, %v7808_v7  ;;  %v8064_v24 = vmax.f32 %v7552_v46, 0.0  ;;  %v7297_v25 = vadd.f32 %v13234_v4, %v6781_v26  ;;  %v7037_v63 = vmul.f32 %v13215_v49, %v6521_v31  ;;  %v6649_v6 = vld [vmem:[#allocation2 + $0xd18] sm:$0xff]  ;;  %v10892_v33 = vld [vmem:[%s11136_s29 + $0x4e0] sm:$0xff]  ;;  %10570 = vmatmul.msk.bf16.gmra.mxu1 %vm3137_vm2, %v10828_v42  ;;  %v1239_v46 = vld [vmem:[#allocation2 + $0xd28] sm:$0xff] }
 0x327   : > { %9216 = vst.msk [vmem:[%s11330_s10 + $0x684] sm:$0xf] %vm8798_vm4, %v8703_v3  ;;  %v8448_v9 = vpack.c.bf16 %v7936_v28, %v7936_v28  ;;  %v8192_v54 = vmax.f32 %v7680_v12, 0.0  ;;  %v7425_v50 = vadd.f32 %v13234_v4, %v6909_v60  ;;  %v7165_v0 = vmul.f32 %v13215_v49, %v6649_v6  ;;  %v6266_v52 = vld [vmem:[#allocation2 + $0x120] sm:$0xff]  ;;  %10634 = vmatmul.msk.bf16.gmra.mxu2 %vm3137_vm2, %v10892_v33  ;;  %v1112_v31 = vld [vmem:[#allocation2 + $0x930] sm:$0xff]  ;;  %v1113_v6 = vld [vmem:[#allocation2 + $0x938] sm:$0xff] }
 0x328   : > { %8833 = vst.msk [vmem:[%s11330_s10 + $0x88] sm:$0xf] %vm8798_vm4, %v8320_v27  ;;  %v8576_v43 = vpack.c.bf16 %v8064_v24, %v8064_v24  ;;  %v7809_v10 = vmax.f32 %v7297_v25, 0.0  ;;  %v7553_v16 = vadd.f32 %v13234_v4, %v7037_v63  ;;  %v6782_v15 = vmul.f32 %v13215_v49, %v6266_v52  ;;  %v13604_v62 = vpop.f32.mrf.mxu1  ;;  %v1238_v41 = vld [vmem:[#allocation2 + $0xd20] sm:$0xff]  ;;  %v1240_v27 = vld [vmem:[#allocation2 + $0xd30] sm:$0xff]  ;;  %v985_v63 = vld [vmem:[#allocation2 + $0x538] sm:$0xff] }
 0x329   : > { %8961 = vst.msk [vmem:[%s11330_s10 + $0x288] sm:$0xf] %vm8798_vm4, %v8448_v9  ;;  %v8704_v61 = vpack.c.bf16 %v8192_v54, %v8192_v54  ;;  %v7937_v38 = vmax.f32 %v7425_v50, 0.0  ;;  %v7681_v23 = vadd.f32 %v13234_v4, %v7165_v0  ;;  %v10956_v40 = vld [vmem:[%s11136_s29 + $0x6e0] sm:$0xff]  ;;  %v5366_v20 = vadd.f32 %v13460_v13, %v982_v22  ;;  %v1111_v13 = vld [vmem:[#allocation2 + $0x928] sm:$0xff]  ;;  %v1241_v54 = vld [vmem:[#allocation2 + $0xd38] sm:$0xff] }
 0x32a   : > { %9089 = vst.msk [vmem:[%s11330_s10 + $0x488] sm:$0xf] %vm8798_vm4, %v8576_v43  ;;  %v8321_v19 = vpack.c.bf16 %v7809_v10, %v7809_v10  ;;  %v8065_v58 = vmax.f32 %v7553_v16, 0.0  ;;  %v7298_v49 = vadd.f32 %v13234_v4, %v6782_v15  ;;  %v5494_v5 = vadd.f32 %v13488_v1, %v1110_v18  ;;  %10698 = vmatmul.msk.bf16.gmra.mxu3 %vm3137_vm2, %v10956_v40  ;;  %v856_v1 = vld [vmem:[#allocation2 + $0x130] sm:$0xff]  ;;  %v13632_v39 = vpop.f32.mrf.mxu2  ;;  %v10893_v45 = vld [vmem:[%s11136_s29 + $0x4e8] sm:$0xff] }
 0x32b   : > { %9217 = vst.msk [vmem:[%s11330_s10 + $0x688] sm:$0xf] %vm8798_vm4, %v8704_v61  ;;  %v8449_v48 = vpack.c.bf16 %v7937_v38, %v7937_v38  ;;  %v8193_v30 = vmax.f32 %v7681_v23, 0.0  ;;  %v5622_v57 = vadd.f32 %v13490_v35, %v1238_v41  ;;  %v5239_v7 = vadd.f32 %v13494_v56, %v855_v11  ;;  %v984_v35 = vld [vmem:[#allocation2 + $0x530] sm:$0xff]  ;;  %v13638_v12 = vpop.f32.mrf.mxu0  ;;  %v10957_v42 = vld [vmem:[%s11136_s29 + $0x6e8] sm:$0xff] }
 0x32c   : > { %8834 = vst.msk [vmem:[%s11330_s10 + $0x8c] sm:$0xf] %vm8798_vm4, %v8321_v19  ;;  %v8577_v51 = vpack.c.bf16 %v8065_v58, %v8065_v58  ;;  %v7810_v4 = vmax.f32 %v7298_v49, 0.0  ;;  %v5367_v26 = vadd.f32 %v13496_v37, %v983_v14  ;;  %v5495_v28 = vadd.f32 %v13513_v8, %v1111_v13  ;;  %v857_v8 = vld [vmem:[#allocation2 + $0x138] sm:$0xff]  ;;  %v10765_v58 = vld [vmem:[%s11136_s29 + $0xe8] sm:$0xff] }
 0x32d   : > { %8962 = vst.msk [vmem:[%s11330_s10 + $0x28c] sm:$0xf] %vm8798_vm4, %v8449_v48  ;;  %v8705_v17 = vpack.c.bf16 %v8193_v30, %v8193_v30  ;;  %v13634_v3 = vpop.f32.mrf.mxu3  ;;  %v5623_v56 = vadd.f32 %v13515_v47, %v1239_v46  ;;  %v5240_v37 = vadd.f32 %v13520_v36, %v856_v1  ;;  %v5368_v24 = vadd.f32 %v13522_v44, %v984_v35  ;;  %v13657_v44 = vld [vmem:[%s16857_s2] ss:$0 sm:$0xff]  ;;  %v10829_v49 = vld [vmem:[%s11136_s29 + $0x2e8] sm:$0xff] }
 0x32e   : > { %9090 = vst.msk [vmem:[%s11330_s10 + $0x48c] sm:$0xf] %vm8798_vm4, %v8577_v51  ;;  %v8322_v2 = vpack.c.bf16 %v7810_v4, %v7810_v4  ;;  %v5496_v25 = vadd.f32 %v13556_v32, %v1112_v31  ;;  %v5624_v47 = vadd.f32 %v13558_v34, %v1240_v27  ;;  %v5241_v36 = vadd.f32 %v13564_v53, %v857_v8  ;;  %v858_v34 = vld [vmem:[#allocation2 + $0x140] sm:$0xff] }
 0x32f   : > { %9218 = vst.msk [vmem:[%s11330_s10 + $0x68c] sm:$0xf] %vm8798_vm4, %v8705_v17  ;;  %v5369_v0 = vadd.f32 %v13566_v55, %v985_v63  ;;  %v5497_v16 = vadd.f32 %v13595_v59, %v1113_v6  ;;  %v13676_v55 = vld [vmem:[%s16858_s3] ss:$0 sm:$0xff]  ;;  %v5625_v59 = vadd.f32 %v13597_v29, %v1241_v54  ;;  %v5242_v30 = vadd.f32 %v13602_v21, %v858_v34 }
 0x330   : > { %8835 = vst.msk [vmem:[%s11330_s10 + $0x90] sm:$0xf] %vm8798_vm4, %v8322_v2  ;;  %v13640_v60 = vpop.f32.mrf.mxu1 }
 0x331   : > { %5879 = vst.msk [vmem:[#allocation2 + $0x520] sm:$0xff] %vm305_vm3, %v5366_v20 }
 0x332   : > { %6007 = vst.msk [vmem:[#allocation2 + $0x920] sm:$0xff] %vm305_vm3, %v5494_v5  ;;  %v13662_v52 = vpop.f32.mrf.mxu2 }
 0x333   : > { %6135 = vst.msk [vmem:[#allocation2 + $0xd20] sm:$0xff] %vm305_vm3, %v5622_v57  ;;  %v13669_v15 = vpop.f32.mrf.mxu0 }
 0x334   : > { %5752 = vst.msk [vmem:[#allocation2 + $0x128] sm:$0xff] %vm305_vm3, %v5239_v7 }
 0x335   : > { %5880 = vst.msk [vmem:[#allocation2 + $0x528] sm:$0xff] %vm305_vm3, %v5367_v26  ;;  %v13664_v43 = vpop.f32.mrf.mxu3  ;;  %10507 = vmatmul.msk.bf16.gmra.mxu0 %vm3137_vm2, %v10765_v58 }
 0x336   : > { %6008 = vst.msk [vmem:[#allocation2 + $0x928] sm:$0xff] %vm305_vm3, %v5495_v28  ;;  %10571 = vmatmul.msk.bf16.gmra.mxu1 %vm3137_vm2, %v10829_v49 }
 0x337   : > { %6136 = vst.msk [vmem:[#allocation2 + $0xd28] sm:$0xff] %vm305_vm3, %v5623_v56  ;;  %10635 = vmatmul.msk.bf16.gmra.mxu2 %vm3137_vm2, %v10893_v45 }
 0x338   : > { %v6394_v9 = vld [vmem:[#allocation2 + $0x520] sm:$0xff]  ;;  %5753 = vst.msk [vmem:[#allocation2 + $0x130] sm:$0xff] %vm305_vm3, %v5240_v37  ;;  %v13671_v61 = vpop.f32.mrf.mxu1 }
 0x339   : > { %v6910_v50 = vmul.f32 %v13657_v44, %v6394_v9  ;;  %v6522_v32 = vld [vmem:[#allocation2 + $0x920] sm:$0xff]  ;;  %5881 = vst.msk [vmem:[#allocation2 + $0x530] sm:$0xff] %vm305_vm3, %v5368_v24 }
 0x33a   : > { %v7038_v53 = vmul.f32 %v13657_v44, %v6522_v32  ;;  %v6650_v10 = vld [vmem:[#allocation2 + $0xd20] sm:$0xff]  ;;  %6009 = vst.msk [vmem:[#allocation2 + $0x930] sm:$0xff] %vm305_vm3, %v5496_v25  ;;  %10699 = vmatmul.msk.bf16.gmra.mxu3 %vm3137_vm2, %v10957_v42  ;;  %v13710_v37 = vpop.f32.mrf.mxu2 }
 0x33b   : > { %v7426_v38 = vadd.f32 %v13676_v55, %v6910_v50  ;;  %v7166_v23 = vmul.f32 %v13657_v44, %v6650_v10  ;;  %v6267_v19 = vld [vmem:[#allocation2 + $0x128] sm:$0xff]  ;;  %6137 = vst.msk [vmem:[#allocation2 + $0xd30] sm:$0xff] %vm305_vm3, %v5624_v47  ;;  %v13718_v6 = vpop.f32.mrf.mxu0 }
 0x33c   : > { %v7554_v22 = vadd.f32 %v13676_v55, %v7038_v53  ;;  %v6783_v18 = vmul.f32 %v13657_v44, %v6267_v19  ;;  %v6395_v48 = vld [vmem:[#allocation2 + $0x528] sm:$0xff]  ;;  %5754 = vst.msk [vmem:[#allocation2 + $0x138] sm:$0xff] %vm305_vm3, %v5241_v36 }
 0x33d   : > { %v7938_v33 = vmax.f32 %v7426_v38, 0.0  ;;  %v7682_v51 = vadd.f32 %v13676_v55, %v7166_v23  ;;  %v6911_v4 = vmul.f32 %v13657_v44, %v6395_v48  ;;  %v6523_v41 = vld [vmem:[#allocation2 + $0x928] sm:$0xff]  ;;  %5882 = vst.msk [vmem:[#allocation2 + $0x538] sm:$0xff] %vm305_vm3, %v5369_v0  ;;  %v13712_v27 = vpop.f32.mrf.mxu3 }
 0x33e   : > { %v8066_v29 = vmax.f32 %v7554_v22, 0.0  ;;  %v7299_v40 = vadd.f32 %v13676_v55, %v6783_v18  ;;  %v7039_v17 = vmul.f32 %v13657_v44, %v6523_v41  ;;  %v6651_v21 = vld [vmem:[#allocation2 + $0xd28] sm:$0xff]  ;;  %6010 = vst.msk [vmem:[#allocation2 + $0x938] sm:$0xff] %vm305_vm3, %v5497_v16 }
 0x33f   : > { %v8450_v20 = vpack.c.bf16 %v7938_v33, %v7938_v33  ;;  %v8194_v11 = vmax.f32 %v7682_v51, 0.0  ;;  %v7427_v2 = vadd.f32 %v13676_v55, %v6911_v4  ;;  %v7167_v5 = vmul.f32 %v13657_v44, %v6651_v21  ;;  %v6268_v14 = vld [vmem:[#allocation2 + $0x130] sm:$0xff]  ;;  %6138 = vst.msk [vmem:[#allocation2 + $0xd38] sm:$0xff] %vm305_vm3, %v5625_v59 }
 0x340   : > { %v8578_v57 = vpack.c.bf16 %v8066_v29, %v8066_v29  ;;  %v7811_v13 = vmax.f32 %v7299_v40, 0.0  ;;  %v7555_v7 = vadd.f32 %v13676_v55, %v7039_v17  ;;  %v6784_v46 = vmul.f32 %v13657_v44, %v6268_v14  ;;  %v6396_v26 = vld [vmem:[#allocation2 + $0x530] sm:$0xff]  ;;  %5755 = vst.msk [vmem:[#allocation2 + $0x140] sm:$0xff] %vm305_vm3, %v5242_v30  ;;  %v13720_v9 = vpop.f32.mrf.mxu1 }
 0x341   : > { %8963 = vst.msk [vmem:[%s11330_s10 + $0x290] sm:$0xf] %vm8798_vm4, %v8450_v20  ;;  %v8706_v1 = vpack.c.bf16 %v8194_v11, %v8194_v11  ;;  %v7939_v28 = vmax.f32 %v7427_v2, 0.0  ;;  %v7683_v35 = vadd.f32 %v13676_v55, %v7167_v5  ;;  %v6912_v56 = vmul.f32 %v13657_v44, %v6396_v26  ;;  %v6524_v31 = vld [vmem:[#allocation2 + $0x930] sm:$0xff]  ;;  %v1114_v26 = vld [vmem:[#allocation2 + $0x940] sm:$0xff] }
 0x342   : > { %9091 = vst.msk [vmem:[%s11330_s10 + $0x490] sm:$0xf] %vm8798_vm4, %v8578_v57  ;;  %v8323_v24 = vpack.c.bf16 %v7811_v13, %v7811_v13  ;;  %v8067_v8 = vmax.f32 %v7555_v7, 0.0  ;;  %v7300_v25 = vadd.f32 %v13676_v55, %v6784_v46  ;;  %v7040_v63 = vmul.f32 %v13657_v44, %v6524_v31  ;;  %v6652_v47 = vld [vmem:[#allocation2 + $0xd30] sm:$0xff]  ;;  %v13749_v5 = vpop.f32.mrf.mxu2  ;;  %v986_v46 = vld [vmem:[#allocation2 + $0x540] sm:$0xff] }
 0x343   : > { %9219 = vst.msk [vmem:[%s11330_s10 + $0x690] sm:$0xf] %vm8798_vm4, %v8706_v1  ;;  %v8451_v36 = vpack.c.bf16 %v7939_v28, %v7939_v28  ;;  %v8195_v54 = vmax.f32 %v7683_v35, 0.0  ;;  %v7428_v50 = vadd.f32 %v13676_v55, %v6912_v56  ;;  %v7168_v32 = vmul.f32 %v13657_v44, %v6652_v47  ;;  %v6269_v0 = vld [vmem:[#allocation2 + $0x138] sm:$0xff]  ;;  %v13756_v1 = vpop.f32.mrf.mxu0  ;;  %v10766_v31 = vld [vmem:[%s11136_s29 + $0xf0] sm:$0xff]  ;;  %v1242_v47 = vld [vmem:[#allocation2 + $0xd40] sm:$0xff] }
 0x344   : > { %8836 = vst.msk [vmem:[%s11330_s10 + $0x94] sm:$0xf] %vm8798_vm4, %v8323_v24  ;;  %v8579_v34 = vpack.c.bf16 %v8067_v8, %v8067_v8  ;;  %v7812_v53 = vmax.f32 %v7300_v25, 0.0  ;;  %v7556_v10 = vadd.f32 %v13676_v55, %v7040_v63  ;;  %v6785_v16 = vmul.f32 %v13657_v44, %v6269_v0  ;;  %v6397_v38 = vld [vmem:[#allocation2 + $0x538] sm:$0xff]  ;;  %v10830_v24 = vld [vmem:[%s11136_s29 + $0x2f0] sm:$0xff] }
 0x345   : > { %8964 = vst.msk [vmem:[%s11330_s10 + $0x294] sm:$0xf] %vm8798_vm4, %v8451_v36  ;;  %v8707_v23 = vpack.c.bf16 %v8195_v54, %v8195_v54  ;;  %v7940_v19 = vmax.f32 %v7428_v50, 0.0  ;;  %v7684_v59 = vadd.f32 %v13676_v55, %v7168_v32  ;;  %v6913_v58 = vmul.f32 %v13657_v44, %v6397_v38  ;;  %v6525_v49 = vld [vmem:[#allocation2 + $0x938] sm:$0xff]  ;;  %v13751_v14 = vpop.f32.mrf.mxu3  ;;  %v10894_v8 = vld [vmem:[%s11136_s29 + $0x4f0] sm:$0xff]  ;;  %v859_v32 = vld [vmem:[#allocation2 + $0x148] sm:$0xff]  ;;  %10508 = vmatmul.msk.bf16.gmra.mxu0 %vm3137_vm2, %v10766_v31 }
 0x346   : > { %9092 = vst.msk [vmem:[%s11330_s10 + $0x494] sm:$0xf] %vm8798_vm4, %v8579_v34  ;;  %v8324_v22 = vpack.c.bf16 %v7812_v53, %v7812_v53  ;;  %v8068_v18 = vmax.f32 %v7556_v10, 0.0  ;;  %v7301_v48 = vadd.f32 %v13676_v55, %v6785_v16  ;;  %v7041_v30 = vmul.f32 %v13657_v44, %v6525_v49  ;;  %v6653_v45 = vld [vmem:[#allocation2 + $0xd38] sm:$0xff]  ;;  %v10958_v36 = vld [vmem:[%s11136_s29 + $0x6f0] sm:$0xff]  ;;  %10572 = vmatmul.msk.bf16.gmra.mxu1 %vm3137_vm2, %v10830_v24  ;;  %v987_v53 = vld [vmem:[#allocation2 + $0x548] sm:$0xff] }
 0x347   : > { %9220 = vst.msk [vmem:[%s11330_s10 + $0x694] sm:$0xf] %vm8798_vm4, %v8707_v23  ;;  %v8452_v42 = vpack.c.bf16 %v7940_v19, %v7940_v19  ;;  %v8196_v33 = vmax.f32 %v7684_v59, 0.0  ;;  %v7429_v51 = vadd.f32 %v13676_v55, %v6913_v58  ;;  %v7169_v4 = vmul.f32 %v13657_v44, %v6653_v45  ;;  %v6270_v41 = vld [vmem:[#allocation2 + $0x140] sm:$0xff]  ;;  %10636 = vmatmul.msk.bf16.gmra.mxu2 %vm3137_vm2, %v10894_v8  ;;  %v1243_v38 = vld [vmem:[#allocation2 + $0xd48] sm:$0xff]  ;;  %v10895_v31 = vld [vmem:[%s11136_s29 + $0x4f8] sm:$0xff] }
 0x348   : > { %8837 = vst.msk [vmem:[%s11330_s10 + $0x98] sm:$0xf] %vm8798_vm4, %v8324_v22  ;;  %v8580_v29 = vpack.c.bf16 %v8068_v18, %v8068_v18  ;;  %v7813_v40 = vmax.f32 %v7301_v48, 0.0  ;;  %v7557_v17 = vadd.f32 %v13676_v55, %v7041_v30  ;;  %v6786_v21 = vmul.f32 %v13657_v44, %v6270_v41  ;;  %v13758_v28 = vpop.f32.mrf.mxu1  ;;  %v1116_v18 = vld [vmem:[#allocation2 + $0x950] sm:$0xff]  ;;  %v10959_v24 = vld [vmem:[%s11136_s29 + $0x6f8] sm:$0xff] }
 0x349   : > { %8965 = vst.msk [vmem:[%s11330_s10 + $0x298] sm:$0xf] %vm8798_vm4, %v8452_v42  ;;  %v8708_v20 = vpack.c.bf16 %v8196_v33, %v8196_v33  ;;  %v7941_v11 = vmax.f32 %v7429_v51, 0.0  ;;  %v7685_v2 = vadd.f32 %v13676_v55, %v7169_v4  ;;  %v5370_v50 = vadd.f32 %v13604_v62, %v986_v46  ;;  %v1115_v62 = vld [vmem:[#allocation2 + $0x948] sm:$0xff]  ;;  %v1244_v48 = vld [vmem:[#allocation2 + $0xd50] sm:$0xff]  ;;  %v989_v42 = vld [vmem:[#allocation2 + $0x558] sm:$0xff] }
 0x34a   : > { %9093 = vst.msk [vmem:[%s11330_s10 + $0x498] sm:$0xf] %vm8798_vm4, %v8580_v29  ;;  %v8325_v57 = vpack.c.bf16 %v7813_v40, %v7813_v40  ;;  %v8069_v13 = vmax.f32 %v7557_v17, 0.0  ;;  %v7302_v7 = vadd.f32 %v13676_v55, %v6786_v21  ;;  %v5498_v34 = vadd.f32 %v13632_v39, %v1114_v26  ;;  %10700 = vmatmul.msk.bf16.gmra.mxu3 %vm3137_vm2, %v10958_v36  ;;  %v860_v39 = vld [vmem:[#allocation2 + $0x150] sm:$0xff]  ;;  %v13786_v19 = vpop.f32.mrf.mxu2  ;;  %v1117_v33 = vld [vmem:[#allocation2 + $0x958] sm:$0xff]  ;;  %v862_v29 = vld [vmem:[#allocation2 + $0x160] sm:$0xff] }
 0x34b   : > { %9221 = vst.msk [vmem:[%s11330_s10 + $0x698] sm:$0xf] %vm8798_vm4, %v8708_v20  ;;  %v8453_v35 = vpack.c.bf16 %v7941_v11, %v7941_v11  ;;  %v8197_v56 = vmax.f32 %v7685_v2, 0.0  ;;  %v5626_v10 = vadd.f32 %v13634_v3, %v1242_v47  ;;  %v5243_v16 = vadd.f32 %v13638_v12, %v859_v32  ;;  %v988_v3 = vld [vmem:[#allocation2 + $0x550] sm:$0xff]  ;;  %v13792_v49 = vpop.f32.mrf.mxu0  ;;  %v1245_v4 = vld [vmem:[#allocation2 + $0xd58] sm:$0xff] }
 0x34c   : > { %8838 = vst.msk [vmem:[%s11330_s10 + $0x9c] sm:$0xf] %vm8798_vm4, %v8325_v57  ;;  %v8581_v25 = vpack.c.bf16 %v8069_v13, %v8069_v13  ;;  %v7814_v63 = vmax.f32 %v7302_v7, 0.0  ;;  %v5371_v23 = vadd.f32 %v13640_v60, %v987_v53  ;;  %v5499_v58 = vadd.f32 %v13662_v52, %v1115_v62  ;;  %v861_v52 = vld [vmem:[#allocation2 + $0x158] sm:$0xff] }
 0x34d   : > { %8966 = vst.msk [vmem:[%s11330_s10 + $0x29c] sm:$0xf] %vm8798_vm4, %v8453_v35  ;;  %v8709_v54 = vpack.c.bf16 %v8197_v56, %v8197_v56  ;;  %v13788_v59 = vpop.f32.mrf.mxu3  ;;  %v5627_v12 = vadd.f32 %v13664_v43, %v1243_v38  ;;  %v5244_v60 = vadd.f32 %v13669_v15, %v860_v39  ;;  %v5372_v30 = vadd.f32 %v13671_v61, %v988_v3  ;;  %v10767_v7 = vld [vmem:[%s11136_s29 + $0xf8] sm:$0xff] }
 0x34e   : > { %9094 = vst.msk [vmem:[%s11330_s10 + $0x49c] sm:$0xf] %vm8798_vm4, %v8581_v25  ;;  %v8326_v0 = vpack.c.bf16 %v7814_v63, %v7814_v63  ;;  %v5500_v45 = vadd.f32 %v13710_v37, %v1116_v18  ;;  %v5628_v43 = vadd.f32 %v13712_v27, %v1244_v48  ;;  %v5245_v15 = vadd.f32 %v13718_v6, %v861_v52  ;;  %v10831_v46 = vld [vmem:[%s11136_s29 + $0x2f8] sm:$0xff] }
 0x34f   : > { %9222 = vst.msk [vmem:[%s11330_s10 + $0x69c] sm:$0xf] %vm8798_vm4, %v8709_v54  ;;  %v5373_v37 = vadd.f32 %v13720_v9, %v989_v42  ;;  %v5501_v6 = vadd.f32 %v13749_v5, %v1117_v33  ;;  %v5629_v13 = vadd.f32 %v13751_v14, %v1245_v4  ;;  %v5246_v56 = vadd.f32 %v13756_v1, %v862_v29 }
 0x350   : > { %8839 = vst.msk [vmem:[%s11330_s10 + $0xa0] sm:$0xf] %vm8798_vm4, %v8326_v0  ;;  %v13794_v22 = vpop.f32.mrf.mxu1 }
 0x351   : > { %5883 = vst.msk [vmem:[#allocation2 + $0x540] sm:$0xff] %vm305_vm3, %v5370_v50 }
 0x352   : > { %6011 = vst.msk [vmem:[#allocation2 + $0x940] sm:$0xff] %vm305_vm3, %v5498_v34  ;;  %v13811_v40 = vpop.f32.mrf.mxu2 }
 0x353   : > { %6139 = vst.msk [vmem:[#allocation2 + $0xd40] sm:$0xff] %vm305_vm3, %v5626_v10  ;;  %v13818_v20 = vpop.f32.mrf.mxu0 }
 0x354   : > { %5756 = vst.msk [vmem:[#allocation2 + $0x148] sm:$0xff] %vm305_vm3, %v5243_v16 }
 0x355   : > { %5884 = vst.msk [vmem:[#allocation2 + $0x548] sm:$0xff] %vm305_vm3, %v5371_v23  ;;  %v13813_v27 = vpop.f32.mrf.mxu3  ;;  %10509 = vmatmul.msk.bf16.gmra.mxu0 %vm3137_vm2, %v10767_v7 }
 0x356   : > { %6012 = vst.msk [vmem:[#allocation2 + $0x948] sm:$0xff] %vm305_vm3, %v5499_v58  ;;  %10573 = vmatmul.msk.bf16.gmra.mxu1 %vm3137_vm2, %v10831_v46 }
 0x357   : > { %6140 = vst.msk [vmem:[#allocation2 + $0xd48] sm:$0xff] %vm305_vm3, %v5627_v12  ;;  %10637 = vmatmul.msk.bf16.gmra.mxu2 %vm3137_vm2, %v10895_v31 }
 0x358   : > { %v6398_v51 = vld [vmem:[#allocation2 + $0x540] sm:$0xff]  ;;  %5757 = vst.msk [vmem:[#allocation2 + $0x150] sm:$0xff] %vm305_vm3, %v5244_v60  ;;  %v13820_v11 = vpop.f32.mrf.mxu1 }
 0x359   : > { %v6914_v41 = vmul.f32 %v13657_v44, %v6398_v51  ;;  %v6526_v61 = vld [vmem:[#allocation2 + $0x940] sm:$0xff]  ;;  %5885 = vst.msk [vmem:[#allocation2 + $0x550] sm:$0xff] %vm305_vm3, %v5372_v30 }
 0x35a   : > { %v7042_v17 = vmul.f32 %v13657_v44, %v6526_v61  ;;  %v6654_v21 = vld [vmem:[#allocation2 + $0xd40] sm:$0xff]  ;;  %6013 = vst.msk [vmem:[#allocation2 + $0x950] sm:$0xff] %vm305_vm3, %v5500_v45  ;;  %10701 = vmatmul.msk.bf16.gmra.mxu3 %vm3137_vm2, %v10959_v24  ;;  %v13854_v60 = vpop.f32.mrf.mxu2 }
 0x35b   : > { %v7430_v9 = vadd.f32 %v13676_v55, %v6914_v41  ;;  %v7170_v2 = vmul.f32 %v13657_v44, %v6654_v21  ;;  %v6271_v57 = vld [vmem:[#allocation2 + $0x148] sm:$0xff]  ;;  %6141 = vst.msk [vmem:[#allocation2 + $0xd50] sm:$0xff] %vm305_vm3, %v5628_v43  ;;  %v13862_v33 = vpop.f32.mrf.mxu0 }
 0x35c   : > { %v7558_v26 = vadd.f32 %v13676_v55, %v7042_v17  ;;  %v6787_v5 = vmul.f32 %v13657_v44, %v6271_v57  ;;  %v6399_v35 = vld [vmem:[#allocation2 + $0x548] sm:$0xff]  ;;  %5758 = vst.msk [vmem:[#allocation2 + $0x158] sm:$0xff] %vm305_vm3, %v5245_v15 }
 0x35d   : > { %v7942_v8 = vmax.f32 %v7430_v9, 0.0  ;;  %v7686_v25 = vadd.f32 %v13676_v55, %v7170_v2  ;;  %v6915_v63 = vmul.f32 %v13657_v44, %v6399_v35  ;;  %v6527_v47 = vld [vmem:[#allocation2 + $0x948] sm:$0xff]  ;;  %5886 = vst.msk [vmem:[#allocation2 + $0x558] sm:$0xff] %vm305_vm3, %v5373_v37  ;;  %v13856_v48 = vpop.f32.mrf.mxu3 }
 0x35e   : > { %v8070_v14 = vmax.f32 %v7558_v26, 0.0  ;;  %v7303_v36 = vadd.f32 %v13676_v55, %v6787_v5  ;;  %v7043_v54 = vmul.f32 %v13657_v44, %v6527_v47  ;;  %v6655_v1 = vld [vmem:[#allocation2 + $0xd48] sm:$0xff]  ;;  %6014 = vst.msk [vmem:[#allocation2 + $0x958] sm:$0xff] %vm305_vm3, %v5501_v6 }
 0x35f   : > { %v8454_v50 = vpack.c.bf16 %v7942_v8, %v7942_v8  ;;  %v8198_v32 = vmax.f32 %v7686_v25, 0.0  ;;  %v7431_v0 = vadd.f32 %v13676_v55, %v6915_v63  ;;  %v7171_v34 = vmul.f32 %v13657_v44, %v6655_v1  ;;  %v6272_v53 = vld [vmem:[#allocation2 + $0x150] sm:$0xff]  ;;  %6142 = vst.msk [vmem:[#allocation2 + $0xd58] sm:$0xff] %vm305_vm3, %v5629_v13 }
 0x360   : > { %v8582_v10 = vpack.c.bf16 %v8070_v14, %v8070_v14  ;;  %v7815_v62 = vmax.f32 %v7303_v36, 0.0  ;;  %v7559_v16 = vadd.f32 %v13676_v55, %v7043_v54  ;;  %v6788_v38 = vmul.f32 %v13657_v44, %v6272_v53  ;;  %v6400_v23 = vld [vmem:[#allocation2 + $0x550] sm:$0xff]  ;;  %5759 = vst.msk [vmem:[#allocation2 + $0x160] sm:$0xff] %vm305_vm3, %v5246_v56  ;;  %v13864_v51 = vpop.f32.mrf.mxu1 }
 0x361   : > { %8967 = vst.msk [vmem:[%s11330_s10 + $0x2a0] sm:$0xf] %vm8798_vm4, %v8454_v50  ;;  %v8710_v39 = vpack.c.bf16 %v8198_v32, %v8198_v32  ;;  %v7943_v58 = vmax.f32 %v7431_v0, 0.0  ;;  %v7687_v3 = vadd.f32 %v13676_v55, %v7171_v34  ;;  %v6916_v12 = vmul.f32 %v13657_v44, %v6400_v23  ;;  %v6528_v18 = vld [vmem:[#allocation2 + $0x950] sm:$0xff]  ;;  %v1118_v23 = vld [vmem:[#allocation2 + $0x960] sm:$0xff] }
 0x362   : > { %9095 = vst.msk [vmem:[%s11330_s10 + $0x4a0] sm:$0xf] %vm8798_vm4, %v8582_v10  ;;  %v8327_v30 = vpack.c.bf16 %v7815_v62, %v7815_v62  ;;  %v8071_v52 = vmax.f32 %v7559_v16, 0.0  ;;  %v7304_v45 = vadd.f32 %v13676_v55, %v6788_v38  ;;  %v7044_v42 = vmul.f32 %v13657_v44, %v6528_v18  ;;  %v6656_v43 = vld [vmem:[#allocation2 + $0xd50] sm:$0xff]  ;;  %v13893_v34 = vpop.f32.mrf.mxu2  ;;  %v990_v38 = vld [vmem:[#allocation2 + $0x560] sm:$0xff] }
 0x363   : > { %9223 = vst.msk [vmem:[%s11330_s10 + $0x6a0] sm:$0xf] %vm8798_vm4, %v8710_v39  ;;  %v8455_v15 = vpack.c.bf16 %v7943_v58, %v7943_v58  ;;  %v8199_v4 = vmax.f32 %v7687_v3, 0.0  ;;  %v7432_v41 = vadd.f32 %v13676_v55, %v6916_v12  ;;  %v7172_v61 = vmul.f32 %v13657_v44, %v6656_v43  ;;  %v6273_v37 = vld [vmem:[#allocation2 + $0x158] sm:$0xff]  ;;  %v13900_v39 = vpop.f32.mrf.mxu0  ;;  %v10768_v18 = vld [vmem:[%s11136_s29 + $0x100] sm:$0xff] }
 0x364   : > { %8840 = vst.msk [vmem:[%s11330_s10 + $0xa4] sm:$0xf] %vm8798_vm4, %v8327_v30  ;;  %v8583_v29 = vpack.c.bf16 %v8071_v52, %v8071_v52  ;;  %v7816_v17 = vmax.f32 %v7304_v45, 0.0  ;;  %v7560_v21 = vadd.f32 %v13676_v55, %v7044_v42  ;;  %v6789_v6 = vmul.f32 %v13657_v44, %v6273_v37  ;;  %v6401_v9 = vld [vmem:[#allocation2 + $0x558] sm:$0xff]  ;;  %v10832_v30 = vld [vmem:[%s11136_s29 + $0x300] sm:$0xff] }
 0x365   : > { %8968 = vst.msk [vmem:[%s11330_s10 + $0x2a4] sm:$0xf] %vm8798_vm4, %v8455_v15  ;;  %v8711_v2 = vpack.c.bf16 %v8199_v4, %v8199_v4  ;;  %v7944_v57 = vmax.f32 %v7432_v41, 0.0  ;;  %v7688_v13 = vadd.f32 %v13676_v55, %v7172_v61  ;;  %v6917_v7 = vmul.f32 %v13657_v44, %v6401_v9  ;;  %v6529_v46 = vld [vmem:[#allocation2 + $0x958] sm:$0xff]  ;;  %v13895_v53 = vpop.f32.mrf.mxu3  ;;  %v10896_v52 = vld [vmem:[%s11136_s29 + $0x500] sm:$0xff]  ;;  %v863_v61 = vld [vmem:[#allocation2 + $0x168] sm:$0xff]  ;;  %10510 = vmatmul.msk.bf16.gmra.mxu0 %vm3137_vm2, %v10768_v18 }
 0x366   : > { %9096 = vst.msk [vmem:[%s11330_s10 + $0x4a4] sm:$0xf] %vm8798_vm4, %v8583_v29  ;;  %v8328_v26 = vpack.c.bf16 %v7816_v17, %v7816_v17  ;;  %v8072_v5 = vmax.f32 %v7560_v21, 0.0  ;;  %v7305_v35 = vadd.f32 %v13676_v55, %v6789_v6  ;;  %v7045_v56 = vmul.f32 %v13657_v44, %v6529_v46  ;;  %v6657_v31 = vld [vmem:[#allocation2 + $0xd58] sm:$0xff]  ;;  %v1246_v43 = vld [vmem:[#allocation2 + $0xd60] sm:$0xff]  ;;  %10574 = vmatmul.msk.bf16.gmra.mxu1 %vm3137_vm2, %v10832_v30  ;;  %v991_v17 = vld [vmem:[#allocation2 + $0x568] sm:$0xff] }
 0x367   : > { %9224 = vst.msk [vmem:[%s11330_s10 + $0x6a4] sm:$0xf] %vm8798_vm4, %v8711_v2  ;;  %v8456_v24 = vpack.c.bf16 %v7944_v57, %v7944_v57  ;;  %v8200_v8 = vmax.f32 %v7688_v13, 0.0  ;;  %v7433_v25 = vadd.f32 %v13676_v55, %v6917_v7  ;;  %v7173_v63 = vmul.f32 %v13657_v44, %v6657_v31  ;;  %v6274_v47 = vld [vmem:[#allocation2 + $0x160] sm:$0xff]  ;;  %10638 = vmatmul.msk.bf16.gmra.mxu2 %vm3137_vm2, %v10896_v52  ;;  %v1247_v9 = vld [vmem:[#allocation2 + $0xd68] sm:$0xff] }
 0x368   : > { %8841 = vst.msk [vmem:[%s11330_s10 + $0xa8] sm:$0xf] %vm8798_vm4, %v8328_v26  ;;  %v8584_v14 = vpack.c.bf16 %v8072_v5, %v8072_v5  ;;  %v7817_v36 = vmax.f32 %v7305_v35, 0.0  ;;  %v7561_v54 = vadd.f32 %v13676_v55, %v7045_v56  ;;  %v6790_v1 = vmul.f32 %v13657_v44, %v6274_v47  ;;  %v13902_v58 = vpop.f32.mrf.mxu1  ;;  %v10960_v15 = vld [vmem:[%s11136_s29 + $0x700] sm:$0xff]  ;;  %v1120_v5 = vld [vmem:[#allocation2 + $0x970] sm:$0xff]  ;;  %v10897_v18 = vld [vmem:[%s11136_s29 + $0x508] sm:$0xff] }
 0x369   : > { %8969 = vst.msk [vmem:[%s11330_s10 + $0x2a8] sm:$0xf] %vm8798_vm4, %v8456_v24  ;;  %v8712_v50 = vpack.c.bf16 %v8200_v8, %v8200_v8  ;;  %v7945_v32 = vmax.f32 %v7433_v25, 0.0  ;;  %v7689_v0 = vadd.f32 %v13676_v55, %v7173_v63  ;;  %v5374_v41 = vadd.f32 %v13758_v28, %v990_v38  ;;  %v1119_v28 = vld [vmem:[#allocation2 + $0x968] sm:$0xff]  ;;  %v1248_v35 = vld [vmem:[#allocation2 + $0xd70] sm:$0xff]  ;;  %v993_v24 = vld [vmem:[#allocation2 + $0x578] sm:$0xff] }
 0x36a   : > { %9097 = vst.msk [vmem:[%s11330_s10 + $0x4a8] sm:$0xf] %vm8798_vm4, %v8584_v14  ;;  %v8329_v10 = vpack.c.bf16 %v7817_v36, %v7817_v36  ;;  %v8073_v62 = vmax.f32 %v7561_v54, 0.0  ;;  %v7306_v16 = vadd.f32 %v13676_v55, %v6790_v1  ;;  %v5502_v29 = vadd.f32 %v13786_v19, %v1118_v23  ;;  %10702 = vmatmul.msk.bf16.gmra.mxu3 %vm3137_vm2, %v10960_v15  ;;  %v864_v19 = vld [vmem:[#allocation2 + $0x170] sm:$0xff]  ;;  %v13930_v57 = vpop.f32.mrf.mxu2  ;;  %v1121_v8 = vld [vmem:[#allocation2 + $0x978] sm:$0xff]  ;;  %v866_v14 = vld [vmem:[#allocation2 + $0x180] sm:$0xff] }
 0x36b   : > { %9225 = vst.msk [vmem:[%s11330_s10 + $0x6a8] sm:$0xf] %vm8798_vm4, %v8712_v50  ;;  %v8457_v3 = vpack.c.bf16 %v7945_v32, %v7945_v32  ;;  %v8201_v12 = vmax.f32 %v7689_v0, 0.0  ;;  %v5630_v21 = vadd.f32 %v13788_v59, %v1246_v43  ;;  %v5247_v6 = vadd.f32 %v13792_v49, %v863_v61  ;;  %v992_v59 = vld [vmem:[#allocation2 + $0x570] sm:$0xff]  ;;  %v13936_v46 = vpop.f32.mrf.mxu0  ;;  %v1249_v63 = vld [vmem:[#allocation2 + $0xd78] sm:$0xff]  ;;  %v10833_v38 = vld [vmem:[%s11136_s29 + $0x308] sm:$0xff] }
 0x36c   : > { %8842 = vst.msk [vmem:[%s11330_s10 + $0xac] sm:$0xf] %vm8798_vm4, %v8329_v10  ;;  %v8585_v45 = vpack.c.bf16 %v8073_v62, %v8073_v62  ;;  %v7818_v42 = vmax.f32 %v7306_v16, 0.0  ;;  %v5375_v2 = vadd.f32 %v13794_v22, %v991_v17  ;;  %v5503_v7 = vadd.f32 %v13811_v40, %v1119_v28  ;;  %v865_v40 = vld [vmem:[#allocation2 + $0x178] sm:$0xff]  ;;  %v10769_v16 = vld [vmem:[%s11136_s29 + $0x108] sm:$0xff] }
 0x36d   : > { %8970 = vst.msk [vmem:[%s11330_s10 + $0x2ac] sm:$0xf] %vm8798_vm4, %v8457_v3  ;;  %v8713_v4 = vpack.c.bf16 %v8201_v12, %v8201_v12  ;;  %v13932_v13 = vpop.f32.mrf.mxu3  ;;  %v5631_v49 = vadd.f32 %v13813_v27, %v1247_v9  ;;  %v5248_v22 = vadd.f32 %v13818_v20, %v864_v19  ;;  %v5376_v56 = vadd.f32 %v13820_v11, %v992_v59  ;;  %v10961_v30 = vld [vmem:[%s11136_s29 + $0x708] sm:$0xff] }
 0x36e   : > { %9098 = vst.msk [vmem:[%s11330_s10 + $0x4ac] sm:$0xf] %vm8798_vm4, %v8585_v45  ;;  %v8330_v37 = vpack.c.bf16 %v7818_v42, %v7818_v42  ;;  %v5504_v31 = vadd.f32 %v13854_v60, %v1120_v5  ;;  %v5632_v27 = vadd.f32 %v13856_v48, %v1248_v35  ;;  %v5249_v20 = vadd.f32 %v13862_v33, %v865_v40 }
 0x36f   : > { %9226 = vst.msk [vmem:[%s11330_s10 + $0x6ac] sm:$0xf] %vm8798_vm4, %v8713_v4  ;;  %v5377_v60 = vadd.f32 %v13864_v51, %v993_v24  ;;  %v5505_v33 = vadd.f32 %v13893_v34, %v1121_v8  ;;  %v5633_v62 = vadd.f32 %v13895_v53, %v1249_v63  ;;  %v5250_v12 = vadd.f32 %v13900_v39, %v866_v14 }
 0x370   : > { %8843 = vst.msk [vmem:[%s11330_s10 + $0xb0] sm:$0xf] %vm8798_vm4, %v8330_v37  ;;  %v13938_v26 = vpop.f32.mrf.mxu1 }
 0x371   : > { %5887 = vst.msk [vmem:[#allocation2 + $0x560] sm:$0xff] %vm305_vm3, %v5374_v41 }
 0x372   : > { %6015 = vst.msk [vmem:[#allocation2 + $0x960] sm:$0xff] %vm305_vm3, %v5502_v29  ;;  %v13955_v36 = vpop.f32.mrf.mxu2 }
 0x373   : > { %6143 = vst.msk [vmem:[#allocation2 + $0xd60] sm:$0xff] %vm305_vm3, %v5630_v21  ;;  %v13962_v50 = vpop.f32.mrf.mxu0 }
 0x374   : > { %5760 = vst.msk [vmem:[#allocation2 + $0x168] sm:$0xff] %vm305_vm3, %v5247_v6 }
 0x375   : > { %5888 = vst.msk [vmem:[#allocation2 + $0x568] sm:$0xff] %vm305_vm3, %v5375_v2  ;;  %v13957_v48 = vpop.f32.mrf.mxu3  ;;  %10511 = vmatmul.msk.bf16.gmra.mxu0 %vm3137_vm2, %v10769_v16 }
 0x376   : > { %6016 = vst.msk [vmem:[#allocation2 + $0x968] sm:$0xff] %vm305_vm3, %v5503_v7  ;;  %10575 = vmatmul.msk.bf16.gmra.mxu1 %vm3137_vm2, %v10833_v38 }
 0x377   : > { %6144 = vst.msk [vmem:[#allocation2 + $0xd68] sm:$0xff] %vm305_vm3, %v5631_v49  ;;  %10639 = vmatmul.msk.bf16.gmra.mxu2 %vm3137_vm2, %v10897_v18 }
 0x378   : > { %v6402_v25 = vld [vmem:[#allocation2 + $0x560] sm:$0xff]  ;;  %5761 = vst.msk [vmem:[#allocation2 + $0x170] sm:$0xff] %vm305_vm3, %v5248_v22  ;;  %v13964_v32 = vpop.f32.mrf.mxu1 }
 0x379   : > { %v6918_v47 = vmul.f32 %v13657_v44, %v6402_v25  ;;  %v6530_v11 = vld [vmem:[#allocation2 + $0x960] sm:$0xff]  ;;  %5889 = vst.msk [vmem:[#allocation2 + $0x570] sm:$0xff] %vm305_vm3, %v5376_v56 }
 0x37a   : > { %v7046_v54 = vmul.f32 %v13657_v44, %v6530_v11  ;;  %v6658_v1 = vld [vmem:[#allocation2 + $0xd60] sm:$0xff]  ;;  %6017 = vst.msk [vmem:[#allocation2 + $0x970] sm:$0xff] %vm305_vm3, %v5504_v31  ;;  %10703 = vmatmul.msk.bf16.gmra.mxu3 %vm3137_vm2, %v10961_v30  ;;  %v13998_v22 = vpop.f32.mrf.mxu2 }
 0x37b   : > { %v7434_v51 = vadd.f32 %v13676_v55, %v6918_v47  ;;  %v7174_v0 = vmul.f32 %v13657_v44, %v6658_v1  ;;  %v6275_v10 = vld [vmem:[#allocation2 + $0x168] sm:$0xff]  ;;  %6145 = vst.msk [vmem:[#allocation2 + $0xd70] sm:$0xff] %vm305_vm3, %v5632_v27  ;;  %v14006_v8 = vpop.f32.mrf.mxu0 }
 0x37c   : > { %v7562_v23 = vadd.f32 %v13676_v55, %v7046_v54  ;;  %v6791_v34 = vmul.f32 %v13657_v44, %v6275_v10  ;;  %v6403_v3 = vld [vmem:[#allocation2 + $0x568] sm:$0xff]  ;;  %5762 = vst.msk [vmem:[#allocation2 + $0x178] sm:$0xff] %vm305_vm3, %v5249_v20 }
 0x37d   : > { %v7946_v52 = vmax.f32 %v7434_v51, 0.0  ;;  %v7690_v45 = vadd.f32 %v13676_v55, %v7174_v0  ;;  %v6919_v42 = vmul.f32 %v13657_v44, %v6403_v3  ;;  %v6531_v43 = vld [vmem:[#allocation2 + $0x968] sm:$0xff]  ;;  %5890 = vst.msk [vmem:[#allocation2 + $0x578] sm:$0xff] %vm305_vm3, %v5377_v60  ;;  %v14000_v35 = vpop.f32.mrf.mxu3 }
 0x37e   : > { %v8074_v53 = vmax.f32 %v7562_v23, 0.0  ;;  %v7307_v15 = vadd.f32 %v13676_v55, %v6791_v34  ;;  %v7047_v4 = vmul.f32 %v13657_v44, %v6531_v43  ;;  %v6659_v39 = vld [vmem:[#allocation2 + $0xd68] sm:$0xff]  ;;  %6018 = vst.msk [vmem:[#allocation2 + $0x978] sm:$0xff] %vm305_vm3, %v5505_v33 }
 0x37f   : > { %v8458_v41 = vpack.c.bf16 %v7946_v52, %v7946_v52  ;;  %v8202_v61 = vmax.f32 %v7690_v45, 0.0  ;;  %v7435_v37 = vadd.f32 %v13676_v55, %v6919_v42  ;;  %v7175_v29 = vmul.f32 %v13657_v44, %v6659_v39  ;;  %v6276_v17 = vld [vmem:[#allocation2 + $0x170] sm:$0xff]  ;;  %6146 = vst.msk [vmem:[#allocation2 + $0xd78] sm:$0xff] %vm305_vm3, %v5633_v62 }
 0x380   : > { %v8586_v21 = vpack.c.bf16 %v8074_v53, %v8074_v53  ;;  %v7819_v28 = vmax.f32 %v7307_v15, 0.0  ;;  %v7563_v6 = vadd.f32 %v13676_v55, %v7047_v4  ;;  %v6792_v9 = vmul.f32 %v13657_v44, %v6276_v17  ;;  %v6404_v2 = vld [vmem:[#allocation2 + $0x570] sm:$0xff]  ;;  %5763 = vst.msk [vmem:[#allocation2 + $0x180] sm:$0xff] %vm305_vm3, %v5250_v12  ;;  %v14008_v25 = vpop.f32.mrf.mxu1 }
 0x381   : > { %8971 = vst.msk [vmem:[%s11330_s10 + $0x2b0] sm:$0xf] %vm8798_vm4, %v8458_v41  ;;  %v8714_v19 = vpack.c.bf16 %v8202_v61, %v8202_v61  ;;  %v7947_v7 = vmax.f32 %v7435_v37, 0.0  ;;  %v7691_v59 = vadd.f32 %v13676_v55, %v7175_v29  ;;  %v6920_v49 = vmul.f32 %v13657_v44, %v6404_v2  ;;  %v6532_v5 = vld [vmem:[#allocation2 + $0x970] sm:$0xff] }
 0x382   : > { %9099 = vst.msk [vmem:[%s11330_s10 + $0x4b0] sm:$0xf] %vm8798_vm4, %v8586_v21  ;;  %v8331_v56 = vpack.c.bf16 %v7819_v28, %v7819_v28  ;;  %v8075_v40 = vmax.f32 %v7563_v6, 0.0  ;;  %v7308_v31 = vadd.f32 %v13676_v55, %v6792_v9  ;;  %v7048_v24 = vmul.f32 %v13657_v44, %v6532_v5  ;;  %v6660_v27 = vld [vmem:[#allocation2 + $0xd70] sm:$0xff]  ;;  %v14037_v29 = vpop.f32.mrf.mxu2  ;;  %v994_v6 = vld [vmem:[#allocation2 + $0x580] sm:$0xff] }
 0x383   : > { %9227 = vst.msk [vmem:[%s11330_s10 + $0x6b0] sm:$0xf] %vm8798_vm4, %v8714_v19  ;;  %v8459_v20 = vpack.c.bf16 %v7947_v7, %v7947_v7  ;;  %v8203_v63 = vmax.f32 %v7691_v59, 0.0  ;;  %v7436_v47 = vadd.f32 %v13676_v55, %v6920_v49  ;;  %v7176_v11 = vmul.f32 %v13657_v44, %v6660_v27  ;;  %v6277_v60 = vld [vmem:[#allocation2 + $0x178] sm:$0xff]  ;;  %v1122_v9 = vld [vmem:[#allocation2 + $0x980] sm:$0xff]  ;;  %v14044_v2 = vpop.f32.mrf.mxu0  ;;  %v10770_v49 = vld [vmem:[%s11136_s29 + $0x110] sm:$0xff] }
 0x384   : > { %8844 = vst.msk [vmem:[%s11330_s10 + $0xb4] sm:$0xf] %vm8798_vm4, %v8331_v56  ;;  %v8587_v14 = vpack.c.bf16 %v8075_v40, %v8075_v40  ;;  %v7820_v54 = vmax.f32 %v7308_v31, 0.0  ;;  %v7564_v1 = vadd.f32 %v13676_v55, %v7048_v24  ;;  %v6793_v33 = vmul.f32 %v13657_v44, %v6277_v60  ;;  %v6405_v51 = vld [vmem:[#allocation2 + $0x578] sm:$0xff]  ;;  %v10834_v5 = vld [vmem:[%s11136_s29 + $0x310] sm:$0xff]  ;;  %v1250_v31 = vld [vmem:[#allocation2 + $0xd80] sm:$0xff] }
 0x385   : > { %8972 = vst.msk [vmem:[%s11330_s10 + $0x2b4] sm:$0xf] %vm8798_vm4, %v8459_v20  ;;  %v8715_v0 = vpack.c.bf16 %v8203_v63, %v8203_v63  ;;  %v7948_v10 = vmax.f32 %v7436_v47, 0.0  ;;  %v7692_v62 = vadd.f32 %v13676_v55, %v7176_v11  ;;  %v6921_v16 = vmul.f32 %v13657_v44, %v6405_v51  ;;  %v6533_v38 = vld [vmem:[#allocation2 + $0x978] sm:$0xff]  ;;  %v14039_v17 = vpop.f32.mrf.mxu3  ;;  %v10898_v56 = vld [vmem:[%s11136_s29 + $0x510] sm:$0xff]  ;;  %v867_v63 = vld [vmem:[#allocation2 + $0x188] sm:$0xff]  ;;  %10512 = vmatmul.msk.bf16.gmra.mxu0 %vm3137_vm2, %v10770_v49 }
 0x386   : > { %9100 = vst.msk [vmem:[%s11330_s10 + $0x4b4] sm:$0xf] %vm8798_vm4, %v8587_v14  ;;  %v8332_v23 = vpack.c.bf16 %v7820_v54, %v7820_v54  ;;  %v8076_v34 = vmax.f32 %v7564_v1, 0.0  ;;  %v7309_v3 = vadd.f32 %v13676_v55, %v6793_v33  ;;  %v7049_v12 = vmul.f32 %v13657_v44, %v6533_v38  ;;  %v6661_v18 = vld [vmem:[#allocation2 + $0xd78] sm:$0xff]  ;;  %v10962_v24 = vld [vmem:[%s11136_s29 + $0x710] sm:$0xff]  ;;  %10576 = vmatmul.msk.bf16.gmra.mxu1 %vm3137_vm2, %v10834_v5  ;;  %v995_v60 = vld [vmem:[#allocation2 + $0x588] sm:$0xff] }
 0x387   : > { %9228 = vst.msk [vmem:[%s11330_s10 + $0x6b4] sm:$0xf] %vm8798_vm4, %v8715_v0  ;;  %v8460_v30 = vpack.c.bf16 %v7948_v10, %v7948_v10  ;;  %v8204_v52 = vmax.f32 %v7692_v62, 0.0  ;;  %v7437_v45 = vadd.f32 %v13676_v55, %v6921_v16  ;;  %v7177_v42 = vmul.f32 %v13657_v44, %v6661_v18  ;;  %v6278_v43 = vld [vmem:[#allocation2 + $0x180] sm:$0xff]  ;;  %10640 = vmatmul.msk.bf16.gmra.mxu2 %vm3137_vm2, %v10898_v56  ;;  %v1251_v1 = vld [vmem:[#allocation2 + $0xd88] sm:$0xff]  ;;  %v1124_v38 = vld [vmem:[#allocation2 + $0x990] sm:$0xff] }
 0x388   : > { %8845 = vst.msk [vmem:[%s11330_s10 + $0xb8] sm:$0xf] %vm8798_vm4, %v8332_v23  ;;  %v8588_v53 = vpack.c.bf16 %v8076_v34, %v8076_v34  ;;  %v7821_v15 = vmax.f32 %v7309_v3, 0.0  ;;  %v7565_v4 = vadd.f32 %v13676_v55, %v7049_v12  ;;  %v6794_v39 = vmul.f32 %v13657_v44, %v6278_v43  ;;  %v14046_v19 = vpop.f32.mrf.mxu1  ;;  %v1252_v23 = vld [vmem:[#allocation2 + $0xd90] sm:$0xff]  ;;  %v997_v12 = vld [vmem:[#allocation2 + $0x598] sm:$0xff] }
 0x389   : > { %8973 = vst.msk [vmem:[%s11330_s10 + $0x2b8] sm:$0xf] %vm8798_vm4, %v8460_v30  ;;  %v8716_v41 = vpack.c.bf16 %v8204_v52, %v8204_v52  ;;  %v7949_v61 = vmax.f32 %v7437_v45, 0.0  ;;  %v7693_v37 = vadd.f32 %v13676_v55, %v7177_v42  ;;  %v5378_v20 = vadd.f32 %v13902_v58, %v994_v6  ;;  %v1123_v58 = vld [vmem:[#allocation2 + $0x988] sm:$0xff]  ;;  %v1125_v18 = vld [vmem:[#allocation2 + $0x998] sm:$0xff] }
 0x38a   : > { %9101 = vst.msk [vmem:[%s11330_s10 + $0x4b8] sm:$0xf] %vm8798_vm4, %v8588_v53  ;;  %v8333_v21 = vpack.c.bf16 %v7821_v15, %v7821_v15  ;;  %v8077_v28 = vmax.f32 %v7565_v4, 0.0  ;;  %v7310_v44 = vadd.f32 %v13676_v55, %v6794_v39  ;;  %v5506_v11 = vadd.f32 %v13930_v57, %v1122_v9  ;;  %10704 = vmatmul.msk.bf16.gmra.mxu3 %vm3137_vm2, %v10962_v24  ;;  %v868_v57 = vld [vmem:[#allocation2 + $0x190] sm:$0xff]  ;;  %v14074_v51 = vpop.f32.mrf.mxu2  ;;  %v1253_v52 = vld [vmem:[#allocation2 + $0xd98] sm:$0xff] }
 0x38b   : > { %9229 = vst.msk [vmem:[%s11330_s10 + $0x6b8] sm:$0xf] %vm8798_vm4, %v8716_v41  ;;  %v8461_v7 = vpack.c.bf16 %v7949_v61, %v7949_v61  ;;  %v8205_v59 = vmax.f32 %v7693_v37, 0.0  ;;  %v5634_v14 = vadd.f32 %v13932_v13, %v1250_v31  ;;  %v5251_v54 = vadd.f32 %v13936_v46, %v867_v63  ;;  %v996_v13 = vld [vmem:[#allocation2 + $0x590] sm:$0xff]  ;;  %v14080_v62 = vpop.f32.mrf.mxu0  ;;  %v10899_v49 = vld [vmem:[%s11136_s29 + $0x518] sm:$0xff] }
 0x38c   : > { %8846 = vst.msk [vmem:[%s11330_s10 + $0xbc] sm:$0xf] %vm8798_vm4, %v8333_v21  ;;  %v8589_v40 = vpack.c.bf16 %v8077_v28, %v8077_v28  ;;  %v7822_v55 = vmax.f32 %v7310_v44, 0.0  ;;  %v5379_v33 = vadd.f32 %v13938_v26, %v995_v60  ;;  %v5507_v10 = vadd.f32 %v13955_v36, %v1123_v58  ;;  %v869_v36 = vld [vmem:[#allocation2 + $0x198] sm:$0xff] }
 0x38d   : > { %8974 = vst.msk [vmem:[%s11330_s10 + $0x2bc] sm:$0xf] %vm8798_vm4, %v8461_v7  ;;  %v8717_v27 = vpack.c.bf16 %v8205_v59, %v8205_v59  ;;  %v14076_v0 = vpop.f32.mrf.mxu3  ;;  %v5635_v46 = vadd.f32 %v13957_v48, %v1251_v1  ;;  %v5252_v26 = vadd.f32 %v13962_v50, %v868_v57  ;;  %v5380_v34 = vadd.f32 %v13964_v32, %v996_v13  ;;  %v14099_v32 = vld [vmem:[%s16857_s2] ss:$0 sm:$0xff]  ;;  %v10771_v28 = vld [vmem:[%s11136_s29 + $0x118] sm:$0xff] }
 0x38e   : > { %9102 = vst.msk [vmem:[%s11330_s10 + $0x4bc] sm:$0xf] %vm8798_vm4, %v8589_v40  ;;  %v8334_v47 = vpack.c.bf16 %v7822_v55, %v7822_v55  ;;  %v5508_v3 = vadd.f32 %v13998_v22, %v1124_v38  ;;  %v5636_v48 = vadd.f32 %v14000_v35, %v1252_v23  ;;  %v5253_v50 = vadd.f32 %v14006_v8, %v869_v36  ;;  %v870_v35 = vld [vmem:[#allocation2 + $0x1a0] sm:$0xff]  ;;  %v10835_v44 = vld [vmem:[%s11136_s29 + $0x318] sm:$0xff] }
 0x38f   : > { %9230 = vst.msk [vmem:[%s11330_s10 + $0x6bc] sm:$0xf] %vm8798_vm4, %v8717_v27  ;;  %v5381_v42 = vadd.f32 %v14008_v25, %v997_v12  ;;  %v5509_v4 = vadd.f32 %v14037_v29, %v1125_v18  ;;  %v14118_v25 = vld [vmem:[%s16858_s3] ss:$0 sm:$0xff]  ;;  %v5637_v29 = vadd.f32 %v14039_v17, %v1253_v52  ;;  %v5254_v59 = vadd.f32 %v14044_v2, %v870_v35  ;;  %v10963_v5 = vld [vmem:[%s11136_s29 + $0x718] sm:$0xff] }
 0x390   : > { %8847 = vst.msk [vmem:[%s11330_s10 + $0xc0] sm:$0xf] %vm8798_vm4, %v8334_v47  ;;  %v14082_v16 = vpop.f32.mrf.mxu1 }
 0x391   : > { %5891 = vst.msk [vmem:[#allocation2 + $0x580] sm:$0xff] %vm305_vm3, %v5378_v20 }
 0x392   : > { %6019 = vst.msk [vmem:[#allocation2 + $0x980] sm:$0xff] %vm305_vm3, %v5506_v11  ;;  %v14104_v43 = vpop.f32.mrf.mxu2 }
 0x393   : > { %6147 = vst.msk [vmem:[#allocation2 + $0xd80] sm:$0xff] %vm305_vm3, %v5634_v14  ;;  %v14111_v39 = vpop.f32.mrf.mxu0 }
 0x394   : > { %5764 = vst.msk [vmem:[#allocation2 + $0x188] sm:$0xff] %vm305_vm3, %v5251_v54 }
 0x395   : > { %5892 = vst.msk [vmem:[#allocation2 + $0x588] sm:$0xff] %vm305_vm3, %v5379_v33  ;;  %v14106_v53 = vpop.f32.mrf.mxu3  ;;  %10513 = vmatmul.msk.bf16.gmra.mxu0 %vm3137_vm2, %v10771_v28 }
 0x396   : > { %6020 = vst.msk [vmem:[#allocation2 + $0x988] sm:$0xff] %vm305_vm3, %v5507_v10  ;;  %10577 = vmatmul.msk.bf16.gmra.mxu1 %vm3137_vm2, %v10835_v44 }
 0x397   : > { %6148 = vst.msk [vmem:[#allocation2 + $0xd88] sm:$0xff] %vm305_vm3, %v5635_v46  ;;  %10641 = vmatmul.msk.bf16.gmra.mxu2 %vm3137_vm2, %v10899_v49 }
 0x398   : > { %v6406_v30 = vld [vmem:[#allocation2 + $0x580] sm:$0xff]  ;;  %5765 = vst.msk [vmem:[#allocation2 + $0x190] sm:$0xff] %vm305_vm3, %v5252_v26  ;;  %v14113_v41 = vpop.f32.mrf.mxu1 }
 0x399   : > { %v6922_v45 = vmul.f32 %v14099_v32, %v6406_v30  ;;  %v6534_v22 = vld [vmem:[#allocation2 + $0x980] sm:$0xff]  ;;  %5893 = vst.msk [vmem:[#allocation2 + $0x590] sm:$0xff] %vm305_vm3, %v5380_v34 }
 0x39a   : > { %v7050_v8 = vmul.f32 %v14099_v32, %v6534_v22  ;;  %v6662_v15 = vld [vmem:[#allocation2 + $0xd80] sm:$0xff]  ;;  %6021 = vst.msk [vmem:[#allocation2 + $0x990] sm:$0xff] %vm305_vm3, %v5508_v3  ;;  %10705 = vmatmul.msk.bf16.gmra.mxu3 %vm3137_vm2, %v10963_v5  ;;  %v14152_v26 = vpop.f32.mrf.mxu2 }
 0x39b   : > { %v7438_v61 = vadd.f32 %v14118_v25, %v6922_v45  ;;  %v7178_v37 = vmul.f32 %v14099_v32, %v6662_v15  ;;  %v6279_v21 = vld [vmem:[#allocation2 + $0x188] sm:$0xff]  ;;  %6149 = vst.msk [vmem:[#allocation2 + $0xd90] sm:$0xff] %vm305_vm3, %v5636_v48  ;;  %v14160_v18 = vpop.f32.mrf.mxu0 }
 0x39c   : > { %v7566_v6 = vadd.f32 %v14118_v25, %v7050_v8  ;;  %v6795_v9 = vmul.f32 %v14099_v32, %v6279_v21  ;;  %v6407_v7 = vld [vmem:[#allocation2 + $0x588] sm:$0xff]  ;;  %5766 = vst.msk [vmem:[#allocation2 + $0x198] sm:$0xff] %vm305_vm3, %v5253_v50 }
 0x39d   : > { %v7950_v56 = vmax.f32 %v7438_v61, 0.0  ;;  %v7694_v40 = vadd.f32 %v14118_v25, %v7178_v37  ;;  %v6923_v55 = vmul.f32 %v14099_v32, %v6407_v7  ;;  %v6535_v31 = vld [vmem:[#allocation2 + $0x988] sm:$0xff]  ;;  %5894 = vst.msk [vmem:[#allocation2 + $0x598] sm:$0xff] %vm305_vm3, %v5381_v42  ;;  %v14154_v23 = vpop.f32.mrf.mxu3 }
 0x39e   : > { %v8078_v17 = vmax.f32 %v7566_v6, 0.0  ;;  %v7311_v24 = vadd.f32 %v14118_v25, %v6795_v9  ;;  %v7051_v27 = vmul.f32 %v14099_v32, %v6535_v31  ;;  %v6663_v2 = vld [vmem:[#allocation2 + $0xd88] sm:$0xff]  ;;  %6022 = vst.msk [vmem:[#allocation2 + $0x998] sm:$0xff] %vm305_vm3, %v5509_v4 }
 0x39f   : > { %v8462_v20 = vpack.c.bf16 %v7950_v56, %v7950_v56  ;;  %v8206_v63 = vmax.f32 %v7694_v40, 0.0  ;;  %v7439_v47 = vadd.f32 %v14118_v25, %v6923_v55  ;;  %v7179_v11 = vmul.f32 %v14099_v32, %v6663_v2  ;;  %v6280_v60 = vld [vmem:[#allocation2 + $0x190] sm:$0xff]  ;;  %6150 = vst.msk [vmem:[#allocation2 + $0xd98] sm:$0xff] %vm305_vm3, %v5637_v29 }
 0x3a0   : > { %v8590_v14 = vpack.c.bf16 %v8078_v17, %v8078_v17  ;;  %v7823_v58 = vmax.f32 %v7311_v24, 0.0  ;;  %v7567_v54 = vadd.f32 %v14118_v25, %v7051_v27  ;;  %v6796_v1 = vmul.f32 %v14099_v32, %v6280_v60  ;;  %v6408_v33 = vld [vmem:[#allocation2 + $0x590] sm:$0xff]  ;;  %5767 = vst.msk [vmem:[#allocation2 + $0x1a0] sm:$0xff] %vm305_vm3, %v5254_v59  ;;  %v14162_v30 = vpop.f32.mrf.mxu1 }
 0x3a1   : > { %8975 = vst.msk [vmem:[%s11330_s10 + $0x2c0] sm:$0xf] %vm8798_vm4, %v8462_v20  ;;  %v8718_v57 = vpack.c.bf16 %v8206_v63, %v8206_v63  ;;  %v7951_v10 = vmax.f32 %v7439_v47, 0.0  ;;  %v7695_v13 = vadd.f32 %v14118_v25, %v7179_v11  ;;  %v6924_v46 = vmul.f32 %v14099_v32, %v6408_v33  ;;  %v6536_v38 = vld [vmem:[#allocation2 + $0x990] sm:$0xff]  ;;  %v1126_v33 = vld [vmem:[#allocation2 + $0x9a0] sm:$0xff] }
 0x3a2   : > { %9103 = vst.msk [vmem:[%s11330_s10 + $0x4c0] sm:$0xf] %vm8798_vm4, %v8590_v14  ;;  %v8335_v34 = vpack.c.bf16 %v7823_v58, %v7823_v58  ;;  %v8079_v36 = vmax.f32 %v7567_v54, 0.0  ;;  %v7312_v3 = vadd.f32 %v14118_v25, %v6796_v1  ;;  %v7052_v12 = vmul.f32 %v14099_v32, %v6536_v38  ;;  %v6664_v48 = vld [vmem:[#allocation2 + $0xd90] sm:$0xff]  ;;  %v14191_v11 = vpop.f32.mrf.mxu2  ;;  %v998_v1 = vld [vmem:[#allocation2 + $0x5a0] sm:$0xff] }
 0x3a3   : > { %9231 = vst.msk [vmem:[%s11330_s10 + $0x6c0] sm:$0xf] %vm8798_vm4, %v8718_v57  ;;  %v8463_v50 = vpack.c.bf16 %v7951_v10, %v7951_v10  ;;  %v8207_v52 = vmax.f32 %v7695_v13, 0.0  ;;  %v7440_v45 = vadd.f32 %v14118_v25, %v6924_v46  ;;  %v7180_v22 = vmul.f32 %v14099_v32, %v6664_v48  ;;  %v6281_v42 = vld [vmem:[#allocation2 + $0x198] sm:$0xff]  ;;  %v14198_v57 = vpop.f32.mrf.mxu0  ;;  %v10772_v38 = vld [vmem:[%s11136_s29 + $0x120] sm:$0xff] }
 0x3a4   : > { %8848 = vst.msk [vmem:[%s11330_s10 + $0xc4] sm:$0xf] %vm8798_vm4, %v8335_v34  ;;  %v8591_v35 = vpack.c.bf16 %v8079_v36, %v8079_v36  ;;  %v7824_v8 = vmax.f32 %v7312_v3, 0.0  ;;  %v7568_v15 = vadd.f32 %v14118_v25, %v7052_v12  ;;  %v6797_v4 = vmul.f32 %v14099_v32, %v6281_v42  ;;  %v6409_v61 = vld [vmem:[#allocation2 + $0x598] sm:$0xff]  ;;  %v10836_v34 = vld [vmem:[%s11136_s29 + $0x320] sm:$0xff] }
 0x3a5   : > { %8976 = vst.msk [vmem:[%s11330_s10 + $0x2c4] sm:$0xf] %vm8798_vm4, %v8463_v50  ;;  %v8719_v37 = vpack.c.bf16 %v8207_v52, %v8207_v52  ;;  %v7952_v21 = vmax.f32 %v7440_v45, 0.0  ;;  %v7696_v29 = vadd.f32 %v14118_v25, %v7180_v22  ;;  %v6925_v28 = vmul.f32 %v14099_v32, %v6409_v61  ;;  %v6537_v44 = vld [vmem:[#allocation2 + $0x998] sm:$0xff]  ;;  %v14193_v60 = vpop.f32.mrf.mxu3  ;;  %v10900_v36 = vld [vmem:[%s11136_s29 + $0x520] sm:$0xff]  ;;  %v871_v22 = vld [vmem:[#allocation2 + $0x1a8] sm:$0xff]  ;;  %10514 = vmatmul.msk.bf16.gmra.mxu0 %vm3137_vm2, %v10772_v38 }
 0x3a6   : > { %9104 = vst.msk [vmem:[%s11330_s10 + $0x4c4] sm:$0xf] %vm8798_vm4, %v8591_v35  ;;  %v8336_v6 = vpack.c.bf16 %v7824_v8, %v7824_v8  ;;  %v8080_v9 = vmax.f32 %v7568_v15, 0.0  ;;  %v7313_v7 = vadd.f32 %v14118_v25, %v6797_v4  ;;  %v7053_v59 = vmul.f32 %v14099_v32, %v6537_v44  ;;  %v6665_v49 = vld [vmem:[#allocation2 + $0xd98] sm:$0xff]  ;;  %v1254_v48 = vld [vmem:[#allocation2 + $0xda0] sm:$0xff]  ;;  %10578 = vmatmul.msk.bf16.gmra.mxu1 %vm3137_vm2, %v10836_v34  ;;  %v999_v8 = vld [vmem:[#allocation2 + $0x5a8] sm:$0xff] }
 0x3a7   : > { %9232 = vst.msk [vmem:[%s11330_s10 + $0x6c4] sm:$0xf] %vm8798_vm4, %v8719_v37  ;;  %v8464_v5 = vpack.c.bf16 %v7952_v21, %v7952_v21  ;;  %v8208_v56 = vmax.f32 %v7696_v29, 0.0  ;;  %v7441_v40 = vadd.f32 %v14118_v25, %v6925_v28  ;;  %v7181_v55 = vmul.f32 %v14099_v32, %v6665_v49  ;;  %v6282_v31 = vld [vmem:[#allocation2 + $0x1a0] sm:$0xff]  ;;  %10642 = vmatmul.msk.bf16.gmra.mxu2 %vm3137_vm2, %v10900_v36  ;;  %v1255_v61 = vld [vmem:[#allocation2 + $0xda8] sm:$0xff] }
 0x3a8   : > { %8849 = vst.msk [vmem:[%s11330_s10 + $0xc8] sm:$0xf] %vm8798_vm4, %v8336_v6  ;;  %v8592_v17 = vpack.c.bf16 %v8080_v9, %v8080_v9  ;;  %v7825_v24 = vmax.f32 %v7313_v7, 0.0  ;;  %v7569_v27 = vadd.f32 %v14118_v25, %v7053_v59  ;;  %v6798_v2 = vmul.f32 %v14099_v32, %v6282_v31  ;;  %v14200_v10 = vpop.f32.mrf.mxu1  ;;  %v10964_v50 = vld [vmem:[%s11136_s29 + $0x720] sm:$0xff]  ;;  %v1128_v9 = vld [vmem:[#allocation2 + $0x9b0] sm:$0xff]  ;;  %v10901_v38 = vld [vmem:[%s11136_s29 + $0x528] sm:$0xff] }
 0x3a9   : > { %8977 = vst.msk [vmem:[%s11330_s10 + $0x2c8] sm:$0xf] %vm8798_vm4, %v8464_v5  ;;  %v8720_v20 = vpack.c.bf16 %v8208_v56, %v8208_v56  ;;  %v7953_v63 = vmax.f32 %v7441_v40, 0.0  ;;  %v7697_v47 = vadd.f32 %v14118_v25, %v7181_v55  ;;  %v5382_v45 = vadd.f32 %v14046_v19, %v998_v1  ;;  %v1127_v19 = vld [vmem:[#allocation2 + $0x9a8] sm:$0xff]  ;;  %v1256_v7 = vld [vmem:[#allocation2 + $0xdb0] sm:$0xff]  ;;  %v1001_v5 = vld [vmem:[#allocation2 + $0x5b8] sm:$0xff] }
 0x3aa   : > { %9105 = vst.msk [vmem:[%s11330_s10 + $0x4c8] sm:$0xf] %vm8798_vm4, %v8592_v17  ;;  %v8337_v14 = vpack.c.bf16 %v7825_v24, %v7825_v24  ;;  %v8081_v58 = vmax.f32 %v7569_v27, 0.0  ;;  %v7314_v54 = vadd.f32 %v14118_v25, %v6798_v2  ;;  %v5510_v35 = vadd.f32 %v14074_v51, %v1126_v33  ;;  %10706 = vmatmul.msk.bf16.gmra.mxu3 %vm3137_vm2, %v10964_v50  ;;  %v872_v51 = vld [vmem:[#allocation2 + $0x1b0] sm:$0xff]  ;;  %v14228_v21 = vpop.f32.mrf.mxu2  ;;  %v1129_v56 = vld [vmem:[#allocation2 + $0x9b8] sm:$0xff]  ;;  %v874_v17 = vld [vmem:[#allocation2 + $0x1c0] sm:$0xff] }
 0x3ab   : > { %9233 = vst.msk [vmem:[%s11330_s10 + $0x6c8] sm:$0xf] %vm8798_vm4, %v8720_v20  ;;  %v8465_v13 = vpack.c.bf16 %v7953_v63, %v7953_v63  ;;  %v8209_v46 = vmax.f32 %v7697_v47, 0.0  ;;  %v5638_v15 = vadd.f32 %v14076_v0, %v1254_v48  ;;  %v5255_v4 = vadd.f32 %v14080_v62, %v871_v22  ;;  %v1000_v0 = vld [vmem:[#allocation2 + $0x5b0] sm:$0xff]  ;;  %v14234_v44 = vpop.f32.mrf.mxu0  ;;  %v1257_v55 = vld [vmem:[#allocation2 + $0xdb8] sm:$0xff]  ;;  %v10837_v1 = vld [vmem:[%s11136_s29 + $0x328] sm:$0xff] }
 0x3ac   : > { %8850 = vst.msk [vmem:[%s11330_s10 + $0xcc] sm:$0xf] %vm8798_vm4, %v8337_v14  ;;  %v8593_v3 = vpack.c.bf16 %v8081_v58, %v8081_v58  ;;  %v7826_v12 = vmax.f32 %v7314_v54, 0.0  ;;  %v5383_v37 = vadd.f32 %v14082_v16, %v999_v8  ;;  %v5511_v28 = vadd.f32 %v14104_v43, %v1127_v19  ;;  %v873_v43 = vld [vmem:[#allocation2 + $0x1b8] sm:$0xff]  ;;  %v10773_v54 = vld [vmem:[%s11136_s29 + $0x128] sm:$0xff] }
 0x3ad   : > { %8978 = vst.msk [vmem:[%s11330_s10 + $0x2cc] sm:$0xf] %vm8798_vm4, %v8465_v13  ;;  %v8721_v52 = vpack.c.bf16 %v8209_v46, %v8209_v46  ;;  %v14230_v29 = vpop.f32.mrf.mxu3  ;;  %v5639_v62 = vadd.f32 %v14106_v53, %v1255_v61  ;;  %v5256_v16 = vadd.f32 %v14111_v39, %v872_v51  ;;  %v5384_v59 = vadd.f32 %v14113_v41, %v1000_v0  ;;  %v10965_v34 = vld [vmem:[%s11136_s29 + $0x728] sm:$0xff] }
 0x3ae   : > { %9106 = vst.msk [vmem:[%s11330_s10 + $0x4cc] sm:$0xf] %vm8798_vm4, %v8593_v3  ;;  %v8338_v42 = vpack.c.bf16 %v7826_v12, %v7826_v12  ;;  %v5512_v49 = vadd.f32 %v14152_v26, %v1128_v9  ;;  %v5640_v53 = vadd.f32 %v14154_v23, %v1256_v7  ;;  %v5257_v39 = vadd.f32 %v14160_v18, %v873_v43 }
 0x3af   : > { %9234 = vst.msk [vmem:[%s11330_s10 + $0x6cc] sm:$0xf] %vm8798_vm4, %v8721_v52  ;;  %v5385_v26 = vadd.f32 %v14162_v30, %v1001_v5  ;;  %v5513_v18 = vadd.f32 %v14191_v11, %v1129_v56  ;;  %v5641_v58 = vadd.f32 %v14193_v60, %v1257_v55  ;;  %v5258_v46 = vadd.f32 %v14198_v57, %v874_v17 }
 0x3b0   : > { %8851 = vst.msk [vmem:[%s11330_s10 + $0xd0] sm:$0xf] %vm8798_vm4, %v8338_v42  ;;  %v14236_v6 = vpop.f32.mrf.mxu1 }
 0x3b1   : > { %5895 = vst.msk [vmem:[#allocation2 + $0x5a0] sm:$0xff] %vm305_vm3, %v5382_v45 }
 0x3b2   : > { %6023 = vst.msk [vmem:[#allocation2 + $0x9a0] sm:$0xff] %vm305_vm3, %v5510_v35  ;;  %v14253_v24 = vpop.f32.mrf.mxu2 }
 0x3b3   : > { %6151 = vst.msk [vmem:[#allocation2 + $0xda0] sm:$0xff] %vm305_vm3, %v5638_v15  ;;  %v14260_v20 = vpop.f32.mrf.mxu0 }
 0x3b4   : > { %5768 = vst.msk [vmem:[#allocation2 + $0x1a8] sm:$0xff] %vm305_vm3, %v5255_v4 }
 0x3b5   : > { %5896 = vst.msk [vmem:[#allocation2 + $0x5a8] sm:$0xff] %vm305_vm3, %v5383_v37  ;;  %v14255_v23 = vpop.f32.mrf.mxu3  ;;  %10515 = vmatmul.msk.bf16.gmra.mxu0 %vm3137_vm2, %v10773_v54 }
 0x3b6   : > { %6024 = vst.msk [vmem:[#allocation2 + $0x9a8] sm:$0xff] %vm305_vm3, %v5511_v28  ;;  %10579 = vmatmul.msk.bf16.gmra.mxu1 %vm3137_vm2, %v10837_v1 }
 0x3b7   : > { %6152 = vst.msk [vmem:[#allocation2 + $0xda8] sm:$0xff] %vm305_vm3, %v5639_v62  ;;  %10643 = vmatmul.msk.bf16.gmra.mxu2 %vm3137_vm2, %v10901_v38 }
 0x3b8   : > { %v6410_v40 = vld [vmem:[#allocation2 + $0x5a0] sm:$0xff]  ;;  %5769 = vst.msk [vmem:[#allocation2 + $0x1b0] sm:$0xff] %vm305_vm3, %v5256_v16  ;;  %v14262_v63 = vpop.f32.mrf.mxu1 }
 0x3b9   : > { %v6926_v31 = vmul.f32 %v14099_v32, %v6410_v40  ;;  %v6538_v41 = vld [vmem:[#allocation2 + $0x9a0] sm:$0xff]  ;;  %5897 = vst.msk [vmem:[#allocation2 + $0x5b0] sm:$0xff] %vm305_vm3, %v5384_v59 }
 0x3ba   : > { %v7054_v27 = vmul.f32 %v14099_v32, %v6538_v41  ;;  %v6666_v2 = vld [vmem:[#allocation2 + $0xda0] sm:$0xff]  ;;  %6025 = vst.msk [vmem:[#allocation2 + $0x9b0] sm:$0xff] %vm305_vm3, %v5512_v49  ;;  %10707 = vmatmul.msk.bf16.gmra.mxu3 %vm3137_vm2, %v10965_v34  ;;  %v14296_v16 = vpop.f32.mrf.mxu2 }
 0x3bb   : > { %v7442_v30 = vadd.f32 %v14118_v25, %v6926_v31  ;;  %v7182_v47 = vmul.f32 %v14099_v32, %v6666_v2  ;;  %v6283_v14 = vld [vmem:[#allocation2 + $0x1a8] sm:$0xff]  ;;  %6153 = vst.msk [vmem:[#allocation2 + $0xdb0] sm:$0xff] %vm305_vm3, %v5640_v53  ;;  %v14304_v56 = vpop.f32.mrf.mxu0 }
 0x3bc   : > { %v7570_v33 = vadd.f32 %v14118_v25, %v7054_v27  ;;  %v6799_v11 = vmul.f32 %v14099_v32, %v6283_v14  ;;  %v6411_v13 = vld [vmem:[#allocation2 + $0x5a8] sm:$0xff]  ;;  %5770 = vst.msk [vmem:[#allocation2 + $0x1b8] sm:$0xff] %vm305_vm3, %v5257_v39 }
 0x3bd   : > { %v7954_v36 = vmax.f32 %v7442_v30, 0.0  ;;  %v7698_v3 = vadd.f32 %v14118_v25, %v7182_v47  ;;  %v6927_v12 = vmul.f32 %v14099_v32, %v6411_v13  ;;  %v6539_v48 = vld [vmem:[#allocation2 + $0x9a8] sm:$0xff]  ;;  %5898 = vst.msk [vmem:[#allocation2 + $0x5b8] sm:$0xff] %vm305_vm3, %v5385_v26  ;;  %v14298_v7 = vpop.f32.mrf.mxu3 }
 0x3be   : > { %v8082_v60 = vmax.f32 %v7570_v33, 0.0  ;;  %v7315_v50 = vadd.f32 %v14118_v25, %v6799_v11  ;;  %v7055_v52 = vmul.f32 %v14099_v32, %v6539_v48  ;;  %v6667_v57 = vld [vmem:[#allocation2 + $0xda8] sm:$0xff]  ;;  %6026 = vst.msk [vmem:[#allocation2 + $0x9b8] sm:$0xff] %vm305_vm3, %v5513_v18 }
 0x3bf   : > { %v8466_v45 = vpack.c.bf16 %v7954_v36, %v7954_v36  ;;  %v8210_v22 = vmax.f32 %v7698_v3, 0.0  ;;  %v7443_v42 = vadd.f32 %v14118_v25, %v6927_v12  ;;  %v7183_v35 = vmul.f32 %v14099_v32, %v6667_v57  ;;  %v6284_v8 = vld [vmem:[#allocation2 + $0x1b0] sm:$0xff]  ;;  %6154 = vst.msk [vmem:[#allocation2 + $0xdb8] sm:$0xff] %vm305_vm3, %v5641_v58 }
 0x3c0   : > { %v8594_v15 = vpack.c.bf16 %v8082_v60, %v8082_v60  ;;  %v7827_v19 = vmax.f32 %v7315_v50, 0.0  ;;  %v7571_v4 = vadd.f32 %v14118_v25, %v7055_v52  ;;  %v6800_v61 = vmul.f32 %v14099_v32, %v6284_v8  ;;  %v6412_v37 = vld [vmem:[#allocation2 + $0x5b0] sm:$0xff]  ;;  %5771 = vst.msk [vmem:[#allocation2 + $0x1c0] sm:$0xff] %vm305_vm3, %v5258_v46  ;;  %v14306_v40 = vpop.f32.mrf.mxu1 }
 0x3c1   : > { %8979 = vst.msk [vmem:[%s11330_s10 + $0x2d0] sm:$0xf] %vm8798_vm4, %v8466_v45  ;;  %v8722_v51 = vpack.c.bf16 %v8210_v22, %v8210_v22  ;;  %v7955_v28 = vmax.f32 %v7443_v42, 0.0  ;;  %v7699_v0 = vadd.f32 %v14118_v25, %v7183_v35  ;;  %v6928_v62 = vmul.f32 %v14099_v32, %v6412_v37  ;;  %v6540_v9 = vld [vmem:[#allocation2 + $0x9b0] sm:$0xff]  ;;  %v1130_v37 = vld [vmem:[#allocation2 + $0x9c0] sm:$0xff] }
 0x3c2   : > { %9107 = vst.msk [vmem:[%s11330_s10 + $0x4d0] sm:$0xf] %vm8798_vm4, %v8594_v15  ;;  %v8339_v59 = vpack.c.bf16 %v7827_v19, %v7827_v19  ;;  %v8083_v43 = vmax.f32 %v7571_v4, 0.0  ;;  %v7316_v49 = vadd.f32 %v14118_v25, %v6800_v61  ;;  %v7056_v5 = vmul.f32 %v14099_v32, %v6540_v9  ;;  %v6668_v53 = vld [vmem:[#allocation2 + $0xdb0] sm:$0xff]  ;;  %v14335_v35 = vpop.f32.mrf.mxu2  ;;  %v1002_v61 = vld [vmem:[#allocation2 + $0x5c0] sm:$0xff] }
 0x3c3   : > { %9235 = vst.msk [vmem:[%s11330_s10 + $0x6d0] sm:$0xf] %vm8798_vm4, %v8722_v51  ;;  %v8467_v39 = vpack.c.bf16 %v7955_v28, %v7955_v28  ;;  %v8211_v55 = vmax.f32 %v7699_v0, 0.0  ;;  %v7444_v31 = vadd.f32 %v14118_v25, %v6928_v62  ;;  %v7184_v41 = vmul.f32 %v14099_v32, %v6668_v53  ;;  %v6285_v26 = vld [vmem:[#allocation2 + $0x1b8] sm:$0xff]  ;;  %v14342_v51 = vpop.f32.mrf.mxu0  ;;  %v10774_v9 = vld [vmem:[%s11136_s29 + $0x130] sm:$0xff]  ;;  %v1258_v53 = vld [vmem:[#allocation2 + $0xdc0] sm:$0xff] }
 0x3c4   : > { %8852 = vst.msk [vmem:[%s11330_s10 + $0xd4] sm:$0xf] %vm8798_vm4, %v8339_v59  ;;  %v8595_v17 = vpack.c.bf16 %v8083_v43, %v8083_v43  ;;  %v7828_v27 = vmax.f32 %v7316_v49, 0.0  ;;  %v7572_v2 = vadd.f32 %v14118_v25, %v7056_v5  ;;  %v6801_v18 = vmul.f32 %v14099_v32, %v6285_v26  ;;  %v6413_v30 = vld [vmem:[#allocation2 + $0x5b8] sm:$0xff]  ;;  %v10838_v59 = vld [vmem:[%s11136_s29 + $0x330] sm:$0xff] }
 0x3c5   : > { %8980 = vst.msk [vmem:[%s11330_s10 + $0x2d4] sm:$0xf] %vm8798_vm4, %v8467_v39  ;;  %v8723_v47 = vpack.c.bf16 %v8211_v55, %v8211_v55  ;;  %v7956_v14 = vmax.f32 %v7444_v31, 0.0  ;;  %v7700_v58 = vadd.f32 %v14118_v25, %v7184_v41  ;;  %v6929_v54 = vmul.f32 %v14099_v32, %v6413_v30  ;;  %v6541_v1 = vld [vmem:[#allocation2 + $0x9b8] sm:$0xff]  ;;  %v14337_v8 = vpop.f32.mrf.mxu3  ;;  %v10902_v43 = vld [vmem:[%s11136_s29 + $0x530] sm:$0xff]  ;;  %v875_v41 = vld [vmem:[#allocation2 + $0x1c8] sm:$0xff]  ;;  %10516 = vmatmul.msk.bf16.gmra.mxu0 %vm3137_vm2, %v10774_v9 }
 0x3c6   : > { %9108 = vst.msk [vmem:[%s11330_s10 + $0x4d4] sm:$0xf] %vm8798_vm4, %v8595_v17  ;;  %v8340_v33 = vpack.c.bf16 %v7828_v27, %v7828_v27  ;;  %v8084_v11 = vmax.f32 %v7572_v2, 0.0  ;;  %v7317_v13 = vadd.f32 %v14118_v25, %v6801_v18  ;;  %v7057_v46 = vmul.f32 %v14099_v32, %v6541_v1  ;;  %v6669_v38 = vld [vmem:[#allocation2 + $0xdb8] sm:$0xff]  ;;  %v10966_v39 = vld [vmem:[%s11136_s29 + $0x730] sm:$0xff]  ;;  %10580 = vmatmul.msk.bf16.gmra.mxu1 %vm3137_vm2, %v10838_v59  ;;  %v1003_v27 = vld [vmem:[#allocation2 + $0x5c8] sm:$0xff] }
 0x3c7   : > { %9236 = vst.msk [vmem:[%s11330_s10 + $0x6d4] sm:$0xf] %vm8798_vm4, %v8723_v47  ;;  %v8468_v34 = vpack.c.bf16 %v7956_v14, %v7956_v14  ;;  %v8212_v36 = vmax.f32 %v7700_v58, 0.0  ;;  %v7445_v3 = vadd.f32 %v14118_v25, %v6929_v54  ;;  %v7185_v12 = vmul.f32 %v14099_v32, %v6669_v38  ;;  %v6286_v48 = vld [vmem:[#allocation2 + $0x1c0] sm:$0xff]  ;;  %10644 = vmatmul.msk.bf16.gmra.mxu2 %vm3137_vm2, %v10902_v43  ;;  %v1259_v30 = vld [vmem:[#allocation2 + $0xdc8] sm:$0xff]  ;;  %v10903_v9 = vld [vmem:[%s11136_s29 + $0x538] sm:$0xff] }
 0x3c8   : > { %8853 = vst.msk [vmem:[%s11330_s10 + $0xd8] sm:$0xf] %vm8798_vm4, %v8340_v33  ;;  %v8596_v60 = vpack.c.bf16 %v8084_v11, %v8084_v11  ;;  %v7829_v50 = vmax.f32 %v7317_v13, 0.0  ;;  %v7573_v52 = vadd.f32 %v14118_v25, %v7057_v46  ;;  %v6802_v57 = vmul.f32 %v14099_v32, %v6286_v48  ;;  %v14344_v28 = vpop.f32.mrf.mxu1  ;;  %v1132_v11 = vld [vmem:[#allocation2 + $0x9d0] sm:$0xff]  ;;  %v10967_v59 = vld [vmem:[%s11136_s29 + $0x738] sm:$0xff] }
 0x3c9   : > { %8981 = vst.msk [vmem:[%s11330_s10 + $0x2d8] sm:$0xf] %vm8798_vm4, %v8468_v34  ;;  %v8724_v45 = vpack.c.bf16 %v8212_v36, %v8212_v36  ;;  %v7957_v22 = vmax.f32 %v7445_v3, 0.0  ;;  %v7701_v42 = vadd.f32 %v14118_v25, %v7185_v12  ;;  %v5386_v31 = vadd.f32 %v14200_v10, %v1002_v61  ;;  %v1131_v10 = vld [vmem:[#allocation2 + $0x9c8] sm:$0xff]  ;;  %v1260_v13 = vld [vmem:[#allocation2 + $0xdd0] sm:$0xff]  ;;  %v1005_v34 = vld [vmem:[#allocation2 + $0x5d8] sm:$0xff] }
 0x3ca   : > { %9109 = vst.msk [vmem:[%s11330_s10 + $0x4d8] sm:$0xf] %vm8798_vm4, %v8596_v60  ;;  %v8341_v15 = vpack.c.bf16 %v7829_v50, %v7829_v50  ;;  %v8085_v19 = vmax.f32 %v7573_v52, 0.0  ;;  %v7318_v4 = vadd.f32 %v14118_v25, %v6802_v57  ;;  %v5514_v17 = vadd.f32 %v14228_v21, %v1130_v37  ;;  %10708 = vmatmul.msk.bf16.gmra.mxu3 %vm3137_vm2, %v10966_v39  ;;  %v876_v21 = vld [vmem:[#allocation2 + $0x1d0] sm:$0xff]  ;;  %v14372_v14 = vpop.f32.mrf.mxu2  ;;  %v1133_v36 = vld [vmem:[#allocation2 + $0x9d8] sm:$0xff]  ;;  %v878_v60 = vld [vmem:[#allocation2 + $0x1e0] sm:$0xff] }
 0x3cb   : > { %9237 = vst.msk [vmem:[%s11330_s10 + $0x6d8] sm:$0xf] %vm8798_vm4, %v8724_v45  ;;  %v8469_v0 = vpack.c.bf16 %v7957_v22, %v7957_v22  ;;  %v8213_v62 = vmax.f32 %v7701_v42, 0.0  ;;  %v5642_v2 = vadd.f32 %v14230_v29, %v1258_v53  ;;  %v5259_v18 = vadd.f32 %v14234_v44, %v875_v41  ;;  %v1004_v29 = vld [vmem:[#allocation2 + $0x5d0] sm:$0xff]  ;;  %v14378_v1 = vpop.f32.mrf.mxu0  ;;  %v1261_v12 = vld [vmem:[#allocation2 + $0xdd8] sm:$0xff] }
 0x3cc   : > { %8854 = vst.msk [vmem:[%s11330_s10 + $0xdc] sm:$0xf] %vm8798_vm4, %v8341_v15  ;;  %v8597_v49 = vpack.c.bf16 %v8085_v19, %v8085_v19  ;;  %v7830_v5 = vmax.f32 %v7318_v4, 0.0  ;;  %v5387_v47 = vadd.f32 %v14236_v6, %v1003_v27  ;;  %v5515_v54 = vadd.f32 %v14253_v24, %v1131_v10  ;;  %v877_v24 = vld [vmem:[#allocation2 + $0x1d8] sm:$0xff] }
 0x3cd   : > { %8982 = vst.msk [vmem:[%s11330_s10 + $0x2dc] sm:$0xf] %vm8798_vm4, %v8469_v0  ;;  %v8725_v55 = vpack.c.bf16 %v8213_v62, %v8213_v62  ;;  %v14374_v58 = vpop.f32.mrf.mxu3  ;;  %v5643_v44 = vadd.f32 %v14255_v23, %v1259_v30  ;;  %v5260_v6 = vadd.f32 %v14260_v20, %v876_v21  ;;  %v5388_v46 = vadd.f32 %v14262_v63, %v1004_v29  ;;  %v10775_v4 = vld [vmem:[%s11136_s29 + $0x138] sm:$0xff] }
 0x3ce   : > { %9110 = vst.msk [vmem:[%s11330_s10 + $0x4dc] sm:$0xf] %vm8798_vm4, %v8597_v49  ;;  %v8342_v26 = vpack.c.bf16 %v7830_v5, %v7830_v5  ;;  %v5516_v38 = vadd.f32 %v14296_v16, %v1132_v11  ;;  %v5644_v23 = vadd.f32 %v14298_v7, %v1260_v13  ;;  %v5261_v20 = vadd.f32 %v14304_v56, %v877_v24  ;;  %v10839_v61 = vld [vmem:[%s11136_s29 + $0x338] sm:$0xff] }
 0x3cf   : > { %9238 = vst.msk [vmem:[%s11330_s10 + $0x6dc] sm:$0xf] %vm8798_vm4, %v8725_v55  ;;  %v5389_v16 = vadd.f32 %v14306_v40, %v1005_v34  ;;  %v5517_v56 = vadd.f32 %v14335_v35, %v1133_v36  ;;  %v5645_v19 = vadd.f32 %v14337_v8, %v1261_v12  ;;  %v5262_v62 = vadd.f32 %v14342_v51, %v878_v60 }
 0x3d0   : > { %8855 = vst.msk [vmem:[%s11330_s10 + $0xe0] sm:$0xf] %vm8798_vm4, %v8342_v26  ;;  %v14380_v33 = vpop.f32.mrf.mxu1 }
 0x3d1   : > { %5899 = vst.msk [vmem:[#allocation2 + $0x5c0] sm:$0xff] %vm305_vm3, %v5386_v31 }
 0x3d2   : > { %6027 = vst.msk [vmem:[#allocation2 + $0x9c0] sm:$0xff] %vm305_vm3, %v5514_v17  ;;  %v14397_v50 = vpop.f32.mrf.mxu2 }
 0x3d3   : > { %6155 = vst.msk [vmem:[#allocation2 + $0xdc0] sm:$0xff] %vm305_vm3, %v5642_v2  ;;  %v14404_v45 = vpop.f32.mrf.mxu0 }
 0x3d4   : > { %5772 = vst.msk [vmem:[#allocation2 + $0x1c8] sm:$0xff] %vm305_vm3, %v5259_v18 }
 0x3d5   : > { %5900 = vst.msk [vmem:[#allocation2 + $0x5c8] sm:$0xff] %vm305_vm3, %v5387_v47  ;;  %v14399_v7 = vpop.f32.mrf.mxu3  ;;  %10517 = vmatmul.msk.bf16.gmra.mxu0 %vm3137_vm2, %v10775_v4 }
 0x3d6   : > { %6028 = vst.msk [vmem:[#allocation2 + $0x9c8] sm:$0xff] %vm305_vm3, %v5515_v54  ;;  %10581 = vmatmul.msk.bf16.gmra.mxu1 %vm3137_vm2, %v10839_v61 }
 0x3d7   : > { %6156 = vst.msk [vmem:[#allocation2 + $0xdc8] sm:$0xff] %vm305_vm3, %v5643_v44  ;;  %10645 = vmatmul.msk.bf16.gmra.mxu2 %vm3137_vm2, %v10903_v9 }
 0x3d8   : > { %v6414_v3 = vld [vmem:[#allocation2 + $0x5c0] sm:$0xff]  ;;  %5773 = vst.msk [vmem:[#allocation2 + $0x1d0] sm:$0xff] %vm305_vm3, %v5260_v6  ;;  %v14406_v22 = vpop.f32.mrf.mxu1 }
 0x3d9   : > { %v6930_v48 = vmul.f32 %v14099_v32, %v6414_v3  ;;  %v6542_v63 = vld [vmem:[#allocation2 + $0x9c0] sm:$0xff]  ;;  %5901 = vst.msk [vmem:[#allocation2 + $0x5d0] sm:$0xff] %vm305_vm3, %v5388_v46 }
 0x3da   : > { %v7058_v52 = vmul.f32 %v14099_v32, %v6542_v63  ;;  %v6670_v57 = vld [vmem:[#allocation2 + $0xdc0] sm:$0xff]  ;;  %6029 = vst.msk [vmem:[#allocation2 + $0x9d0] sm:$0xff] %vm305_vm3, %v5516_v38  ;;  %10709 = vmatmul.msk.bf16.gmra.mxu3 %vm3137_vm2, %v10967_v59  ;;  %v14440_v6 = vpop.f32.mrf.mxu2 }
 0x3db   : > { %v7446_v40 = vadd.f32 %v14118_v25, %v6930_v48  ;;  %v7186_v42 = vmul.f32 %v14099_v32, %v6670_v57  ;;  %v6287_v15 = vld [vmem:[#allocation2 + $0x1c8] sm:$0xff]  ;;  %6157 = vst.msk [vmem:[#allocation2 + $0xdd0] sm:$0xff] %vm305_vm3, %v5644_v23  ;;  %v14448_v36 = vpop.f32.mrf.mxu0 }
 0x3dc   : > { %v7574_v37 = vadd.f32 %v14118_v25, %v7058_v52  ;;  %v6803_v35 = vmul.f32 %v14099_v32, %v6287_v15  ;;  %v6415_v0 = vld [vmem:[#allocation2 + $0x5c8] sm:$0xff]  ;;  %5774 = vst.msk [vmem:[#allocation2 + $0x1d8] sm:$0xff] %vm305_vm3, %v5261_v20 }
 0x3dd   : > { %v7958_v43 = vmax.f32 %v7446_v40, 0.0  ;;  %v7702_v49 = vadd.f32 %v14118_v25, %v7186_v42  ;;  %v6931_v5 = vmul.f32 %v14099_v32, %v6415_v0  ;;  %v6543_v53 = vld [vmem:[#allocation2 + $0x9c8] sm:$0xff]  ;;  %5902 = vst.msk [vmem:[#allocation2 + $0x5d8] sm:$0xff] %vm305_vm3, %v5389_v16  ;;  %v14442_v13 = vpop.f32.mrf.mxu3 }
 0x3de   : > { %v8086_v8 = vmax.f32 %v7574_v37, 0.0  ;;  %v7319_v39 = vadd.f32 %v14118_v25, %v6803_v35  ;;  %v7059_v55 = vmul.f32 %v14099_v32, %v6543_v53  ;;  %v6671_v51 = vld [vmem:[#allocation2 + $0xdc8] sm:$0xff]  ;;  %6030 = vst.msk [vmem:[#allocation2 + $0x9d8] sm:$0xff] %vm305_vm3, %v5517_v56 }
 0x3df   : > { %v8470_v31 = vpack.c.bf16 %v7958_v43, %v7958_v43  ;;  %v8214_v41 = vmax.f32 %v7702_v49, 0.0  ;;  %v7447_v26 = vadd.f32 %v14118_v25, %v6931_v5  ;;  %v7187_v17 = vmul.f32 %v14099_v32, %v6671_v51  ;;  %v6288_v27 = vld [vmem:[#allocation2 + $0x1d0] sm:$0xff]  ;;  %6158 = vst.msk [vmem:[#allocation2 + $0xdd8] sm:$0xff] %vm305_vm3, %v5645_v19 }
 0x3e0   : > { %v8598_v2 = vpack.c.bf16 %v8086_v8, %v8086_v8  ;;  %v7831_v10 = vmax.f32 %v7319_v39, 0.0  ;;  %v7575_v18 = vadd.f32 %v14118_v25, %v7059_v55  ;;  %v6804_v30 = vmul.f32 %v14099_v32, %v6288_v27  ;;  %v6416_v47 = vld [vmem:[#allocation2 + $0x5d0] sm:$0xff]  ;;  %5775 = vst.msk [vmem:[#allocation2 + $0x1e0] sm:$0xff] %vm305_vm3, %v5262_v62  ;;  %v14450_v3 = vpop.f32.mrf.mxu1 }
 0x3e1   : > { %8983 = vst.msk [vmem:[%s11330_s10 + $0x2e0] sm:$0xf] %vm8798_vm4, %v8470_v31  ;;  %v8726_v21 = vpack.c.bf16 %v8214_v41, %v8214_v41  ;;  %v7959_v54 = vmax.f32 %v7447_v26, 0.0  ;;  %v7703_v29 = vadd.f32 %v14118_v25, %v7187_v17  ;;  %v6932_v44 = vmul.f32 %v14099_v32, %v6416_v47  ;;  %v6544_v11 = vld [vmem:[#allocation2 + $0x9d0] sm:$0xff] }
 0x3e2   : > { %9111 = vst.msk [vmem:[%s11330_s10 + $0x4e0] sm:$0xf] %vm8798_vm4, %v8598_v2  ;;  %v8343_v46 = vpack.c.bf16 %v7831_v10, %v7831_v10  ;;  %v8087_v24 = vmax.f32 %v7575_v18, 0.0  ;;  %v7320_v38 = vadd.f32 %v14118_v25, %v6804_v30  ;;  %v7060_v34 = vmul.f32 %v14099_v32, %v6544_v11  ;;  %v6672_v23 = vld [vmem:[#allocation2 + $0xdd0] sm:$0xff]  ;;  %v14479_v17 = vpop.f32.mrf.mxu2  ;;  %v1006_v18 = vld [vmem:[#allocation2 + $0x5e0] sm:$0xff] }
 0x3e3   : > { %9239 = vst.msk [vmem:[%s11330_s10 + $0x6e0] sm:$0xf] %vm8798_vm4, %v8726_v21  ;;  %v8471_v20 = vpack.c.bf16 %v7959_v54, %v7959_v54  ;;  %v8215_v12 = vmax.f32 %v7703_v29, 0.0  ;;  %v7448_v48 = vadd.f32 %v14118_v25, %v6932_v44  ;;  %v7188_v63 = vmul.f32 %v14099_v32, %v6672_v23  ;;  %v6289_v16 = vld [vmem:[#allocation2 + $0x1d8] sm:$0xff]  ;;  %v1134_v30 = vld [vmem:[#allocation2 + $0x9e0] sm:$0xff]  ;;  %v14486_v47 = vpop.f32.mrf.mxu0 }
 0x3e4   : > { %8856 = vst.msk [vmem:[%s11330_s10 + $0xe4] sm:$0xf] %vm8798_vm4, %v8343_v46  ;;  %v8599_v60 = vpack.c.bf16 %v8087_v24, %v8087_v24  ;;  %v7832_v52 = vmax.f32 %v7320_v38, 0.0  ;;  %v7576_v57 = vadd.f32 %v14118_v25, %v7060_v34  ;;  %v6805_v56 = vmul.f32 %v14099_v32, %v6289_v16  ;;  %v6417_v40 = vld [vmem:[#allocation2 + $0x5d8] sm:$0xff]  ;;  %v10776_v44 = vld [vmem:[%s11136_s29 + $0x140] sm:$0xff]  ;;  %v1007_v16 = vld [vmem:[#allocation2 + $0x5e8] sm:$0xff] }
 0x3e5   : > { %8984 = vst.msk [vmem:[%s11330_s10 + $0x2e4] sm:$0xf] %vm8798_vm4, %v8471_v20  ;;  %v8727_v42 = vpack.c.bf16 %v8215_v12, %v8215_v12  ;;  %v7960_v15 = vmax.f32 %v7448_v48, 0.0  ;;  %v7704_v19 = vadd.f32 %v14118_v25, %v7188_v63  ;;  %v6933_v4 = vmul.f32 %v14099_v32, %v6417_v40  ;;  %v6545_v61 = vld [vmem:[#allocation2 + $0x9d8] sm:$0xff]  ;;  %v14481_v27 = vpop.f32.mrf.mxu3  ;;  %v10840_v11 = vld [vmem:[%s11136_s29 + $0x340] sm:$0xff]  ;;  %v879_v12 = vld [vmem:[#allocation2 + $0x1e8] sm:$0xff]  ;;  %10518 = vmatmul.msk.bf16.gmra.mxu0 %vm3137_vm2, %v10776_v44 }
 0x3e6   : > { %9112 = vst.msk [vmem:[%s11330_s10 + $0x4e4] sm:$0xf] %vm8798_vm4, %v8599_v60  ;;  %v8344_v37 = vpack.c.bf16 %v7832_v52, %v7832_v52  ;;  %v8088_v35 = vmax.f32 %v7576_v57, 0.0  ;;  %v7321_v0 = vadd.f32 %v14118_v25, %v6805_v56  ;;  %v7061_v62 = vmul.f32 %v14099_v32, %v6545_v61  ;;  %v6673_v9 = vld [vmem:[#allocation2 + $0xdd8] sm:$0xff]  ;;  %v10904_v46 = vld [vmem:[%s11136_s29 + $0x540] sm:$0xff]  ;;  %10582 = vmatmul.msk.bf16.gmra.mxu1 %vm3137_vm2, %v10840_v11  ;;  %v1263_v57 = vld [vmem:[#allocation2 + $0xde8] sm:$0xff] }
 0x3e7   : > { %9240 = vst.msk [vmem:[%s11330_s10 + $0x6e4] sm:$0xf] %vm8798_vm4, %v8727_v42  ;;  %v8472_v59 = vpack.c.bf16 %v7960_v15, %v7960_v15  ;;  %v8216_v43 = vmax.f32 %v7704_v19, 0.0  ;;  %v7449_v49 = vadd.f32 %v14118_v25, %v6933_v4  ;;  %v7189_v5 = vmul.f32 %v14099_v32, %v6673_v9  ;;  %v6290_v53 = vld [vmem:[#allocation2 + $0x1e0] sm:$0xff]  ;;  %10646 = vmatmul.msk.bf16.gmra.mxu2 %vm3137_vm2, %v10904_v46  ;;  %v1136_v61 = vld [vmem:[#allocation2 + $0x9f0] sm:$0xff]  ;;  %v1137_v9 = vld [vmem:[#allocation2 + $0x9f8] sm:$0xff] }
 0x3e8   : > { %8857 = vst.msk [vmem:[%s11330_s10 + $0xe8] sm:$0xf] %vm8798_vm4, %v8344_v37  ;;  %v8600_v8 = vpack.c.bf16 %v8088_v35, %v8088_v35  ;;  %v7833_v39 = vmax.f32 %v7321_v0, 0.0  ;;  %v7577_v55 = vadd.f32 %v14118_v25, %v7061_v62  ;;  %v6806_v51 = vmul.f32 %v14099_v32, %v6290_v53  ;;  %v14488_v21 = vpop.f32.mrf.mxu1  ;;  %v1262_v38 = vld [vmem:[#allocation2 + $0xde0] sm:$0xff]  ;;  %v1264_v37 = vld [vmem:[#allocation2 + $0xdf0] sm:$0xff]  ;;  %v1009_v62 = vld [vmem:[#allocation2 + $0x5f8] sm:$0xff] }
 0x3e9   : > { %8985 = vst.msk [vmem:[%s11330_s10 + $0x2e8] sm:$0xf] %vm8798_vm4, %v8472_v59  ;;  %v8728_v31 = vpack.c.bf16 %v8216_v43, %v8216_v43  ;;  %v7961_v41 = vmax.f32 %v7449_v49, 0.0  ;;  %v7705_v26 = vadd.f32 %v14118_v25, %v7189_v5  ;;  %v10968_v34 = vld [vmem:[%s11136_s29 + $0x740] sm:$0xff]  ;;  %v5390_v20 = vadd.f32 %v14344_v28, %v1006_v18  ;;  %v1135_v28 = vld [vmem:[#allocation2 + $0x9e8] sm:$0xff]  ;;  %v1265_v43 = vld [vmem:[#allocation2 + $0xdf8] sm:$0xff] }
 0x3ea   : > { %9113 = vst.msk [vmem:[%s11330_s10 + $0x4e8] sm:$0xf] %vm8798_vm4, %v8600_v8  ;;  %v8345_v2 = vpack.c.bf16 %v7833_v39, %v7833_v39  ;;  %v8089_v10 = vmax.f32 %v7577_v55, 0.0  ;;  %v7322_v32 = vadd.f32 %v14118_v25, %v6806_v51  ;;  %v5518_v63 = vadd.f32 %v14372_v14, %v1134_v30  ;;  %10710 = vmatmul.msk.bf16.gmra.mxu3 %vm3137_vm2, %v10968_v34  ;;  %v880_v14 = vld [vmem:[#allocation2 + $0x1f0] sm:$0xff]  ;;  %v14516_v40 = vpop.f32.mrf.mxu2  ;;  %v10905_v44 = vld [vmem:[%s11136_s29 + $0x548] sm:$0xff] }
 0x3eb   : > { %9241 = vst.msk [vmem:[%s11330_s10 + $0x6e8] sm:$0xf] %vm8798_vm4, %v8728_v31  ;;  %v8473_v54 = vpack.c.bf16 %v7961_v41, %v7961_v41  ;;  %v8217_v29 = vmax.f32 %v7705_v26, 0.0  ;;  %v5646_v60 = vadd.f32 %v14374_v58, %v1262_v38  ;;  %v5263_v52 = vadd.f32 %v14378_v1, %v879_v12  ;;  %v1008_v58 = vld [vmem:[#allocation2 + $0x5f0] sm:$0xff]  ;;  %v14522_v19 = vpop.f32.mrf.mxu0  ;;  %v10969_v11 = vld [vmem:[%s11136_s29 + $0x748] sm:$0xff] }
 0x3ec   : > { %8858 = vst.msk [vmem:[%s11330_s10 + $0xec] sm:$0xf] %vm8798_vm4, %v8345_v2  ;;  %v8601_v24 = vpack.c.bf16 %v8089_v10, %v8089_v10  ;;  %v7834_v25 = vmax.f32 %v7322_v32, 0.0  ;;  %v5391_v56 = vadd.f32 %v14380_v33, %v1007_v16  ;;  %v5519_v15 = vadd.f32 %v14397_v50, %v1135_v28  ;;  %v881_v50 = vld [vmem:[#allocation2 + $0x1f8] sm:$0xff]  ;;  %v10777_v10 = vld [vmem:[%s11136_s29 + $0x148] sm:$0xff] }
 0x3ed   : > { %8986 = vst.msk [vmem:[%s11330_s10 + $0x2ec] sm:$0xf] %vm8798_vm4, %v8473_v54  ;;  %v8729_v23 = vpack.c.bf16 %v8217_v29, %v8217_v29  ;;  %v14518_v42 = vpop.f32.mrf.mxu3  ;;  %v5647_v1 = vadd.f32 %v14399_v7, %v1263_v57  ;;  %v5264_v33 = vadd.f32 %v14404_v45, %v880_v14  ;;  %v5392_v35 = vadd.f32 %v14406_v22, %v1008_v58  ;;  %v14541_v22 = vld [vmem:[%s16857_s2] ss:$0 sm:$0xff]  ;;  %v10841_v32 = vld [vmem:[%s11136_s29 + $0x348] sm:$0xff] }
 0x3ee   : > { %9114 = vst.msk [vmem:[%s11330_s10 + $0x4ec] sm:$0xf] %vm8798_vm4, %v8601_v24  ;;  %v8346_v48 = vpack.c.bf16 %v7834_v25, %v7834_v25  ;;  %v5520_v0 = vadd.f32 %v14440_v6, %v1136_v61  ;;  %v5648_v7 = vadd.f32 %v14442_v13, %v1264_v37  ;;  %v5265_v45 = vadd.f32 %v14448_v36, %v881_v50  ;;  %v882_v13 = vld [vmem:[#allocation2 + $0x200] sm:$0xff] }
 0x3ef   : > { %9242 = vst.msk [vmem:[%s11330_s10 + $0x6ec] sm:$0xf] %vm8798_vm4, %v8729_v23  ;;  %v5393_v5 = vadd.f32 %v14450_v3, %v1009_v62  ;;  %v5521_v55 = vadd.f32 %v14479_v17, %v1137_v9  ;;  %v14560_v3 = vld [vmem:[%s16858_s3] ss:$0 sm:$0xff]  ;;  %v5649_v17 = vadd.f32 %v14481_v27, %v1265_v43  ;;  %v5266_v29 = vadd.f32 %v14486_v47, %v882_v13 }
 0x3f0   : > { %8859 = vst.msk [vmem:[%s11330_s10 + $0xf0] sm:$0xf] %vm8798_vm4, %v8346_v48  ;;  %v14524_v4 = vpop.f32.mrf.mxu1 }
 0x3f1   : > { %5903 = vst.msk [vmem:[#allocation2 + $0x5e0] sm:$0xff] %vm305_vm3, %v5390_v20 }
 0x3f2   : > { %6031 = vst.msk [vmem:[#allocation2 + $0x9e0] sm:$0xff] %vm305_vm3, %v5518_v63  ;;  %v14546_v53 = vpop.f32.mrf.mxu2 }
 0x3f3   : > { %6159 = vst.msk [vmem:[#allocation2 + $0xde0] sm:$0xff] %vm305_vm3, %v5646_v60  ;;  %v14553_v51 = vpop.f32.mrf.mxu0 }
 0x3f4   : > { %5776 = vst.msk [vmem:[#allocation2 + $0x1e8] sm:$0xff] %vm305_vm3, %v5263_v52 }
 0x3f5   : > { %5904 = vst.msk [vmem:[#allocation2 + $0x5e8] sm:$0xff] %vm305_vm3, %v5391_v56  ;;  %v14548_v8 = vpop.f32.mrf.mxu3  ;;  %10519 = vmatmul.msk.bf16.gmra.mxu0 %vm3137_vm2, %v10777_v10 }
 0x3f6   : > { %6032 = vst.msk [vmem:[#allocation2 + $0x9e8] sm:$0xff] %vm305_vm3, %v5519_v15  ;;  %10583 = vmatmul.msk.bf16.gmra.mxu1 %vm3137_vm2, %v10841_v32 }
 0x3f7   : > { %6160 = vst.msk [vmem:[#allocation2 + $0xde8] sm:$0xff] %vm305_vm3, %v5647_v1  ;;  %10647 = vmatmul.msk.bf16.gmra.mxu2 %vm3137_vm2, %v10905_v44 }
 0x3f8   : > { %v6418_v59 = vld [vmem:[#allocation2 + $0x5e0] sm:$0xff]  ;;  %5777 = vst.msk [vmem:[#allocation2 + $0x1f0] sm:$0xff] %vm305_vm3, %v5264_v33  ;;  %v14555_v31 = vpop.f32.mrf.mxu1 }
 0x3f9   : > { %v6934_v49 = vmul.f32 %v14541_v22, %v6418_v59  ;;  %v6546_v6 = vld [vmem:[#allocation2 + $0x9e0] sm:$0xff]  ;;  %5905 = vst.msk [vmem:[#allocation2 + $0x5f0] sm:$0xff] %vm305_vm3, %v5392_v35 }
 0x3fa   : > { %v7062_v36 = vmul.f32 %v14541_v22, %v6546_v6  ;;  %v6674_v39 = vld [vmem:[#allocation2 + $0xde0] sm:$0xff]  ;;  %6033 = vst.msk [vmem:[#allocation2 + $0x9f0] sm:$0xff] %vm305_vm3, %v5520_v0  ;;  %10711 = vmatmul.msk.bf16.gmra.mxu3 %vm3137_vm2, %v10969_v11  ;;  %v14594_v33 = vpop.f32.mrf.mxu2 }
 0x3fb   : > { %v7450_v41 = vadd.f32 %v14560_v3, %v6934_v49  ;;  %v7190_v26 = vmul.f32 %v14541_v22, %v6674_v39  ;;  %v6291_v2 = vld [vmem:[#allocation2 + $0x1e8] sm:$0xff]  ;;  %6161 = vst.msk [vmem:[#allocation2 + $0xdf0] sm:$0xff] %vm305_vm3, %v5648_v7  ;;  %v14602_v9 = vpop.f32.mrf.mxu0 }
 0x3fc   : > { %v7578_v18 = vadd.f32 %v14560_v3, %v7062_v36  ;;  %v6807_v30 = vmul.f32 %v14541_v22, %v6291_v2  ;;  %v6419_v54 = vld [vmem:[#allocation2 + $0x5e8] sm:$0xff]  ;;  %5778 = vst.msk [vmem:[#allocation2 + $0x1f8] sm:$0xff] %vm305_vm3, %v5265_v45 }
 0x3fd   : > { %v7962_v46 = vmax.f32 %v7450_v41, 0.0  ;;  %v7706_v24 = vadd.f32 %v14560_v3, %v7190_v26  ;;  %v6935_v25 = vmul.f32 %v14541_v22, %v6419_v54  ;;  %v6547_v38 = vld [vmem:[#allocation2 + $0x9e8] sm:$0xff]  ;;  %5906 = vst.msk [vmem:[#allocation2 + $0x5f8] sm:$0xff] %vm305_vm3, %v5393_v5  ;;  %v14596_v37 = vpop.f32.mrf.mxu3 }
 0x3fe   : > { %v8090_v27 = vmax.f32 %v7578_v18, 0.0  ;;  %v7323_v34 = vadd.f32 %v14560_v3, %v6807_v30  ;;  %v7063_v23 = vmul.f32 %v14541_v22, %v6547_v38  ;;  %v6675_v47 = vld [vmem:[#allocation2 + $0xde8] sm:$0xff]  ;;  %6034 = vst.msk [vmem:[#allocation2 + $0x9f8] sm:$0xff] %vm305_vm3, %v5521_v55 }
 0x3ff   : > { %v8474_v20 = vpack.c.bf16 %v7962_v46, %v7962_v46  ;;  %v8218_v12 = vmax.f32 %v7706_v24, 0.0  ;;  %v7451_v48 = vadd.f32 %v14560_v3, %v6935_v25  ;;  %v7191_v63 = vmul.f32 %v14541_v22, %v6675_v47  ;;  %v6292_v16 = vld [vmem:[#allocation2 + $0x1f0] sm:$0xff]  ;;  %6162 = vst.msk [vmem:[#allocation2 + $0xdf8] sm:$0xff] %vm305_vm3, %v5649_v17 }
 0x400   : > { %v8602_v60 = vpack.c.bf16 %v8090_v27, %v8090_v27  ;;  %v7835_v28 = vmax.f32 %v7323_v34, 0.0  ;;  %v7579_v52 = vadd.f32 %v14560_v3, %v7063_v23  ;;  %v6808_v57 = vmul.f32 %v14541_v22, %v6292_v16  ;;  %v6420_v56 = vld [vmem:[#allocation2 + $0x5f0] sm:$0xff]  ;;  %5779 = vst.msk [vmem:[#allocation2 + $0x200] sm:$0xff] %vm305_vm3, %v5266_v29  ;;  %v14604_v59 = vpop.f32.mrf.mxu1 }
 0x401   : > { %8987 = vst.msk [vmem:[%s11330_s10 + $0x2f0] sm:$0xf] %vm8798_vm4, %v8474_v20  ;;  %v8730_v14 = vpack.c.bf16 %v8218_v12, %v8218_v12  ;;  %v7963_v15 = vmax.f32 %v7451_v48, 0.0  ;;  %v7707_v58 = vadd.f32 %v14560_v3, %v7191_v63  ;;  %v6936_v1 = vmul.f32 %v14541_v22, %v6420_v56  ;;  %v6548_v61 = vld [vmem:[#allocation2 + $0x9f0] sm:$0xff]  ;;  %v1138_v56 = vld [vmem:[#allocation2 + $0xa00] sm:$0xff] }
 0x402   : > { %9115 = vst.msk [vmem:[%s11330_s10 + $0x4f0] sm:$0xf] %vm8798_vm4, %v8602_v60  ;;  %v8347_v35 = vpack.c.bf16 %v7835_v28, %v7835_v28  ;;  %v8091_v50 = vmax.f32 %v7579_v52, 0.0  ;;  %v7324_v0 = vadd.f32 %v14560_v3, %v6808_v57  ;;  %v7064_v62 = vmul.f32 %v14541_v22, %v6548_v61  ;;  %v6676_v7 = vld [vmem:[#allocation2 + $0xdf0] sm:$0xff]  ;;  %v14633_v63 = vpop.f32.mrf.mxu2  ;;  %v1010_v57 = vld [vmem:[#allocation2 + $0x600] sm:$0xff] }
 0x403   : > { %9243 = vst.msk [vmem:[%s11330_s10 + $0x6f0] sm:$0xf] %vm8798_vm4, %v8730_v14  ;;  %v8475_v45 = vpack.c.bf16 %v7963_v15, %v7963_v15  ;;  %v8219_v43 = vmax.f32 %v7707_v58, 0.0  ;;  %v7452_v49 = vadd.f32 %v14560_v3, %v6936_v1  ;;  %v7192_v6 = vmul.f32 %v14541_v22, %v6676_v7  ;;  %v6293_v5 = vld [vmem:[#allocation2 + $0x1f8] sm:$0xff]  ;;  %v14640_v14 = vpop.f32.mrf.mxu0  ;;  %v10778_v61 = vld [vmem:[%s11136_s29 + $0x150] sm:$0xff]  ;;  %v1266_v7 = vld [vmem:[#allocation2 + $0xe00] sm:$0xff] }
 0x404   : > { %8860 = vst.msk [vmem:[%s11330_s10 + $0xf4] sm:$0xf] %vm8798_vm4, %v8347_v35  ;;  %v8603_v13 = vpack.c.bf16 %v8091_v50, %v8091_v50  ;;  %v7836_v36 = vmax.f32 %v7324_v0, 0.0  ;;  %v7580_v39 = vadd.f32 %v14560_v3, %v7064_v62  ;;  %v6809_v55 = vmul.f32 %v14541_v22, %v6293_v5  ;;  %v6421_v41 = vld [vmem:[#allocation2 + $0x5f8] sm:$0xff]  ;;  %v10842_v35 = vld [vmem:[%s11136_s29 + $0x350] sm:$0xff] }
 0x405   : > { %8988 = vst.msk [vmem:[%s11330_s10 + $0x2f4] sm:$0xf] %vm8798_vm4, %v8475_v45  ;;  %v8731_v26 = vpack.c.bf16 %v8219_v43, %v8219_v43  ;;  %v7964_v2 = vmax.f32 %v7452_v49, 0.0  ;;  %v7708_v17 = vadd.f32 %v14560_v3, %v7192_v6  ;;  %v6937_v10 = vmul.f32 %v14541_v22, %v6421_v41  ;;  %v6549_v32 = vld [vmem:[#allocation2 + $0x9f8] sm:$0xff]  ;;  %v14635_v16 = vpop.f32.mrf.mxu3  ;;  %v10906_v50 = vld [vmem:[%s11136_s29 + $0x550] sm:$0xff]  ;;  %v883_v6 = vld [vmem:[#allocation2 + $0x208] sm:$0xff]  ;;  %10520 = vmatmul.msk.bf16.gmra.mxu0 %vm3137_vm2, %v10778_v61 }
 0x406   : > { %9116 = vst.msk [vmem:[%s11330_s10 + $0x4f4] sm:$0xf] %vm8798_vm4, %v8603_v13  ;;  %v8348_v18 = vpack.c.bf16 %v7836_v36, %v7836_v36  ;;  %v8092_v30 = vmax.f32 %v7580_v39, 0.0  ;;  %v7325_v54 = vadd.f32 %v14560_v3, %v6809_v55  ;;  %v7065_v29 = vmul.f32 %v14541_v22, %v6549_v32  ;;  %v6677_v44 = vld [vmem:[#allocation2 + $0xdf8] sm:$0xff]  ;;  %v10970_v45 = vld [vmem:[%s11136_s29 + $0x750] sm:$0xff]  ;;  %10584 = vmatmul.msk.bf16.gmra.mxu1 %vm3137_vm2, %v10842_v35  ;;  %v1011_v36 = vld [vmem:[#allocation2 + $0x608] sm:$0xff] }
 0x407   : > { %9244 = vst.msk [vmem:[%s11330_s10 + $0x6f4] sm:$0xf] %vm8798_vm4, %v8731_v26  ;;  %v8476_v11 = vpack.c.bf16 %v7964_v2, %v7964_v2  ;;  %v8220_v46 = vmax.f32 %v7708_v17, 0.0  ;;  %v7453_v24 = vadd.f32 %v14560_v3, %v6937_v10  ;;  %v7193_v25 = vmul.f32 %v14541_v22, %v6677_v44  ;;  %v6294_v38 = vld [vmem:[#allocation2 + $0x200] sm:$0xff]  ;;  %10648 = vmatmul.msk.bf16.gmra.mxu2 %vm3137_vm2, %v10906_v50  ;;  %v1267_v41 = vld [vmem:[#allocation2 + $0xe08] sm:$0xff]  ;;  %v10907_v61 = vld [vmem:[%s11136_s29 + $0x558] sm:$0xff] }
 0x408   : > { %8861 = vst.msk [vmem:[%s11330_s10 + $0xf8] sm:$0xf] %vm8798_vm4, %v8348_v18  ;;  %v8604_v27 = vpack.c.bf16 %v8092_v30, %v8092_v30  ;;  %v7837_v34 = vmax.f32 %v7325_v54, 0.0  ;;  %v7581_v23 = vadd.f32 %v14560_v3, %v7065_v29  ;;  %v6810_v47 = vmul.f32 %v14541_v22, %v6294_v38  ;;  %v14642_v15 = vpop.f32.mrf.mxu1  ;;  %v1140_v30 = vld [vmem:[#allocation2 + $0xa10] sm:$0xff]  ;;  %v10971_v35 = vld [vmem:[%s11136_s29 + $0x758] sm:$0xff] }
 0x409   : > { %8989 = vst.msk [vmem:[%s11330_s10 + $0x2f8] sm:$0xf] %vm8798_vm4, %v8476_v11  ;;  %v8732_v20 = vpack.c.bf16 %v8220_v46, %v8220_v46  ;;  %v7965_v12 = vmax.f32 %v7453_v24, 0.0  ;;  %v7709_v48 = vadd.f32 %v14560_v3, %v7193_v25  ;;  %v5394_v49 = vadd.f32 %v14488_v21, %v1010_v57  ;;  %v1139_v21 = vld [vmem:[#allocation2 + $0xa08] sm:$0xff]  ;;  %v1268_v54 = vld [vmem:[#allocation2 + $0xe10] sm:$0xff]  ;;  %v1013_v11 = vld [vmem:[#allocation2 + $0x618] sm:$0xff] }
 0x40a   : > { %9117 = vst.msk [vmem:[%s11330_s10 + $0x4f8] sm:$0xf] %vm8798_vm4, %v8604_v27  ;;  %v8349_v60 = vpack.c.bf16 %v7837_v34, %v7837_v34  ;;  %v8093_v28 = vmax.f32 %v7581_v23, 0.0  ;;  %v7326_v52 = vadd.f32 %v14560_v3, %v6810_v47  ;;  %v5522_v13 = vadd.f32 %v14516_v40, %v1138_v56  ;;  %10712 = vmatmul.msk.bf16.gmra.mxu3 %vm3137_vm2, %v10970_v45  ;;  %v884_v40 = vld [vmem:[#allocation2 + $0x210] sm:$0xff]  ;;  %v14670_v2 = vpop.f32.mrf.mxu2  ;;  %v1141_v46 = vld [vmem:[#allocation2 + $0xa18] sm:$0xff]  ;;  %v886_v27 = vld [vmem:[#allocation2 + $0x220] sm:$0xff] }
 0x40b   : > { %9245 = vst.msk [vmem:[%s11330_s10 + $0x6f8] sm:$0xf] %vm8798_vm4, %v8732_v20  ;;  %v8477_v58 = vpack.c.bf16 %v7965_v12, %v7965_v12  ;;  %v8221_v1 = vmax.f32 %v7709_v48, 0.0  ;;  %v5650_v39 = vadd.f32 %v14518_v42, %v1266_v7  ;;  %v5267_v55 = vadd.f32 %v14522_v19, %v883_v6  ;;  %v1012_v42 = vld [vmem:[#allocation2 + $0x610] sm:$0xff]  ;;  %v14676_v32 = vpop.f32.mrf.mxu0  ;;  %v1269_v25 = vld [vmem:[#allocation2 + $0xe18] sm:$0xff] }
 0x40c   : > { %8862 = vst.msk [vmem:[%s11330_s10 + $0xfc] sm:$0xf] %vm8798_vm4, %v8349_v60  ;;  %v8605_v0 = vpack.c.bf16 %v8093_v28, %v8093_v28  ;;  %v7838_v62 = vmax.f32 %v7326_v52, 0.0  ;;  %v5395_v26 = vadd.f32 %v14524_v4, %v1011_v36  ;;  %v5523_v10 = vadd.f32 %v14546_v53, %v1139_v21  ;;  %v885_v53 = vld [vmem:[#allocation2 + $0x218] sm:$0xff] }
 0x40d   : > { %8990 = vst.msk [vmem:[%s11330_s10 + $0x2fc] sm:$0xf] %vm8798_vm4, %v8477_v58  ;;  %v8733_v43 = vpack.c.bf16 %v8221_v1, %v8221_v1  ;;  %v14672_v17 = vpop.f32.mrf.mxu3  ;;  %v5651_v19 = vadd.f32 %v14548_v8, %v1267_v41  ;;  %v5268_v4 = vadd.f32 %v14553_v51, %v884_v40  ;;  %v5396_v29 = vadd.f32 %v14555_v31, %v1012_v42  ;;  %v10779_v52 = vld [vmem:[%s11136_s29 + $0x158] sm:$0xff] }
 0x40e   : > { %9118 = vst.msk [vmem:[%s11330_s10 + $0x4fc] sm:$0xf] %vm8798_vm4, %v8605_v0  ;;  %v8350_v5 = vpack.c.bf16 %v7838_v62, %v7838_v62  ;;  %v5524_v44 = vadd.f32 %v14594_v33, %v1140_v30  ;;  %v5652_v8 = vadd.f32 %v14596_v37, %v1268_v54  ;;  %v5269_v51 = vadd.f32 %v14602_v9, %v885_v53  ;;  %v10843_v57 = vld [vmem:[%s11136_s29 + $0x358] sm:$0xff] }
 0x40f   : > { %9246 = vst.msk [vmem:[%s11330_s10 + $0x6fc] sm:$0xf] %vm8798_vm4, %v8733_v43  ;;  %v5397_v33 = vadd.f32 %v14604_v59, %v1013_v11  ;;  %v5525_v9 = vadd.f32 %v14633_v63, %v1141_v46  ;;  %v5653_v28 = vadd.f32 %v14635_v16, %v1269_v25  ;;  %v5270_v1 = vadd.f32 %v14640_v14, %v886_v27 }
 0x410   : > { %8863 = vst.msk [vmem:[%s11330_s10 + $0x100] sm:$0xf] %vm8798_vm4, %v8350_v5  ;;  %v14678_v18 = vpop.f32.mrf.mxu1 }
 0x411   : > { %5907 = vst.msk [vmem:[#allocation2 + $0x600] sm:$0xff] %vm305_vm3, %v5394_v49 }
 0x412   : > { %6035 = vst.msk [vmem:[#allocation2 + $0xa00] sm:$0xff] %vm305_vm3, %v5522_v13  ;;  %v14695_v34 = vpop.f32.mrf.mxu2 }
 0x413   : > { %6163 = vst.msk [vmem:[#allocation2 + $0xe00] sm:$0xff] %vm305_vm3, %v5650_v39  ;;  %v14702_v20 = vpop.f32.mrf.mxu0 }
 0x414   : > { %5780 = vst.msk [vmem:[#allocation2 + $0x208] sm:$0xff] %vm305_vm3, %v5267_v55 }
 0x415   : > { %5908 = vst.msk [vmem:[#allocation2 + $0x608] sm:$0xff] %vm305_vm3, %v5395_v26  ;;  %v14697_v37 = vpop.f32.mrf.mxu3  ;;  %10521 = vmatmul.msk.bf16.gmra.mxu0 %vm3137_vm2, %v10779_v52 }
 0x416   : > { %6036 = vst.msk [vmem:[#allocation2 + $0xa08] sm:$0xff] %vm305_vm3, %v5523_v10  ;;  %10585 = vmatmul.msk.bf16.gmra.mxu1 %vm3137_vm2, %v10843_v57 }
 0x417   : > { %6164 = vst.msk [vmem:[#allocation2 + $0xe08] sm:$0xff] %vm305_vm3, %v5651_v19  ;;  %10649 = vmatmul.msk.bf16.gmra.mxu2 %vm3137_vm2, %v10907_v61 }
 0x418   : > { %v6422_v24 = vld [vmem:[#allocation2 + $0x600] sm:$0xff]  ;;  %5781 = vst.msk [vmem:[#allocation2 + $0x210] sm:$0xff] %vm305_vm3, %v5268_v4  ;;  %v14704_v12 = vpop.f32.mrf.mxu1 }
 0x419   : > { %v6938_v38 = vmul.f32 %v14541_v22, %v6422_v24  ;;  %v6550_v31 = vld [vmem:[#allocation2 + $0xa00] sm:$0xff]  ;;  %5909 = vst.msk [vmem:[#allocation2 + $0x610] sm:$0xff] %vm305_vm3, %v5396_v29 }
 0x41a   : > { %v7066_v23 = vmul.f32 %v14541_v22, %v6550_v31  ;;  %v6678_v47 = vld [vmem:[#allocation2 + $0xe00] sm:$0xff]  ;;  %6037 = vst.msk [vmem:[#allocation2 + $0xa10] sm:$0xff] %vm305_vm3, %v5524_v44  ;;  %10713 = vmatmul.msk.bf16.gmra.mxu3 %vm3137_vm2, %v10971_v35  ;;  %v14738_v4 = vpop.f32.mrf.mxu2 }
 0x41b   : > { %v7454_v59 = vadd.f32 %v14560_v3, %v6938_v38  ;;  %v7194_v48 = vmul.f32 %v14541_v22, %v6678_v47  ;;  %v6295_v60 = vld [vmem:[#allocation2 + $0x208] sm:$0xff]  ;;  %6165 = vst.msk [vmem:[#allocation2 + $0xe10] sm:$0xff] %vm305_vm3, %v5652_v8  ;;  %v14746_v46 = vpop.f32.mrf.mxu0 }
 0x41c   : > { %v7582_v56 = vadd.f32 %v14560_v3, %v7066_v23  ;;  %v6811_v63 = vmul.f32 %v14541_v22, %v6295_v60  ;;  %v6423_v58 = vld [vmem:[#allocation2 + $0x608] sm:$0xff]  ;;  %5782 = vst.msk [vmem:[#allocation2 + $0x218] sm:$0xff] %vm305_vm3, %v5269_v51 }
 0x41d   : > { %v7966_v50 = vmax.f32 %v7454_v59, 0.0  ;;  %v7710_v0 = vadd.f32 %v14560_v3, %v7194_v48  ;;  %v6939_v62 = vmul.f32 %v14541_v22, %v6423_v58  ;;  %v6551_v7 = vld [vmem:[#allocation2 + $0xa08] sm:$0xff]  ;;  %5910 = vst.msk [vmem:[#allocation2 + $0x618] sm:$0xff] %vm305_vm3, %v5397_v33  ;;  %v14740_v54 = vpop.f32.mrf.mxu3 }
 0x41e   : > { %v8094_v16 = vmax.f32 %v7582_v56, 0.0  ;;  %v7327_v45 = vadd.f32 %v14560_v3, %v6811_v63  ;;  %v7067_v43 = vmul.f32 %v14541_v22, %v6551_v7  ;;  %v6679_v14 = vld [vmem:[#allocation2 + $0xe08] sm:$0xff]  ;;  %6038 = vst.msk [vmem:[#allocation2 + $0xa18] sm:$0xff] %vm305_vm3, %v5525_v9 }
 0x41f   : > { %v8478_v49 = vpack.c.bf16 %v7966_v50, %v7966_v50  ;;  %v8222_v6 = vmax.f32 %v7710_v0, 0.0  ;;  %v7455_v5 = vadd.f32 %v14560_v3, %v6939_v62  ;;  %v7195_v13 = vmul.f32 %v14541_v22, %v6679_v14  ;;  %v6296_v36 = vld [vmem:[#allocation2 + $0x210] sm:$0xff]  ;;  %6166 = vst.msk [vmem:[#allocation2 + $0xe18] sm:$0xff] %vm305_vm3, %v5653_v28 }
 0x420   : > { %v8606_v39 = vpack.c.bf16 %v8094_v16, %v8094_v16  ;;  %v7839_v21 = vmax.f32 %v7327_v45, 0.0  ;;  %v7583_v55 = vadd.f32 %v14560_v3, %v7067_v43  ;;  %v6812_v41 = vmul.f32 %v14541_v22, %v6296_v36  ;;  %v6424_v26 = vld [vmem:[#allocation2 + $0x610] sm:$0xff]  ;;  %5783 = vst.msk [vmem:[#allocation2 + $0x220] sm:$0xff] %vm305_vm3, %v5270_v1  ;;  %v14748_v24 = vpop.f32.mrf.mxu1 }
 0x421   : > { %8991 = vst.msk [vmem:[%s11330_s10 + $0x300] sm:$0xf] %vm8798_vm4, %v8478_v49  ;;  %v8734_v40 = vpack.c.bf16 %v8222_v6, %v8222_v6  ;;  %v7967_v10 = vmax.f32 %v7455_v5, 0.0  ;;  %v7711_v42 = vadd.f32 %v14560_v3, %v7195_v13  ;;  %v6940_v19 = vmul.f32 %v14541_v22, %v6424_v26  ;;  %v6552_v30 = vld [vmem:[#allocation2 + $0xa10] sm:$0xff]  ;;  %v1142_v26 = vld [vmem:[#allocation2 + $0xa20] sm:$0xff] }
 0x422   : > { %9119 = vst.msk [vmem:[%s11330_s10 + $0x500] sm:$0xf] %vm8798_vm4, %v8606_v39  ;;  %v8351_v29 = vpack.c.bf16 %v7839_v21, %v7839_v21  ;;  %v8095_v53 = vmax.f32 %v7583_v55, 0.0  ;;  %v7328_v44 = vadd.f32 %v14560_v3, %v6812_v41  ;;  %v7068_v11 = vmul.f32 %v14541_v22, %v6552_v30  ;;  %v6680_v8 = vld [vmem:[#allocation2 + $0xe10] sm:$0xff]  ;;  %v14777_v13 = vpop.f32.mrf.mxu2  ;;  %v1014_v41 = vld [vmem:[#allocation2 + $0x620] sm:$0xff] }
 0x423   : > { %9247 = vst.msk [vmem:[%s11330_s10 + $0x700] sm:$0xf] %vm8798_vm4, %v8734_v40  ;;  %v8479_v51 = vpack.c.bf16 %v7967_v10, %v7967_v10  ;;  %v8223_v25 = vmax.f32 %v7711_v42, 0.0  ;;  %v7456_v38 = vadd.f32 %v14560_v3, %v6940_v19  ;;  %v7196_v31 = vmul.f32 %v14541_v22, %v6680_v8  ;;  %v6297_v33 = vld [vmem:[#allocation2 + $0x218] sm:$0xff]  ;;  %v14784_v40 = vpop.f32.mrf.mxu0  ;;  %v10780_v30 = vld [vmem:[%s11136_s29 + $0x160] sm:$0xff] }
 0x424   : > { %8864 = vst.msk [vmem:[%s11330_s10 + $0x104] sm:$0xf] %vm8798_vm4, %v8351_v29  ;;  %v8607_v27 = vpack.c.bf16 %v8095_v53, %v8095_v53  ;;  %v7840_v23 = vmax.f32 %v7328_v44, 0.0  ;;  %v7584_v47 = vadd.f32 %v14560_v3, %v7068_v11  ;;  %v6813_v9 = vmul.f32 %v14541_v22, %v6297_v33  ;;  %v6425_v59 = vld [vmem:[#allocation2 + $0x618] sm:$0xff]  ;;  %v10844_v29 = vld [vmem:[%s11136_s29 + $0x360] sm:$0xff] }
 0x425   : > { %8992 = vst.msk [vmem:[%s11330_s10 + $0x304] sm:$0xf] %vm8798_vm4, %v8479_v51  ;;  %v8735_v48 = vpack.c.bf16 %v8223_v25, %v8223_v25  ;;  %v7968_v60 = vmax.f32 %v7456_v38, 0.0  ;;  %v7712_v28 = vadd.f32 %v14560_v3, %v7196_v31  ;;  %v6941_v52 = vmul.f32 %v14541_v22, %v6425_v59  ;;  %v6553_v57 = vld [vmem:[#allocation2 + $0xa18] sm:$0xff]  ;;  %v14779_v36 = vpop.f32.mrf.mxu3  ;;  %v10908_v53 = vld [vmem:[%s11136_s29 + $0x560] sm:$0xff]  ;;  %v887_v31 = vld [vmem:[#allocation2 + $0x228] sm:$0xff]  ;;  %10522 = vmatmul.msk.bf16.gmra.mxu0 %vm3137_vm2, %v10780_v30 }
 0x426   : > { %9120 = vst.msk [vmem:[%s11330_s10 + $0x504] sm:$0xf] %vm8798_vm4, %v8607_v27  ;;  %v8352_v56 = vpack.c.bf16 %v7840_v23, %v7840_v23  ;;  %v8096_v63 = vmax.f32 %v7584_v47, 0.0  ;;  %v7329_v58 = vadd.f32 %v14560_v3, %v6813_v9  ;;  %v7069_v1 = vmul.f32 %v14541_v22, %v6553_v57  ;;  %v6681_v61 = vld [vmem:[#allocation2 + $0xe18] sm:$0xff]  ;;  %v1270_v8 = vld [vmem:[#allocation2 + $0xe20] sm:$0xff]  ;;  %10586 = vmatmul.msk.bf16.gmra.mxu1 %vm3137_vm2, %v10844_v29  ;;  %v1015_v23 = vld [vmem:[#allocation2 + $0x628] sm:$0xff] }
 0x427   : > { %9248 = vst.msk [vmem:[%s11330_s10 + $0x704] sm:$0xf] %vm8798_vm4, %v8735_v48  ;;  %v8480_v35 = vpack.c.bf16 %v7968_v60, %v7968_v60  ;;  %v8224_v50 = vmax.f32 %v7712_v28, 0.0  ;;  %v7457_v0 = vadd.f32 %v14560_v3, %v6941_v52  ;;  %v7197_v62 = vmul.f32 %v14541_v22, %v6681_v61  ;;  %v6298_v7 = vld [vmem:[#allocation2 + $0x220] sm:$0xff]  ;;  %10650 = vmatmul.msk.bf16.gmra.mxu2 %vm3137_vm2, %v10908_v53  ;;  %v1271_v59 = vld [vmem:[#allocation2 + $0xe28] sm:$0xff] }
 0x428   : > { %8865 = vst.msk [vmem:[%s11330_s10 + $0x108] sm:$0xf] %vm8798_vm4, %v8352_v56  ;;  %v8608_v16 = vpack.c.bf16 %v8096_v63, %v8096_v63  ;;  %v7841_v45 = vmax.f32 %v7329_v58, 0.0  ;;  %v7585_v43 = vadd.f32 %v14560_v3, %v7069_v1  ;;  %v6814_v14 = vmul.f32 %v14541_v22, %v6298_v7  ;;  %v14786_v10 = vpop.f32.mrf.mxu1  ;;  %v10972_v51 = vld [vmem:[%s11136_s29 + $0x760] sm:$0xff]  ;;  %v1144_v63 = vld [vmem:[#allocation2 + $0xa30] sm:$0xff]  ;;  %v10909_v30 = vld [vmem:[%s11136_s29 + $0x568] sm:$0xff] }
 0x429   : > { %8993 = vst.msk [vmem:[%s11330_s10 + $0x308] sm:$0xf] %vm8798_vm4, %v8480_v35  ;;  %v8736_v49 = vpack.c.bf16 %v8224_v50, %v8224_v50  ;;  %v7969_v6 = vmax.f32 %v7457_v0, 0.0  ;;  %v7713_v5 = vadd.f32 %v14560_v3, %v7197_v62  ;;  %v5398_v38 = vadd.f32 %v14642_v15, %v1014_v41  ;;  %v1143_v15 = vld [vmem:[#allocation2 + $0xa28] sm:$0xff]  ;;  %v1272_v58 = vld [vmem:[#allocation2 + $0xe30] sm:$0xff]  ;;  %v1017_v35 = vld [vmem:[#allocation2 + $0x638] sm:$0xff] }
 0x42a   : > { %9121 = vst.msk [vmem:[%s11330_s10 + $0x508] sm:$0xf] %vm8798_vm4, %v8608_v16  ;;  %v8353_v39 = vpack.c.bf16 %v7841_v45, %v7841_v45  ;;  %v8097_v21 = vmax.f32 %v7585_v43, 0.0  ;;  %v7330_v55 = vadd.f32 %v14560_v3, %v6814_v14  ;;  %v5526_v27 = vadd.f32 %v14670_v2, %v1142_v26  ;;  %10714 = vmatmul.msk.bf16.gmra.mxu3 %vm3137_vm2, %v10972_v51  ;;  %v888_v2 = vld [vmem:[#allocation2 + $0x230] sm:$0xff]  ;;  %v14814_v60 = vpop.f32.mrf.mxu2  ;;  %v1145_v50 = vld [vmem:[#allocation2 + $0xa38] sm:$0xff]  ;;  %v890_v16 = vld [vmem:[#allocation2 + $0x240] sm:$0xff] }
 0x42b   : > { %9249 = vst.msk [vmem:[%s11330_s10 + $0x708] sm:$0xf] %vm8798_vm4, %v8736_v49  ;;  %v8481_v42 = vpack.c.bf16 %v7969_v6, %v7969_v6  ;;  %v8225_v19 = vmax.f32 %v7713_v5, 0.0  ;;  %v5654_v47 = vadd.f32 %v14672_v17, %v1270_v8  ;;  %v5271_v9 = vadd.f32 %v14676_v32, %v887_v31  ;;  %v1016_v17 = vld [vmem:[#allocation2 + $0x630] sm:$0xff]  ;;  %v14820_v57 = vpop.f32.mrf.mxu0  ;;  %v1273_v62 = vld [vmem:[#allocation2 + $0xe38] sm:$0xff]  ;;  %v10845_v41 = vld [vmem:[%s11136_s29 + $0x368] sm:$0xff] }
 0x42c   : > { %8866 = vst.msk [vmem:[%s11330_s10 + $0x10c] sm:$0xf] %vm8798_vm4, %v8353_v39  ;;  %v8609_v44 = vpack.c.bf16 %v8097_v21, %v8097_v21  ;;  %v7842_v11 = vmax.f32 %v7330_v55, 0.0  ;;  %v5399_v48 = vadd.f32 %v14678_v18, %v1015_v23  ;;  %v5527_v52 = vadd.f32 %v14695_v34, %v1143_v15  ;;  %v889_v34 = vld [vmem:[#allocation2 + $0x238] sm:$0xff]  ;;  %v10781_v55 = vld [vmem:[%s11136_s29 + $0x168] sm:$0xff] }
 0x42d   : > { %8994 = vst.msk [vmem:[%s11330_s10 + $0x30c] sm:$0xf] %vm8798_vm4, %v8481_v42  ;;  %v8737_v25 = vpack.c.bf16 %v8225_v19, %v8225_v19  ;;  %v14816_v28 = vpop.f32.mrf.mxu3  ;;  %v5655_v32 = vadd.f32 %v14697_v37, %v1271_v59  ;;  %v5272_v18 = vadd.f32 %v14702_v20, %v888_v2  ;;  %v5400_v1 = vadd.f32 %v14704_v12, %v1016_v17  ;;  %v10973_v29 = vld [vmem:[%s11136_s29 + $0x768] sm:$0xff] }
 0x42e   : > { %9122 = vst.msk [vmem:[%s11330_s10 + $0x50c] sm:$0xf] %vm8798_vm4, %v8609_v44  ;;  %v8354_v33 = vpack.c.bf16 %v7842_v11, %v7842_v11  ;;  %v5528_v61 = vadd.f32 %v14738_v4, %v1144_v63  ;;  %v5656_v37 = vadd.f32 %v14740_v54, %v1272_v58  ;;  %v5273_v20 = vadd.f32 %v14746_v46, %v889_v34 }
 0x42f   : > { %9250 = vst.msk [vmem:[%s11330_s10 + $0x70c] sm:$0xf] %vm8798_vm4, %v8737_v25  ;;  %v5401_v4 = vadd.f32 %v14748_v24, %v1017_v35  ;;  %v5529_v46 = vadd.f32 %v14777_v13, %v1145_v50  ;;  %v5657_v21 = vadd.f32 %v14779_v36, %v1273_v62  ;;  %v5274_v19 = vadd.f32 %v14784_v40, %v890_v16 }
 0x430   : > { %8867 = vst.msk [vmem:[%s11330_s10 + $0x110] sm:$0xf] %vm8798_vm4, %v8354_v33  ;;  %v14822_v56 = vpop.f32.mrf.mxu1 }
 0x431   : > { %5911 = vst.msk [vmem:[#allocation2 + $0x620] sm:$0xff] %vm305_vm3, %v5398_v38 }
 0x432   : > { %6039 = vst.msk [vmem:[#allocation2 + $0xa20] sm:$0xff] %vm305_vm3, %v5526_v27  ;;  %v14839_v45 = vpop.f32.mrf.mxu2 }
 0x433   : > { %6167 = vst.msk [vmem:[#allocation2 + $0xe20] sm:$0xff] %vm305_vm3, %v5654_v47  ;;  %v14846_v49 = vpop.f32.mrf.mxu0 }
 0x434   : > { %5784 = vst.msk [vmem:[#allocation2 + $0x228] sm:$0xff] %vm305_vm3, %v5271_v9 }
 0x435   : > { %5912 = vst.msk [vmem:[#allocation2 + $0x628] sm:$0xff] %vm305_vm3, %v5399_v48  ;;  %v14841_v54 = vpop.f32.mrf.mxu3  ;;  %10523 = vmatmul.msk.bf16.gmra.mxu0 %vm3137_vm2, %v10781_v55 }
 0x436   : > { %6040 = vst.msk [vmem:[#allocation2 + $0xa28] sm:$0xff] %vm305_vm3, %v5527_v52  ;;  %10587 = vmatmul.msk.bf16.gmra.mxu1 %vm3137_vm2, %v10845_v41 }
 0x437   : > { %6168 = vst.msk [vmem:[#allocation2 + $0xe28] sm:$0xff] %vm305_vm3, %v5655_v32  ;;  %10651 = vmatmul.msk.bf16.gmra.mxu2 %vm3137_vm2, %v10909_v30 }
 0x438   : > { %v6426_v0 = vld [vmem:[#allocation2 + $0x620] sm:$0xff]  ;;  %5785 = vst.msk [vmem:[#allocation2 + $0x230] sm:$0xff] %vm305_vm3, %v5272_v18  ;;  %v14848_v6 = vpop.f32.mrf.mxu1 }
 0x439   : > { %v6942_v7 = vmul.f32 %v14541_v22, %v6426_v0  ;;  %v6554_v12 = vld [vmem:[#allocation2 + $0xa20] sm:$0xff]  ;;  %5913 = vst.msk [vmem:[#allocation2 + $0x630] sm:$0xff] %vm305_vm3, %v5400_v1 }
 0x43a   : > { %v7070_v43 = vmul.f32 %v14541_v22, %v6554_v12  ;;  %v6682_v14 = vld [vmem:[#allocation2 + $0xe20] sm:$0xff]  ;;  %6041 = vst.msk [vmem:[#allocation2 + $0xa30] sm:$0xff] %vm305_vm3, %v5528_v61  ;;  %10715 = vmatmul.msk.bf16.gmra.mxu3 %vm3137_vm2, %v10973_v29  ;;  %v14882_v18 = vpop.f32.mrf.mxu2 }
 0x43b   : > { %v7458_v24 = vadd.f32 %v14560_v3, %v6942_v7  ;;  %v7198_v5 = vmul.f32 %v14541_v22, %v6682_v14  ;;  %v6299_v39 = vld [vmem:[#allocation2 + $0x228] sm:$0xff]  ;;  %6169 = vst.msk [vmem:[#allocation2 + $0xe30] sm:$0xff] %vm305_vm3, %v5656_v37  ;;  %v14890_v50 = vpop.f32.mrf.mxu0 }
 0x43c   : > { %v7586_v26 = vadd.f32 %v14560_v3, %v7070_v43  ;;  %v6815_v13 = vmul.f32 %v14541_v22, %v6299_v39  ;;  %v6427_v42 = vld [vmem:[#allocation2 + $0x628] sm:$0xff]  ;;  %5786 = vst.msk [vmem:[#allocation2 + $0x238] sm:$0xff] %vm305_vm3, %v5273_v20 }
 0x43d   : > { %v7970_v53 = vmax.f32 %v7458_v24, 0.0  ;;  %v7714_v44 = vadd.f32 %v14560_v3, %v7198_v5  ;;  %v6943_v11 = vmul.f32 %v14541_v22, %v6427_v42  ;;  %v6555_v8 = vld [vmem:[#allocation2 + $0xa28] sm:$0xff]  ;;  %5914 = vst.msk [vmem:[#allocation2 + $0x638] sm:$0xff] %vm305_vm3, %v5401_v4  ;;  %v14884_v58 = vpop.f32.mrf.mxu3 }
 0x43e   : > { %v8098_v36 = vmax.f32 %v7586_v26, 0.0  ;;  %v7331_v51 = vadd.f32 %v14560_v3, %v6815_v13  ;;  %v7071_v25 = vmul.f32 %v14541_v22, %v6555_v8  ;;  %v6683_v40 = vld [vmem:[#allocation2 + $0xe28] sm:$0xff]  ;;  %6042 = vst.msk [vmem:[#allocation2 + $0xa38] sm:$0xff] %vm305_vm3, %v5529_v46 }
 0x43f   : > { %v8482_v38 = vpack.c.bf16 %v7970_v53, %v7970_v53  ;;  %v8226_v31 = vmax.f32 %v7714_v44, 0.0  ;;  %v7459_v33 = vadd.f32 %v14560_v3, %v6943_v11  ;;  %v7199_v27 = vmul.f32 %v14541_v22, %v6683_v40  ;;  %v6300_v23 = vld [vmem:[#allocation2 + $0x230] sm:$0xff]  ;;  %6170 = vst.msk [vmem:[#allocation2 + $0xe38] sm:$0xff] %vm305_vm3, %v5657_v21 }
 0x440   : > { %v8610_v47 = vpack.c.bf16 %v8098_v36, %v8098_v36  ;;  %v7843_v15 = vmax.f32 %v7331_v51, 0.0  ;;  %v7587_v9 = vadd.f32 %v14560_v3, %v7071_v25  ;;  %v6816_v59 = vmul.f32 %v14541_v22, %v6300_v23  ;;  %v6428_v48 = vld [vmem:[#allocation2 + $0x630] sm:$0xff]  ;;  %5787 = vst.msk [vmem:[#allocation2 + $0x240] sm:$0xff] %vm305_vm3, %v5274_v19  ;;  %v14892_v0 = vpop.f32.mrf.mxu1 }
 0x441   : > { %8995 = vst.msk [vmem:[%s11330_s10 + $0x310] sm:$0xf] %vm8798_vm4, %v8482_v38  ;;  %v8738_v2 = vpack.c.bf16 %v8226_v31, %v8226_v31  ;;  %v7971_v52 = vmax.f32 %v7459_v33, 0.0  ;;  %v7715_v17 = vadd.f32 %v14560_v3, %v7199_v27  ;;  %v6944_v32 = vmul.f32 %v14541_v22, %v6428_v48  ;;  %v6556_v63 = vld [vmem:[#allocation2 + $0xa30] sm:$0xff] }
 0x442   : > { %9123 = vst.msk [vmem:[%s11330_s10 + $0x510] sm:$0xf] %vm8798_vm4, %v8610_v47  ;;  %v8355_v1 = vpack.c.bf16 %v7843_v15, %v7843_v15  ;;  %v8099_v34 = vmax.f32 %v7587_v9, 0.0  ;;  %v7332_v61 = vadd.f32 %v14560_v3, %v6816_v59  ;;  %v7072_v35 = vmul.f32 %v14541_v22, %v6556_v63  ;;  %v6684_v37 = vld [vmem:[#allocation2 + $0xe30] sm:$0xff]  ;;  %v14921_v27 = vpop.f32.mrf.mxu2  ;;  %v1018_v9 = vld [vmem:[#allocation2 + $0x640] sm:$0xff] }
 0x443   : > { %9251 = vst.msk [vmem:[%s11330_s10 + $0x710] sm:$0xf] %vm8798_vm4, %v8738_v2  ;;  %v8483_v20 = vpack.c.bf16 %v7971_v52, %v7971_v52  ;;  %v8227_v62 = vmax.f32 %v7715_v17, 0.0  ;;  %v7460_v7 = vadd.f32 %v14560_v3, %v6944_v32  ;;  %v7200_v12 = vmul.f32 %v14541_v22, %v6684_v37  ;;  %v6301_v4 = vld [vmem:[#allocation2 + $0x238] sm:$0xff]  ;;  %v1146_v59 = vld [vmem:[#allocation2 + $0xa40] sm:$0xff]  ;;  %v14928_v48 = vpop.f32.mrf.mxu0  ;;  %v10782_v32 = vld [vmem:[%s11136_s29 + $0x170] sm:$0xff] }
 0x444   : > { %8868 = vst.msk [vmem:[%s11330_s10 + $0x114] sm:$0xf] %vm8798_vm4, %v8355_v1  ;;  %v8611_v16 = vpack.c.bf16 %v8099_v34, %v8099_v34  ;;  %v7844_v43 = vmax.f32 %v7332_v61, 0.0  ;;  %v7588_v14 = vadd.f32 %v14560_v3, %v7072_v35  ;;  %v6817_v46 = vmul.f32 %v14541_v22, %v6301_v4  ;;  %v6429_v24 = vld [vmem:[#allocation2 + $0x638] sm:$0xff]  ;;  %v10846_v63 = vld [vmem:[%s11136_s29 + $0x370] sm:$0xff]  ;;  %v1274_v61 = vld [vmem:[#allocation2 + $0xe40] sm:$0xff] }
 0x445   : > { %8996 = vst.msk [vmem:[%s11330_s10 + $0x314] sm:$0xf] %vm8798_vm4, %v8483_v20  ;;  %v8739_v5 = vpack.c.bf16 %v8227_v62, %v8227_v62  ;;  %v7972_v39 = vmax.f32 %v7460_v7, 0.0  ;;  %v7716_v21 = vadd.f32 %v14560_v3, %v7200_v12  ;;  %v6945_v55 = vmul.f32 %v14541_v22, %v6429_v24  ;;  %v6557_v41 = vld [vmem:[#allocation2 + $0xa38] sm:$0xff]  ;;  %v14923_v23 = vpop.f32.mrf.mxu3  ;;  %v10910_v1 = vld [vmem:[%s11136_s29 + $0x570] sm:$0xff]  ;;  %v891_v62 = vld [vmem:[#allocation2 + $0x248] sm:$0xff]  ;;  %10524 = vmatmul.msk.bf16.gmra.mxu0 %vm3137_vm2, %v10782_v32 }
 0x446   : > { %9124 = vst.msk [vmem:[%s11330_s10 + $0x514] sm:$0xf] %vm8798_vm4, %v8611_v16  ;;  %v8356_v26 = vpack.c.bf16 %v7844_v43, %v7844_v43  ;;  %v8100_v13 = vmax.f32 %v7588_v14, 0.0  ;;  %v7333_v42 = vadd.f32 %v14560_v3, %v6817_v46  ;;  %v7073_v19 = vmul.f32 %v14541_v22, %v6557_v41  ;;  %v6685_v30 = vld [vmem:[#allocation2 + $0xe38] sm:$0xff]  ;;  %v10974_v35 = vld [vmem:[%s11136_s29 + $0x770] sm:$0xff]  ;;  %10588 = vmatmul.msk.bf16.gmra.mxu1 %vm3137_vm2, %v10846_v63  ;;  %v1019_v4 = vld [vmem:[#allocation2 + $0x648] sm:$0xff] }
 0x447   : > { %9252 = vst.msk [vmem:[%s11330_s10 + $0x714] sm:$0xf] %vm8798_vm4, %v8739_v5  ;;  %v8484_v29 = vpack.c.bf16 %v7972_v39, %v7972_v39  ;;  %v8228_v53 = vmax.f32 %v7716_v21, 0.0  ;;  %v7461_v44 = vadd.f32 %v14560_v3, %v6945_v55  ;;  %v7201_v11 = vmul.f32 %v14541_v22, %v6685_v30  ;;  %v6302_v8 = vld [vmem:[#allocation2 + $0x240] sm:$0xff]  ;;  %10652 = vmatmul.msk.bf16.gmra.mxu2 %vm3137_vm2, %v10910_v1  ;;  %v1275_v14 = vld [vmem:[#allocation2 + $0xe48] sm:$0xff]  ;;  %v1148_v41 = vld [vmem:[#allocation2 + $0xa50] sm:$0xff] }
 0x448   : > { %8869 = vst.msk [vmem:[%s11330_s10 + $0x118] sm:$0xf] %vm8798_vm4, %v8356_v26  ;;  %v8612_v36 = vpack.c.bf16 %v8100_v13, %v8100_v13  ;;  %v7845_v51 = vmax.f32 %v7333_v42, 0.0  ;;  %v7589_v25 = vadd.f32 %v14560_v3, %v7073_v19  ;;  %v6818_v40 = vmul.f32 %v14541_v22, %v6302_v8  ;;  %v14930_v2 = vpop.f32.mrf.mxu1  ;;  %v1276_v26 = vld [vmem:[#allocation2 + $0xe50] sm:$0xff]  ;;  %v1021_v19 = vld [vmem:[#allocation2 + $0x658] sm:$0xff] }
 0x449   : > { %8997 = vst.msk [vmem:[%s11330_s10 + $0x318] sm:$0xf] %vm8798_vm4, %v8484_v29  ;;  %v8740_v38 = vpack.c.bf16 %v8228_v53, %v8228_v53  ;;  %v7973_v31 = vmax.f32 %v7461_v44, 0.0  ;;  %v7717_v33 = vadd.f32 %v14560_v3, %v7201_v11  ;;  %v5402_v20 = vadd.f32 %v14786_v10, %v1018_v9  ;;  %v1147_v10 = vld [vmem:[#allocation2 + $0xa48] sm:$0xff]  ;;  %v1149_v30 = vld [vmem:[#allocation2 + $0xa58] sm:$0xff] }
 0x44a   : > { %9125 = vst.msk [vmem:[%s11330_s10 + $0x518] sm:$0xf] %vm8798_vm4, %v8612_v36  ;;  %v8357_v47 = vpack.c.bf16 %v7845_v51, %v7845_v51  ;;  %v8101_v15 = vmax.f32 %v7589_v25, 0.0  ;;  %v7334_v22 = vadd.f32 %v14560_v3, %v6818_v40  ;;  %v5530_v12 = vadd.f32 %v14814_v60, %v1146_v59  ;;  %10716 = vmatmul.msk.bf16.gmra.mxu3 %vm3137_vm2, %v10974_v35  ;;  %v892_v60 = vld [vmem:[#allocation2 + $0x250] sm:$0xff]  ;;  %v14958_v24 = vpop.f32.mrf.mxu2  ;;  %v1277_v53 = vld [vmem:[#allocation2 + $0xe58] sm:$0xff] }
 0x44b   : > { %9253 = vst.msk [vmem:[%s11330_s10 + $0x718] sm:$0xf] %vm8798_vm4, %v8740_v38  ;;  %v8485_v52 = vpack.c.bf16 %v7973_v31, %v7973_v31  ;;  %v8229_v17 = vmax.f32 %v7717_v33, 0.0  ;;  %v5658_v16 = vadd.f32 %v14816_v28, %v1274_v61  ;;  %v5275_v43 = vadd.f32 %v14820_v57, %v891_v62  ;;  %v1020_v28 = vld [vmem:[#allocation2 + $0x650] sm:$0xff]  ;;  %v14964_v21 = vpop.f32.mrf.mxu0  ;;  %v10911_v32 = vld [vmem:[%s11136_s29 + $0x578] sm:$0xff] }
 0x44c   : > { %8870 = vst.msk [vmem:[%s11330_s10 + $0x11c] sm:$0xf] %vm8798_vm4, %v8357_v47  ;;  %v8613_v34 = vpack.c.bf16 %v8101_v15, %v8101_v15  ;;  %v7846_v3 = vmax.f32 %v7334_v22, 0.0  ;;  %v5403_v46 = vadd.f32 %v14822_v56, %v1019_v4  ;;  %v5531_v39 = vadd.f32 %v14839_v45, %v1147_v10  ;;  %v893_v45 = vld [vmem:[#allocation2 + $0x258] sm:$0xff] }
 0x44d   : > { %8998 = vst.msk [vmem:[%s11330_s10 + $0x31c] sm:$0xf] %vm8798_vm4, %v8485_v52  ;;  %v8741_v37 = vpack.c.bf16 %v8229_v17, %v8229_v17  ;;  %v14960_v5 = vpop.f32.mrf.mxu3  ;;  %v5659_v57 = vadd.f32 %v14841_v54, %v1275_v14  ;;  %v5276_v56 = vadd.f32 %v14846_v49, %v892_v60  ;;  %v5404_v13 = vadd.f32 %v14848_v6, %v1020_v28  ;;  %v14983_v6 = vld [vmem:[%s16857_s2] ss:$0 sm:$0xff]  ;;  %v10783_v15 = vld [vmem:[%s11136_s29 + $0x178] sm:$0xff] }
 0x44e   : > { %9126 = vst.msk [vmem:[%s11330_s10 + $0x51c] sm:$0xf] %vm8798_vm4, %v8613_v34  ;;  %v8358_v7 = vpack.c.bf16 %v7846_v3, %v7846_v3  ;;  %v5532_v42 = vadd.f32 %v14882_v18, %v1148_v41  ;;  %v5660_v54 = vadd.f32 %v14884_v58, %v1276_v26  ;;  %v5277_v49 = vadd.f32 %v14890_v50, %v893_v45  ;;  %v894_v58 = vld [vmem:[#allocation2 + $0x260] sm:$0xff]  ;;  %v10847_v22 = vld [vmem:[%s11136_s29 + $0x378] sm:$0xff] }
 0x44f   : > { %9254 = vst.msk [vmem:[%s11330_s10 + $0x71c] sm:$0xf] %vm8798_vm4, %v8741_v37  ;;  %v5405_v11 = vadd.f32 %v14892_v0, %v1021_v19  ;;  %v5533_v25 = vadd.f32 %v14921_v27, %v1149_v30  ;;  %v15002_v0 = vld [vmem:[%s16858_s3] ss:$0 sm:$0xff]  ;;  %v5661_v27 = vadd.f32 %v14923_v23, %v1277_v53  ;;  %v5278_v17 = vadd.f32 %v14928_v48, %v894_v58  ;;  %v10975_v63 = vld [vmem:[%s11136_s29 + $0x778] sm:$0xff] }
 0x450   : > { %8871 = vst.msk [vmem:[%s11330_s10 + $0x120] sm:$0xf] %vm8798_vm4, %v8358_v7  ;;  %v14966_v55 = vpop.f32.mrf.mxu1 }
 0x451   : > { %5915 = vst.msk [vmem:[#allocation2 + $0x640] sm:$0xff] %vm305_vm3, %v5402_v20 }
 0x452   : > { %6043 = vst.msk [vmem:[#allocation2 + $0xa40] sm:$0xff] %vm305_vm3, %v5530_v12  ;;  %v14988_v8 = vpop.f32.mrf.mxu2 }
 0x453   : > { %6171 = vst.msk [vmem:[#allocation2 + $0xe40] sm:$0xff] %vm305_vm3, %v5658_v16  ;;  %v14995_v40 = vpop.f32.mrf.mxu0 }
 0x454   : > { %5788 = vst.msk [vmem:[#allocation2 + $0x248] sm:$0xff] %vm305_vm3, %v5275_v43 }
 0x455   : > { %5916 = vst.msk [vmem:[#allocation2 + $0x648] sm:$0xff] %vm305_vm3, %v5403_v46  ;;  %v14990_v36 = vpop.f32.mrf.mxu3  ;;  %10525 = vmatmul.msk.bf16.gmra.mxu0 %vm3137_vm2, %v10783_v15 }
 0x456   : > { %6044 = vst.msk [vmem:[#allocation2 + $0xa48] sm:$0xff] %vm305_vm3, %v5531_v39  ;;  %10589 = vmatmul.msk.bf16.gmra.mxu1 %vm3137_vm2, %v10847_v22 }
 0x457   : > { %6172 = vst.msk [vmem:[#allocation2 + $0xe48] sm:$0xff] %vm305_vm3, %v5659_v57  ;;  %10653 = vmatmul.msk.bf16.gmra.mxu2 %vm3137_vm2, %v10911_v32 }
 0x458   : > { %v6430_v29 = vld [vmem:[#allocation2 + $0x640] sm:$0xff]  ;;  %5789 = vst.msk [vmem:[#allocation2 + $0x250] sm:$0xff] %vm305_vm3, %v5276_v56  ;;  %v14997_v38 = vpop.f32.mrf.mxu1 }
 0x459   : > { %v6946_v44 = vmul.f32 %v14983_v6, %v6430_v29  ;;  %v6558_v18 = vld [vmem:[#allocation2 + $0xa40] sm:$0xff]  ;;  %5917 = vst.msk [vmem:[#allocation2 + $0x650] sm:$0xff] %vm305_vm3, %v5404_v13 }
 0x45a   : > { %v7074_v50 = vmul.f32 %v14983_v6, %v6558_v18  ;;  %v6686_v51 = vld [vmem:[#allocation2 + $0xe40] sm:$0xff]  ;;  %6045 = vst.msk [vmem:[#allocation2 + $0xa50] sm:$0xff] %vm305_vm3, %v5532_v42  ;;  %10717 = vmatmul.msk.bf16.gmra.mxu3 %vm3137_vm2, %v10975_v63  ;;  %v15036_v56 = vpop.f32.mrf.mxu2 }
 0x45b   : > { %v7462_v31 = vadd.f32 %v15002_v0, %v6946_v44  ;;  %v7202_v33 = vmul.f32 %v14983_v6, %v6686_v51  ;;  %v6303_v47 = vld [vmem:[#allocation2 + $0x248] sm:$0xff]  ;;  %6173 = vst.msk [vmem:[#allocation2 + $0xe50] sm:$0xff] %vm305_vm3, %v5660_v54  ;;  %v15044_v30 = vpop.f32.mrf.mxu0 }
 0x45c   : > { %v7590_v9 = vadd.f32 %v15002_v0, %v7074_v50  ;;  %v6819_v59 = vmul.f32 %v14983_v6, %v6303_v47  ;;  %v6431_v52 = vld [vmem:[#allocation2 + $0x648] sm:$0xff]  ;;  %5790 = vst.msk [vmem:[#allocation2 + $0x258] sm:$0xff] %vm305_vm3, %v5277_v49 }
 0x45d   : > { %v7974_v1 = vmax.f32 %v7462_v31, 0.0  ;;  %v7718_v34 = vadd.f32 %v15002_v0, %v7202_v33  ;;  %v6947_v3 = vmul.f32 %v14983_v6, %v6431_v52  ;;  %v6559_v61 = vld [vmem:[#allocation2 + $0xa48] sm:$0xff]  ;;  %5918 = vst.msk [vmem:[#allocation2 + $0x658] sm:$0xff] %vm305_vm3, %v5405_v11  ;;  %v15038_v26 = vpop.f32.mrf.mxu3 }
 0x45e   : > { %v8102_v23 = vmax.f32 %v7590_v9, 0.0  ;;  %v7335_v35 = vadd.f32 %v15002_v0, %v6819_v59  ;;  %v7075_v37 = vmul.f32 %v14983_v6, %v6559_v61  ;;  %v6687_v48 = vld [vmem:[#allocation2 + $0xe48] sm:$0xff]  ;;  %6046 = vst.msk [vmem:[#allocation2 + $0xa58] sm:$0xff] %vm305_vm3, %v5533_v25 }
 0x45f   : > { %v8486_v20 = vpack.c.bf16 %v7974_v1, %v7974_v1  ;;  %v8230_v62 = vmax.f32 %v7718_v34, 0.0  ;;  %v7463_v7 = vadd.f32 %v15002_v0, %v6947_v3  ;;  %v7203_v12 = vmul.f32 %v14983_v6, %v6687_v48  ;;  %v6304_v4 = vld [vmem:[#allocation2 + $0x250] sm:$0xff]  ;;  %6174 = vst.msk [vmem:[#allocation2 + $0xe58] sm:$0xff] %vm305_vm3, %v5661_v27 }
 0x460   : > { %v8614_v16 = vpack.c.bf16 %v8102_v23, %v8102_v23  ;;  %v7847_v10 = vmax.f32 %v7335_v35, 0.0  ;;  %v7591_v43 = vadd.f32 %v15002_v0, %v7075_v37  ;;  %v6820_v14 = vmul.f32 %v14983_v6, %v6304_v4  ;;  %v6432_v46 = vld [vmem:[#allocation2 + $0x650] sm:$0xff]  ;;  %5791 = vst.msk [vmem:[#allocation2 + $0x260] sm:$0xff] %vm305_vm3, %v5278_v17  ;;  %v15046_v29 = vpop.f32.mrf.mxu1 }
 0x461   : > { %8999 = vst.msk [vmem:[%s11330_s10 + $0x320] sm:$0xf] %vm8798_vm4, %v8486_v20  ;;  %v8742_v60 = vpack.c.bf16 %v8230_v62, %v8230_v62  ;;  %v7975_v39 = vmax.f32 %v7463_v7, 0.0  ;;  %v7719_v28 = vadd.f32 %v15002_v0, %v7203_v12  ;;  %v6948_v57 = vmul.f32 %v14983_v6, %v6432_v46  ;;  %v6560_v41 = vld [vmem:[#allocation2 + $0xa50] sm:$0xff]  ;;  %v1150_v46 = vld [vmem:[#allocation2 + $0xa60] sm:$0xff] }
 0x462   : > { %9127 = vst.msk [vmem:[%s11330_s10 + $0x520] sm:$0xf] %vm8798_vm4, %v8614_v16  ;;  %v8359_v13 = vpack.c.bf16 %v7847_v10, %v7847_v10  ;;  %v8103_v45 = vmax.f32 %v7591_v43, 0.0  ;;  %v7336_v42 = vadd.f32 %v15002_v0, %v6820_v14  ;;  %v7076_v19 = vmul.f32 %v14983_v6, %v6560_v41  ;;  %v6688_v54 = vld [vmem:[#allocation2 + $0xe50] sm:$0xff]  ;;  %v15075_v12 = vpop.f32.mrf.mxu2  ;;  %v1022_v14 = vld [vmem:[#allocation2 + $0x660] sm:$0xff] }
 0x463   : > { %9255 = vst.msk [vmem:[%s11330_s10 + $0x720] sm:$0xf] %vm8798_vm4, %v8742_v60  ;;  %v8487_v49 = vpack.c.bf16 %v7975_v39, %v7975_v39  ;;  %v8231_v53 = vmax.f32 %v7719_v28, 0.0  ;;  %v7464_v44 = vadd.f32 %v15002_v0, %v6948_v57  ;;  %v7204_v18 = vmul.f32 %v14983_v6, %v6688_v54  ;;  %v6305_v11 = vld [vmem:[#allocation2 + $0x258] sm:$0xff]  ;;  %v15082_v60 = vpop.f32.mrf.mxu0  ;;  %v10784_v41 = vld [vmem:[%s11136_s29 + $0x180] sm:$0xff] }
 0x464   : > { %8872 = vst.msk [vmem:[%s11330_s10 + $0x124] sm:$0xf] %vm8798_vm4, %v8359_v13  ;;  %v8615_v58 = vpack.c.bf16 %v8103_v45, %v8103_v45  ;;  %v7848_v50 = vmax.f32 %v7336_v42, 0.0  ;;  %v7592_v51 = vadd.f32 %v15002_v0, %v7076_v19  ;;  %v6821_v25 = vmul.f32 %v14983_v6, %v6305_v11  ;;  %v6433_v31 = vld [vmem:[#allocation2 + $0x658] sm:$0xff]  ;;  %v10848_v13 = vld [vmem:[%s11136_s29 + $0x380] sm:$0xff] }
 0x465   : > { %9000 = vst.msk [vmem:[%s11330_s10 + $0x324] sm:$0xf] %vm8798_vm4, %v8487_v49  ;;  %v8743_v33 = vpack.c.bf16 %v8231_v53, %v8231_v53  ;;  %v7976_v47 = vmax.f32 %v7464_v44, 0.0  ;;  %v7720_v27 = vadd.f32 %v15002_v0, %v7204_v18  ;;  %v6949_v15 = vmul.f32 %v14983_v6, %v6433_v31  ;;  %v6561_v22 = vld [vmem:[#allocation2 + $0xa58] sm:$0xff]  ;;  %v15077_v4 = vpop.f32.mrf.mxu3  ;;  %v10912_v45 = vld [vmem:[%s11136_s29 + $0x580] sm:$0xff]  ;;  %v895_v18 = vld [vmem:[#allocation2 + $0x268] sm:$0xff]  ;;  %10526 = vmatmul.msk.bf16.gmra.mxu0 %vm3137_vm2, %v10784_v41 }
 0x466   : > { %9128 = vst.msk [vmem:[%s11330_s10 + $0x524] sm:$0xf] %vm8798_vm4, %v8615_v58  ;;  %v8360_v9 = vpack.c.bf16 %v7848_v50, %v7848_v50  ;;  %v8104_v59 = vmax.f32 %v7592_v51, 0.0  ;;  %v7337_v52 = vadd.f32 %v15002_v0, %v6821_v25  ;;  %v7077_v17 = vmul.f32 %v14983_v6, %v6561_v22  ;;  %v6689_v32 = vld [vmem:[#allocation2 + $0xe58] sm:$0xff]  ;;  %v1278_v54 = vld [vmem:[#allocation2 + $0xe60] sm:$0xff]  ;;  %10590 = vmatmul.msk.bf16.gmra.mxu1 %vm3137_vm2, %v10848_v13  ;;  %v1023_v50 = vld [vmem:[#allocation2 + $0x668] sm:$0xff] }
 0x467   : > { %9256 = vst.msk [vmem:[%s11330_s10 + $0x724] sm:$0xf] %vm8798_vm4, %v8743_v33  ;;  %v8488_v63 = vpack.c.bf16 %v7976_v47, %v7976_v47  ;;  %v8232_v1 = vmax.f32 %v7720_v27, 0.0  ;;  %v7465_v34 = vadd.f32 %v15002_v0, %v6949_v15  ;;  %v7205_v3 = vmul.f32 %v14983_v6, %v6689_v32  ;;  %v6306_v61 = vld [vmem:[#allocation2 + $0x260] sm:$0xff]  ;;  %10654 = vmatmul.msk.bf16.gmra.mxu2 %vm3137_vm2, %v10912_v45  ;;  %v1279_v31 = vld [vmem:[#allocation2 + $0xe68] sm:$0xff] }
 0x468   : > { %8873 = vst.msk [vmem:[%s11330_s10 + $0x128] sm:$0xf] %vm8798_vm4, %v8360_v9  ;;  %v8616_v23 = vpack.c.bf16 %v8104_v59, %v8104_v59  ;;  %v7849_v35 = vmax.f32 %v7337_v52, 0.0  ;;  %v7593_v37 = vadd.f32 %v15002_v0, %v7077_v17  ;;  %v6822_v48 = vmul.f32 %v14983_v6, %v6306_v61  ;;  %v15084_v39 = vpop.f32.mrf.mxu1  ;;  %v10976_v49 = vld [vmem:[%s11136_s29 + $0x780] sm:$0xff]  ;;  %v1152_v59 = vld [vmem:[#allocation2 + $0xa70] sm:$0xff]  ;;  %v10913_v41 = vld [vmem:[%s11136_s29 + $0x588] sm:$0xff] }
 0x469   : > { %9001 = vst.msk [vmem:[%s11330_s10 + $0x328] sm:$0xf] %vm8798_vm4, %v8488_v63  ;;  %v8744_v20 = vpack.c.bf16 %v8232_v1, %v8232_v1  ;;  %v7977_v62 = vmax.f32 %v7465_v34, 0.0  ;;  %v7721_v7 = vadd.f32 %v15002_v0, %v7205_v3  ;;  %v5406_v44 = vadd.f32 %v14930_v2, %v1022_v14  ;;  %v1151_v2 = vld [vmem:[#allocation2 + $0xa68] sm:$0xff]  ;;  %v1280_v52 = vld [vmem:[#allocation2 + $0xe70] sm:$0xff]  ;;  %v1025_v63 = vld [vmem:[#allocation2 + $0x678] sm:$0xff] }
 0x46a   : > { %9129 = vst.msk [vmem:[%s11330_s10 + $0x528] sm:$0xf] %vm8798_vm4, %v8616_v23  ;;  %v8361_v16 = vpack.c.bf16 %v7849_v35, %v7849_v35  ;;  %v8105_v10 = vmax.f32 %v7593_v37, 0.0  ;;  %v7338_v43 = vadd.f32 %v15002_v0, %v6822_v48  ;;  %v5534_v58 = vadd.f32 %v14958_v24, %v1150_v46  ;;  %10718 = vmatmul.msk.bf16.gmra.mxu3 %vm3137_vm2, %v10976_v49  ;;  %v896_v24 = vld [vmem:[#allocation2 + $0x270] sm:$0xff]  ;;  %v15112_v47 = vpop.f32.mrf.mxu2  ;;  %v1153_v1 = vld [vmem:[#allocation2 + $0xa78] sm:$0xff]  ;;  %v898_v23 = vld [vmem:[#allocation2 + $0x280] sm:$0xff] }
 0x46b   : > { %9257 = vst.msk [vmem:[%s11330_s10 + $0x728] sm:$0xf] %vm8798_vm4, %v8744_v20  ;;  %v8489_v28 = vpack.c.bf16 %v7977_v62, %v7977_v62  ;;  %v8233_v57 = vmax.f32 %v7721_v7, 0.0  ;;  %v5662_v51 = vadd.f32 %v14960_v5, %v1278_v54  ;;  %v5279_v25 = vadd.f32 %v14964_v21, %v895_v18  ;;  %v1024_v5 = vld [vmem:[#allocation2 + $0x670] sm:$0xff]  ;;  %v15118_v22 = vpop.f32.mrf.mxu0  ;;  %v1281_v3 = vld [vmem:[#allocation2 + $0xe78] sm:$0xff]  ;;  %v10849_v14 = vld [vmem:[%s11136_s29 + $0x388] sm:$0xff] }
 0x46c   : > { %8874 = vst.msk [vmem:[%s11330_s10 + $0x12c] sm:$0xf] %vm8798_vm4, %v8361_v16  ;;  %v8617_v42 = vpack.c.bf16 %v8105_v10, %v8105_v10  ;;  %v7850_v19 = vmax.f32 %v7338_v43, 0.0  ;;  %v5407_v33 = vadd.f32 %v14966_v55, %v1023_v50  ;;  %v5535_v15 = vadd.f32 %v14988_v8, %v1151_v2  ;;  %v897_v8 = vld [vmem:[#allocation2 + $0x278] sm:$0xff]  ;;  %v10785_v43 = vld [vmem:[%s11136_s29 + $0x188] sm:$0xff] }
 0x46d   : > { %9002 = vst.msk [vmem:[%s11330_s10 + $0x32c] sm:$0xf] %vm8798_vm4, %v8489_v28  ;;  %v8745_v53 = vpack.c.bf16 %v8233_v57, %v8233_v57  ;;  %v15114_v27 = vpop.f32.mrf.mxu3  ;;  %v5663_v21 = vadd.f32 %v14990_v36, %v1279_v31  ;;  %v5280_v55 = vadd.f32 %v14995_v40, %v896_v24  ;;  %v5408_v17 = vadd.f32 %v14997_v38, %v1024_v5  ;;  %v10977_v13 = vld [vmem:[%s11136_s29 + $0x788] sm:$0xff] }
 0x46e   : > { %9130 = vst.msk [vmem:[%s11330_s10 + $0x52c] sm:$0xf] %vm8798_vm4, %v8617_v42  ;;  %v8362_v11 = vpack.c.bf16 %v7850_v19, %v7850_v19  ;;  %v5536_v32 = vadd.f32 %v15036_v56, %v1152_v59  ;;  %v5664_v36 = vadd.f32 %v15038_v26, %v1280_v52  ;;  %v5281_v40 = vadd.f32 %v15044_v30, %v897_v8 }
 0x46f   : > { %9258 = vst.msk [vmem:[%s11330_s10 + $0x72c] sm:$0xf] %vm8798_vm4, %v8745_v53  ;;  %v5409_v56 = vadd.f32 %v15046_v29, %v1025_v63  ;;  %v5537_v30 = vadd.f32 %v15075_v12, %v1153_v1  ;;  %v5665_v10 = vadd.f32 %v15077_v4, %v1281_v3  ;;  %v5282_v57 = vadd.f32 %v15082_v60, %v898_v23 }
 0x470   : > { %8875 = vst.msk [vmem:[%s11330_s10 + $0x130] sm:$0xf] %vm8798_vm4, %v8362_v11  ;;  %v15120_v9 = vpop.f32.mrf.mxu1 }
 0x471   : > { %5919 = vst.msk [vmem:[#allocation2 + $0x660] sm:$0xff] %vm305_vm3, %v5406_v44 }
 0x472   : > { %6047 = vst.msk [vmem:[#allocation2 + $0xa60] sm:$0xff] %vm305_vm3, %v5534_v58  ;;  %v15137_v35 = vpop.f32.mrf.mxu2 }
 0x473   : > { %6175 = vst.msk [vmem:[#allocation2 + $0xe60] sm:$0xff] %vm305_vm3, %v5662_v51  ;;  %v15144_v20 = vpop.f32.mrf.mxu0 }
 0x474   : > { %5792 = vst.msk [vmem:[#allocation2 + $0x268] sm:$0xff] %vm305_vm3, %v5279_v25 }
 0x475   : > { %5920 = vst.msk [vmem:[#allocation2 + $0x668] sm:$0xff] %vm305_vm3, %v5407_v33  ;;  %v15139_v26 = vpop.f32.mrf.mxu3  ;;  %10527 = vmatmul.msk.bf16.gmra.mxu0 %vm3137_vm2, %v10785_v43 }
 0x476   : > { %6048 = vst.msk [vmem:[#allocation2 + $0xa68] sm:$0xff] %vm305_vm3, %v5535_v15  ;;  %10591 = vmatmul.msk.bf16.gmra.mxu1 %vm3137_vm2, %v10849_v14 }
 0x477   : > { %6176 = vst.msk [vmem:[#allocation2 + $0xe68] sm:$0xff] %vm305_vm3, %v5663_v21  ;;  %10655 = vmatmul.msk.bf16.gmra.mxu2 %vm3137_vm2, %v10913_v41 }
 0x478   : > { %v6434_v34 = vld [vmem:[#allocation2 + $0x660] sm:$0xff]  ;;  %5793 = vst.msk [vmem:[#allocation2 + $0x270] sm:$0xff] %vm305_vm3, %v5280_v55  ;;  %v15146_v62 = vpop.f32.mrf.mxu1 }
 0x479   : > { %v6950_v61 = vmul.f32 %v14983_v6, %v6434_v34  ;;  %v6562_v38 = vld [vmem:[#allocation2 + $0xa60] sm:$0xff]  ;;  %5921 = vst.msk [vmem:[#allocation2 + $0x670] sm:$0xff] %vm305_vm3, %v5408_v17 }
 0x47a   : > { %v7078_v37 = vmul.f32 %v14983_v6, %v6562_v38  ;;  %v6690_v48 = vld [vmem:[#allocation2 + $0xe60] sm:$0xff]  ;;  %6049 = vst.msk [vmem:[#allocation2 + $0xa70] sm:$0xff] %vm305_vm3, %v5536_v32  ;;  %10719 = vmatmul.msk.bf16.gmra.mxu3 %vm3137_vm2, %v10977_v13  ;;  %v15180_v55 = vpop.f32.mrf.mxu2 }
 0x47b   : > { %v7466_v29 = vadd.f32 %v15002_v0, %v6950_v61  ;;  %v7206_v7 = vmul.f32 %v14983_v6, %v6690_v48  ;;  %v6307_v16 = vld [vmem:[#allocation2 + $0x268] sm:$0xff]  ;;  %6177 = vst.msk [vmem:[#allocation2 + $0xe70] sm:$0xff] %vm305_vm3, %v5664_v36  ;;  %v15188_v1 = vpop.f32.mrf.mxu0 }
 0x47c   : > { %v7594_v46 = vadd.f32 %v15002_v0, %v7078_v37  ;;  %v6823_v12 = vmul.f32 %v14983_v6, %v6307_v16  ;;  %v6435_v28 = vld [vmem:[#allocation2 + $0x668] sm:$0xff]  ;;  %5794 = vst.msk [vmem:[#allocation2 + $0x278] sm:$0xff] %vm305_vm3, %v5281_v40 }
 0x47d   : > { %v7978_v45 = vmax.f32 %v7466_v29, 0.0  ;;  %v7722_v42 = vadd.f32 %v15002_v0, %v7206_v7  ;;  %v6951_v19 = vmul.f32 %v14983_v6, %v6435_v28  ;;  %v6563_v54 = vld [vmem:[#allocation2 + $0xa68] sm:$0xff]  ;;  %5922 = vst.msk [vmem:[#allocation2 + $0x678] sm:$0xff] %vm305_vm3, %v5409_v56  ;;  %v15182_v52 = vpop.f32.mrf.mxu3 }
 0x47e   : > { %v8106_v4 = vmax.f32 %v7594_v46, 0.0  ;;  %v7339_v49 = vadd.f32 %v15002_v0, %v6823_v12  ;;  %v7079_v53 = vmul.f32 %v14983_v6, %v6563_v54  ;;  %v6691_v60 = vld [vmem:[#allocation2 + $0xe68] sm:$0xff]  ;;  %6050 = vst.msk [vmem:[#allocation2 + $0xa78] sm:$0xff] %vm305_vm3, %v5537_v30 }
 0x47f   : > { %v8490_v44 = vpack.c.bf16 %v7978_v45, %v7978_v45  ;;  %v8234_v18 = vmax.f32 %v7722_v42, 0.0  ;;  %v7467_v11 = vadd.f32 %v15002_v0, %v6951_v19  ;;  %v7207_v58 = vmul.f32 %v14983_v6, %v6691_v60  ;;  %v6308_v50 = vld [vmem:[#allocation2 + $0x270] sm:$0xff]  ;;  %6178 = vst.msk [vmem:[#allocation2 + $0xe78] sm:$0xff] %vm305_vm3, %v5665_v10 }
 0x480   : > { %v8618_v51 = vpack.c.bf16 %v8106_v4, %v8106_v4  ;;  %v7851_v2 = vmax.f32 %v7339_v49, 0.0  ;;  %v7595_v25 = vadd.f32 %v15002_v0, %v7079_v53  ;;  %v6824_v31 = vmul.f32 %v14983_v6, %v6308_v50  ;;  %v6436_v33 = vld [vmem:[#allocation2 + $0x670] sm:$0xff]  ;;  %5795 = vst.msk [vmem:[#allocation2 + $0x280] sm:$0xff] %vm305_vm3, %v5282_v57  ;;  %v15190_v34 = vpop.f32.mrf.mxu1 }
 0x481   : > { %9003 = vst.msk [vmem:[%s11330_s10 + $0x330] sm:$0xf] %vm8798_vm4, %v8490_v44  ;;  %v8746_v24 = vpack.c.bf16 %v8234_v18, %v8234_v18  ;;  %v7979_v15 = vmax.f32 %v7467_v11, 0.0  ;;  %v7723_v5 = vadd.f32 %v15002_v0, %v7207_v58  ;;  %v6952_v21 = vmul.f32 %v14983_v6, %v6436_v33  ;;  %v6564_v59 = vld [vmem:[#allocation2 + $0xa70] sm:$0xff]  ;;  %v1154_v33 = vld [vmem:[#allocation2 + $0xa80] sm:$0xff] }
 0x482   : > { %9131 = vst.msk [vmem:[%s11330_s10 + $0x530] sm:$0xf] %vm8798_vm4, %v8618_v51  ;;  %v8363_v17 = vpack.c.bf16 %v7851_v2, %v7851_v2  ;;  %v8107_v8 = vmax.f32 %v7595_v25, 0.0  ;;  %v7340_v32 = vadd.f32 %v15002_v0, %v6824_v31  ;;  %v7080_v63 = vmul.f32 %v14983_v6, %v6564_v59  ;;  %v6692_v36 = vld [vmem:[#allocation2 + $0xe70] sm:$0xff]  ;;  %v15219_v58 = vpop.f32.mrf.mxu2  ;;  %v1026_v31 = vld [vmem:[#allocation2 + $0x680] sm:$0xff] }
 0x483   : > { %9259 = vst.msk [vmem:[%s11330_s10 + $0x730] sm:$0xf] %vm8798_vm4, %v8746_v24  ;;  %v8491_v40 = vpack.c.bf16 %v7979_v15, %v7979_v15  ;;  %v8235_v3 = vmax.f32 %v7723_v5, 0.0  ;;  %v7468_v61 = vadd.f32 %v15002_v0, %v6952_v21  ;;  %v7208_v38 = vmul.f32 %v14983_v6, %v6692_v36  ;;  %v6309_v56 = vld [vmem:[#allocation2 + $0x278] sm:$0xff]  ;;  %v15226_v24 = vpop.f32.mrf.mxu0  ;;  %v10786_v59 = vld [vmem:[%s11136_s29 + $0x190] sm:$0xff]  ;;  %v1282_v36 = vld [vmem:[#allocation2 + $0xe80] sm:$0xff] }
 0x484   : > { %8876 = vst.msk [vmem:[%s11330_s10 + $0x134] sm:$0xf] %vm8798_vm4, %v8363_v17  ;;  %v8619_v23 = vpack.c.bf16 %v8107_v8, %v8107_v8  ;;  %v7852_v37 = vmax.f32 %v7340_v32, 0.0  ;;  %v7596_v48 = vadd.f32 %v15002_v0, %v7080_v63  ;;  %v6825_v30 = vmul.f32 %v14983_v6, %v6309_v56  ;;  %v6437_v29 = vld [vmem:[#allocation2 + $0x678] sm:$0xff]  ;;  %v10850_v17 = vld [vmem:[%s11136_s29 + $0x390] sm:$0xff] }
 0x485   : > { %9004 = vst.msk [vmem:[%s11330_s10 + $0x334] sm:$0xf] %vm8798_vm4, %v8491_v40  ;;  %v8747_v7 = vpack.c.bf16 %v8235_v3, %v8235_v3  ;;  %v7980_v16 = vmax.f32 %v7468_v61, 0.0  ;;  %v7724_v10 = vadd.f32 %v15002_v0, %v7208_v38  ;;  %v6953_v43 = vmul.f32 %v14983_v6, %v6437_v29  ;;  %v6565_v14 = vld [vmem:[#allocation2 + $0xa78] sm:$0xff]  ;;  %v15221_v50 = vpop.f32.mrf.mxu3  ;;  %v10914_v8 = vld [vmem:[%s11136_s29 + $0x590] sm:$0xff]  ;;  %v899_v38 = vld [vmem:[#allocation2 + $0x288] sm:$0xff]  ;;  %10528 = vmatmul.msk.bf16.gmra.mxu0 %vm3137_vm2, %v10786_v59 }
 0x486   : > { %9132 = vst.msk [vmem:[%s11330_s10 + $0x534] sm:$0xf] %vm8798_vm4, %v8619_v23  ;;  %v8364_v46 = vpack.c.bf16 %v7852_v37, %v7852_v37  ;;  %v8108_v12 = vmax.f32 %v7596_v48, 0.0  ;;  %v7341_v28 = vadd.f32 %v15002_v0, %v6825_v30  ;;  %v7081_v57 = vmul.f32 %v14983_v6, %v6565_v14  ;;  %v6693_v41 = vld [vmem:[#allocation2 + $0xe78] sm:$0xff]  ;;  %v10978_v40 = vld [vmem:[%s11136_s29 + $0x790] sm:$0xff]  ;;  %10592 = vmatmul.msk.bf16.gmra.mxu1 %vm3137_vm2, %v10850_v17  ;;  %v1027_v37 = vld [vmem:[#allocation2 + $0x688] sm:$0xff] }
 0x487   : > { %9260 = vst.msk [vmem:[%s11330_s10 + $0x734] sm:$0xf] %vm8798_vm4, %v8747_v7  ;;  %v8492_v13 = vpack.c.bf16 %v7980_v16, %v7980_v16  ;;  %v8236_v45 = vmax.f32 %v7724_v10, 0.0  ;;  %v7469_v42 = vadd.f32 %v15002_v0, %v6953_v43  ;;  %v7209_v19 = vmul.f32 %v14983_v6, %v6693_v41  ;;  %v6310_v54 = vld [vmem:[#allocation2 + $0x280] sm:$0xff]  ;;  %10656 = vmatmul.msk.bf16.gmra.mxu2 %vm3137_vm2, %v10914_v8  ;;  %v1283_v29 = vld [vmem:[#allocation2 + $0xe88] sm:$0xff]  ;;  %v10915_v59 = vld [vmem:[%s11136_s29 + $0x598] sm:$0xff] }
 0x488   : > { %8877 = vst.msk [vmem:[%s11330_s10 + $0x138] sm:$0xf] %vm8798_vm4, %v8364_v46  ;;  %v8620_v4 = vpack.c.bf16 %v8108_v12, %v8108_v12  ;;  %v7853_v49 = vmax.f32 %v7341_v28, 0.0  ;;  %v7597_v53 = vadd.f32 %v15002_v0, %v7081_v57  ;;  %v6826_v60 = vmul.f32 %v14983_v6, %v6310_v54  ;;  %v15228_v15 = vpop.f32.mrf.mxu1  ;;  %v1156_v12 = vld [vmem:[#allocation2 + $0xa90] sm:$0xff]  ;;  %v10979_v17 = vld [vmem:[%s11136_s29 + $0x798] sm:$0xff] }
 0x489   : > { %9005 = vst.msk [vmem:[%s11330_s10 + $0x338] sm:$0xf] %vm8798_vm4, %v8492_v13  ;;  %v8748_v44 = vpack.c.bf16 %v8236_v45, %v8236_v45  ;;  %v7981_v18 = vmax.f32 %v7469_v42, 0.0  ;;  %v7725_v11 = vadd.f32 %v15002_v0, %v7209_v19  ;;  %v5410_v61 = vadd.f32 %v15084_v39, %v1026_v31  ;;  %v1155_v39 = vld [vmem:[#allocation2 + $0xa88] sm:$0xff]  ;;  %v1284_v28 = vld [vmem:[#allocation2 + $0xe90] sm:$0xff]  ;;  %v1029_v13 = vld [vmem:[#allocation2 + $0x698] sm:$0xff] }
 0x48a   : > { %9133 = vst.msk [vmem:[%s11330_s10 + $0x538] sm:$0xf] %vm8798_vm4, %v8620_v4  ;;  %v8365_v51 = vpack.c.bf16 %v7853_v49, %v7853_v49  ;;  %v8109_v2 = vmax.f32 %v7597_v53, 0.0  ;;  %v7342_v25 = vadd.f32 %v15002_v0, %v6826_v60  ;;  %v5538_v23 = vadd.f32 %v15112_v47, %v1154_v33  ;;  %10720 = vmatmul.msk.bf16.gmra.mxu3 %vm3137_vm2, %v10978_v40  ;;  %v900_v47 = vld [vmem:[#allocation2 + $0x290] sm:$0xff]  ;;  %v15256_v16 = vpop.f32.mrf.mxu2  ;;  %v1157_v45 = vld [vmem:[#allocation2 + $0xa98] sm:$0xff]  ;;  %v902_v4 = vld [vmem:[#allocation2 + $0x2a0] sm:$0xff] }
 0x48b   : > { %9261 = vst.msk [vmem:[%s11330_s10 + $0x738] sm:$0xf] %vm8798_vm4, %v8748_v44  ;;  %v8493_v5 = vpack.c.bf16 %v7981_v18, %v7981_v18  ;;  %v8237_v21 = vmax.f32 %v7725_v11, 0.0  ;;  %v5666_v48 = vadd.f32 %v15114_v27, %v1282_v36  ;;  %v5283_v30 = vadd.f32 %v15118_v22, %v899_v38  ;;  %v1028_v27 = vld [vmem:[#allocation2 + $0x690] sm:$0xff]  ;;  %v15262_v14 = vpop.f32.mrf.mxu0  ;;  %v1285_v19 = vld [vmem:[#allocation2 + $0xe98] sm:$0xff] }
 0x48c   : > { %8878 = vst.msk [vmem:[%s11330_s10 + $0x13c] sm:$0xf] %vm8798_vm4, %v8365_v51  ;;  %v8621_v32 = vpack.c.bf16 %v8109_v2, %v8109_v2  ;;  %v7854_v63 = vmax.f32 %v7342_v25, 0.0  ;;  %v5411_v7 = vadd.f32 %v15120_v9, %v1027_v37  ;;  %v5539_v43 = vadd.f32 %v15137_v35, %v1155_v39  ;;  %v901_v35 = vld [vmem:[#allocation2 + $0x298] sm:$0xff] }
 0x48d   : > { %9006 = vst.msk [vmem:[%s11330_s10 + $0x33c] sm:$0xf] %vm8798_vm4, %v8493_v5  ;;  %v8749_v3 = vpack.c.bf16 %v8237_v21, %v8237_v21  ;;  %v15258_v10 = vpop.f32.mrf.mxu3  ;;  %v5667_v22 = vadd.f32 %v15139_v26, %v1283_v29  ;;  %v5284_v9 = vadd.f32 %v15144_v20, %v900_v47  ;;  %v5412_v57 = vadd.f32 %v15146_v62, %v1028_v27  ;;  %v10787_v25 = vld [vmem:[%s11136_s29 + $0x198] sm:$0xff] }
 0x48e   : > { %9134 = vst.msk [vmem:[%s11330_s10 + $0x53c] sm:$0xf] %vm8798_vm4, %v8621_v32  ;;  %v8366_v56 = vpack.c.bf16 %v7854_v63, %v7854_v63  ;;  %v5540_v41 = vadd.f32 %v15180_v55, %v1156_v12  ;;  %v5668_v26 = vadd.f32 %v15182_v52, %v1284_v28  ;;  %v5285_v20 = vadd.f32 %v15188_v1, %v901_v35  ;;  %v10851_v31 = vld [vmem:[%s11136_s29 + $0x398] sm:$0xff] }
 0x48f   : > { %9262 = vst.msk [vmem:[%s11330_s10 + $0x73c] sm:$0xf] %vm8798_vm4, %v8749_v3  ;;  %v5413_v55 = vadd.f32 %v15190_v34, %v1029_v13  ;;  %v5541_v1 = vadd.f32 %v15219_v58, %v1157_v45  ;;  %v5669_v2 = vadd.f32 %v15221_v50, %v1285_v19  ;;  %v5286_v21 = vadd.f32 %v15226_v24, %v902_v4 }
 0x490   : > { %8879 = vst.msk [vmem:[%s11330_s10 + $0x140] sm:$0xf] %vm8798_vm4, %v8366_v56  ;;  %v15264_v46 = vpop.f32.mrf.mxu1 }
 0x491   : > { %5923 = vst.msk [vmem:[#allocation2 + $0x680] sm:$0xff] %vm305_vm3, %v5410_v61 }
 0x492   : > { %6051 = vst.msk [vmem:[#allocation2 + $0xa80] sm:$0xff] %vm305_vm3, %v5538_v23  ;;  %v15281_v49 = vpop.f32.mrf.mxu2 }
 0x493   : > { %6179 = vst.msk [vmem:[#allocation2 + $0xe80] sm:$0xff] %vm305_vm3, %v5666_v48  ;;  %v15288_v44 = vpop.f32.mrf.mxu0 }
 0x494   : > { %5796 = vst.msk [vmem:[#allocation2 + $0x288] sm:$0xff] %vm305_vm3, %v5283_v30 }
 0x495   : > { %5924 = vst.msk [vmem:[#allocation2 + $0x688] sm:$0xff] %vm305_vm3, %v5411_v7  ;;  %v15283_v52 = vpop.f32.mrf.mxu3  ;;  %10529 = vmatmul.msk.bf16.gmra.mxu0 %vm3137_vm2, %v10787_v25 }
 0x496   : > { %6052 = vst.msk [vmem:[#allocation2 + $0xa88] sm:$0xff] %vm305_vm3, %v5539_v43  ;;  %10593 = vmatmul.msk.bf16.gmra.mxu1 %vm3137_vm2, %v10851_v31 }
 0x497   : > { %6180 = vst.msk [vmem:[#allocation2 + $0xe88] sm:$0xff] %vm305_vm3, %v5667_v22  ;;  %10657 = vmatmul.msk.bf16.gmra.mxu2 %vm3137_vm2, %v10915_v59 }
 0x498   : > { %v6438_v42 = vld [vmem:[#allocation2 + $0x680] sm:$0xff]  ;;  %5797 = vst.msk [vmem:[#allocation2 + $0x290] sm:$0xff] %vm305_vm3, %v5284_v9  ;;  %v15290_v18 = vpop.f32.mrf.mxu1 }
 0x499   : > { %v6954_v54 = vmul.f32 %v14983_v6, %v6438_v42  ;;  %v6566_v62 = vld [vmem:[#allocation2 + $0xa80] sm:$0xff]  ;;  %5925 = vst.msk [vmem:[#allocation2 + $0x690] sm:$0xff] %vm305_vm3, %v5412_v57 }
 0x49a   : > { %v7082_v53 = vmul.f32 %v14983_v6, %v6566_v62  ;;  %v6694_v60 = vld [vmem:[#allocation2 + $0xe80] sm:$0xff]  ;;  %6053 = vst.msk [vmem:[#allocation2 + $0xa90] sm:$0xff] %vm305_vm3, %v5540_v41  ;;  %10721 = vmatmul.msk.bf16.gmra.mxu3 %vm3137_vm2, %v10979_v17  ;;  %v15324_v9 = vpop.f32.mrf.mxu2 }
 0x49b   : > { %v7470_v34 = vadd.f32 %v15002_v0, %v6954_v54  ;;  %v7210_v11 = vmul.f32 %v14983_v6, %v6694_v60  ;;  %v6311_v51 = vld [vmem:[#allocation2 + $0x288] sm:$0xff]  ;;  %6181 = vst.msk [vmem:[#allocation2 + $0xe90] sm:$0xff] %vm305_vm3, %v5668_v26  ;;  %v15332_v45 = vpop.f32.mrf.mxu0 }
 0x49c   : > { %v7598_v33 = vadd.f32 %v15002_v0, %v7082_v53  ;;  %v6827_v58 = vmul.f32 %v14983_v6, %v6311_v51  ;;  %v6439_v5 = vld [vmem:[#allocation2 + $0x688] sm:$0xff]  ;;  %5798 = vst.msk [vmem:[#allocation2 + $0x298] sm:$0xff] %vm305_vm3, %v5285_v20 }
 0x49d   : > { %v7982_v8 = vmax.f32 %v7470_v34, 0.0  ;;  %v7726_v32 = vadd.f32 %v15002_v0, %v7210_v11  ;;  %v6955_v63 = vmul.f32 %v14983_v6, %v6439_v5  ;;  %v6567_v36 = vld [vmem:[#allocation2 + $0xa88] sm:$0xff]  ;;  %5926 = vst.msk [vmem:[#allocation2 + $0x698] sm:$0xff] %vm305_vm3, %v5413_v55  ;;  %v15326_v28 = vpop.f32.mrf.mxu3 }
 0x49e   : > { %v8110_v50 = vmax.f32 %v7598_v33, 0.0  ;;  %v7343_v40 = vadd.f32 %v15002_v0, %v6827_v58  ;;  %v7083_v3 = vmul.f32 %v14983_v6, %v6567_v36  ;;  %v6695_v24 = vld [vmem:[#allocation2 + $0xe88] sm:$0xff]  ;;  %6054 = vst.msk [vmem:[#allocation2 + $0xa98] sm:$0xff] %vm305_vm3, %v5541_v1 }
 0x49f   : > { %v8494_v61 = vpack.c.bf16 %v7982_v8, %v7982_v8  ;;  %v8238_v38 = vmax.f32 %v7726_v32, 0.0  ;;  %v7471_v56 = vadd.f32 %v15002_v0, %v6955_v63  ;;  %v7211_v23 = vmul.f32 %v14983_v6, %v6695_v24  ;;  %v6312_v37 = vld [vmem:[#allocation2 + $0x290] sm:$0xff]  ;;  %6182 = vst.msk [vmem:[#allocation2 + $0xe98] sm:$0xff] %vm305_vm3, %v5669_v2 }
 0x4a0   : > { %v8622_v48 = vpack.c.bf16 %v8110_v50, %v8110_v50  ;;  %v7855_v39 = vmax.f32 %v7343_v40, 0.0  ;;  %v7599_v30 = vadd.f32 %v15002_v0, %v7083_v3  ;;  %v6828_v29 = vmul.f32 %v14983_v6, %v6312_v37  ;;  %v6440_v7 = vld [vmem:[#allocation2 + $0x690] sm:$0xff]  ;;  %5799 = vst.msk [vmem:[#allocation2 + $0x2a0] sm:$0xff] %vm305_vm3, %v5286_v21  ;;  %v15334_v42 = vpop.f32.mrf.mxu1 }
 0x4a1   : > { %9007 = vst.msk [vmem:[%s11330_s10 + $0x340] sm:$0xf] %vm8798_vm4, %v8494_v61  ;;  %v8750_v47 = vpack.c.bf16 %v8238_v38, %v8238_v38  ;;  %v7983_v43 = vmax.f32 %v7471_v56, 0.0  ;;  %v7727_v27 = vadd.f32 %v15002_v0, %v7211_v23  ;;  %v6956_v22 = vmul.f32 %v14983_v6, %v6440_v7  ;;  %v6568_v12 = vld [vmem:[#allocation2 + $0xa90] sm:$0xff] }
 0x4a2   : > { %9135 = vst.msk [vmem:[%s11330_s10 + $0x540] sm:$0xf] %vm8798_vm4, %v8622_v48  ;;  %v8367_v57 = vpack.c.bf16 %v7855_v39, %v7855_v39  ;;  %v8111_v35 = vmax.f32 %v7599_v30, 0.0  ;;  %v7344_v41 = vadd.f32 %v15002_v0, %v6828_v29  ;;  %v7084_v13 = vmul.f32 %v14983_v6, %v6568_v12  ;;  %v6696_v26 = vld [vmem:[#allocation2 + $0xe90] sm:$0xff]  ;;  %v15363_v23 = vpop.f32.mrf.mxu2  ;;  %v1030_v30 = vld [vmem:[#allocation2 + $0x6a0] sm:$0xff] }
 0x4a3   : > { %9263 = vst.msk [vmem:[%s11330_s10 + $0x740] sm:$0xf] %vm8798_vm4, %v8750_v47  ;;  %v8495_v20 = vpack.c.bf16 %v7983_v43, %v7983_v43  ;;  %v8239_v19 = vmax.f32 %v7727_v27, 0.0  ;;  %v7472_v54 = vadd.f32 %v15002_v0, %v6956_v22  ;;  %v7212_v62 = vmul.f32 %v14983_v6, %v6696_v26  ;;  %v6313_v55 = vld [vmem:[#allocation2 + $0x298] sm:$0xff]  ;;  %v1158_v29 = vld [vmem:[#allocation2 + $0xaa0] sm:$0xff]  ;;  %v15370_v7 = vpop.f32.mrf.mxu0 }
 0x4a4   : > { %8880 = vst.msk [vmem:[%s11330_s10 + $0x144] sm:$0xf] %vm8798_vm4, %v8367_v57  ;;  %v8623_v4 = vpack.c.bf16 %v8111_v35, %v8111_v35  ;;  %v7856_v53 = vmax.f32 %v7344_v41, 0.0  ;;  %v7600_v60 = vadd.f32 %v15002_v0, %v7084_v13  ;;  %v6829_v1 = vmul.f32 %v14983_v6, %v6313_v55  ;;  %v6441_v34 = vld [vmem:[#allocation2 + $0x698] sm:$0xff]  ;;  %v10788_v22 = vld [vmem:[%s11136_s29 + $0x1a0] sm:$0xff]  ;;  %v1031_v55 = vld [vmem:[#allocation2 + $0x6a8] sm:$0xff] }
 0x4a5   : > { %9008 = vst.msk [vmem:[%s11330_s10 + $0x344] sm:$0xf] %vm8798_vm4, %v8495_v20  ;;  %v8751_v11 = vpack.c.bf16 %v8239_v19, %v8239_v19  ;;  %v7984_v51 = vmax.f32 %v7472_v54, 0.0  ;;  %v7728_v2 = vadd.f32 %v15002_v0, %v7212_v62  ;;  %v6957_v25 = vmul.f32 %v14983_v6, %v6441_v34  ;;  %v6569_v31 = vld [vmem:[#allocation2 + $0xa98] sm:$0xff]  ;;  %v15365_v37 = vpop.f32.mrf.mxu3  ;;  %v10852_v12 = vld [vmem:[%s11136_s29 + $0x3a0] sm:$0xff]  ;;  %v903_v19 = vld [vmem:[#allocation2 + $0x2a8] sm:$0xff]  ;;  %10530 = vmatmul.msk.bf16.gmra.mxu0 %vm3137_vm2, %v10788_v22 }
 0x4a6   : > { %9136 = vst.msk [vmem:[%s11330_s10 + $0x544] sm:$0xf] %vm8798_vm4, %v8623_v4  ;;  %v8368_v33 = vpack.c.bf16 %v7856_v53, %v7856_v53  ;;  %v8112_v58 = vmax.f32 %v7600_v60, 0.0  ;;  %v7345_v5 = vadd.f32 %v15002_v0, %v6829_v1  ;;  %v7085_v21 = vmul.f32 %v14983_v6, %v6569_v31  ;;  %v6697_v59 = vld [vmem:[#allocation2 + $0xe98] sm:$0xff]  ;;  %v10916_v57 = vld [vmem:[%s11136_s29 + $0x5a0] sm:$0xff]  ;;  %10594 = vmatmul.msk.bf16.gmra.mxu1 %vm3137_vm2, %v10852_v12  ;;  %v1287_v60 = vld [vmem:[#allocation2 + $0xea8] sm:$0xff] }
 0x4a7   : > { %9264 = vst.msk [vmem:[%s11330_s10 + $0x744] sm:$0xf] %vm8798_vm4, %v8751_v11  ;;  %v8496_v17 = vpack.c.bf16 %v7984_v51, %v7984_v51  ;;  %v8240_v8 = vmax.f32 %v7728_v2, 0.0  ;;  %v7473_v32 = vadd.f32 %v15002_v0, %v6957_v25  ;;  %v7213_v63 = vmul.f32 %v14983_v6, %v6697_v59  ;;  %v6314_v36 = vld [vmem:[#allocation2 + $0x2a0] sm:$0xff]  ;;  %10658 = vmatmul.msk.bf16.gmra.mxu2 %vm3137_vm2, %v10916_v57  ;;  %v1160_v31 = vld [vmem:[#allocation2 + $0xab0] sm:$0xff]  ;;  %v1161_v59 = vld [vmem:[#allocation2 + $0xab8] sm:$0xff] }
 0x4a8   : > { %8881 = vst.msk [vmem:[%s11330_s10 + $0x148] sm:$0xf] %vm8798_vm4, %v8368_v33  ;;  %v8624_v50 = vpack.c.bf16 %v8112_v58, %v8112_v58  ;;  %v7857_v40 = vmax.f32 %v7345_v5, 0.0  ;;  %v7601_v3 = vadd.f32 %v15002_v0, %v7085_v21  ;;  %v6830_v24 = vmul.f32 %v14983_v6, %v6314_v36  ;;  %v15372_v47 = vpop.f32.mrf.mxu1  ;;  %v1286_v41 = vld [vmem:[#allocation2 + $0xea0] sm:$0xff]  ;;  %v1288_v33 = vld [vmem:[#allocation2 + $0xeb0] sm:$0xff]  ;;  %v1033_v21 = vld [vmem:[#allocation2 + $0x6b8] sm:$0xff] }
 0x4a9   : > { %9009 = vst.msk [vmem:[%s11330_s10 + $0x348] sm:$0xf] %vm8798_vm4, %v8496_v17  ;;  %v8752_v61 = vpack.c.bf16 %v8240_v8, %v8240_v8  ;;  %v7985_v38 = vmax.f32 %v7473_v32, 0.0  ;;  %v7729_v56 = vadd.f32 %v15002_v0, %v7213_v63  ;;  %v10980_v13 = vld [vmem:[%s11136_s29 + $0x7a0] sm:$0xff]  ;;  %v5414_v20 = vadd.f32 %v15228_v15, %v1030_v30  ;;  %v1159_v15 = vld [vmem:[#allocation2 + $0xaa8] sm:$0xff]  ;;  %v1289_v8 = vld [vmem:[#allocation2 + $0xeb8] sm:$0xff] }
 0x4aa   : > { %9137 = vst.msk [vmem:[%s11330_s10 + $0x548] sm:$0xf] %vm8798_vm4, %v8624_v50  ;;  %v8369_v48 = vpack.c.bf16 %v7857_v40, %v7857_v40  ;;  %v8113_v39 = vmax.f32 %v7601_v3, 0.0  ;;  %v7346_v6 = vadd.f32 %v15002_v0, %v6830_v24  ;;  %v5542_v62 = vadd.f32 %v15256_v16, %v1158_v29  ;;  %10722 = vmatmul.msk.bf16.gmra.mxu3 %vm3137_vm2, %v10980_v13  ;;  %v904_v16 = vld [vmem:[#allocation2 + $0x2b0] sm:$0xff]  ;;  %v15400_v34 = vpop.f32.mrf.mxu2  ;;  %v10917_v22 = vld [vmem:[%s11136_s29 + $0x5a8] sm:$0xff] }
 0x4ab   : > { %9265 = vst.msk [vmem:[%s11330_s10 + $0x748] sm:$0xf] %vm8798_vm4, %v8752_v61  ;;  %v8497_v43 = vpack.c.bf16 %v7985_v38, %v7985_v38  ;;  %v8241_v27 = vmax.f32 %v7729_v56, 0.0  ;;  %v5670_v4 = vadd.f32 %v15258_v10, %v1286_v41  ;;  %v5287_v53 = vadd.f32 %v15262_v14, %v903_v19  ;;  %v1032_v10 = vld [vmem:[#allocation2 + $0x6b0] sm:$0xff]  ;;  %v15406_v2 = vpop.f32.mrf.mxu0  ;;  %v10981_v12 = vld [vmem:[%s11136_s29 + $0x7a8] sm:$0xff] }
 0x4ac   : > { %8882 = vst.msk [vmem:[%s11330_s10 + $0x14c] sm:$0xf] %vm8798_vm4, %v8369_v48  ;;  %v8625_v35 = vpack.c.bf16 %v8113_v39, %v8113_v39  ;;  %v7858_v0 = vmax.f32 %v7346_v6, 0.0  ;;  %v5415_v1 = vadd.f32 %v15264_v46, %v1031_v55  ;;  %v5543_v51 = vadd.f32 %v15281_v49, %v1159_v15  ;;  %v905_v49 = vld [vmem:[#allocation2 + $0x2b8] sm:$0xff]  ;;  %v10789_v39 = vld [vmem:[%s11136_s29 + $0x1a8] sm:$0xff] }
 0x4ad   : > { %9010 = vst.msk [vmem:[%s11330_s10 + $0x34c] sm:$0xf] %vm8798_vm4, %v8497_v43  ;;  %v8753_v26 = vpack.c.bf16 %v8241_v27, %v8241_v27  ;;  %v15402_v11 = vpop.f32.mrf.mxu3  ;;  %v5671_v14 = vadd.f32 %v15283_v52, %v1287_v60  ;;  %v5288_v46 = vadd.f32 %v15288_v44, %v904_v16  ;;  %v5416_v58 = vadd.f32 %v15290_v18, %v1032_v10  ;;  %v15425_v18 = vld [vmem:[%s16857_s2] ss:$0 sm:$0xff]  ;;  %v10853_v6 = vld [vmem:[%s11136_s29 + $0x3a8] sm:$0xff] }
 0x4ae   : > { %9138 = vst.msk [vmem:[%s11330_s10 + $0x54c] sm:$0xf] %vm8798_vm4, %v8625_v35  ;;  %v8370_v54 = vpack.c.bf16 %v7858_v0, %v7858_v0  ;;  %v5544_v5 = vadd.f32 %v15324_v9, %v1160_v31  ;;  %v5672_v52 = vadd.f32 %v15326_v28, %v1288_v33  ;;  %v5289_v44 = vadd.f32 %v15332_v45, %v905_v49  ;;  %v906_v28 = vld [vmem:[#allocation2 + $0x2c0] sm:$0xff] }
 0x4af   : > { %9266 = vst.msk [vmem:[%s11330_s10 + $0x74c] sm:$0xf] %vm8798_vm4, %v8753_v26  ;;  %v5417_v63 = vadd.f32 %v15334_v42, %v1033_v21  ;;  %v5545_v3 = vadd.f32 %v15363_v23, %v1161_v59  ;;  %v15444_v42 = vld [vmem:[%s16858_s3] ss:$0 sm:$0xff]  ;;  %v5673_v23 = vadd.f32 %v15365_v37, %v1289_v8  ;;  %v5290_v27 = vadd.f32 %v15370_v7, %v906_v28 }
 0x4b0   : > { %8883 = vst.msk [vmem:[%s11330_s10 + $0x150] sm:$0xf] %vm8798_vm4, %v8370_v54  ;;  %v15408_v25 = vpop.f32.mrf.mxu1 }
 0x4b1   : > { %5927 = vst.msk [vmem:[#allocation2 + $0x6a0] sm:$0xff] %vm305_vm3, %v5414_v20 }
 0x4b2   : > { %6055 = vst.msk [vmem:[#allocation2 + $0xaa0] sm:$0xff] %vm305_vm3, %v5542_v62  ;;  %v15430_v36 = vpop.f32.mrf.mxu2 }
 0x4b3   : > { %6183 = vst.msk [vmem:[#allocation2 + $0xea0] sm:$0xff] %vm305_vm3, %v5670_v4  ;;  %v15437_v24 = vpop.f32.mrf.mxu0 }
 0x4b4   : > { %5800 = vst.msk [vmem:[#allocation2 + $0x2a8] sm:$0xff] %vm305_vm3, %v5287_v53 }
 0x4b5   : > { %5928 = vst.msk [vmem:[#allocation2 + $0x6a8] sm:$0xff] %vm305_vm3, %v5415_v1  ;;  %v15432_v50 = vpop.f32.mrf.mxu3  ;;  %10531 = vmatmul.msk.bf16.gmra.mxu0 %vm3137_vm2, %v10789_v39 }
 0x4b6   : > { %6056 = vst.msk [vmem:[#allocation2 + $0xaa8] sm:$0xff] %vm305_vm3, %v5543_v51  ;;  %10595 = vmatmul.msk.bf16.gmra.mxu1 %vm3137_vm2, %v10853_v6 }
 0x4b7   : > { %6184 = vst.msk [vmem:[#allocation2 + $0xea8] sm:$0xff] %vm305_vm3, %v5671_v14  ;;  %10659 = vmatmul.msk.bf16.gmra.mxu2 %vm3137_vm2, %v10917_v22 }
 0x4b8   : > { %v6442_v17 = vld [vmem:[#allocation2 + $0x6a0] sm:$0xff]  ;;  %5801 = vst.msk [vmem:[#allocation2 + $0x2b0] sm:$0xff] %vm305_vm3, %v5288_v46  ;;  %v15439_v61 = vpop.f32.mrf.mxu1 }
 0x4b9   : > { %v6958_v32 = vmul.f32 %v15425_v18, %v6442_v17  ;;  %v6570_v9 = vld [vmem:[#allocation2 + $0xaa0] sm:$0xff]  ;;  %5929 = vst.msk [vmem:[#allocation2 + $0x6b0] sm:$0xff] %vm305_vm3, %v5416_v58 }
 0x4ba   : > { %v7086_v45 = vmul.f32 %v15425_v18, %v6570_v9  ;;  %v6698_v40 = vld [vmem:[#allocation2 + $0xea0] sm:$0xff]  ;;  %6057 = vst.msk [vmem:[#allocation2 + $0xab0] sm:$0xff] %vm305_vm3, %v5544_v5  ;;  %10723 = vmatmul.msk.bf16.gmra.mxu3 %vm3137_vm2, %v10981_v12  ;;  %v15478_v46 = vpop.f32.mrf.mxu2 }
 0x4bb   : > { %v7474_v38 = vadd.f32 %v15444_v42, %v6958_v32  ;;  %v7214_v56 = vmul.f32 %v15425_v18, %v6698_v40  ;;  %v6315_v48 = vld [vmem:[#allocation2 + $0x2a8] sm:$0xff]  ;;  %6185 = vst.msk [vmem:[#allocation2 + $0xeb0] sm:$0xff] %vm305_vm3, %v5672_v52  ;;  %v15486_v59 = vpop.f32.mrf.mxu0 }
 0x4bc   : > { %v7602_v30 = vadd.f32 %v15444_v42, %v7086_v45  ;;  %v6831_v29 = vmul.f32 %v15425_v18, %v6315_v48  ;;  %v6443_v43 = vld [vmem:[#allocation2 + $0x6a8] sm:$0xff]  ;;  %5802 = vst.msk [vmem:[#allocation2 + $0x2b8] sm:$0xff] %vm305_vm3, %v5289_v44 }
 0x4bd   : > { %v7986_v57 = vmax.f32 %v7474_v38, 0.0  ;;  %v7730_v35 = vadd.f32 %v15444_v42, %v7214_v56  ;;  %v6959_v0 = vmul.f32 %v15425_v18, %v6443_v43  ;;  %v6571_v41 = vld [vmem:[#allocation2 + $0xaa8] sm:$0xff]  ;;  %5930 = vst.msk [vmem:[#allocation2 + $0x6b8] sm:$0xff] %vm305_vm3, %v5417_v63  ;;  %v15480_v33 = vpop.f32.mrf.mxu3 }
 0x4be   : > { %v8114_v37 = vmax.f32 %v7602_v30, 0.0  ;;  %v7347_v13 = vadd.f32 %v15444_v42, %v6831_v29  ;;  %v7087_v26 = vmul.f32 %v15425_v18, %v6571_v41  ;;  %v6699_v7 = vld [vmem:[#allocation2 + $0xea8] sm:$0xff]  ;;  %6058 = vst.msk [vmem:[#allocation2 + $0xab8] sm:$0xff] %vm305_vm3, %v5545_v3 }
 0x4bf   : > { %v8498_v20 = vpack.c.bf16 %v7986_v57, %v7986_v57  ;;  %v8242_v19 = vmax.f32 %v7730_v35, 0.0  ;;  %v7475_v54 = vadd.f32 %v15444_v42, %v6959_v0  ;;  %v7215_v62 = vmul.f32 %v15425_v18, %v6699_v7  ;;  %v6316_v55 = vld [vmem:[#allocation2 + $0x2b0] sm:$0xff]  ;;  %6186 = vst.msk [vmem:[#allocation2 + $0xeb8] sm:$0xff] %vm305_vm3, %v5673_v23 }
 0x4c0   : > { %v8626_v4 = vpack.c.bf16 %v8114_v37, %v8114_v37  ;;  %v7859_v15 = vmax.f32 %v7347_v13, 0.0  ;;  %v7603_v53 = vadd.f32 %v15444_v42, %v7087_v26  ;;  %v6832_v60 = vmul.f32 %v15425_v18, %v6316_v55  ;;  %v6444_v1 = vld [vmem:[#allocation2 + $0x6b0] sm:$0xff]  ;;  %5803 = vst.msk [vmem:[#allocation2 + $0x2c0] sm:$0xff] %vm305_vm3, %v5290_v27  ;;  %v15488_v17 = vpop.f32.mrf.mxu1 }
 0x4c1   : > { %9011 = vst.msk [vmem:[%s11330_s10 + $0x350] sm:$0xf] %vm8798_vm4, %v8498_v20  ;;  %v8754_v16 = vpack.c.bf16 %v8242_v19, %v8242_v19  ;;  %v7987_v51 = vmax.f32 %v7475_v54, 0.0  ;;  %v7731_v10 = vadd.f32 %v15444_v42, %v7215_v62  ;;  %v6960_v14 = vmul.f32 %v15425_v18, %v6444_v1  ;;  %v6572_v31 = vld [vmem:[#allocation2 + $0xab0] sm:$0xff]  ;;  %v1162_v1 = vld [vmem:[#allocation2 + $0xac0] sm:$0xff] }
 0x4c2   : > { %9139 = vst.msk [vmem:[%s11330_s10 + $0x550] sm:$0xf] %vm8798_vm4, %v8626_v4  ;;  %v8371_v58 = vpack.c.bf16 %v7859_v15, %v7859_v15  ;;  %v8115_v49 = vmax.f32 %v7603_v53, 0.0  ;;  %v7348_v5 = vadd.f32 %v15444_v42, %v6832_v60  ;;  %v7088_v21 = vmul.f32 %v15425_v18, %v6572_v31  ;;  %v6700_v52 = vld [vmem:[#allocation2 + $0xeb0] sm:$0xff]  ;;  %v15517_v62 = vpop.f32.mrf.mxu2  ;;  %v1034_v60 = vld [vmem:[#allocation2 + $0x6c0] sm:$0xff] }
 0x4c3   : > { %9267 = vst.msk [vmem:[%s11330_s10 + $0x750] sm:$0xf] %vm8798_vm4, %v8754_v16  ;;  %v8499_v44 = vpack.c.bf16 %v7987_v51, %v7987_v51  ;;  %v8243_v8 = vmax.f32 %v7731_v10, 0.0  ;;  %v7476_v32 = vadd.f32 %v15444_v42, %v6960_v14  ;;  %v7216_v9 = vmul.f32 %v15425_v18, %v6700_v52  ;;  %v6317_v63 = vld [vmem:[#allocation2 + $0x2b8] sm:$0xff]  ;;  %v15524_v16 = vpop.f32.mrf.mxu0  ;;  %v10790_v31 = vld [vmem:[%s11136_s29 + $0x1b0] sm:$0xff]  ;;  %v1290_v52 = vld [vmem:[#allocation2 + $0xec0] sm:$0xff] }
 0x4c4   : > { %8884 = vst.msk [vmem:[%s11330_s10 + $0x154] sm:$0xf] %vm8798_vm4, %v8371_v58  ;;  %v8627_v28 = vpack.c.bf16 %v8115_v49, %v8115_v49  ;;  %v7860_v45 = vmax.f32 %v7348_v5, 0.0  ;;  %v7604_v40 = vadd.f32 %v15444_v42, %v7088_v21  ;;  %v6833_v3 = vmul.f32 %v15425_v18, %v6317_v63  ;;  %v6445_v38 = vld [vmem:[#allocation2 + $0x6b8] sm:$0xff]  ;;  %v10854_v58 = vld [vmem:[%s11136_s29 + $0x3b0] sm:$0xff] }
 0x4c5   : > { %9012 = vst.msk [vmem:[%s11330_s10 + $0x354] sm:$0xf] %vm8798_vm4, %v8499_v44  ;;  %v8755_v56 = vpack.c.bf16 %v8243_v8, %v8243_v8  ;;  %v7988_v48 = vmax.f32 %v7476_v32, 0.0  ;;  %v7732_v23 = vadd.f32 %v15444_v42, %v7216_v9  ;;  %v6961_v39 = vmul.f32 %v15425_v18, %v6445_v38  ;;  %v6573_v6 = vld [vmem:[#allocation2 + $0xab8] sm:$0xff]  ;;  %v15519_v55 = vpop.f32.mrf.mxu3  ;;  %v10918_v49 = vld [vmem:[%s11136_s29 + $0x5b0] sm:$0xff]  ;;  %v907_v9 = vld [vmem:[#allocation2 + $0x2c8] sm:$0xff]  ;;  %10532 = vmatmul.msk.bf16.gmra.mxu0 %vm3137_vm2, %v10790_v31 }
 0x4c6   : > { %9140 = vst.msk [vmem:[%s11330_s10 + $0x554] sm:$0xf] %vm8798_vm4, %v8627_v28  ;;  %v8372_v30 = vpack.c.bf16 %v7860_v45, %v7860_v45  ;;  %v8116_v29 = vmax.f32 %v7604_v40, 0.0  ;;  %v7349_v43 = vadd.f32 %v15444_v42, %v6833_v3  ;;  %v7089_v27 = vmul.f32 %v15425_v18, %v6573_v6  ;;  %v6701_v22 = vld [vmem:[#allocation2 + $0xeb8] sm:$0xff]  ;;  %v10982_v44 = vld [vmem:[%s11136_s29 + $0x7b0] sm:$0xff]  ;;  %10596 = vmatmul.msk.bf16.gmra.mxu1 %vm3137_vm2, %v10854_v58  ;;  %v1035_v45 = vld [vmem:[#allocation2 + $0x6c8] sm:$0xff] }
 0x4c7   : > { %9268 = vst.msk [vmem:[%s11330_s10 + $0x754] sm:$0xf] %vm8798_vm4, %v8755_v56  ;;  %v8500_v12 = vpack.c.bf16 %v7988_v48, %v7988_v48  ;;  %v8244_v57 = vmax.f32 %v7732_v23, 0.0  ;;  %v7477_v35 = vadd.f32 %v15444_v42, %v6961_v39  ;;  %v7217_v0 = vmul.f32 %v15425_v18, %v6701_v22  ;;  %v6318_v41 = vld [vmem:[#allocation2 + $0x2c0] sm:$0xff]  ;;  %10660 = vmatmul.msk.bf16.gmra.mxu2 %vm3137_vm2, %v10918_v49  ;;  %v1291_v38 = vld [vmem:[#allocation2 + $0xec8] sm:$0xff]  ;;  %v10919_v31 = vld [vmem:[%s11136_s29 + $0x5b8] sm:$0xff] }
 0x4c8   : > { %8885 = vst.msk [vmem:[%s11330_s10 + $0x158] sm:$0xf] %vm8798_vm4, %v8372_v30  ;;  %v8628_v37 = vpack.c.bf16 %v8116_v29, %v8116_v29  ;;  %v7861_v13 = vmax.f32 %v7349_v43, 0.0  ;;  %v7605_v26 = vadd.f32 %v15444_v42, %v7089_v27  ;;  %v6834_v7 = vmul.f32 %v15425_v18, %v6318_v41  ;;  %v15526_v51 = vpop.f32.mrf.mxu1  ;;  %v1164_v29 = vld [vmem:[#allocation2 + $0xad0] sm:$0xff]  ;;  %v10983_v58 = vld [vmem:[%s11136_s29 + $0x7b8] sm:$0xff] }
 0x4c9   : > { %9013 = vst.msk [vmem:[%s11330_s10 + $0x358] sm:$0xf] %vm8798_vm4, %v8500_v12  ;;  %v8756_v20 = vpack.c.bf16 %v8244_v57, %v8244_v57  ;;  %v7989_v19 = vmax.f32 %v7477_v35, 0.0  ;;  %v7733_v54 = vadd.f32 %v15444_v42, %v7217_v0  ;;  %v5418_v32 = vadd.f32 %v15372_v47, %v1034_v60  ;;  %v1163_v47 = vld [vmem:[#allocation2 + $0xac8] sm:$0xff]  ;;  %v1292_v43 = vld [vmem:[#allocation2 + $0xed0] sm:$0xff]  ;;  %v1037_v12 = vld [vmem:[#allocation2 + $0x6d8] sm:$0xff] }
 0x4ca   : > { %9141 = vst.msk [vmem:[%s11330_s10 + $0x558] sm:$0xf] %vm8798_vm4, %v8628_v37  ;;  %v8373_v4 = vpack.c.bf16 %v7861_v13, %v7861_v13  ;;  %v8117_v15 = vmax.f32 %v7605_v26, 0.0  ;;  %v7350_v53 = vadd.f32 %v15444_v42, %v6834_v7  ;;  %v5546_v28 = vadd.f32 %v15400_v34, %v1162_v1  ;;  %10724 = vmatmul.msk.bf16.gmra.mxu3 %vm3137_vm2, %v10982_v44  ;;  %v908_v34 = vld [vmem:[#allocation2 + $0x2d0] sm:$0xff]  ;;  %v15554_v48 = vpop.f32.mrf.mxu2  ;;  %v1165_v57 = vld [vmem:[#allocation2 + $0xad8] sm:$0xff]  ;;  %v910_v37 = vld [vmem:[#allocation2 + $0x2e0] sm:$0xff] }
 0x4cb   : > { %9269 = vst.msk [vmem:[%s11330_s10 + $0x758] sm:$0xf] %vm8798_vm4, %v8756_v20  ;;  %v8501_v10 = vpack.c.bf16 %v7989_v19, %v7989_v19  ;;  %v8245_v14 = vmax.f32 %v7733_v54, 0.0  ;;  %v5674_v40 = vadd.f32 %v15402_v11, %v1290_v52  ;;  %v5291_v3 = vadd.f32 %v15406_v2, %v907_v9  ;;  %v1036_v11 = vld [vmem:[#allocation2 + $0x6d0] sm:$0xff]  ;;  %v15560_v6 = vpop.f32.mrf.mxu0  ;;  %v1293_v0 = vld [vmem:[#allocation2 + $0xed8] sm:$0xff] }
 0x4cc   : > { %8886 = vst.msk [vmem:[%s11330_s10 + $0x15c] sm:$0xf] %vm8798_vm4, %v8373_v4  ;;  %v8629_v5 = vpack.c.bf16 %v8117_v15, %v8117_v15  ;;  %v7862_v21 = vmax.f32 %v7350_v53, 0.0  ;;  %v5419_v56 = vadd.f32 %v15408_v25, %v1035_v45  ;;  %v5547_v39 = vadd.f32 %v15430_v36, %v1163_v47  ;;  %v909_v36 = vld [vmem:[#allocation2 + $0x2d8] sm:$0xff] }
 0x4cd   : > { %9014 = vst.msk [vmem:[%s11330_s10 + $0x35c] sm:$0xf] %vm8798_vm4, %v8501_v10  ;;  %v8757_v8 = vpack.c.bf16 %v8245_v14, %v8245_v14  ;;  %v15556_v23 = vpop.f32.mrf.mxu3  ;;  %v5675_v2 = vadd.f32 %v15432_v50, %v1291_v38  ;;  %v5292_v25 = vadd.f32 %v15437_v24, %v908_v34  ;;  %v5420_v27 = vadd.f32 %v15439_v61, %v1036_v11  ;;  %v10791_v53 = vld [vmem:[%s11136_s29 + $0x1b8] sm:$0xff] }
 0x4ce   : > { %9142 = vst.msk [vmem:[%s11330_s10 + $0x55c] sm:$0xf] %vm8798_vm4, %v8629_v5  ;;  %v8374_v63 = vpack.c.bf16 %v7862_v21, %v7862_v21  ;;  %v5548_v22 = vadd.f32 %v15478_v46, %v1164_v29  ;;  %v5676_v50 = vadd.f32 %v15480_v33, %v1292_v43  ;;  %v5293_v24 = vadd.f32 %v15486_v59, %v909_v36  ;;  %v10855_v60 = vld [vmem:[%s11136_s29 + $0x3b8] sm:$0xff] }
 0x4cf   : > { %9270 = vst.msk [vmem:[%s11330_s10 + $0x75c] sm:$0xf] %vm8798_vm4, %v8757_v8  ;;  %v5421_v46 = vadd.f32 %v15488_v17, %v1037_v12  ;;  %v5549_v59 = vadd.f32 %v15517_v62, %v1165_v57  ;;  %v5677_v15 = vadd.f32 %v15519_v55, %v1293_v0  ;;  %v5294_v14 = vadd.f32 %v15524_v16, %v910_v37 }
 0x4d0   : > { %8887 = vst.msk [vmem:[%s11330_s10 + $0x160] sm:$0xf] %vm8798_vm4, %v8374_v63  ;;  %v15562_v30 = vpop.f32.mrf.mxu1 }
 0x4d1   : > { %5931 = vst.msk [vmem:[#allocation2 + $0x6c0] sm:$0xff] %vm305_vm3, %v5418_v32 }
 0x4d2   : > { %6059 = vst.msk [vmem:[#allocation2 + $0xac0] sm:$0xff] %vm305_vm3, %v5546_v28  ;;  %v15579_v13 = vpop.f32.mrf.mxu2 }
 0x4d3   : > { %6187 = vst.msk [vmem:[#allocation2 + $0xec0] sm:$0xff] %vm305_vm3, %v5674_v40  ;;  %v15586_v20 = vpop.f32.mrf.mxu0 }
 0x4d4   : > { %5804 = vst.msk [vmem:[#allocation2 + $0x2c8] sm:$0xff] %vm305_vm3, %v5291_v3 }
 0x4d5   : > { %5932 = vst.msk [vmem:[#allocation2 + $0x6c8] sm:$0xff] %vm305_vm3, %v5419_v56  ;;  %v15581_v33 = vpop.f32.mrf.mxu3  ;;  %10533 = vmatmul.msk.bf16.gmra.mxu0 %vm3137_vm2, %v10791_v53 }
 0x4d6   : > { %6060 = vst.msk [vmem:[#allocation2 + $0xac8] sm:$0xff] %vm305_vm3, %v5547_v39  ;;  %10597 = vmatmul.msk.bf16.gmra.mxu1 %vm3137_vm2, %v10855_v60 }
 0x4d7   : > { %6188 = vst.msk [vmem:[#allocation2 + $0xec8] sm:$0xff] %vm305_vm3, %v5675_v2  ;;  %10661 = vmatmul.msk.bf16.gmra.mxu2 %vm3137_vm2, %v10919_v31 }
 0x4d8   : > { %v6446_v35 = vld [vmem:[#allocation2 + $0x6c0] sm:$0xff]  ;;  %5805 = vst.msk [vmem:[#allocation2 + $0x2d0] sm:$0xff] %vm305_vm3, %v5292_v25  ;;  %v15588_v19 = vpop.f32.mrf.mxu1 }
 0x4d9   : > { %v6962_v41 = vmul.f32 %v15425_v18, %v6446_v35  ;;  %v6574_v61 = vld [vmem:[#allocation2 + $0xac0] sm:$0xff]  ;;  %5933 = vst.msk [vmem:[#allocation2 + $0x6d0] sm:$0xff] %vm305_vm3, %v5420_v27 }
 0x4da   : > { %v7090_v26 = vmul.f32 %v15425_v18, %v6574_v61  ;;  %v6702_v7 = vld [vmem:[#allocation2 + $0xec0] sm:$0xff]  ;;  %6061 = vst.msk [vmem:[#allocation2 + $0xad0] sm:$0xff] %vm305_vm3, %v5548_v22  ;;  %10725 = vmatmul.msk.bf16.gmra.mxu3 %vm3137_vm2, %v10983_v58  ;;  %v15622_v25 = vpop.f32.mrf.mxu2 }
 0x4db   : > { %v7478_v17 = vadd.f32 %v15444_v42, %v6962_v41  ;;  %v7218_v54 = vmul.f32 %v15425_v18, %v6702_v7  ;;  %v6319_v4 = vld [vmem:[#allocation2 + $0x2c8] sm:$0xff]  ;;  %6189 = vst.msk [vmem:[#allocation2 + $0xed0] sm:$0xff] %vm305_vm3, %v5676_v50  ;;  %v15630_v57 = vpop.f32.mrf.mxu0 }
 0x4dc   : > { %v7606_v1 = vadd.f32 %v15444_v42, %v7090_v26  ;;  %v6835_v62 = vmul.f32 %v15425_v18, %v6319_v4  ;;  %v6447_v10 = vld [vmem:[#allocation2 + $0x6c8] sm:$0xff]  ;;  %5806 = vst.msk [vmem:[#allocation2 + $0x2d8] sm:$0xff] %vm305_vm3, %v5293_v24 }
 0x4dd   : > { %v7990_v49 = vmax.f32 %v7478_v17, 0.0  ;;  %v7734_v5 = vadd.f32 %v15444_v42, %v7218_v54  ;;  %v6963_v21 = vmul.f32 %v15425_v18, %v6447_v10  ;;  %v6575_v52 = vld [vmem:[#allocation2 + $0xac8] sm:$0xff]  ;;  %5934 = vst.msk [vmem:[#allocation2 + $0x6d8] sm:$0xff] %vm305_vm3, %v5421_v46  ;;  %v15624_v43 = vpop.f32.mrf.mxu3 }
 0x4de   : > { %v8118_v55 = vmax.f32 %v7606_v1, 0.0  ;;  %v7351_v44 = vadd.f32 %v15444_v42, %v6835_v62  ;;  %v7091_v8 = vmul.f32 %v15425_v18, %v6575_v52  ;;  %v6703_v16 = vld [vmem:[#allocation2 + $0xec8] sm:$0xff]  ;;  %6062 = vst.msk [vmem:[#allocation2 + $0xad8] sm:$0xff] %vm305_vm3, %v5549_v59 }
 0x4df   : > { %v8502_v32 = vpack.c.bf16 %v7990_v49, %v7990_v49  ;;  %v8246_v9 = vmax.f32 %v7734_v5, 0.0  ;;  %v7479_v63 = vadd.f32 %v15444_v42, %v6963_v21  ;;  %v7219_v28 = vmul.f32 %v15425_v18, %v6703_v16  ;;  %v6320_v45 = vld [vmem:[#allocation2 + $0x2d0] sm:$0xff]  ;;  %6190 = vst.msk [vmem:[#allocation2 + $0xed8] sm:$0xff] %vm305_vm3, %v5677_v15 }
 0x4e0   : > { %v8630_v40 = vpack.c.bf16 %v8118_v55, %v8118_v55  ;;  %v7863_v47 = vmax.f32 %v7351_v44, 0.0  ;;  %v7607_v3 = vadd.f32 %v15444_v42, %v7091_v8  ;;  %v6836_v38 = vmul.f32 %v15425_v18, %v6320_v45  ;;  %v6448_v56 = vld [vmem:[#allocation2 + $0x6d0] sm:$0xff]  ;;  %5807 = vst.msk [vmem:[#allocation2 + $0x2e0] sm:$0xff] %vm305_vm3, %v5294_v14  ;;  %v15632_v35 = vpop.f32.mrf.mxu1 }
 0x4e1   : > { %9015 = vst.msk [vmem:[%s11330_s10 + $0x360] sm:$0xf] %vm8798_vm4, %v8502_v32  ;;  %v8758_v34 = vpack.c.bf16 %v8246_v9, %v8246_v9  ;;  %v7991_v39 = vmax.f32 %v7479_v63, 0.0  ;;  %v7735_v11 = vadd.f32 %v15444_v42, %v7219_v28  ;;  %v6964_v2 = vmul.f32 %v15425_v18, %v6448_v56  ;;  %v6576_v29 = vld [vmem:[#allocation2 + $0xad0] sm:$0xff]  ;;  %v1166_v56 = vld [vmem:[#allocation2 + $0xae0] sm:$0xff] }
 0x4e2   : > { %9143 = vst.msk [vmem:[%s11330_s10 + $0x560] sm:$0xf] %vm8798_vm4, %v8630_v40  ;;  %v8375_v27 = vpack.c.bf16 %v7863_v47, %v7863_v47  ;;  %v8119_v36 = vmax.f32 %v7607_v3, 0.0  ;;  %v7352_v22 = vadd.f32 %v15444_v42, %v6836_v38  ;;  %v7092_v12 = vmul.f32 %v15425_v18, %v6576_v29  ;;  %v6704_v50 = vld [vmem:[#allocation2 + $0xed0] sm:$0xff]  ;;  %v15661_v28 = vpop.f32.mrf.mxu2  ;;  %v1038_v38 = vld [vmem:[#allocation2 + $0x6e0] sm:$0xff] }
 0x4e3   : > { %9271 = vst.msk [vmem:[%s11330_s10 + $0x760] sm:$0xf] %vm8798_vm4, %v8758_v34  ;;  %v8503_v24 = vpack.c.bf16 %v7991_v39, %v7991_v39  ;;  %v8247_v0 = vmax.f32 %v7735_v11, 0.0  ;;  %v7480_v41 = vadd.f32 %v15444_v42, %v6964_v2  ;;  %v7220_v61 = vmul.f32 %v15425_v18, %v6704_v50  ;;  %v6321_v46 = vld [vmem:[#allocation2 + $0x2d8] sm:$0xff]  ;;  %v15668_v34 = vpop.f32.mrf.mxu0  ;;  %v10792_v29 = vld [vmem:[%s11136_s29 + $0x1c0] sm:$0xff] }
 0x4e4   : > { %8888 = vst.msk [vmem:[%s11330_s10 + $0x164] sm:$0xf] %vm8798_vm4, %v8375_v27  ;;  %v8631_v37 = vpack.c.bf16 %v8119_v36, %v8119_v36  ;;  %v7864_v26 = vmax.f32 %v7352_v22, 0.0  ;;  %v7608_v7 = vadd.f32 %v15444_v42, %v7092_v12  ;;  %v6837_v59 = vmul.f32 %v15425_v18, %v6321_v46  ;;  %v6449_v17 = vld [vmem:[#allocation2 + $0x6d8] sm:$0xff]  ;;  %v10856_v27 = vld [vmem:[%s11136_s29 + $0x3c0] sm:$0xff] }
 0x4e5   : > { %9016 = vst.msk [vmem:[%s11330_s10 + $0x364] sm:$0xf] %vm8798_vm4, %v8503_v24  ;;  %v8759_v54 = vpack.c.bf16 %v8247_v0, %v8247_v0  ;;  %v7992_v4 = vmax.f32 %v7480_v41, 0.0  ;;  %v7736_v15 = vadd.f32 %v15444_v42, %v7220_v61  ;;  %v6965_v53 = vmul.f32 %v15425_v18, %v6449_v17  ;;  %v6577_v60 = vld [vmem:[#allocation2 + $0xad8] sm:$0xff]  ;;  %v15663_v45 = vpop.f32.mrf.mxu3  ;;  %v10920_v36 = vld [vmem:[%s11136_s29 + $0x5c0] sm:$0xff]  ;;  %v911_v61 = vld [vmem:[#allocation2 + $0x2e8] sm:$0xff]  ;;  %10534 = vmatmul.msk.bf16.gmra.mxu0 %vm3137_vm2, %v10792_v29 }
 0x4e6   : > { %9144 = vst.msk [vmem:[%s11330_s10 + $0x564] sm:$0xf] %vm8798_vm4, %v8631_v37  ;;  %v8376_v1 = vpack.c.bf16 %v7864_v26, %v7864_v26  ;;  %v8120_v62 = vmax.f32 %v7608_v7, 0.0  ;;  %v7353_v10 = vadd.f32 %v15444_v42, %v6837_v59  ;;  %v7093_v14 = vmul.f32 %v15425_v18, %v6577_v60  ;;  %v6705_v31 = vld [vmem:[#allocation2 + $0xed8] sm:$0xff]  ;;  %v1294_v50 = vld [vmem:[#allocation2 + $0xee0] sm:$0xff]  ;;  %10598 = vmatmul.msk.bf16.gmra.mxu1 %vm3137_vm2, %v10856_v27  ;;  %v1039_v26 = vld [vmem:[#allocation2 + $0x6e8] sm:$0xff] }
 0x4e7   : > { %9272 = vst.msk [vmem:[%s11330_s10 + $0x764] sm:$0xf] %vm8798_vm4, %v8759_v54  ;;  %v8504_v58 = vpack.c.bf16 %v7992_v4, %v7992_v4  ;;  %v8248_v49 = vmax.f32 %v7736_v15, 0.0  ;;  %v7481_v5 = vadd.f32 %v15444_v42, %v6965_v53  ;;  %v7221_v21 = vmul.f32 %v15425_v18, %v6705_v31  ;;  %v6322_v52 = vld [vmem:[#allocation2 + $0x2e0] sm:$0xff]  ;;  %10662 = vmatmul.msk.bf16.gmra.mxu2 %vm3137_vm2, %v10920_v36  ;;  %v1295_v17 = vld [vmem:[#allocation2 + $0xee8] sm:$0xff] }
 0x4e8   : > { %8889 = vst.msk [vmem:[%s11330_s10 + $0x168] sm:$0xf] %vm8798_vm4, %v8376_v1  ;;  %v8632_v55 = vpack.c.bf16 %v8120_v62, %v8120_v62  ;;  %v7865_v44 = vmax.f32 %v7353_v10, 0.0  ;;  %v7609_v8 = vadd.f32 %v15444_v42, %v7093_v14  ;;  %v6838_v16 = vmul.f32 %v15425_v18, %v6322_v52  ;;  %v15670_v39 = vpop.f32.mrf.mxu1  ;;  %v10984_v24 = vld [vmem:[%s11136_s29 + $0x7c0] sm:$0xff]  ;;  %v1168_v62 = vld [vmem:[#allocation2 + $0xaf0] sm:$0xff]  ;;  %v10921_v29 = vld [vmem:[%s11136_s29 + $0x5c8] sm:$0xff] }
 0x4e9   : > { %9017 = vst.msk [vmem:[%s11330_s10 + $0x368] sm:$0xf] %vm8798_vm4, %v8504_v58  ;;  %v8760_v32 = vpack.c.bf16 %v8248_v49, %v8248_v49  ;;  %v7993_v9 = vmax.f32 %v7481_v5, 0.0  ;;  %v7737_v63 = vadd.f32 %v15444_v42, %v7221_v21  ;;  %v5422_v41 = vadd.f32 %v15526_v51, %v1038_v38  ;;  %v1167_v51 = vld [vmem:[#allocation2 + $0xae8] sm:$0xff]  ;;  %v1296_v10 = vld [vmem:[#allocation2 + $0xef0] sm:$0xff]  ;;  %v1041_v58 = vld [vmem:[#allocation2 + $0x6f8] sm:$0xff] }
 0x4ea   : > { %9145 = vst.msk [vmem:[%s11330_s10 + $0x568] sm:$0xf] %vm8798_vm4, %v8632_v55  ;;  %v8377_v40 = vpack.c.bf16 %v7865_v44, %v7865_v44  ;;  %v8121_v47 = vmax.f32 %v7609_v8, 0.0  ;;  %v7354_v3 = vadd.f32 %v15444_v42, %v6838_v16  ;;  %v5550_v37 = vadd.f32 %v15554_v48, %v1166_v56  ;;  %10726 = vmatmul.msk.bf16.gmra.mxu3 %vm3137_vm2, %v10984_v24  ;;  %v912_v48 = vld [vmem:[#allocation2 + $0x2f0] sm:$0xff]  ;;  %v15698_v4 = vpop.f32.mrf.mxu2  ;;  %v1169_v49 = vld [vmem:[#allocation2 + $0xaf8] sm:$0xff]  ;;  %v914_v55 = vld [vmem:[#allocation2 + $0x300] sm:$0xff] }
 0x4eb   : > { %9273 = vst.msk [vmem:[%s11330_s10 + $0x768] sm:$0xf] %vm8798_vm4, %v8760_v32  ;;  %v8505_v11 = vpack.c.bf16 %v7993_v9, %v7993_v9  ;;  %v8249_v2 = vmax.f32 %v7737_v63, 0.0  ;;  %v5678_v7 = vadd.f32 %v15556_v23, %v1294_v50  ;;  %v5295_v59 = vadd.f32 %v15560_v6, %v911_v61  ;;  %v1040_v23 = vld [vmem:[#allocation2 + $0x6f0] sm:$0xff]  ;;  %v15704_v60 = vpop.f32.mrf.mxu0  ;;  %v1297_v21 = vld [vmem:[#allocation2 + $0xef8] sm:$0xff]  ;;  %v10857_v38 = vld [vmem:[%s11136_s29 + $0x3c8] sm:$0xff] }
 0x4ec   : > { %8890 = vst.msk [vmem:[%s11330_s10 + $0x16c] sm:$0xf] %vm8798_vm4, %v8377_v40  ;;  %v8633_v22 = vpack.c.bf16 %v8121_v47, %v8121_v47  ;;  %v7866_v12 = vmax.f32 %v7354_v3, 0.0  ;;  %v5423_v54 = vadd.f32 %v15562_v30, %v1039_v26  ;;  %v5551_v53 = vadd.f32 %v15579_v13, %v1167_v51  ;;  %v913_v13 = vld [vmem:[#allocation2 + $0x2f8] sm:$0xff]  ;;  %v10793_v3 = vld [vmem:[%s11136_s29 + $0x1c8] sm:$0xff] }
 0x4ed   : > { %9018 = vst.msk [vmem:[%s11330_s10 + $0x36c] sm:$0xf] %vm8798_vm4, %v8505_v11  ;;  %v8761_v0 = vpack.c.bf16 %v8249_v2, %v8249_v2  ;;  %v15700_v15 = vpop.f32.mrf.mxu3  ;;  %v5679_v6 = vadd.f32 %v15581_v33, %v1295_v17  ;;  %v5296_v30 = vadd.f32 %v15586_v20, %v912_v48  ;;  %v5424_v14 = vadd.f32 %v15588_v19, %v1040_v23  ;;  %v10985_v27 = vld [vmem:[%s11136_s29 + $0x7c8] sm:$0xff] }
 0x4ee   : > { %9146 = vst.msk [vmem:[%s11330_s10 + $0x56c] sm:$0xf] %vm8798_vm4, %v8633_v22  ;;  %v8378_v46 = vpack.c.bf16 %v7866_v12, %v7866_v12  ;;  %v5552_v31 = vadd.f32 %v15622_v25, %v1168_v62  ;;  %v5680_v33 = vadd.f32 %v15624_v43, %v1296_v10  ;;  %v5297_v20 = vadd.f32 %v15630_v57, %v913_v13 }
 0x4ef   : > { %9274 = vst.msk [vmem:[%s11330_s10 + $0x76c] sm:$0xf] %vm8798_vm4, %v8761_v0  ;;  %v5425_v25 = vadd.f32 %v15632_v35, %v1041_v58  ;;  %v5553_v57 = vadd.f32 %v15661_v28, %v1169_v49  ;;  %v5681_v47 = vadd.f32 %v15663_v45, %v1297_v21  ;;  %v5298_v2 = vadd.f32 %v15668_v34, %v914_v55 }
 0x4f0   : > { %8891 = vst.msk [vmem:[%s11330_s10 + $0x170] sm:$0xf] %vm8798_vm4, %v8378_v46  ;;  %v15706_v1 = vpop.f32.mrf.mxu1 }
 0x4f1   : > { %5935 = vst.msk [vmem:[#allocation2 + $0x6e0] sm:$0xff] %vm305_vm3, %v5422_v41 }
 0x4f2   : > { %6063 = vst.msk [vmem:[#allocation2 + $0xae0] sm:$0xff] %vm305_vm3, %v5550_v37  ;;  %v15723_v44 = vpop.f32.mrf.mxu2 }
 0x4f3   : > { %6191 = vst.msk [vmem:[#allocation2 + $0xee0] sm:$0xff] %vm305_vm3, %v5678_v7  ;;  %v15730_v32 = vpop.f32.mrf.mxu0 }
 0x4f4   : > { %5808 = vst.msk [vmem:[#allocation2 + $0x2e8] sm:$0xff] %vm305_vm3, %v5295_v59 }
 0x4f5   : > { %5936 = vst.msk [vmem:[#allocation2 + $0x6e8] sm:$0xff] %vm305_vm3, %v5423_v54  ;;  %v15725_v43 = vpop.f32.mrf.mxu3  ;;  %10535 = vmatmul.msk.bf16.gmra.mxu0 %vm3137_vm2, %v10793_v3 }
 0x4f6   : > { %6064 = vst.msk [vmem:[#allocation2 + $0xae8] sm:$0xff] %vm305_vm3, %v5551_v53  ;;  %10599 = vmatmul.msk.bf16.gmra.mxu1 %vm3137_vm2, %v10857_v38 }
 0x4f7   : > { %6192 = vst.msk [vmem:[#allocation2 + $0xee8] sm:$0xff] %vm305_vm3, %v5679_v6  ;;  %10663 = vmatmul.msk.bf16.gmra.mxu2 %vm3137_vm2, %v10921_v29 }
 0x4f8   : > { %v6450_v5 = vld [vmem:[#allocation2 + $0x6e0] sm:$0xff]  ;;  %5809 = vst.msk [vmem:[#allocation2 + $0x2f0] sm:$0xff] %vm305_vm3, %v5296_v30  ;;  %v15732_v9 = vpop.f32.mrf.mxu1 }
 0x4f9   : > { %v6966_v52 = vmul.f32 %v15425_v18, %v6450_v5  ;;  %v6578_v19 = vld [vmem:[#allocation2 + $0xae0] sm:$0xff]  ;;  %5937 = vst.msk [vmem:[#allocation2 + $0x6f0] sm:$0xff] %vm305_vm3, %v5424_v14 }
 0x4fa   : > { %v7094_v8 = vmul.f32 %v15425_v18, %v6578_v19  ;;  %v6706_v16 = vld [vmem:[#allocation2 + $0xee0] sm:$0xff]  ;;  %6065 = vst.msk [vmem:[#allocation2 + $0xaf0] sm:$0xff] %vm305_vm3, %v5552_v31  ;;  %10727 = vmatmul.msk.bf16.gmra.mxu3 %vm3137_vm2, %v10985_v27  ;;  %v15766_v30 = vpop.f32.mrf.mxu2 }
 0x4fb   : > { %v7482_v35 = vadd.f32 %v15444_v42, %v6966_v52  ;;  %v7222_v63 = vmul.f32 %v15425_v18, %v6706_v16  ;;  %v6323_v40 = vld [vmem:[#allocation2 + $0x2e8] sm:$0xff]  ;;  %6193 = vst.msk [vmem:[#allocation2 + $0xef0] sm:$0xff] %vm305_vm3, %v5680_v33  ;;  %v15774_v49 = vpop.f32.mrf.mxu0 }
 0x4fc   : > { %v7610_v56 = vadd.f32 %v15444_v42, %v7094_v8  ;;  %v6839_v28 = vmul.f32 %v15425_v18, %v6323_v40  ;;  %v6451_v11 = vld [vmem:[#allocation2 + $0x6e8] sm:$0xff]  ;;  %5810 = vst.msk [vmem:[#allocation2 + $0x2f8] sm:$0xff] %vm305_vm3, %v5297_v20 }
 0x4fd   : > { %v7994_v36 = vmax.f32 %v7482_v35, 0.0  ;;  %v7738_v22 = vadd.f32 %v15444_v42, %v7222_v63  ;;  %v6967_v12 = vmul.f32 %v15425_v18, %v6451_v11  ;;  %v6579_v50 = vld [vmem:[#allocation2 + $0xae8] sm:$0xff]  ;;  %5938 = vst.msk [vmem:[#allocation2 + $0x6f8] sm:$0xff] %vm305_vm3, %v5425_v25  ;;  %v15768_v10 = vpop.f32.mrf.mxu3 }
 0x4fe   : > { %v8122_v45 = vmax.f32 %v7610_v56, 0.0  ;;  %v7355_v24 = vadd.f32 %v15444_v42, %v6839_v28  ;;  %v7095_v0 = vmul.f32 %v15425_v18, %v6579_v50  ;;  %v6707_v34 = vld [vmem:[#allocation2 + $0xee8] sm:$0xff]  ;;  %6066 = vst.msk [vmem:[#allocation2 + $0xaf8] sm:$0xff] %vm305_vm3, %v5553_v57 }
 0x4ff   : > { %v8506_v41 = vpack.c.bf16 %v7994_v36, %v7994_v36  ;;  %v8250_v61 = vmax.f32 %v7738_v22, 0.0  ;;  %v7483_v46 = vadd.f32 %v15444_v42, %v6967_v12  ;;  %v7223_v37 = vmul.f32 %v15425_v18, %v6707_v34  ;;  %v6324_v26 = vld [vmem:[#allocation2 + $0x2f0] sm:$0xff]  ;;  %6194 = vst.msk [vmem:[#allocation2 + $0xef8] sm:$0xff] %vm305_vm3, %v5681_v47 }
 0x500   : > { %v8634_v7 = vpack.c.bf16 %v8122_v45, %v8122_v45  ;;  %v7867_v51 = vmax.f32 %v7355_v24, 0.0  ;;  %v7611_v59 = vadd.f32 %v15444_v42, %v7095_v0  ;;  %v6840_v17 = vmul.f32 %v15425_v18, %v6324_v26  ;;  %v6452_v54 = vld [vmem:[#allocation2 + $0x6f0] sm:$0xff]  ;;  %5811 = vst.msk [vmem:[#allocation2 + $0x300] sm:$0xff] %vm305_vm3, %v5298_v2  ;;  %v15776_v5 = vpop.f32.mrf.mxu1 }
 0x501   : > { %9019 = vst.msk [vmem:[%s11330_s10 + $0x370] sm:$0xf] %vm8798_vm4, %v8506_v41  ;;  %v8762_v48 = vpack.c.bf16 %v8250_v61, %v8250_v61  ;;  %v7995_v53 = vmax.f32 %v7483_v46, 0.0  ;;  %v7739_v23 = vadd.f32 %v15444_v42, %v7223_v37  ;;  %v6968_v6 = vmul.f32 %v15425_v18, %v6452_v54  ;;  %v6580_v62 = vld [vmem:[#allocation2 + $0xaf0] sm:$0xff] }
 0x502   : > { %9147 = vst.msk [vmem:[%s11330_s10 + $0x570] sm:$0xf] %vm8798_vm4, %v8634_v7  ;;  %v8379_v14 = vpack.c.bf16 %v7867_v51, %v7867_v51  ;;  %v8123_v13 = vmax.f32 %v7611_v59, 0.0  ;;  %v7356_v31 = vadd.f32 %v15444_v42, %v6840_v17  ;;  %v7096_v58 = vmul.f32 %v15425_v18, %v6580_v62  ;;  %v6708_v33 = vld [vmem:[#allocation2 + $0xef0] sm:$0xff]  ;;  %v15805_v37 = vpop.f32.mrf.mxu2  ;;  %v1042_v59 = vld [vmem:[#allocation2 + $0x700] sm:$0xff] }
 0x503   : > { %9275 = vst.msk [vmem:[%s11330_s10 + $0x770] sm:$0xf] %vm8798_vm4, %v8762_v48  ;;  %v8507_v20 = vpack.c.bf16 %v7995_v53, %v7995_v53  ;;  %v8251_v21 = vmax.f32 %v7739_v23, 0.0  ;;  %v7484_v52 = vadd.f32 %v15444_v42, %v6968_v6  ;;  %v7224_v19 = vmul.f32 %v15425_v18, %v6708_v33  ;;  %v6325_v25 = vld [vmem:[#allocation2 + $0x2f8] sm:$0xff]  ;;  %v1170_v17 = vld [vmem:[#allocation2 + $0xb00] sm:$0xff]  ;;  %v15812_v54 = vpop.f32.mrf.mxu0  ;;  %v10794_v6 = vld [vmem:[%s11136_s29 + $0x1d0] sm:$0xff] }
 0x504   : > { %8892 = vst.msk [vmem:[%s11330_s10 + $0x174] sm:$0xf] %vm8798_vm4, %v8379_v14  ;;  %v8635_v55 = vpack.c.bf16 %v8123_v13, %v8123_v13  ;;  %v7868_v8 = vmax.f32 %v7356_v31, 0.0  ;;  %v7612_v16 = vadd.f32 %v15444_v42, %v7096_v58  ;;  %v6841_v57 = vmul.f32 %v15425_v18, %v6325_v25  ;;  %v6453_v35 = vld [vmem:[#allocation2 + $0x6f8] sm:$0xff]  ;;  %v10858_v62 = vld [vmem:[%s11136_s29 + $0x3d0] sm:$0xff]  ;;  %v1298_v31 = vld [vmem:[#allocation2 + $0xf00] sm:$0xff] }
 0x505   : > { %9020 = vst.msk [vmem:[%s11330_s10 + $0x374] sm:$0xf] %vm8798_vm4, %v8507_v20  ;;  %v8763_v63 = vpack.c.bf16 %v8251_v21, %v8251_v21  ;;  %v7996_v40 = vmax.f32 %v7484_v52, 0.0  ;;  %v7740_v47 = vadd.f32 %v15444_v42, %v7224_v19  ;;  %v6969_v3 = vmul.f32 %v15425_v18, %v6453_v35  ;;  %v6581_v38 = vld [vmem:[#allocation2 + $0xaf8] sm:$0xff]  ;;  %v15807_v26 = vpop.f32.mrf.mxu3  ;;  %v10922_v14 = vld [vmem:[%s11136_s29 + $0x5d0] sm:$0xff]  ;;  %v915_v21 = vld [vmem:[#allocation2 + $0x308] sm:$0xff]  ;;  %10536 = vmatmul.msk.bf16.gmra.mxu0 %vm3137_vm2, %v10794_v6 }
 0x506   : > { %9148 = vst.msk [vmem:[%s11330_s10 + $0x574] sm:$0xf] %vm8798_vm4, %v8635_v55  ;;  %v8380_v56 = vpack.c.bf16 %v7868_v8, %v7868_v8  ;;  %v8124_v28 = vmax.f32 %v7612_v16, 0.0  ;;  %v7357_v11 = vadd.f32 %v15444_v42, %v6841_v57  ;;  %v7097_v2 = vmul.f32 %v15425_v18, %v6581_v38  ;;  %v6709_v29 = vld [vmem:[#allocation2 + $0xef8] sm:$0xff]  ;;  %v10986_v58 = vld [vmem:[%s11136_s29 + $0x7d0] sm:$0xff]  ;;  %10600 = vmatmul.msk.bf16.gmra.mxu1 %vm3137_vm2, %v10858_v62  ;;  %v1043_v25 = vld [vmem:[#allocation2 + $0x708] sm:$0xff] }
 0x507   : > { %9276 = vst.msk [vmem:[%s11330_s10 + $0x774] sm:$0xf] %vm8798_vm4, %v8763_v63  ;;  %v8508_v27 = vpack.c.bf16 %v7996_v40, %v7996_v40  ;;  %v8252_v36 = vmax.f32 %v7740_v47, 0.0  ;;  %v7485_v22 = vadd.f32 %v15444_v42, %v6969_v3  ;;  %v7225_v12 = vmul.f32 %v15425_v18, %v6709_v29  ;;  %v6326_v50 = vld [vmem:[#allocation2 + $0x300] sm:$0xff]  ;;  %10664 = vmatmul.msk.bf16.gmra.mxu2 %vm3137_vm2, %v10922_v14  ;;  %v1299_v16 = vld [vmem:[#allocation2 + $0xf08] sm:$0xff]  ;;  %v1172_v38 = vld [vmem:[#allocation2 + $0xb10] sm:$0xff] }
 0x508   : > { %8893 = vst.msk [vmem:[%s11330_s10 + $0x178] sm:$0xf] %vm8798_vm4, %v8380_v56  ;;  %v8636_v45 = vpack.c.bf16 %v8124_v28, %v8124_v28  ;;  %v7869_v24 = vmax.f32 %v7357_v11, 0.0  ;;  %v7613_v0 = vadd.f32 %v15444_v42, %v7097_v2  ;;  %v6842_v34 = vmul.f32 %v15425_v18, %v6326_v50  ;;  %v15814_v48 = vpop.f32.mrf.mxu1  ;;  %v1300_v56 = vld [vmem:[#allocation2 + $0xf10] sm:$0xff]  ;;  %v1045_v2 = vld [vmem:[#allocation2 + $0x718] sm:$0xff] }
 0x509   : > { %9021 = vst.msk [vmem:[%s11330_s10 + $0x378] sm:$0xf] %vm8798_vm4, %v8508_v27  ;;  %v8764_v41 = vpack.c.bf16 %v8252_v36, %v8252_v36  ;;  %v7997_v61 = vmax.f32 %v7485_v22, 0.0  ;;  %v7741_v46 = vadd.f32 %v15444_v42, %v7225_v12  ;;  %v5426_v20 = vadd.f32 %v15670_v39, %v1042_v59  ;;  %v1171_v39 = vld [vmem:[#allocation2 + $0xb08] sm:$0xff]  ;;  %v1173_v29 = vld [vmem:[#allocation2 + $0xb18] sm:$0xff] }
 0x50a   : > { %9149 = vst.msk [vmem:[%s11330_s10 + $0x578] sm:$0xf] %vm8798_vm4, %v8636_v45  ;;  %v8381_v7 = vpack.c.bf16 %v7869_v24, %v7869_v24  ;;  %v8125_v51 = vmax.f32 %v7613_v0, 0.0  ;;  %v7358_v18 = vadd.f32 %v15444_v42, %v6842_v34  ;;  %v5554_v19 = vadd.f32 %v15698_v4, %v1170_v17  ;;  %10728 = vmatmul.msk.bf16.gmra.mxu3 %vm3137_vm2, %v10986_v58  ;;  %v916_v4 = vld [vmem:[#allocation2 + $0x310] sm:$0xff]  ;;  %v15842_v35 = vpop.f32.mrf.mxu2  ;;  %v1301_v36 = vld [vmem:[#allocation2 + $0xf18] sm:$0xff] }
 0x50b   : > { %9277 = vst.msk [vmem:[%s11330_s10 + $0x778] sm:$0xf] %vm8798_vm4, %v8764_v41  ;;  %v8509_v53 = vpack.c.bf16 %v7997_v61, %v7997_v61  ;;  %v8253_v23 = vmax.f32 %v7741_v46, 0.0  ;;  %v5682_v55 = vadd.f32 %v15700_v15, %v1298_v31  ;;  %v5299_v8 = vadd.f32 %v15704_v60, %v915_v21  ;;  %v1044_v15 = vld [vmem:[#allocation2 + $0x710] sm:$0xff]  ;;  %v15848_v47 = vpop.f32.mrf.mxu0  ;;  %v10923_v6 = vld [vmem:[%s11136_s29 + $0x5d8] sm:$0xff] }
 0x50c   : > { %8894 = vst.msk [vmem:[%s11330_s10 + $0x17c] sm:$0xf] %vm8798_vm4, %v8381_v7  ;;  %v8637_v13 = vpack.c.bf16 %v8125_v51, %v8125_v51  ;;  %v7870_v42 = vmax.f32 %v7358_v18, 0.0  ;;  %v5427_v57 = vadd.f32 %v15706_v1, %v1043_v25  ;;  %v5555_v40 = vadd.f32 %v15723_v44, %v1171_v39  ;;  %v917_v44 = vld [vmem:[#allocation2 + $0x318] sm:$0xff] }
 0x50d   : > { %9022 = vst.msk [vmem:[%s11330_s10 + $0x37c] sm:$0xf] %vm8798_vm4, %v8509_v53  ;;  %v8765_v33 = vpack.c.bf16 %v8253_v23, %v8253_v23  ;;  %v15844_v63 = vpop.f32.mrf.mxu3  ;;  %v5683_v60 = vadd.f32 %v15725_v43, %v1299_v16  ;;  %v5300_v1 = vadd.f32 %v15730_v32, %v916_v4  ;;  %v5428_v28 = vadd.f32 %v15732_v9, %v1044_v15  ;;  %v15867_v9 = vld [vmem:[%s16857_s2] ss:$0 sm:$0xff]  ;;  %v10795_v51 = vld [vmem:[%s11136_s29 + $0x1d8] sm:$0xff] }
 0x50e   : > { %9150 = vst.msk [vmem:[%s11330_s10 + $0x57c] sm:$0xf] %vm8798_vm4, %v8637_v13  ;;  %v8382_v52 = vpack.c.bf16 %v7870_v42, %v7870_v42  ;;  %v5556_v11 = vadd.f32 %v15766_v30, %v1172_v38  ;;  %v5684_v43 = vadd.f32 %v15768_v10, %v1300_v56  ;;  %v5301_v32 = vadd.f32 %v15774_v49, %v917_v44  ;;  %v918_v10 = vld [vmem:[#allocation2 + $0x320] sm:$0xff]  ;;  %v10859_v18 = vld [vmem:[%s11136_s29 + $0x3d8] sm:$0xff] }
 0x50f   : > { %9278 = vst.msk [vmem:[%s11330_s10 + $0x77c] sm:$0xf] %vm8798_vm4, %v8765_v33  ;;  %v5429_v12 = vadd.f32 %v15776_v5, %v1045_v2  ;;  %v5557_v0 = vadd.f32 %v15805_v37, %v1173_v29  ;;  %v15886_v5 = vld [vmem:[%s16858_s3] ss:$0 sm:$0xff]  ;;  %v5685_v37 = vadd.f32 %v15807_v26, %v1301_v36  ;;  %v5302_v23 = vadd.f32 %v15812_v54, %v918_v10  ;;  %v10987_v62 = vld [vmem:[%s11136_s29 + $0x7d8] sm:$0xff] }
 0x510   : > { %8895 = vst.msk [vmem:[%s11330_s10 + $0x180] sm:$0xf] %vm8798_vm4, %v8382_v52  ;;  %v15850_v3 = vpop.f32.mrf.mxu1 }
 0x511   : > { %5939 = vst.msk [vmem:[#allocation2 + $0x700] sm:$0xff] %vm305_vm3, %v5426_v20 }
 0x512   : > { %6067 = vst.msk [vmem:[#allocation2 + $0xb00] sm:$0xff] %vm305_vm3, %v5554_v19  ;;  %v15872_v50 = vpop.f32.mrf.mxu2 }
 0x513   : > { %6195 = vst.msk [vmem:[#allocation2 + $0xf00] sm:$0xff] %vm305_vm3, %v5682_v55  ;;  %v15879_v34 = vpop.f32.mrf.mxu0 }
 0x514   : > { %5812 = vst.msk [vmem:[#allocation2 + $0x308] sm:$0xff] %vm305_vm3, %v5299_v8 }
 0x515   : > { %5940 = vst.msk [vmem:[#allocation2 + $0x708] sm:$0xff] %vm305_vm3, %v5427_v57  ;;  %v15874_v45 = vpop.f32.mrf.mxu3  ;;  %10537 = vmatmul.msk.bf16.gmra.mxu0 %vm3137_vm2, %v10795_v51 }
 0x516   : > { %6068 = vst.msk [vmem:[#allocation2 + $0xb08] sm:$0xff] %vm305_vm3, %v5555_v40  ;;  %10601 = vmatmul.msk.bf16.gmra.mxu1 %vm3137_vm2, %v10859_v18 }
 0x517   : > { %6196 = vst.msk [vmem:[#allocation2 + $0xf08] sm:$0xff] %vm305_vm3, %v5683_v60  ;;  %10665 = vmatmul.msk.bf16.gmra.mxu2 %vm3137_vm2, %v10923_v6 }
 0x518   : > { %v6454_v27 = vld [vmem:[#allocation2 + $0x700] sm:$0xff]  ;;  %5813 = vst.msk [vmem:[#allocation2 + $0x310] sm:$0xff] %vm305_vm3, %v5300_v1  ;;  %v15881_v41 = vpop.f32.mrf.mxu1 }
 0x519   : > { %v6970_v22 = vmul.f32 %v15867_v9, %v6454_v27  ;;  %v6582_v30 = vld [vmem:[#allocation2 + $0xb00] sm:$0xff]  ;;  %5941 = vst.msk [vmem:[#allocation2 + $0x710] sm:$0xff] %vm305_vm3, %v5428_v28 }
 0x51a   : > { %v7098_v49 = vmul.f32 %v15867_v9, %v6582_v30  ;;  %v6710_v24 = vld [vmem:[#allocation2 + $0xf00] sm:$0xff]  ;;  %6069 = vst.msk [vmem:[#allocation2 + $0xb10] sm:$0xff] %vm305_vm3, %v5556_v11  ;;  %10729 = vmatmul.msk.bf16.gmra.mxu3 %vm3137_vm2, %v10987_v62  ;;  %v15920_v1 = vpop.f32.mrf.mxu2 }
 0x51b   : > { %v7486_v61 = vadd.f32 %v15886_v5, %v6970_v22  ;;  %v7226_v46 = vmul.f32 %v15867_v9, %v6710_v24  ;;  %v6327_v7 = vld [vmem:[#allocation2 + $0x308] sm:$0xff]  ;;  %6197 = vst.msk [vmem:[#allocation2 + $0xf10] sm:$0xff] %vm305_vm3, %v5684_v43  ;;  %v15928_v29 = vpop.f32.mrf.mxu0 }
 0x51c   : > { %v7614_v59 = vadd.f32 %v15886_v5, %v7098_v49  ;;  %v6843_v17 = vmul.f32 %v15867_v9, %v6327_v7  ;;  %v6455_v53 = vld [vmem:[#allocation2 + $0x708] sm:$0xff]  ;;  %5814 = vst.msk [vmem:[#allocation2 + $0x318] sm:$0xff] %vm305_vm3, %v5301_v32 }
 0x51d   : > { %v7998_v14 = vmax.f32 %v7486_v61, 0.0  ;;  %v7742_v13 = vadd.f32 %v15886_v5, %v7226_v46  ;;  %v6971_v42 = vmul.f32 %v15867_v9, %v6455_v53  ;;  %v6583_v31 = vld [vmem:[#allocation2 + $0xb08] sm:$0xff]  ;;  %5942 = vst.msk [vmem:[#allocation2 + $0x718] sm:$0xff] %vm305_vm3, %v5429_v12  ;;  %v15922_v56 = vpop.f32.mrf.mxu3 }
 0x51e   : > { %v8126_v26 = vmax.f32 %v7614_v59, 0.0  ;;  %v7359_v58 = vadd.f32 %v15886_v5, %v6843_v17  ;;  %v7099_v33 = vmul.f32 %v15867_v9, %v6583_v31  ;;  %v6711_v54 = vld [vmem:[#allocation2 + $0xf08] sm:$0xff]  ;;  %6070 = vst.msk [vmem:[#allocation2 + $0xb18] sm:$0xff] %vm305_vm3, %v5557_v0 }
 0x51f   : > { %v8510_v20 = vpack.c.bf16 %v7998_v14, %v7998_v14  ;;  %v8254_v21 = vmax.f32 %v7742_v13, 0.0  ;;  %v7487_v52 = vadd.f32 %v15886_v5, %v6971_v42  ;;  %v7227_v19 = vmul.f32 %v15867_v9, %v6711_v54  ;;  %v6328_v25 = vld [vmem:[#allocation2 + $0x310] sm:$0xff]  ;;  %6198 = vst.msk [vmem:[#allocation2 + $0xf18] sm:$0xff] %vm305_vm3, %v5685_v37 }
 0x520   : > { %v8638_v55 = vpack.c.bf16 %v8126_v26, %v8126_v26  ;;  %v7871_v39 = vmax.f32 %v7359_v58, 0.0  ;;  %v7615_v8 = vadd.f32 %v15886_v5, %v7099_v33  ;;  %v6844_v16 = vmul.f32 %v15867_v9, %v6328_v25  ;;  %v6456_v57 = vld [vmem:[#allocation2 + $0x710] sm:$0xff]  ;;  %5815 = vst.msk [vmem:[#allocation2 + $0x320] sm:$0xff] %vm305_vm3, %v5302_v23  ;;  %v15930_v27 = vpop.f32.mrf.mxu1 }
 0x521   : > { %9023 = vst.msk [vmem:[%s11330_s10 + $0x380] sm:$0xf] %vm8798_vm4, %v8510_v20  ;;  %v8766_v4 = vpack.c.bf16 %v8254_v21, %v8254_v21  ;;  %v7999_v40 = vmax.f32 %v7487_v52, 0.0  ;;  %v7743_v15 = vadd.f32 %v15886_v5, %v7227_v19  ;;  %v6972_v60 = vmul.f32 %v15867_v9, %v6456_v57  ;;  %v6584_v38 = vld [vmem:[#allocation2 + $0xb10] sm:$0xff]  ;;  %v1174_v57 = vld [vmem:[#allocation2 + $0xb20] sm:$0xff] }
 0x522   : > { %9151 = vst.msk [vmem:[%s11330_s10 + $0x580] sm:$0xf] %vm8798_vm4, %v8638_v55  ;;  %v8383_v28 = vpack.c.bf16 %v7871_v39, %v7871_v39  ;;  %v8127_v44 = vmax.f32 %v7615_v8, 0.0  ;;  %v7360_v11 = vadd.f32 %v15886_v5, %v6844_v16  ;;  %v7100_v2 = vmul.f32 %v15867_v9, %v6584_v38  ;;  %v6712_v43 = vld [vmem:[#allocation2 + $0xf10] sm:$0xff]  ;;  %v15959_v19 = vpop.f32.mrf.mxu2  ;;  %v1046_v16 = vld [vmem:[#allocation2 + $0x720] sm:$0xff] }
 0x523   : > { %9279 = vst.msk [vmem:[%s11330_s10 + $0x780] sm:$0xf] %vm8798_vm4, %v8766_v4  ;;  %v8511_v32 = vpack.c.bf16 %v7999_v40, %v7999_v40  ;;  %v8255_v36 = vmax.f32 %v7743_v15, 0.0  ;;  %v7488_v22 = vadd.f32 %v15886_v5, %v6972_v60  ;;  %v7228_v30 = vmul.f32 %v15867_v9, %v6712_v43  ;;  %v6329_v12 = vld [vmem:[#allocation2 + $0x318] sm:$0xff]  ;;  %v15966_v4 = vpop.f32.mrf.mxu0  ;;  %v10796_v38 = vld [vmem:[%s11136_s29 + $0x1e0] sm:$0xff] }
 0x524   : > { %8896 = vst.msk [vmem:[%s11330_s10 + $0x184] sm:$0xf] %vm8798_vm4, %v8383_v28  ;;  %v8639_v10 = vpack.c.bf16 %v8127_v44, %v8127_v44  ;;  %v7872_v49 = vmax.f32 %v7360_v11, 0.0  ;;  %v7616_v24 = vadd.f32 %v15886_v5, %v7100_v2  ;;  %v6845_v0 = vmul.f32 %v15867_v9, %v6329_v12  ;;  %v6457_v61 = vld [vmem:[#allocation2 + $0x718] sm:$0xff]  ;;  %v10860_v28 = vld [vmem:[%s11136_s29 + $0x3e0] sm:$0xff] }
 0x525   : > { %9024 = vst.msk [vmem:[%s11330_s10 + $0x384] sm:$0xf] %vm8798_vm4, %v8511_v32  ;;  %v8767_v46 = vpack.c.bf16 %v8255_v36, %v8255_v36  ;;  %v8000_v7 = vmax.f32 %v7488_v22, 0.0  ;;  %v7744_v37 = vadd.f32 %v15886_v5, %v7228_v30  ;;  %v6973_v51 = vmul.f32 %v15867_v9, %v6457_v61  ;;  %v6585_v18 = vld [vmem:[#allocation2 + $0xb18] sm:$0xff]  ;;  %v15961_v25 = vpop.f32.mrf.mxu3  ;;  %v10924_v44 = vld [vmem:[%s11136_s29 + $0x5e0] sm:$0xff]  ;;  %v919_v30 = vld [vmem:[#allocation2 + $0x328] sm:$0xff]  ;;  %10538 = vmatmul.msk.bf16.gmra.mxu0 %vm3137_vm2, %v10796_v38 }
 0x526   : > { %9152 = vst.msk [vmem:[%s11330_s10 + $0x584] sm:$0xf] %vm8798_vm4, %v8639_v10  ;;  %v8384_v59 = vpack.c.bf16 %v7872_v49, %v7872_v49  ;;  %v8128_v17 = vmax.f32 %v7616_v24, 0.0  ;;  %v7361_v53 = vadd.f32 %v15886_v5, %v6845_v0  ;;  %v7101_v23 = vmul.f32 %v15867_v9, %v6585_v18  ;;  %v6713_v6 = vld [vmem:[#allocation2 + $0xf18] sm:$0xff]  ;;  %v1302_v43 = vld [vmem:[#allocation2 + $0xf20] sm:$0xff]  ;;  %10602 = vmatmul.msk.bf16.gmra.mxu1 %vm3137_vm2, %v10860_v28  ;;  %v1047_v49 = vld [vmem:[#allocation2 + $0x728] sm:$0xff] }
 0x527   : > { %9280 = vst.msk [vmem:[%s11330_s10 + $0x784] sm:$0xf] %vm8798_vm4, %v8767_v46  ;;  %v8512_v62 = vpack.c.bf16 %v8000_v7, %v8000_v7  ;;  %v8256_v14 = vmax.f32 %v7744_v37, 0.0  ;;  %v7489_v13 = vadd.f32 %v15886_v5, %v6973_v51  ;;  %v7229_v42 = vmul.f32 %v15867_v9, %v6713_v6  ;;  %v6330_v31 = vld [vmem:[#allocation2 + $0x320] sm:$0xff]  ;;  %10666 = vmatmul.msk.bf16.gmra.mxu2 %vm3137_vm2, %v10924_v44  ;;  %v1303_v61 = vld [vmem:[#allocation2 + $0xf28] sm:$0xff] }
 0x528   : > { %8897 = vst.msk [vmem:[%s11330_s10 + $0x188] sm:$0xf] %vm8798_vm4, %v8384_v59  ;;  %v8640_v26 = vpack.c.bf16 %v8128_v17, %v8128_v17  ;;  %v7873_v58 = vmax.f32 %v7361_v53, 0.0  ;;  %v7617_v33 = vadd.f32 %v15886_v5, %v7101_v23  ;;  %v6846_v54 = vmul.f32 %v15867_v9, %v6330_v31  ;;  %v15968_v40 = vpop.f32.mrf.mxu1  ;;  %v10988_v32 = vld [vmem:[%s11136_s29 + $0x7e0] sm:$0xff]  ;;  %v1176_v17 = vld [vmem:[#allocation2 + $0xb30] sm:$0xff]  ;;  %v10925_v38 = vld [vmem:[%s11136_s29 + $0x5e8] sm:$0xff] }
 0x529   : > { %9025 = vst.msk [vmem:[%s11330_s10 + $0x388] sm:$0xf] %vm8798_vm4, %v8512_v62  ;;  %v8768_v20 = vpack.c.bf16 %v8256_v14, %v8256_v14  ;;  %v8001_v21 = vmax.f32 %v7489_v13, 0.0  ;;  %v7745_v52 = vadd.f32 %v15886_v5, %v7229_v42  ;;  %v5430_v22 = vadd.f32 %v15814_v48, %v1046_v16  ;;  %v1175_v48 = vld [vmem:[#allocation2 + $0xb28] sm:$0xff]  ;;  %v1304_v53 = vld [vmem:[#allocation2 + $0xf30] sm:$0xff]  ;;  %v1049_v62 = vld [vmem:[#allocation2 + $0x738] sm:$0xff] }
 0x52a   : > { %9153 = vst.msk [vmem:[%s11330_s10 + $0x588] sm:$0xf] %vm8798_vm4, %v8640_v26  ;;  %v8385_v55 = vpack.c.bf16 %v7873_v58, %v7873_v58  ;;  %v8129_v39 = vmax.f32 %v7617_v33, 0.0  ;;  %v7362_v8 = vadd.f32 %v15886_v5, %v6846_v54  ;;  %v5558_v10 = vadd.f32 %v15842_v35, %v1174_v57  ;;  %10730 = vmatmul.msk.bf16.gmra.mxu3 %vm3137_vm2, %v10988_v32  ;;  %v920_v35 = vld [vmem:[#allocation2 + $0x330] sm:$0xff]  ;;  %v15996_v7 = vpop.f32.mrf.mxu2  ;;  %v1177_v14 = vld [vmem:[#allocation2 + $0xb38] sm:$0xff]  ;;  %v922_v26 = vld [vmem:[#allocation2 + $0x340] sm:$0xff] }
 0x52b   : > { %9281 = vst.msk [vmem:[%s11330_s10 + $0x788] sm:$0xf] %vm8798_vm4, %v8768_v20  ;;  %v8513_v15 = vpack.c.bf16 %v8001_v21, %v8001_v21  ;;  %v8257_v60 = vmax.f32 %v7745_v52, 0.0  ;;  %v5686_v24 = vadd.f32 %v15844_v63, %v1302_v43  ;;  %v5303_v0 = vadd.f32 %v15848_v47, %v919_v30  ;;  %v1048_v63 = vld [vmem:[#allocation2 + $0x730] sm:$0xff]  ;;  %v16002_v18 = vpop.f32.mrf.mxu0  ;;  %v1305_v42 = vld [vmem:[#allocation2 + $0xf38] sm:$0xff]  ;;  %v10861_v16 = vld [vmem:[%s11136_s29 + $0x3e8] sm:$0xff] }
 0x52c   : > { %8898 = vst.msk [vmem:[%s11330_s10 + $0x18c] sm:$0xf] %vm8798_vm4, %v8385_v55  ;;  %v8641_v11 = vpack.c.bf16 %v8129_v39, %v8129_v39  ;;  %v7874_v2 = vmax.f32 %v7362_v8, 0.0  ;;  %v5431_v46 = vadd.f32 %v15850_v3, %v1047_v49  ;;  %v5559_v51 = vadd.f32 %v15872_v50, %v1175_v48  ;;  %v921_v50 = vld [vmem:[#allocation2 + $0x338] sm:$0xff]  ;;  %v10797_v8 = vld [vmem:[%s11136_s29 + $0x1e8] sm:$0xff] }
 0x52d   : > { %9026 = vst.msk [vmem:[%s11330_s10 + $0x38c] sm:$0xf] %vm8798_vm4, %v8513_v15  ;;  %v8769_v36 = vpack.c.bf16 %v8257_v60, %v8257_v60  ;;  %v15998_v37 = vpop.f32.mrf.mxu3  ;;  %v5687_v47 = vadd.f32 %v15874_v45, %v1303_v61  ;;  %v5304_v3 = vadd.f32 %v15879_v34, %v920_v35  ;;  %v5432_v23 = vadd.f32 %v15881_v41, %v1048_v63  ;;  %v10989_v28 = vld [vmem:[%s11136_s29 + $0x7e8] sm:$0xff] }
 0x52e   : > { %9154 = vst.msk [vmem:[%s11330_s10 + $0x58c] sm:$0xf] %vm8798_vm4, %v8641_v11  ;;  %v8386_v12 = vpack.c.bf16 %v7874_v2, %v7874_v2  ;;  %v5560_v6 = vadd.f32 %v15920_v1, %v1176_v17  ;;  %v5688_v45 = vadd.f32 %v15922_v56, %v1304_v53  ;;  %v5305_v34 = vadd.f32 %v15928_v29, %v921_v50 }
 0x52f   : > { %9282 = vst.msk [vmem:[%s11330_s10 + $0x78c] sm:$0xf] %vm8798_vm4, %v8769_v36  ;;  %v5433_v1 = vadd.f32 %v15930_v27, %v1049_v62  ;;  %v5561_v29 = vadd.f32 %v15959_v19, %v1177_v14  ;;  %v5689_v39 = vadd.f32 %v15961_v25, %v1305_v42  ;;  %v5306_v60 = vadd.f32 %v15966_v4, %v922_v26 }
 0x530   : > { %8899 = vst.msk [vmem:[%s11330_s10 + $0x190] sm:$0xf] %vm8798_vm4, %v8386_v12  ;;  %v16004_v59 = vpop.f32.mrf.mxu1 }
 0x531   : > { %5943 = vst.msk [vmem:[#allocation2 + $0x720] sm:$0xff] %vm305_vm3, %v5430_v22 }
 0x532   : > { %6071 = vst.msk [vmem:[#allocation2 + $0xb20] sm:$0xff] %vm305_vm3, %v5558_v10  ;;  %v16021_v58 = vpop.f32.mrf.mxu2 }
 0x533   : > { %6199 = vst.msk [vmem:[#allocation2 + $0xf20] sm:$0xff] %vm305_vm3, %v5686_v24  ;;  %v16028_v20 = vpop.f32.mrf.mxu0 }
 0x534   : > { %5816 = vst.msk [vmem:[#allocation2 + $0x328] sm:$0xff] %vm305_vm3, %v5303_v0 }
 0x535   : > { %5944 = vst.msk [vmem:[#allocation2 + $0x728] sm:$0xff] %vm305_vm3, %v5431_v46  ;;  %v16023_v56 = vpop.f32.mrf.mxu3  ;;  %10539 = vmatmul.msk.bf16.gmra.mxu0 %vm3137_vm2, %v10797_v8 }
 0x536   : > { %6072 = vst.msk [vmem:[#allocation2 + $0xb28] sm:$0xff] %vm305_vm3, %v5559_v51  ;;  %10603 = vmatmul.msk.bf16.gmra.mxu1 %vm3137_vm2, %v10861_v16 }
 0x537   : > { %6200 = vst.msk [vmem:[#allocation2 + $0xf28] sm:$0xff] %vm305_vm3, %v5687_v47  ;;  %10667 = vmatmul.msk.bf16.gmra.mxu2 %vm3137_vm2, %v10925_v38 }
 0x538   : > { %v6458_v13 = vld [vmem:[#allocation2 + $0x720] sm:$0xff]  ;;  %5817 = vst.msk [vmem:[#allocation2 + $0x330] sm:$0xff] %vm305_vm3, %v5304_v3  ;;  %v16030_v21 = vpop.f32.mrf.mxu1 }
 0x539   : > { %v6974_v31 = vmul.f32 %v15867_v9, %v6458_v13  ;;  %v6586_v41 = vld [vmem:[#allocation2 + $0xb20] sm:$0xff]  ;;  %5945 = vst.msk [vmem:[#allocation2 + $0x730] sm:$0xff] %vm305_vm3, %v5432_v23 }
 0x53a   : > { %v7102_v33 = vmul.f32 %v15867_v9, %v6586_v41  ;;  %v6714_v54 = vld [vmem:[#allocation2 + $0xf20] sm:$0xff]  ;;  %6073 = vst.msk [vmem:[#allocation2 + $0xb30] sm:$0xff] %vm305_vm3, %v5560_v6  ;;  %10731 = vmatmul.msk.bf16.gmra.mxu3 %vm3137_vm2, %v10989_v28  ;;  %v16064_v3 = vpop.f32.mrf.mxu2 }
 0x53b   : > { %v7490_v27 = vadd.f32 %v15886_v5, %v6974_v31  ;;  %v7230_v52 = vmul.f32 %v15867_v9, %v6714_v54  ;;  %v6331_v55 = vld [vmem:[#allocation2 + $0x328] sm:$0xff]  ;;  %6201 = vst.msk [vmem:[#allocation2 + $0xf30] sm:$0xff] %vm305_vm3, %v5688_v45  ;;  %v16072_v14 = vpop.f32.mrf.mxu0 }
 0x53c   : > { %v7618_v57 = vadd.f32 %v15886_v5, %v7102_v33  ;;  %v6847_v19 = vmul.f32 %v15867_v9, %v6331_v55  ;;  %v6459_v15 = vld [vmem:[#allocation2 + $0x728] sm:$0xff]  ;;  %5818 = vst.msk [vmem:[#allocation2 + $0x338] sm:$0xff] %vm305_vm3, %v5305_v34 }
 0x53d   : > { %v8002_v44 = vmax.f32 %v7490_v27, 0.0  ;;  %v7746_v11 = vadd.f32 %v15886_v5, %v7230_v52  ;;  %v6975_v2 = vmul.f32 %v15867_v9, %v6459_v15  ;;  %v6587_v43 = vld [vmem:[#allocation2 + $0xb28] sm:$0xff]  ;;  %5946 = vst.msk [vmem:[#allocation2 + $0x738] sm:$0xff] %vm305_vm3, %v5433_v1  ;;  %v16066_v53 = vpop.f32.mrf.mxu3 }
 0x53e   : > { %v8130_v25 = vmax.f32 %v7618_v57, 0.0  ;;  %v7363_v32 = vadd.f32 %v15886_v5, %v6847_v19  ;;  %v7103_v36 = vmul.f32 %v15867_v9, %v6587_v43  ;;  %v6715_v4 = vld [vmem:[#allocation2 + $0xf28] sm:$0xff]  ;;  %6074 = vst.msk [vmem:[#allocation2 + $0xb38] sm:$0xff] %vm305_vm3, %v5561_v29 }
 0x53f   : > { %v8514_v22 = vpack.c.bf16 %v8002_v44, %v8002_v44  ;;  %v8258_v30 = vmax.f32 %v7746_v11, 0.0  ;;  %v7491_v12 = vadd.f32 %v15886_v5, %v6975_v2  ;;  %v7231_v10 = vmul.f32 %v15867_v9, %v6715_v4  ;;  %v6332_v49 = vld [vmem:[#allocation2 + $0x330] sm:$0xff]  ;;  %6202 = vst.msk [vmem:[#allocation2 + $0xf38] sm:$0xff] %vm305_vm3, %v5689_v39 }
 0x540   : > { %v8642_v24 = vpack.c.bf16 %v8130_v25, %v8130_v25  ;;  %v7875_v48 = vmax.f32 %v7363_v32, 0.0  ;;  %v7619_v0 = vadd.f32 %v15886_v5, %v7103_v36  ;;  %v6848_v61 = vmul.f32 %v15867_v9, %v6332_v49  ;;  %v6460_v46 = vld [vmem:[#allocation2 + $0x730] sm:$0xff]  ;;  %5819 = vst.msk [vmem:[#allocation2 + $0x340] sm:$0xff] %vm305_vm3, %v5306_v60  ;;  %v16074_v13 = vpop.f32.mrf.mxu1 }
 0x541   : > { %9027 = vst.msk [vmem:[%s11330_s10 + $0x390] sm:$0xf] %vm8798_vm4, %v8514_v22  ;;  %v8770_v35 = vpack.c.bf16 %v8258_v30, %v8258_v30  ;;  %v8003_v51 = vmax.f32 %v7491_v12, 0.0  ;;  %v7747_v63 = vadd.f32 %v15886_v5, %v7231_v10  ;;  %v6976_v47 = vmul.f32 %v15867_v9, %v6460_v46  ;;  %v6588_v17 = vld [vmem:[#allocation2 + $0xb30] sm:$0xff]  ;;  %v1178_v46 = vld [vmem:[#allocation2 + $0xb40] sm:$0xff] }
 0x542   : > { %9155 = vst.msk [vmem:[%s11330_s10 + $0x590] sm:$0xf] %vm8798_vm4, %v8642_v24  ;;  %v8387_v23 = vpack.c.bf16 %v7875_v48, %v7875_v48  ;;  %v8131_v50 = vmax.f32 %v7619_v0, 0.0  ;;  %v7364_v6 = vadd.f32 %v15886_v5, %v6848_v61  ;;  %v7104_v62 = vmul.f32 %v15867_v9, %v6588_v17  ;;  %v6716_v45 = vld [vmem:[#allocation2 + $0xf30] sm:$0xff]  ;;  %v16103_v10 = vpop.f32.mrf.mxu2  ;;  %v1050_v61 = vld [vmem:[#allocation2 + $0x740] sm:$0xff] }
 0x543   : > { %9283 = vst.msk [vmem:[%s11330_s10 + $0x790] sm:$0xf] %vm8798_vm4, %v8770_v35  ;;  %v8515_v34 = vpack.c.bf16 %v8003_v51, %v8003_v51  ;;  %v8259_v42 = vmax.f32 %v7747_v63, 0.0  ;;  %v7492_v31 = vadd.f32 %v15886_v5, %v6976_v47  ;;  %v7232_v41 = vmul.f32 %v15867_v9, %v6716_v45  ;;  %v6333_v1 = vld [vmem:[#allocation2 + $0x338] sm:$0xff]  ;;  %v16110_v35 = vpop.f32.mrf.mxu0  ;;  %v10798_v17 = vld [vmem:[%s11136_s29 + $0x1f0] sm:$0xff]  ;;  %v1306_v45 = vld [vmem:[#allocation2 + $0xf40] sm:$0xff] }
 0x544   : > { %8900 = vst.msk [vmem:[%s11330_s10 + $0x194] sm:$0xf] %vm8798_vm4, %v8387_v23  ;;  %v8643_v26 = vpack.c.bf16 %v8131_v50, %v8131_v50  ;;  %v7876_v33 = vmax.f32 %v7364_v6, 0.0  ;;  %v7620_v54 = vadd.f32 %v15886_v5, %v7104_v62  ;;  %v6849_v29 = vmul.f32 %v15867_v9, %v6333_v1  ;;  %v6461_v27 = vld [vmem:[#allocation2 + $0x738] sm:$0xff]  ;;  %v10862_v23 = vld [vmem:[%s11136_s29 + $0x3f0] sm:$0xff] }
 0x545   : > { %9028 = vst.msk [vmem:[%s11330_s10 + $0x394] sm:$0xf] %vm8798_vm4, %v8515_v34  ;;  %v8771_v52 = vpack.c.bf16 %v8259_v42, %v8259_v42  ;;  %v8004_v55 = vmax.f32 %v7492_v31, 0.0  ;;  %v7748_v39 = vadd.f32 %v15886_v5, %v7232_v41  ;;  %v6977_v8 = vmul.f32 %v15867_v9, %v6461_v27  ;;  %v6589_v16 = vld [vmem:[#allocation2 + $0xb38] sm:$0xff]  ;;  %v16105_v49 = vpop.f32.mrf.mxu3  ;;  %v10926_v50 = vld [vmem:[%s11136_s29 + $0x5f0] sm:$0xff]  ;;  %v923_v41 = vld [vmem:[#allocation2 + $0x348] sm:$0xff]  ;;  %10540 = vmatmul.msk.bf16.gmra.mxu0 %vm3137_vm2, %v10798_v17 }
 0x546   : > { %9156 = vst.msk [vmem:[%s11330_s10 + $0x594] sm:$0xf] %vm8798_vm4, %v8643_v26  ;;  %v8388_v57 = vpack.c.bf16 %v7876_v33, %v7876_v33  ;;  %v8132_v19 = vmax.f32 %v7620_v54, 0.0  ;;  %v7365_v15 = vadd.f32 %v15886_v5, %v6849_v29  ;;  %v7105_v60 = vmul.f32 %v15867_v9, %v6589_v16  ;;  %v6717_v38 = vld [vmem:[#allocation2 + $0xf38] sm:$0xff]  ;;  %v10990_v34 = vld [vmem:[%s11136_s29 + $0x7f0] sm:$0xff]  ;;  %10604 = vmatmul.msk.bf16.gmra.mxu1 %vm3137_vm2, %v10862_v23  ;;  %v1051_v33 = vld [vmem:[#allocation2 + $0x748] sm:$0xff] }
 0x547   : > { %9284 = vst.msk [vmem:[%s11330_s10 + $0x794] sm:$0xf] %vm8798_vm4, %v8771_v52  ;;  %v8516_v28 = vpack.c.bf16 %v8004_v55, %v8004_v55  ;;  %v8260_v44 = vmax.f32 %v7748_v39, 0.0  ;;  %v7493_v11 = vadd.f32 %v15886_v5, %v6977_v8  ;;  %v7233_v2 = vmul.f32 %v15867_v9, %v6717_v38  ;;  %v6334_v43 = vld [vmem:[#allocation2 + $0x340] sm:$0xff]  ;;  %10668 = vmatmul.msk.bf16.gmra.mxu2 %vm3137_vm2, %v10926_v50  ;;  %v1307_v27 = vld [vmem:[#allocation2 + $0xf48] sm:$0xff]  ;;  %v10927_v17 = vld [vmem:[%s11136_s29 + $0x5f8] sm:$0xff] }
 0x548   : > { %8901 = vst.msk [vmem:[%s11330_s10 + $0x198] sm:$0xf] %vm8798_vm4, %v8388_v57  ;;  %v8644_v25 = vpack.c.bf16 %v8132_v19, %v8132_v19  ;;  %v7877_v32 = vmax.f32 %v7365_v15, 0.0  ;;  %v7621_v36 = vadd.f32 %v15886_v5, %v7105_v60  ;;  %v6850_v4 = vmul.f32 %v15867_v9, %v6334_v43  ;;  %v16112_v51 = vpop.f32.mrf.mxu1  ;;  %v1180_v19 = vld [vmem:[#allocation2 + $0xb50] sm:$0xff]  ;;  %v10991_v23 = vld [vmem:[%s11136_s29 + $0x7f8] sm:$0xff] }
 0x549   : > { %9029 = vst.msk [vmem:[%s11330_s10 + $0x398] sm:$0xf] %vm8798_vm4, %v8516_v28  ;;  %v8772_v22 = vpack.c.bf16 %v8260_v44, %v8260_v44  ;;  %v8005_v30 = vmax.f32 %v7493_v11, 0.0  ;;  %v7749_v12 = vadd.f32 %v15886_v5, %v7233_v2  ;;  %v5434_v31 = vadd.f32 %v15968_v40, %v1050_v61  ;;  %v1179_v40 = vld [vmem:[#allocation2 + $0xb48] sm:$0xff]  ;;  %v1308_v15 = vld [vmem:[#allocation2 + $0xf50] sm:$0xff]  ;;  %v1053_v28 = vld [vmem:[#allocation2 + $0x758] sm:$0xff] }
 0x54a   : > { %9157 = vst.msk [vmem:[%s11330_s10 + $0x598] sm:$0xf] %vm8798_vm4, %v8644_v25  ;;  %v8389_v24 = vpack.c.bf16 %v7877_v32, %v7877_v32  ;;  %v8133_v48 = vmax.f32 %v7621_v36, 0.0  ;;  %v7366_v0 = vadd.f32 %v15886_v5, %v6850_v4  ;;  %v5562_v26 = vadd.f32 %v15996_v7, %v1178_v46  ;;  %10732 = vmatmul.msk.bf16.gmra.mxu3 %vm3137_vm2, %v10990_v34  ;;  %v924_v7 = vld [vmem:[#allocation2 + $0x350] sm:$0xff]  ;;  %v16140_v55 = vpop.f32.mrf.mxu2  ;;  %v1181_v44 = vld [vmem:[#allocation2 + $0xb58] sm:$0xff]  ;;  %v926_v25 = vld [vmem:[#allocation2 + $0x360] sm:$0xff] }
 0x54b   : > { %9285 = vst.msk [vmem:[%s11330_s10 + $0x798] sm:$0xf] %vm8798_vm4, %v8772_v22  ;;  %v8517_v63 = vpack.c.bf16 %v8005_v30, %v8005_v30  ;;  %v8261_v47 = vmax.f32 %v7749_v12, 0.0  ;;  %v5690_v54 = vadd.f32 %v15998_v37, %v1306_v45  ;;  %v5307_v29 = vadd.f32 %v16002_v18, %v923_v41  ;;  %v1052_v37 = vld [vmem:[#allocation2 + $0x750] sm:$0xff]  ;;  %v16146_v16 = vpop.f32.mrf.mxu0  ;;  %v1309_v2 = vld [vmem:[#allocation2 + $0xf58] sm:$0xff] }
 0x54c   : > { %8902 = vst.msk [vmem:[%s11330_s10 + $0x19c] sm:$0xf] %vm8798_vm4, %v8389_v24  ;;  %v8645_v6 = vpack.c.bf16 %v8133_v48, %v8133_v48  ;;  %v7878_v62 = vmax.f32 %v7366_v0, 0.0  ;;  %v5435_v52 = vadd.f32 %v16004_v59, %v1051_v33  ;;  %v5563_v8 = vadd.f32 %v16021_v58, %v1179_v40  ;;  %v925_v58 = vld [vmem:[#allocation2 + $0x358] sm:$0xff] }
 0x54d   : > { %9030 = vst.msk [vmem:[%s11330_s10 + $0x39c] sm:$0xf] %vm8798_vm4, %v8517_v63  ;;  %v8773_v42 = vpack.c.bf16 %v8261_v47, %v8261_v47  ;;  %v16142_v39 = vpop.f32.mrf.mxu3  ;;  %v5691_v18 = vadd.f32 %v16023_v56, %v1307_v27  ;;  %v5308_v59 = vadd.f32 %v16028_v20, %v924_v7  ;;  %v5436_v60 = vadd.f32 %v16030_v21, %v1052_v37  ;;  %v10799_v0 = vld [vmem:[%s11136_s29 + $0x1f8] sm:$0xff] }
 0x54e   : > { %9158 = vst.msk [vmem:[%s11330_s10 + $0x59c] sm:$0xf] %vm8798_vm4, %v8645_v6  ;;  %v8390_v1 = vpack.c.bf16 %v7878_v62, %v7878_v62  ;;  %v5564_v38 = vadd.f32 %v16064_v3, %v1180_v19  ;;  %v5692_v56 = vadd.f32 %v16066_v53, %v1308_v15  ;;  %v5309_v20 = vadd.f32 %v16072_v14, %v925_v58  ;;  %v10863_v61 = vld [vmem:[%s11136_s29 + $0x3f8] sm:$0xff] }
 0x54f   : > { %9286 = vst.msk [vmem:[%s11330_s10 + $0x79c] sm:$0xf] %vm8798_vm4, %v8773_v42  ;;  %v5437_v3 = vadd.f32 %v16074_v13, %v1053_v28  ;;  %v5565_v14 = vadd.f32 %v16103_v10, %v1181_v44  ;;  %v5693_v48 = vadd.f32 %v16105_v49, %v1309_v2  ;;  %v5310_v47 = vadd.f32 %v16110_v35, %v926_v25 }
 0x550   : > { %8903 = vst.msk [vmem:[%s11330_s10 + $0x1a0] sm:$0xf] %vm8798_vm4, %v8390_v1  ;;  %v16148_v57 = vpop.f32.mrf.mxu1 }
 0x551   : > { %5947 = vst.msk [vmem:[#allocation2 + $0x740] sm:$0xff] %vm305_vm3, %v5434_v31 }
 0x552   : > { %6075 = vst.msk [vmem:[#allocation2 + $0xb40] sm:$0xff] %vm305_vm3, %v5562_v26  ;;  %v16165_v32 = vpop.f32.mrf.mxu2 }
 0x553   : > { %6203 = vst.msk [vmem:[#allocation2 + $0xf40] sm:$0xff] %vm305_vm3, %v5690_v54  ;;  %v16172_v22 = vpop.f32.mrf.mxu0 }
 0x554   : > { %5820 = vst.msk [vmem:[#allocation2 + $0x348] sm:$0xff] %vm305_vm3, %v5307_v29 }
 0x555   : > { %5948 = vst.msk [vmem:[#allocation2 + $0x748] sm:$0xff] %vm305_vm3, %v5435_v52  ;;  %v16167_v53 = vpop.f32.mrf.mxu3  ;;  %10541 = vmatmul.msk.bf16.gmra.mxu0 %vm3137_vm2, %v10799_v0 }
 0x556   : > { %6076 = vst.msk [vmem:[#allocation2 + $0xb48] sm:$0xff] %vm305_vm3, %v5563_v8  ;;  %10605 = vmatmul.msk.bf16.gmra.mxu1 %vm3137_vm2, %v10863_v61 }
 0x557   : > { %6204 = vst.msk [vmem:[#allocation2 + $0xf48] sm:$0xff] %vm305_vm3, %v5691_v18  ;;  %10669 = vmatmul.msk.bf16.gmra.mxu2 %vm3137_vm2, %v10927_v17 }
 0x558   : > { %v6462_v11 = vld [vmem:[#allocation2 + $0x740] sm:$0xff]  ;;  %5821 = vst.msk [vmem:[#allocation2 + $0x350] sm:$0xff] %vm305_vm3, %v5308_v59  ;;  %v16174_v30 = vpop.f32.mrf.mxu1 }
 0x559   : > { %v6978_v43 = vmul.f32 %v15867_v9, %v6462_v11  ;;  %v6590_v21 = vld [vmem:[#allocation2 + $0xb40] sm:$0xff]  ;;  %5949 = vst.msk [vmem:[#allocation2 + $0x750] sm:$0xff] %vm305_vm3, %v5436_v60 }
 0x55a   : > { %v7106_v36 = vmul.f32 %v15867_v9, %v6590_v21  ;;  %v6718_v4 = vld [vmem:[#allocation2 + $0xf40] sm:$0xff]  ;;  %6077 = vst.msk [vmem:[#allocation2 + $0xb50] sm:$0xff] %vm305_vm3, %v5564_v38  ;;  %10733 = vmatmul.msk.bf16.gmra.mxu3 %vm3137_vm2, %v10991_v23  ;;  %v16208_v59 = vpop.f32.mrf.mxu2 }
 0x55b   : > { %v7494_v13 = vadd.f32 %v15886_v5, %v6978_v43  ;;  %v7234_v12 = vmul.f32 %v15867_v9, %v6718_v4  ;;  %v6335_v24 = vld [vmem:[#allocation2 + $0x348] sm:$0xff]  ;;  %6205 = vst.msk [vmem:[#allocation2 + $0xf50] sm:$0xff] %vm305_vm3, %v5692_v56  ;;  %v16216_v44 = vpop.f32.mrf.mxu0 }
 0x55c   : > { %v7622_v46 = vadd.f32 %v15886_v5, %v7106_v36  ;;  %v6851_v10 = vmul.f32 %v15867_v9, %v6335_v24  ;;  %v6463_v63 = vld [vmem:[#allocation2 + $0x748] sm:$0xff]  ;;  %5822 = vst.msk [vmem:[#allocation2 + $0x358] sm:$0xff] %vm305_vm3, %v5309_v20 }
 0x55d   : > { %v8006_v50 = vmax.f32 %v7494_v13, 0.0  ;;  %v7750_v6 = vadd.f32 %v15886_v5, %v7234_v12  ;;  %v6979_v62 = vmul.f32 %v15867_v9, %v6463_v63  ;;  %v6591_v45 = vld [vmem:[#allocation2 + $0xb48] sm:$0xff]  ;;  %5950 = vst.msk [vmem:[#allocation2 + $0x758] sm:$0xff] %vm305_vm3, %v5437_v3  ;;  %v16210_v15 = vpop.f32.mrf.mxu3 }
 0x55e   : > { %v8134_v49 = vmax.f32 %v7622_v46, 0.0  ;;  %v7367_v34 = vadd.f32 %v15886_v5, %v6851_v10  ;;  %v7107_v42 = vmul.f32 %v15867_v9, %v6591_v45  ;;  %v6719_v35 = vld [vmem:[#allocation2 + $0xf48] sm:$0xff]  ;;  %6078 = vst.msk [vmem:[#allocation2 + $0xb58] sm:$0xff] %vm305_vm3, %v5565_v14 }
 0x55f   : > { %v8518_v31 = vpack.c.bf16 %v8006_v50, %v8006_v50  ;;  %v8262_v41 = vmax.f32 %v7750_v6, 0.0  ;;  %v7495_v1 = vadd.f32 %v15886_v5, %v6979_v62  ;;  %v7235_v26 = vmul.f32 %v15867_v9, %v6719_v35  ;;  %v6336_v33 = vld [vmem:[#allocation2 + $0x350] sm:$0xff]  ;;  %6206 = vst.msk [vmem:[#allocation2 + $0xf58] sm:$0xff] %vm305_vm3, %v5693_v48 }
 0x560   : > { %v8646_v54 = vpack.c.bf16 %v8134_v49, %v8134_v49  ;;  %v7879_v40 = vmax.f32 %v7367_v34, 0.0  ;;  %v7623_v29 = vadd.f32 %v15886_v5, %v7107_v42  ;;  %v6852_v27 = vmul.f32 %v15867_v9, %v6336_v33  ;;  %v6464_v52 = vld [vmem:[#allocation2 + $0x750] sm:$0xff]  ;;  %5823 = vst.msk [vmem:[#allocation2 + $0x360] sm:$0xff] %vm305_vm3, %v5310_v47  ;;  %v16218_v11 = vpop.f32.mrf.mxu1 }
 0x561   : > { %9031 = vst.msk [vmem:[%s11330_s10 + $0x3a0] sm:$0xf] %vm8798_vm4, %v8518_v31  ;;  %v8774_v7 = vpack.c.bf16 %v8262_v41, %v8262_v41  ;;  %v8007_v8 = vmax.f32 %v7495_v1, 0.0  ;;  %v7751_v37 = vadd.f32 %v15886_v5, %v7235_v26  ;;  %v6980_v18 = vmul.f32 %v15867_v9, %v6464_v52  ;;  %v6592_v19 = vld [vmem:[#allocation2 + $0xb50] sm:$0xff] }
 0x562   : > { %9159 = vst.msk [vmem:[%s11330_s10 + $0x5a0] sm:$0xf] %vm8798_vm4, %v8646_v54  ;;  %v8391_v60 = vpack.c.bf16 %v7879_v40, %v7879_v40  ;;  %v8135_v58 = vmax.f32 %v7623_v29, 0.0  ;;  %v7368_v38 = vadd.f32 %v15886_v5, %v6852_v27  ;;  %v7108_v28 = vmul.f32 %v15867_v9, %v6592_v19  ;;  %v6720_v56 = vld [vmem:[#allocation2 + $0xf50] sm:$0xff]  ;;  %v16247_v26 = vpop.f32.mrf.mxu2 }
 0x563   : > { %9287 = vst.msk [vmem:[%s11330_s10 + $0x7a0] sm:$0xf] %vm8798_vm4, %v8774_v7  ;;  %v8519_v20 = vpack.c.bf16 %v8007_v8, %v8007_v8  ;;  %v8263_v2 = vmax.f32 %v7751_v37, 0.0  ;;  %v7496_v43 = vadd.f32 %v15886_v5, %v6980_v18  ;;  %v7236_v21 = vmul.f32 %v15867_v9, %v6720_v56  ;;  %v6337_v3 = vld [vmem:[#allocation2 + $0x358] sm:$0xff]  ;;  %v16254_v27 = vpop.f32.mrf.mxu0  ;;  %v1182_v37 = vld [vmem:[#allocation2 + $0xb60] sm:$0xff] }
 0x564   : > { %8904 = vst.msk [vmem:[%s11330_s10 + $0x1a4] sm:$0xf] %vm8798_vm4, %v8391_v60  ;;  %v8647_v25 = vpack.c.bf16 %v8135_v58, %v8135_v58  ;;  %v7880_v36 = vmax.f32 %v7368_v38, 0.0  ;;  %v7624_v4 = vadd.f32 %v15886_v5, %v7108_v28  ;;  %v6853_v14 = vmul.f32 %v15867_v9, %v6337_v3  ;;  %v6465_v13 = vld [vmem:[#allocation2 + $0x758] sm:$0xff]  ;;  %v1310_v60 = vld [vmem:[#allocation2 + $0xf60] sm:$0xff]  ;;  %v927_v38 = vld [vmem:[#allocation2 + $0x368] sm:$0xff] }
 0x565   : > { %9032 = vst.msk [vmem:[%s11330_s10 + $0x3a4] sm:$0xf] %vm8798_vm4, %v8519_v20  ;;  %v8775_v12 = vpack.c.bf16 %v8263_v2, %v8263_v2  ;;  %v8008_v24 = vmax.f32 %v7496_v43, 0.0  ;;  %v7752_v48 = vadd.f32 %v15886_v5, %v7236_v21  ;;  %v6981_v0 = vmul.f32 %v15867_v9, %v6465_v13  ;;  %v6593_v61 = vld [vmem:[#allocation2 + $0xb58] sm:$0xff]  ;;  %v16249_v33 = vpop.f32.mrf.mxu3  ;;  %v1055_v20 = vld [vmem:[#allocation2 + $0x768] sm:$0xff] }
 0x566   : > { %9160 = vst.msk [vmem:[%s11330_s10 + $0x5a4] sm:$0xf] %vm8798_vm4, %v8647_v25  ;;  %v8392_v46 = vpack.c.bf16 %v7880_v36, %v7880_v36  ;;  %v8136_v10 = vmax.f32 %v7624_v4, 0.0  ;;  %v7369_v63 = vadd.f32 %v15886_v5, %v6853_v14  ;;  %v7109_v47 = vmul.f32 %v15867_v9, %v6593_v61  ;;  %v6721_v17 = vld [vmem:[#allocation2 + $0xf58] sm:$0xff]  ;;  %v1183_v43 = vld [vmem:[#allocation2 + $0xb68] sm:$0xff]  ;;  %v928_v25 = vld [vmem:[#allocation2 + $0x370] sm:$0xff] }
 0x567   : > { %9288 = vst.msk [vmem:[%s11330_s10 + $0x7a4] sm:$0xf] %vm8798_vm4, %v8775_v12  ;;  %v8520_v23 = vpack.c.bf16 %v8008_v24, %v8008_v24  ;;  %v8264_v50 = vmax.f32 %v7752_v48, 0.0  ;;  %v7497_v6 = vadd.f32 %v15886_v5, %v6981_v0  ;;  %v7237_v62 = vmul.f32 %v15867_v9, %v6721_v17  ;;  %v6338_v45 = vld [vmem:[#allocation2 + $0x360] sm:$0xff]  ;;  %v1311_v3 = vld [vmem:[#allocation2 + $0xf68] sm:$0xff]  ;;  %v1184_v12 = vld [vmem:[#allocation2 + $0xb70] sm:$0xff] }
 0x568   : > { %8905 = vst.msk [vmem:[%s11330_s10 + $0x1a8] sm:$0xf] %vm8798_vm4, %v8392_v46  ;;  %v8648_v49 = vpack.c.bf16 %v8136_v10, %v8136_v10  ;;  %v7881_v34 = vmax.f32 %v7369_v63, 0.0  ;;  %v7625_v42 = vadd.f32 %v15886_v5, %v7109_v47  ;;  %v6854_v35 = vmul.f32 %v15867_v9, %v6338_v45  ;;  %v1054_v9 = vld [vmem:[#allocation2 + $0x760] sm:$0xff]  ;;  %v16256_v52 = vpop.f32.mrf.mxu1  ;;  %v1312_v24 = vld [vmem:[#allocation2 + $0xf70] sm:$0xff]  ;;  %v1057_v61 = vld [vmem:[#allocation2 + $0x778] sm:$0xff] }
 0x569   : > { %9033 = vst.msk [vmem:[%s11330_s10 + $0x3a8] sm:$0xf] %vm8798_vm4, %v8520_v23  ;;  %v8776_v31 = vpack.c.bf16 %v8264_v50, %v8264_v50  ;;  %v8009_v41 = vmax.f32 %v7497_v6, 0.0  ;;  %v7753_v1 = vadd.f32 %v15886_v5, %v7237_v62  ;;  %v5438_v58 = vadd.f32 %v16112_v51, %v1054_v9  ;;  %v1185_v46 = vld [vmem:[#allocation2 + $0xb78] sm:$0xff] }
 0x56a   : > { %9161 = vst.msk [vmem:[%s11330_s10 + $0x5a8] sm:$0xf] %vm8798_vm4, %v8648_v49  ;;  %v8393_v54 = vpack.c.bf16 %v7881_v34, %v7881_v34  ;;  %v8137_v40 = vmax.f32 %v7625_v42, 0.0  ;;  %v7370_v29 = vadd.f32 %v15886_v5, %v6854_v35  ;;  %v5566_v56 = vadd.f32 %v16140_v55, %v1182_v37  ;;  %v16276_v36 = vpop.f32.mrf.mxu2  ;;  %v1313_v63 = vld [vmem:[#allocation2 + $0xf78] sm:$0xff] }
 0x56b   : > { %9289 = vst.msk [vmem:[%s11330_s10 + $0x7a8] sm:$0xf] %vm8798_vm4, %v8776_v31  ;;  %v8521_v7 = vpack.c.bf16 %v8009_v41, %v8009_v41  ;;  %v8265_v8 = vmax.f32 %v7753_v1, 0.0  ;;  %v5694_v2 = vadd.f32 %v16142_v39, %v1310_v60  ;;  %v5311_v21 = vadd.f32 %v16146_v16, %v927_v38  ;;  %v1056_v39 = vld [vmem:[#allocation2 + $0x770] sm:$0xff]  ;;  %v16282_v14 = vpop.f32.mrf.mxu0 }
 0x56c   : > { %8906 = vst.msk [vmem:[%s11330_s10 + $0x1ac] sm:$0xf] %vm8798_vm4, %v8393_v54  ;;  %v8649_v18 = vpack.c.bf16 %v8137_v40, %v8137_v40  ;;  %v7882_v19 = vmax.f32 %v7370_v29, 0.0  ;;  %v5439_v51 = vadd.f32 %v16148_v57, %v1055_v20  ;;  %v5567_v55 = vadd.f32 %v16165_v32, %v1183_v43  ;;  %v929_v32 = vld [vmem:[#allocation2 + $0x378] sm:$0xff] }
 0x56d   : > { %9034 = vst.msk [vmem:[%s11330_s10 + $0x3ac] sm:$0xf] %vm8798_vm4, %v8521_v7  ;;  %v8777_v5 = vpack.c.bf16 %v8265_v8, %v8265_v8  ;;  %v16278_v4 = vpop.f32.mrf.mxu3  ;;  %v5695_v16 = vadd.f32 %v16167_v53, %v1311_v3  ;;  %v5312_v57 = vadd.f32 %v16172_v22, %v928_v25  ;;  %v5440_v48 = vadd.f32 %v16174_v30, %v1056_v39  ;;  %v16301_v30 = vld [vmem:[%s16857_s2] ss:$0 sm:$0xff] }
 0x56e   : > { %9162 = vst.msk [vmem:[%s11330_s10 + $0x5ac] sm:$0xf] %vm8798_vm4, %v8649_v18  ;;  %v8394_v28 = vpack.c.bf16 %v7882_v19, %v7882_v19  ;;  %v5568_v0 = vadd.f32 %v16208_v59, %v1184_v12  ;;  %v5696_v53 = vadd.f32 %v16210_v15, %v1312_v24  ;;  %v5313_v22 = vadd.f32 %v16216_v44, %v929_v32  ;;  %v930_v15 = vld [vmem:[#allocation2 + $0x380] sm:$0xff] }
 0x56f   : > { %9290 = vst.msk [vmem:[%s11330_s10 + $0x7ac] sm:$0xf] %vm8798_vm4, %v8777_v5  ;;  %v5441_v17 = vadd.f32 %v16218_v11, %v1057_v61  ;;  %v5569_v62 = vadd.f32 %v16247_v26, %v1185_v46  ;;  %v16320_v11 = vld [vmem:[%s16858_s3] ss:$0 sm:$0xff]  ;;  %v5697_v31 = vadd.f32 %v16249_v33, %v1313_v63  ;;  %v5314_v54 = vadd.f32 %v16254_v27, %v930_v15 }
 0x570   : > { %8907 = vst.msk [vmem:[%s11330_s10 + $0x1b0] sm:$0xf] %vm8798_vm4, %v8394_v28  ;;  %v16284_v13 = vpop.f32.mrf.mxu1 }
 0x571   : > { %5951 = vst.msk [vmem:[#allocation2 + $0x760] sm:$0xff] %vm305_vm3, %v5438_v58 }
 0x572   : > { %6079 = vst.msk [vmem:[#allocation2 + $0xb60] sm:$0xff] %vm305_vm3, %v5566_v56  ;;  %v16306_v23 = vpop.f32.mrf.mxu2 }
 0x573   : > { %6207 = vst.msk [vmem:[#allocation2 + $0xf60] sm:$0xff] %vm305_vm3, %v5694_v2  ;;  %v16313_v45 = vpop.f32.mrf.mxu0 }
 0x574   : > { %5824 = vst.msk [vmem:[#allocation2 + $0x368] sm:$0xff] %vm305_vm3, %v5311_v21 }
 0x575   : > { %5952 = vst.msk [vmem:[#allocation2 + $0x768] sm:$0xff] %vm305_vm3, %v5439_v51  ;;  %v16308_v50 = vpop.f32.mrf.mxu3 }
 0x576   : > { %6080 = vst.msk [vmem:[#allocation2 + $0xb68] sm:$0xff] %vm305_vm3, %v5567_v55 }
 0x577   : > { %6208 = vst.msk [vmem:[#allocation2 + $0xf68] sm:$0xff] %vm305_vm3, %v5695_v16 }
 0x578   : > { %v6466_v10 = vld [vmem:[#allocation2 + $0x760] sm:$0xff]  ;;  %5825 = vst.msk [vmem:[#allocation2 + $0x370] sm:$0xff] %vm305_vm3, %v5312_v57  ;;  %v16315_v49 = vpop.f32.mrf.mxu1 }
 0x579   : > { %v6982_v47 = vmul.f32 %v16301_v30, %v6466_v10  ;;  %v6594_v59 = vld [vmem:[#allocation2 + $0xb60] sm:$0xff]  ;;  %5953 = vst.msk [vmem:[#allocation2 + $0x770] sm:$0xff] %vm305_vm3, %v5440_v48 }
 0x57a   : > { %v7110_v44 = vmul.f32 %v16301_v30, %v6594_v59  ;;  %v6722_v6 = vld [vmem:[#allocation2 + $0xf60] sm:$0xff]  ;;  %6081 = vst.msk [vmem:[#allocation2 + $0xb70] sm:$0xff] %vm305_vm3, %v5568_v0  ;;  %v16346_v55 = vpop.f32.mrf.mxu2 }
 0x57b   : > { %v7498_v34 = vadd.f32 %v16320_v11, %v6982_v47  ;;  %v7238_v42 = vmul.f32 %v16301_v30, %v6722_v6  ;;  %v6339_v35 = vld [vmem:[#allocation2 + $0x368] sm:$0xff]  ;;  %6209 = vst.msk [vmem:[#allocation2 + $0xf70] sm:$0xff] %vm305_vm3, %v5696_v53  ;;  %v16354_v32 = vpop.f32.mrf.mxu0 }
 0x57c   : > { %v7626_v41 = vadd.f32 %v16320_v11, %v7110_v44  ;;  %v6855_v1 = vmul.f32 %v16301_v30, %v6339_v35  ;;  %v6467_v26 = vld [vmem:[#allocation2 + $0x768] sm:$0xff]  ;;  %5826 = vst.msk [vmem:[#allocation2 + $0x378] sm:$0xff] %vm305_vm3, %v5313_v22 }
 0x57d   : > { %v8010_v40 = vmax.f32 %v7498_v34, 0.0  ;;  %v7754_v29 = vadd.f32 %v16320_v11, %v7238_v42  ;;  %v6983_v9 = vmul.f32 %v16301_v30, %v6467_v26  ;;  %v6595_v7 = vld [vmem:[#allocation2 + $0xb68] sm:$0xff]  ;;  %5954 = vst.msk [vmem:[#allocation2 + $0x778] sm:$0xff] %vm305_vm3, %v5441_v17  ;;  %v16348_v39 = vpop.f32.mrf.mxu3 }
 0x57e   : > { %v8138_v8 = vmax.f32 %v7626_v41, 0.0  ;;  %v7371_v33 = vadd.f32 %v16320_v11, %v6855_v1  ;;  %v7111_v37 = vmul.f32 %v16301_v30, %v6595_v7  ;;  %v6723_v18 = vld [vmem:[#allocation2 + $0xf68] sm:$0xff]  ;;  %6082 = vst.msk [vmem:[#allocation2 + $0xb78] sm:$0xff] %vm305_vm3, %v5569_v62 }
 0x57f   : > { %v8522_v19 = vpack.c.bf16 %v8010_v40, %v8010_v40  ;;  %v8266_v60 = vmax.f32 %v7754_v29, 0.0  ;;  %v7499_v27 = vadd.f32 %v16320_v11, %v6983_v9  ;;  %v7239_v5 = vmul.f32 %v16301_v30, %v6723_v18  ;;  %v6340_v58 = vld [vmem:[#allocation2 + $0x370] sm:$0xff]  ;;  %6210 = vst.msk [vmem:[#allocation2 + $0xf78] sm:$0xff] %vm305_vm3, %v5697_v31 }
 0x580   : > { %v8650_v38 = vpack.c.bf16 %v8138_v8, %v8138_v8  ;;  %v7883_v28 = vmax.f32 %v7371_v33, 0.0  ;;  %v7627_v56 = vadd.f32 %v16320_v11, %v7111_v37  ;;  %v6856_v20 = vmul.f32 %v16301_v30, %v6340_v58  ;;  %v6468_v2 = vld [vmem:[#allocation2 + $0x770] sm:$0xff]  ;;  %5827 = vst.msk [vmem:[#allocation2 + $0x380] sm:$0xff] %vm305_vm3, %v5314_v54  ;;  %v16356_v0 = vpop.f32.mrf.mxu1 }
 0x581   : > { %9035 = vst.msk [vmem:[%s11330_s10 + $0x3b0] sm:$0xf] %vm8798_vm4, %v8522_v19  ;;  %v8778_v43 = vpack.c.bf16 %v8266_v60, %v8266_v60  ;;  %v8011_v21 = vmax.f32 %v7499_v27, 0.0  ;;  %v7755_v3 = vadd.f32 %v16320_v11, %v7239_v5  ;;  %v6984_v51 = vmul.f32 %v16301_v30, %v6468_v2  ;;  %v6596_v25 = vld [vmem:[#allocation2 + $0xb70] sm:$0xff] }
 0x582   : > { %9163 = vst.msk [vmem:[%s11330_s10 + $0x5b0] sm:$0xf] %vm8798_vm4, %v8650_v38  ;;  %v8395_v16 = vpack.c.bf16 %v7883_v28, %v7883_v28  ;;  %v8139_v12 = vmax.f32 %v7627_v56, 0.0  ;;  %v7372_v57 = vadd.f32 %v16320_v11, %v6856_v20  ;;  %v7112_v24 = vmul.f32 %v16301_v30, %v6596_v25  ;;  %v6724_v48 = vld [vmem:[#allocation2 + $0xf70] sm:$0xff]  ;;  %v16385_v5 = vpop.f32.mrf.mxu2  ;;  %v1058_v20 = vld [vmem:[#allocation2 + $0x780] sm:$0xff] }
 0x583   : > { %9291 = vst.msk [vmem:[%s11330_s10 + $0x7b0] sm:$0xf] %vm8798_vm4, %v8778_v43  ;;  %v8523_v61 = vpack.c.bf16 %v8011_v21, %v8011_v21  ;;  %v8267_v53 = vmax.f32 %v7755_v3, 0.0  ;;  %v7500_v46 = vadd.f32 %v16320_v11, %v6984_v51  ;;  %v7240_v10 = vmul.f32 %v16301_v30, %v6724_v48  ;;  %v6341_v22 = vld [vmem:[#allocation2 + $0x378] sm:$0xff]  ;;  %v16392_v2 = vpop.f32.mrf.mxu0  ;;  %v1186_v51 = vld [vmem:[#allocation2 + $0xb80] sm:$0xff]  ;;  %v931_v48 = vld [vmem:[#allocation2 + $0x388] sm:$0xff] }
 0x584   : > { %8908 = vst.msk [vmem:[%s11330_s10 + $0x1b4] sm:$0xf] %vm8798_vm4, %v8395_v16  ;;  %v8651_v63 = vpack.c.bf16 %v8139_v12, %v8139_v12  ;;  %v7884_v47 = vmax.f32 %v7372_v57, 0.0  ;;  %v7628_v59 = vadd.f32 %v16320_v11, %v7112_v24  ;;  %v6857_v17 = vmul.f32 %v16301_v30, %v6341_v22  ;;  %v6469_v15 = vld [vmem:[#allocation2 + $0x778] sm:$0xff]  ;;  %v1314_v12 = vld [vmem:[#allocation2 + $0xf80] sm:$0xff]  ;;  %v1187_v22 = vld [vmem:[#allocation2 + $0xb88] sm:$0xff] }
 0x585   : > { %9036 = vst.msk [vmem:[%s11330_s10 + $0x3b4] sm:$0xf] %vm8798_vm4, %v8523_v61  ;;  %v8779_v44 = vpack.c.bf16 %v8267_v53, %v8267_v53  ;;  %v8012_v6 = vmax.f32 %v7500_v46, 0.0  ;;  %v7756_v62 = vadd.f32 %v16320_v11, %v7240_v10  ;;  %v6985_v34 = vmul.f32 %v16301_v30, %v6469_v15  ;;  %v6597_v42 = vld [vmem:[#allocation2 + $0xb78] sm:$0xff]  ;;  %v16387_v58 = vpop.f32.mrf.mxu3  ;;  %v1059_v46 = vld [vmem:[#allocation2 + $0x788] sm:$0xff] }
 0x586   : > { %9164 = vst.msk [vmem:[%s11330_s10 + $0x5b4] sm:$0xf] %vm8798_vm4, %v8651_v63  ;;  %v8396_v35 = vpack.c.bf16 %v7884_v47, %v7884_v47  ;;  %v8140_v31 = vmax.f32 %v7628_v59, 0.0  ;;  %v7373_v41 = vadd.f32 %v16320_v11, %v6857_v17  ;;  %v7113_v1 = vmul.f32 %v16301_v30, %v6597_v42  ;;  %v6725_v26 = vld [vmem:[#allocation2 + $0xf78] sm:$0xff]  ;;  %v1315_v47 = vld [vmem:[#allocation2 + $0xf88] sm:$0xff]  ;;  %v932_v59 = vld [vmem:[#allocation2 + $0x390] sm:$0xff] }
 0x587   : > { %9292 = vst.msk [vmem:[%s11330_s10 + $0x7b4] sm:$0xf] %vm8798_vm4, %v8779_v44  ;;  %v8524_v54 = vpack.c.bf16 %v8012_v6, %v8012_v6  ;;  %v8268_v40 = vmax.f32 %v7756_v62, 0.0  ;;  %v7501_v29 = vadd.f32 %v16320_v11, %v6985_v34  ;;  %v7241_v9 = vmul.f32 %v16301_v30, %v6725_v26  ;;  %v6342_v7 = vld [vmem:[#allocation2 + $0x380] sm:$0xff]  ;;  %v1188_v62 = vld [vmem:[#allocation2 + $0xb90] sm:$0xff]  ;;  %v1317_v26 = vld [vmem:[#allocation2 + $0xf98] sm:$0xff] }
 0x588   : > { %8909 = vst.msk [vmem:[%s11330_s10 + $0x1b8] sm:$0xf] %vm8798_vm4, %v8396_v35  ;;  %v8652_v8 = vpack.c.bf16 %v8140_v31, %v8140_v31  ;;  %v7885_v33 = vmax.f32 %v7373_v41, 0.0  ;;  %v7629_v37 = vadd.f32 %v16320_v11, %v7113_v1  ;;  %v6858_v18 = vmul.f32 %v16301_v30, %v6342_v7  ;;  %v16394_v43 = vpop.f32.mrf.mxu1  ;;  %v1316_v34 = vld [vmem:[#allocation2 + $0xf90] sm:$0xff]  ;;  %v1061_v31 = vld [vmem:[#allocation2 + $0x798] sm:$0xff] }
 0x589   : > { %9037 = vst.msk [vmem:[%s11330_s10 + $0x3b8] sm:$0xf] %vm8798_vm4, %v8524_v54  ;;  %v8780_v19 = vpack.c.bf16 %v8268_v40, %v8268_v40  ;;  %v8013_v60 = vmax.f32 %v7501_v29, 0.0  ;;  %v7757_v27 = vadd.f32 %v16320_v11, %v7241_v9  ;;  %v5442_v24 = vadd.f32 %v16256_v52, %v1058_v20  ;;  %v1189_v41 = vld [vmem:[#allocation2 + $0xb98] sm:$0xff] }
 0x58a   : > { %9165 = vst.msk [vmem:[%s11330_s10 + $0x5b8] sm:$0xf] %vm8798_vm4, %v8652_v8  ;;  %v8397_v38 = vpack.c.bf16 %v7885_v33, %v7885_v33  ;;  %v8141_v28 = vmax.f32 %v7629_v37, 0.0  ;;  %v7374_v56 = vadd.f32 %v16320_v11, %v6858_v18  ;;  %v5570_v53 = vadd.f32 %v16276_v36, %v1186_v51  ;;  %v16414_v17 = vpop.f32.mrf.mxu2 }
 0x58b   : > { %9293 = vst.msk [vmem:[%s11330_s10 + $0x7b8] sm:$0xf] %vm8798_vm4, %v8780_v19  ;;  %v8525_v21 = vpack.c.bf16 %v8013_v60, %v8013_v60  ;;  %v8269_v3 = vmax.f32 %v7757_v27, 0.0  ;;  %v5698_v10 = vadd.f32 %v16278_v4, %v1314_v12  ;;  %v5315_v63 = vadd.f32 %v16282_v14, %v931_v48  ;;  %v1060_v4 = vld [vmem:[#allocation2 + $0x790] sm:$0xff]  ;;  %v16420_v44 = vpop.f32.mrf.mxu0 }
 0x58c   : > { %8910 = vst.msk [vmem:[%s11330_s10 + $0x1bc] sm:$0xf] %vm8798_vm4, %v8397_v38  ;;  %v8653_v25 = vpack.c.bf16 %v8141_v28, %v8141_v28  ;;  %v7886_v16 = vmax.f32 %v7374_v56, 0.0  ;;  %v5443_v52 = vadd.f32 %v16284_v13, %v1059_v46  ;;  %v5571_v36 = vadd.f32 %v16306_v23, %v1187_v22  ;;  %v933_v23 = vld [vmem:[#allocation2 + $0x398] sm:$0xff] }
 0x58d   : > { %9038 = vst.msk [vmem:[%s11330_s10 + $0x3bc] sm:$0xf] %vm8798_vm4, %v8525_v21  ;;  %v8781_v57 = vpack.c.bf16 %v8269_v3, %v8269_v3  ;;  %v16416_v15 = vpop.f32.mrf.mxu3  ;;  %v5699_v14 = vadd.f32 %v16308_v50, %v1315_v47  ;;  %v5316_v13 = vadd.f32 %v16313_v45, %v932_v59  ;;  %v5444_v42 = vadd.f32 %v16315_v49, %v1060_v4 }
 0x58e   : > { %9166 = vst.msk [vmem:[%s11330_s10 + $0x5bc] sm:$0xf] %vm8798_vm4, %v8653_v25  ;;  %v8398_v61 = vpack.c.bf16 %v7886_v16, %v7886_v16  ;;  %v5572_v35 = vadd.f32 %v16346_v55, %v1188_v62  ;;  %v5700_v50 = vadd.f32 %v16348_v39, %v1316_v34  ;;  %v5317_v45 = vadd.f32 %v16354_v32, %v933_v23  ;;  %v934_v55 = vld [vmem:[#allocation2 + $0x3a0] sm:$0xff] }
 0x58f   : > { %9294 = vst.msk [vmem:[%s11330_s10 + $0x7bc] sm:$0xf] %vm8798_vm4, %v8781_v57  ;;  %v5445_v40 = vadd.f32 %v16356_v0, %v1061_v31  ;;  %v5573_v32 = vadd.f32 %v16385_v5, %v1189_v41  ;;  %v5701_v0 = vadd.f32 %v16387_v58, %v1317_v26  ;;  %v5318_v5 = vadd.f32 %v16392_v2, %v934_v55 }
 0x590   : > { %8911 = vst.msk [vmem:[%s11330_s10 + $0x1c0] sm:$0xf] %vm8798_vm4, %v8398_v61  ;;  %v16422_v6 = vpop.f32.mrf.mxu1 }
 0x591   : > { %5955 = vst.msk [vmem:[#allocation2 + $0x780] sm:$0xff] %vm305_vm3, %v5442_v24 }
 0x592   : > { %6083 = vst.msk [vmem:[#allocation2 + $0xb80] sm:$0xff] %vm305_vm3, %v5570_v53  ;;  %v16439_v29 = vpop.f32.mrf.mxu2 }
 0x593   : > { %6211 = vst.msk [vmem:[#allocation2 + $0xf80] sm:$0xff] %vm305_vm3, %v5698_v10  ;;  %v16450_v18 = vpop.f32.mrf.mxu0 }
 0x594   : > { %5828 = vst.msk [vmem:[#allocation2 + $0x388] sm:$0xff] %vm305_vm3, %v5315_v63 }
 0x595   : > { %5956 = vst.msk [vmem:[#allocation2 + $0x788] sm:$0xff] %vm305_vm3, %v5443_v52  ;;  %v16441_v9 = vpop.f32.mrf.mxu3 }
 0x596   : > { %6084 = vst.msk [vmem:[#allocation2 + $0xb88] sm:$0xff] %vm305_vm3, %v5571_v36 }
 0x597   : > { %6212 = vst.msk [vmem:[#allocation2 + $0xf88] sm:$0xff] %vm305_vm3, %v5699_v14 }
 0x598   : > { %v6470_v1 = vld [vmem:[#allocation2 + $0x780] sm:$0xff]  ;;  %5829 = vst.msk [vmem:[#allocation2 + $0x390] sm:$0xff] %vm305_vm3, %v5316_v13  ;;  %v16456_v38 = vpop.f32.mrf.mxu1 }
 0x599   : > { %v6986_v54 = vmul.f32 %v16301_v30, %v6470_v1  ;;  %v6598_v49 = vld [vmem:[#allocation2 + $0xb80] sm:$0xff]  ;;  %5957 = vst.msk [vmem:[#allocation2 + $0x790] sm:$0xff] %vm305_vm3, %v5444_v42 }
 0x59a   : > { %v7114_v39 = vmul.f32 %v16301_v30, %v6598_v49  ;;  %v6726_v7 = vld [vmem:[#allocation2 + $0xf80] sm:$0xff]  ;;  %6085 = vst.msk [vmem:[#allocation2 + $0xb90] sm:$0xff] %vm305_vm3, %v5572_v35  ;;  %v16474_v36 = vpop.f32.mrf.mxu2 }
 0x59b   : > { %v7502_v8 = vadd.f32 %v16320_v11, %v6986_v54  ;;  %v7242_v33 = vmul.f32 %v16301_v30, %v6726_v7  ;;  %v6343_v37 = vld [vmem:[#allocation2 + $0x388] sm:$0xff]  ;;  %6213 = vst.msk [vmem:[#allocation2 + $0xf90] sm:$0xff] %vm305_vm3, %v5700_v50 }
 0x59c   : > { %v7630_v19 = vadd.f32 %v16320_v11, %v7114_v39  ;;  %v6859_v60 = vmul.f32 %v16301_v30, %v6343_v37  ;;  %v6471_v27 = vld [vmem:[#allocation2 + $0x788] sm:$0xff]  ;;  %5830 = vst.msk [vmem:[#allocation2 + $0x398] sm:$0xff] %vm305_vm3, %v5317_v45 }
 0x59d   : > { %v8014_v28 = vmax.f32 %v7502_v8, 0.0  ;;  %v7758_v56 = vadd.f32 %v16320_v11, %v7242_v33  ;;  %v6987_v20 = vmul.f32 %v16301_v30, %v6471_v27  ;;  %v6599_v21 = vld [vmem:[#allocation2 + $0xb88] sm:$0xff]  ;;  %5958 = vst.msk [vmem:[#allocation2 + $0x798] sm:$0xff] %vm305_vm3, %v5445_v40  ;;  %v16476_v4 = vpop.f32.mrf.mxu3  ;;  %v16494_v8 = vpop.f32.mrf.mxu0 }
 0x59e   : > { %v8142_v58 = vmax.f32 %v7630_v19, 0.0  ;;  %v7375_v3 = vadd.f32 %v16320_v11, %v6859_v60  ;;  %v7115_v51 = vmul.f32 %v16301_v30, %v6599_v21  ;;  %v6727_v25 = vld [vmem:[#allocation2 + $0xf88] sm:$0xff]  ;;  %6086 = vst.msk [vmem:[#allocation2 + $0xb98] sm:$0xff] %vm305_vm3, %v5573_v32 }
 0x59f   : > { %v8526_v2 = vpack.c.bf16 %v8014_v28, %v8014_v28  ;;  %v8270_v16 = vmax.f32 %v7758_v56, 0.0  ;;  %v7503_v12 = vadd.f32 %v16320_v11, %v6987_v20  ;;  %v7243_v57 = vmul.f32 %v16301_v30, %v6727_v25  ;;  %v6344_v24 = vld [vmem:[#allocation2 + $0x390] sm:$0xff]  ;;  %6214 = vst.msk [vmem:[#allocation2 + $0xf98] sm:$0xff] %vm305_vm3, %v5701_v0 }
 0x5a0   : > { %v8654_v48 = vpack.c.bf16 %v8142_v58, %v8142_v58  ;;  %v7887_v61 = vmax.f32 %v7375_v3, 0.0  ;;  %v7631_v53 = vadd.f32 %v16320_v11, %v7115_v51  ;;  %v6860_v46 = vmul.f32 %v16301_v30, %v6344_v24  ;;  %v6472_v10 = vld [vmem:[#allocation2 + $0x790] sm:$0xff]  ;;  %5831 = vst.msk [vmem:[#allocation2 + $0x3a0] sm:$0xff] %vm305_vm3, %v5318_v5  ;;  %v16500_v27 = vpop.f32.mrf.mxu1 }
 0x5a1   : > { %9039 = vst.msk [vmem:[%s11330_s10 + $0x3c0] sm:$0xf] %vm8798_vm4, %v8526_v2  ;;  %v8782_v22 = vpack.c.bf16 %v8270_v16, %v8270_v16  ;;  %v8015_v63 = vmax.f32 %v7503_v12, 0.0  ;;  %v7759_v47 = vadd.f32 %v16320_v11, %v7243_v57  ;;  %v6988_v52 = vmul.f32 %v16301_v30, %v6472_v10  ;;  %v6600_v59 = vld [vmem:[#allocation2 + $0xb90] sm:$0xff] }
 0x5a2   : > { %9167 = vst.msk [vmem:[%s11330_s10 + $0x5c0] sm:$0xf] %vm8798_vm4, %v8654_v48  ;;  %v8399_v14 = vpack.c.bf16 %v7887_v61, %v7887_v61  ;;  %v8143_v62 = vmax.f32 %v7631_v53, 0.0  ;;  %v7376_v13 = vadd.f32 %v16320_v11, %v6860_v46  ;;  %v7116_v34 = vmul.f32 %v16301_v30, %v6600_v59  ;;  %v6728_v42 = vld [vmem:[#allocation2 + $0xf90] sm:$0xff]  ;;  %v16513_v57 = vpop.f32.mrf.mxu2  ;;  %v1062_v46 = vld [vmem:[#allocation2 + $0x7a0] sm:$0xff] }
 0x5a3   : > { %9295 = vst.msk [vmem:[%s11330_s10 + $0x7c0] sm:$0xf] %vm8798_vm4, %v8782_v22  ;;  %v8527_v23 = vpack.c.bf16 %v8015_v63, %v8015_v63  ;;  %v8271_v35 = vmax.f32 %v7759_v47, 0.0  ;;  %v7504_v31 = vadd.f32 %v16320_v11, %v6988_v52  ;;  %v7244_v50 = vmul.f32 %v16301_v30, %v6728_v42  ;;  %v6345_v41 = vld [vmem:[#allocation2 + $0x398] sm:$0xff]  ;;  %v1190_v63 = vld [vmem:[#allocation2 + $0xba0] sm:$0xff] }
 0x5a4   : > { %8912 = vst.msk [vmem:[%s11330_s10 + $0x1c4] sm:$0xf] %vm8798_vm4, %v8399_v14  ;;  %v8655_v1 = vpack.c.bf16 %v8143_v62, %v8143_v62  ;;  %v7888_v45 = vmax.f32 %v7376_v13, 0.0  ;;  %v7632_v26 = vadd.f32 %v16320_v11, %v7116_v34  ;;  %v6861_v54 = vmul.f32 %v16301_v30, %v6345_v41  ;;  %v6473_v49 = vld [vmem:[#allocation2 + $0x798] sm:$0xff]  ;;  %v1318_v59 = vld [vmem:[#allocation2 + $0xfa0] sm:$0xff]  ;;  %v935_v13 = vld [vmem:[#allocation2 + $0x3a8] sm:$0xff] }
 0x5a5   : > { %9040 = vst.msk [vmem:[%s11330_s10 + $0x3c4] sm:$0xf] %vm8798_vm4, %v8527_v23  ;;  %v8783_v40 = vpack.c.bf16 %v8271_v35, %v8271_v35  ;;  %v8016_v55 = vmax.f32 %v7504_v31, 0.0  ;;  %v7760_v39 = vadd.f32 %v16320_v11, %v7244_v50  ;;  %v6989_v7 = vmul.f32 %v16301_v30, %v6473_v49  ;;  %v6601_v32 = vld [vmem:[#allocation2 + $0xb98] sm:$0xff]  ;;  %v16515_v24 = vpop.f32.mrf.mxu3  ;;  %v1063_v23 = vld [vmem:[#allocation2 + $0x7a8] sm:$0xff]  ;;  %v4222_v50 = vpop.f32.mrf.mxu0 }
 0x5a6   : > { %9168 = vst.msk [vmem:[%s11330_s10 + $0x5c4] sm:$0xf] %vm8798_vm4, %v8655_v1  ;;  %v8400_v33 = vpack.c.bf16 %v7888_v45, %v7888_v45  ;;  %v8144_v37 = vmax.f32 %v7632_v26, 0.0  ;;  %v7377_v0 = vadd.f32 %v16320_v11, %v6861_v54  ;;  %v7117_v19 = vmul.f32 %v16301_v30, %v6601_v32  ;;  %v6729_v60 = vld [vmem:[#allocation2 + $0xf98] sm:$0xff]  ;;  %v1191_v31 = vld [vmem:[#allocation2 + $0xba8] sm:$0xff]  ;;  %v936_v26 = vld [vmem:[#allocation2 + $0x3b0] sm:$0xff] }
 0x5a7   : > { %9296 = vst.msk [vmem:[%s11330_s10 + $0x7c4] sm:$0xf] %vm8798_vm4, %v8783_v40  ;;  %v8528_v5 = vpack.c.bf16 %v8016_v55, %v8016_v55  ;;  %v8272_v28 = vmax.f32 %v7760_v39, 0.0  ;;  %v7505_v56 = vadd.f32 %v16320_v11, %v6989_v7  ;;  %v7245_v20 = vmul.f32 %v16301_v30, %v6729_v60  ;;  %v6346_v21 = vld [vmem:[#allocation2 + $0x3a0] sm:$0xff]  ;;  %v1319_v1 = vld [vmem:[#allocation2 + $0xfa8] sm:$0xff]  ;;  %v1064_v54 = vld [vmem:[#allocation2 + $0x7b0] sm:$0xff] }
 0x5a8   : > { %8913 = vst.msk [vmem:[%s11330_s10 + $0x1c8] sm:$0xf] %vm8798_vm4, %v8400_v33  ;;  %v8656_v58 = vpack.c.bf16 %v8144_v37, %v8144_v37  ;;  %v7889_v3 = vmax.f32 %v7377_v0, 0.0  ;;  %v7633_v51 = vadd.f32 %v16320_v11, %v7117_v19  ;;  %v6862_v25 = vmul.f32 %v16301_v30, %v6346_v21  ;;  %v16536_v45 = vpop.f32.mrf.mxu1  ;;  %v1192_v40 = vld [vmem:[#allocation2 + $0xbb0] sm:$0xff]  ;;  %v937_v7 = vld [vmem:[#allocation2 + $0x3b8] sm:$0xff] }
 0x5a9   : > { %9041 = vst.msk [vmem:[%s11330_s10 + $0x3c8] sm:$0xf] %vm8798_vm4, %v8528_v5  ;;  %v8784_v2 = vpack.c.bf16 %v8272_v28, %v8272_v28  ;;  %v8017_v16 = vmax.f32 %v7505_v56, 0.0  ;;  %v7761_v12 = vadd.f32 %v16320_v11, %v7245_v20  ;;  %v5446_v62 = vadd.f32 %v16394_v43, %v1062_v46  ;;  %v1065_v32 = vld [vmem:[#allocation2 + $0x7b8] sm:$0xff] }
 0x5aa   : > { %9169 = vst.msk [vmem:[%s11330_s10 + $0x5c8] sm:$0xf] %vm8798_vm4, %v8656_v58  ;;  %v8401_v48 = vpack.c.bf16 %v7889_v3, %v7889_v3  ;;  %v8145_v61 = vmax.f32 %v7633_v51, 0.0  ;;  %v7378_v53 = vadd.f32 %v16320_v11, %v6862_v25  ;;  %v5574_v42 = vadd.f32 %v16414_v17, %v1190_v63  ;;  %v16540_v17 = vpop.f32.mrf.mxu2  ;;  %v1193_v33 = vld [vmem:[#allocation2 + $0xbb8] sm:$0xff] }
 0x5ab   : > { %9297 = vst.msk [vmem:[%s11330_s10 + $0x7c8] sm:$0xf] %vm8798_vm4, %v8784_v2  ;;  %v8529_v10 = vpack.c.bf16 %v8017_v16, %v8017_v16  ;;  %v8273_v22 = vmax.f32 %v7761_v12, 0.0  ;;  %v5702_v35 = vadd.f32 %v16416_v15, %v1318_v59  ;;  %v5319_v41 = vadd.f32 %v16420_v44, %v935_v13  ;;  %v1321_v0 = vld [vmem:[#allocation2 + $0xfb8] sm:$0xff] }
 0x5ac   : > { %8914 = vst.msk [vmem:[%s11330_s10 + $0x1cc] sm:$0xf] %vm8798_vm4, %v8401_v48  ;;  %v8657_v47 = vpack.c.bf16 %v8145_v61, %v8145_v61  ;;  %v7890_v52 = vmax.f32 %v7378_v53, 0.0  ;;  %v5447_v43 = vadd.f32 %v16422_v6, %v1063_v23  ;;  %v5575_v15 = vadd.f32 %v16439_v29, %v1191_v31  ;;  %v1320_v6 = vld [vmem:[#allocation2 + $0xfb0] sm:$0xff] }
 0x5ad   : > { %9042 = vst.msk [vmem:[%s11330_s10 + $0x3cc] sm:$0xf] %vm8798_vm4, %v8529_v10  ;;  %v8785_v14 = vpack.c.bf16 %v8273_v22, %v8273_v22  ;;  %v16544_v49 = vpop.f32.mrf.mxu3  ;;  %v5703_v44 = vadd.f32 %v16441_v9, %v1319_v1  ;;  %v5320_v55 = vadd.f32 %v16450_v18, %v936_v26  ;;  %v5448_v39 = vadd.f32 %v16456_v38, %v1064_v54  ;;  %v16561_v5 = vpop.f32.mrf.mxu0 }
 0x5ae   : > { %9170 = vst.msk [vmem:[%s11330_s10 + $0x5cc] sm:$0xf] %vm8798_vm4, %v8657_v47  ;;  %v8402_v34 = vpack.c.bf16 %v7890_v52, %v7890_v52  ;;  %v5576_v29 = vadd.f32 %v16474_v36, %v1192_v40  ;;  %v5704_v9 = vadd.f32 %v16476_v4, %v1320_v6  ;;  %v5321_v18 = vadd.f32 %v16494_v8, %v937_v7  ;;  %v938_v36 = vld [vmem:[#allocation2 + $0x3c0] sm:$0xff] }
 0x5af   : > { %9298 = vst.msk [vmem:[%s11330_s10 + $0x7cc] sm:$0xf] %vm8798_vm4, %v8785_v14  ;;  %v5449_v60 = vadd.f32 %v16500_v27, %v1065_v32  ;;  %v5577_v56 = vadd.f32 %v16513_v57, %v1193_v33  ;;  %v5705_v27 = vadd.f32 %v16515_v24, %v1321_v0  ;;  %v5322_v16 = vadd.f32 %v4222_v50, %v938_v36 }
 0x5b0   : > { %8915 = vst.msk [vmem:[%s11330_s10 + $0x1d0] sm:$0xf] %vm8798_vm4, %v8402_v34  ;;  %v16566_v20 = vpop.f32.mrf.mxu1 }
 0x5b1   : > { %5959 = vst.msk [vmem:[#allocation2 + $0x7a0] sm:$0xff] %vm305_vm3, %v5446_v62 }
 0x5b2   : > { %6087 = vst.msk [vmem:[#allocation2 + $0xba0] sm:$0xff] %vm305_vm3, %v5574_v42  ;;  %v16572_v3 = vpop.f32.mrf.mxu2 }
 0x5b3   : > { %6215 = vst.msk [vmem:[#allocation2 + $0xfa0] sm:$0xff] %vm305_vm3, %v5702_v35 }
 0x5b4   : > { %5832 = vst.msk [vmem:[#allocation2 + $0x3a8] sm:$0xff] %vm305_vm3, %v5319_v41 }
 0x5b5   : > { %5960 = vst.msk [vmem:[#allocation2 + $0x7a8] sm:$0xff] %vm305_vm3, %v5447_v43  ;;  %v16577_v12 = vpop.f32.mrf.mxu3 }
 0x5b6   : > { %6088 = vst.msk [vmem:[#allocation2 + $0xba8] sm:$0xff] %vm305_vm3, %v5575_v15 }
 0x5b7   : > { %6216 = vst.msk [vmem:[#allocation2 + $0xfa8] sm:$0xff] %vm305_vm3, %v5703_v44 }
 0x5b8   : > { %v6474_v37 = vld [vmem:[#allocation2 + $0x7a0] sm:$0xff]  ;;  %5833 = vst.msk [vmem:[#allocation2 + $0x3b0] sm:$0xff] %vm305_vm3, %v5320_v55  ;;  %v16609_v0 = vpop.f32.mrf.mxu1 }
 0x5b9   : > { %v6990_v19 = vmul.f32 %v16301_v30, %v6474_v37  ;;  %v6602_v38 = vld [vmem:[#allocation2 + $0xba0] sm:$0xff]  ;;  %5961 = vst.msk [vmem:[#allocation2 + $0x7b0] sm:$0xff] %vm305_vm3, %v5448_v39 }
 0x5ba   : > { %v7118_v28 = vmul.f32 %v16301_v30, %v6602_v38  ;;  %v6730_v4 = vld [vmem:[#allocation2 + $0xfa0] sm:$0xff]  ;;  %6089 = vst.msk [vmem:[#allocation2 + $0xbb0] sm:$0xff] %vm305_vm3, %v5576_v29  ;;  %v16603_v29 = vpop.f32.mrf.mxu0 }
 0x5bb   : > { %v7506_v8 = vadd.f32 %v16320_v11, %v6990_v19  ;;  %v7246_v21 = vmul.f32 %v16301_v30, %v6730_v4  ;;  %v6347_v58 = vld [vmem:[#allocation2 + $0x3a8] sm:$0xff]  ;;  %6217 = vst.msk [vmem:[#allocation2 + $0xfb0] sm:$0xff] %vm305_vm3, %v5704_v9  ;;  %v16615_v4 = vpop.f32.mrf.mxu2 }
 0x5bc   : > { %v7634_v51 = vadd.f32 %v16320_v11, %v7118_v28  ;;  %v6863_v25 = vmul.f32 %v16301_v30, %v6347_v58  ;;  %v6475_v2 = vld [vmem:[#allocation2 + $0x7a8] sm:$0xff]  ;;  %5834 = vst.msk [vmem:[#allocation2 + $0x3b8] sm:$0xff] %vm305_vm3, %v5321_v18 }
 0x5bd   : > { %v8018_v57 = vmax.f32 %v7506_v8, 0.0  ;;  %v7762_v48 = vadd.f32 %v16320_v11, %v7246_v21  ;;  %v6991_v61 = vmul.f32 %v16301_v30, %v6475_v2  ;;  %v6603_v53 = vld [vmem:[#allocation2 + $0xba8] sm:$0xff]  ;;  %5962 = vst.msk [vmem:[#allocation2 + $0x7b8] sm:$0xff] %vm305_vm3, %v5449_v60 }
 0x5be   : > { %v8146_v24 = vmax.f32 %v7634_v51, 0.0  ;;  %v7379_v46 = vadd.f32 %v16320_v11, %v6863_v25  ;;  %v7119_v10 = vmul.f32 %v16301_v30, %v6603_v53  ;;  %v6731_v22 = vld [vmem:[#allocation2 + $0xfa8] sm:$0xff]  ;;  %6090 = vst.msk [vmem:[#allocation2 + $0xbb8] sm:$0xff] %vm305_vm3, %v5577_v56  ;;  %v16621_v51 = vpop.f32.mrf.mxu3 }
 0x5bf   : > { %v8530_v63 = vpack.c.bf16 %v8018_v57, %v8018_v57  ;;  %v8274_v47 = vmax.f32 %v7762_v48, 0.0  ;;  %v7507_v52 = vadd.f32 %v16320_v11, %v6991_v61  ;;  %v7247_v59 = vmul.f32 %v16301_v30, %v6731_v22  ;;  %v6348_v14 = vld [vmem:[#allocation2 + $0x3b0] sm:$0xff]  ;;  %6218 = vst.msk [vmem:[#allocation2 + $0xfb8] sm:$0xff] %vm305_vm3, %v5705_v27 }
 0x5c0   : > { %v8658_v62 = vpack.c.bf16 %v8146_v24, %v8146_v24  ;;  %v7891_v13 = vmax.f32 %v7379_v46, 0.0  ;;  %v7635_v34 = vadd.f32 %v16320_v11, %v7119_v10  ;;  %v6864_v42 = vmul.f32 %v16301_v30, %v6348_v14  ;;  %v6476_v23 = vld [vmem:[#allocation2 + $0x7b0] sm:$0xff]  ;;  %5835 = vst.msk [vmem:[#allocation2 + $0x3c0] sm:$0xff] %vm305_vm3, %v5322_v16  ;;  %v1066_v14 = vld [vmem:[#allocation2 + $0x7c0] sm:$0xff] }
 0x5c1   : > { %9043 = vst.msk [vmem:[%s11330_s10 + $0x3d0] sm:$0xf] %vm8798_vm4, %v8530_v63  ;;  %v8786_v35 = vpack.c.bf16 %v8274_v47, %v8274_v47  ;;  %v8019_v31 = vmax.f32 %v7507_v52, 0.0  ;;  %v7763_v50 = vadd.f32 %v16320_v11, %v7247_v59  ;;  %v6992_v41 = vmul.f32 %v16301_v30, %v6476_v23  ;;  %v6604_v1 = vld [vmem:[#allocation2 + $0xbb0] sm:$0xff] }
 0x5c2   : > { %9171 = vst.msk [vmem:[%s11330_s10 + $0x5d0] sm:$0xf] %vm8798_vm4, %v8658_v62  ;;  %v8403_v43 = vpack.c.bf16 %v7891_v13, %v7891_v13  ;;  %v8147_v26 = vmax.f32 %v7635_v34, 0.0  ;;  %v7380_v15 = vadd.f32 %v16320_v11, %v6864_v42  ;;  %v7120_v54 = vmul.f32 %v16301_v30, %v6604_v1  ;;  %v6732_v44 = vld [vmem:[#allocation2 + $0xfb0] sm:$0xff]  ;;  %v1194_v34 = vld [vmem:[#allocation2 + $0xbc0] sm:$0xff]  ;;  %v4229_v1 = vpop.f32.mrf.mxu0 }
 0x5c3   : > { %9299 = vst.msk [vmem:[%s11330_s10 + $0x7d0] sm:$0xf] %vm8798_vm4, %v8786_v35  ;;  %v8531_v40 = vpack.c.bf16 %v8019_v31, %v8019_v31  ;;  %v8275_v55 = vmax.f32 %v7763_v50, 0.0  ;;  %v7508_v6 = vadd.f32 %v16320_v11, %v6992_v41  ;;  %v7248_v39 = vmul.f32 %v16301_v30, %v6732_v44  ;;  %v6349_v7 = vld [vmem:[#allocation2 + $0x3b8] sm:$0xff]  ;;  %v1322_v35 = vld [vmem:[#allocation2 + $0xfc0] sm:$0xff]  ;;  %v939_v41 = vld [vmem:[#allocation2 + $0x3c8] sm:$0xff] }
 0x5c4   : > { %8916 = vst.msk [vmem:[%s11330_s10 + $0x1d4] sm:$0xf] %vm8798_vm4, %v8403_v43  ;;  %v8659_v32 = vpack.c.bf16 %v8147_v26, %v8147_v26  ;;  %v7892_v9 = vmax.f32 %v7380_v15, 0.0  ;;  %v7636_v33 = vadd.f32 %v16320_v11, %v7120_v54  ;;  %v6865_v37 = vmul.f32 %v16301_v30, %v6349_v7  ;;  %v6477_v18 = vld [vmem:[#allocation2 + $0x7b8] sm:$0xff]  ;;  %v1067_v15 = vld [vmem:[#allocation2 + $0x7c8] sm:$0xff]  ;;  %v4549_v54 = vpop.f32.mrf.mxu1 }
 0x5c5   : > { %9044 = vst.msk [vmem:[%s11330_s10 + $0x3d4] sm:$0xf] %vm8798_vm4, %v8531_v40  ;;  %v8787_v19 = vpack.c.bf16 %v8275_v55, %v8275_v55  ;;  %v8020_v38 = vmax.f32 %v7508_v6, 0.0  ;;  %v7764_v60 = vadd.f32 %v16320_v11, %v7248_v39  ;;  %v6993_v36 = vmul.f32 %v16301_v30, %v6477_v18  ;;  %v6605_v28 = vld [vmem:[#allocation2 + $0xbb8] sm:$0xff]  ;;  %v1195_v40 = vld [vmem:[#allocation2 + $0xbc8] sm:$0xff]  ;;  %v4869_v55 = vpop.f32.mrf.mxu2 }
 0x5c6   : > { %9172 = vst.msk [vmem:[%s11330_s10 + $0x5d4] sm:$0xf] %vm8798_vm4, %v8659_v32  ;;  %v8404_v56 = vpack.c.bf16 %v7892_v9, %v7892_v9  ;;  %v8148_v8 = vmax.f32 %v7636_v33, 0.0  ;;  %v7381_v21 = vadd.f32 %v16320_v11, %v6865_v37  ;;  %v7121_v58 = vmul.f32 %v16301_v30, %v6605_v28  ;;  %v6733_v27 = vld [vmem:[#allocation2 + $0xfb8] sm:$0xff]  ;;  %v5189_v39 = vpop.f32.mrf.mxu3  ;;  %v940_v32 = vld [vmem:[#allocation2 + $0x3d0] sm:$0xff] }
 0x5c7   : > { %9300 = vst.msk [vmem:[%s11330_s10 + $0x7d4] sm:$0xf] %vm8798_vm4, %v8787_v19  ;;  %v8532_v25 = vpack.c.bf16 %v8020_v38, %v8020_v38  ;;  %v8276_v2 = vmax.f32 %v7764_v60, 0.0  ;;  %v7509_v16 = vadd.f32 %v16320_v11, %v6993_v36  ;;  %v7249_v57 = vmul.f32 %v16301_v30, %v6733_v27  ;;  %v6350_v48 = vld [vmem:[#allocation2 + $0x3c0] sm:$0xff]  ;;  %v1068_v9 = vld [vmem:[#allocation2 + $0x7d0] sm:$0xff]  ;;  %v941_v18 = vld [vmem:[#allocation2 + $0x3d8] sm:$0xff] }
 0x5c8   : > { %8917 = vst.msk [vmem:[%s11330_s10 + $0x1d8] sm:$0xf] %vm8798_vm4, %v8404_v56  ;;  %v8660_v61 = vpack.c.bf16 %v8148_v8, %v8148_v8  ;;  %v7893_v53 = vmax.f32 %v7381_v21, 0.0  ;;  %v7637_v24 = vadd.f32 %v16320_v11, %v7121_v58  ;;  %v6866_v46 = vmul.f32 %v16301_v30, %v6350_v48  ;;  %v1196_v33 = vld [vmem:[#allocation2 + $0xbd0] sm:$0xff]  ;;  %v1069_v19 = vld [vmem:[#allocation2 + $0x7d8] sm:$0xff]  ;;  %v942_v21 = vld [vmem:[#allocation2 + $0x3e0] sm:$0xff] }
 0x5c9   : > { %9045 = vst.msk [vmem:[%s11330_s10 + $0x3d8] sm:$0xf] %vm8798_vm4, %v8532_v25  ;;  %v8788_v10 = vpack.c.bf16 %v8276_v2, %v8276_v2  ;;  %v8021_v22 = vmax.f32 %v7509_v16, 0.0  ;;  %v7765_v63 = vadd.f32 %v16320_v11, %v7249_v57  ;;  %v5450_v50 = vadd.f32 %v16536_v45, %v1066_v14  ;;  %v1323_v45 = vld [vmem:[#allocation2 + $0xfc8] sm:$0xff]  ;;  %v1324_v37 = vld [vmem:[#allocation2 + $0xfd0] sm:$0xff]  ;;  %v1197_v38 = vld [vmem:[#allocation2 + $0xbd8] sm:$0xff] }
 0x5ca   : > { %9173 = vst.msk [vmem:[%s11330_s10 + $0x5d8] sm:$0xf] %vm8798_vm4, %v8660_v61  ;;  %v8405_v47 = vpack.c.bf16 %v7893_v53, %v7893_v53  ;;  %v8149_v52 = vmax.f32 %v7637_v24, 0.0  ;;  %v7382_v59 = vadd.f32 %v16320_v11, %v6866_v46  ;;  %v5578_v26 = vadd.f32 %v16540_v17, %v1194_v34  ;;  %v4232_v60 = vpop.f32.mrf.mxu0  ;;  %v1325_v28 = vld [vmem:[#allocation2 + $0xfd8] sm:$0xff] }
 0x5cb   : > { %9301 = vst.msk [vmem:[%s11330_s10 + $0x7d8] sm:$0xf] %vm8798_vm4, %v8788_v10  ;;  %v8533_v62 = vpack.c.bf16 %v8021_v22, %v8021_v22  ;;  %v8277_v13 = vmax.f32 %v7765_v63, 0.0  ;;  %v5706_v44 = vadd.f32 %v16544_v49, %v1322_v35  ;;  %v5323_v6 = vadd.f32 %v16561_v5, %v939_v41 }
 0x5cc   : > { %8918 = vst.msk [vmem:[%s11330_s10 + $0x1dc] sm:$0xf] %vm8798_vm4, %v8405_v47  ;;  %v8661_v42 = vpack.c.bf16 %v8149_v52, %v8149_v52  ;;  %v7894_v23 = vmax.f32 %v7382_v59, 0.0  ;;  %v5451_v7 = vadd.f32 %v16566_v20, %v1067_v15  ;;  %v5579_v17 = vadd.f32 %v16572_v3, %v1195_v40  ;;  %v16668_v56 = vpop.f32.mrf.mxu1 }
 0x5cd   : > { %9046 = vst.msk [vmem:[%s11330_s10 + $0x3dc] sm:$0xf] %vm8798_vm4, %v8533_v62  ;;  %v8789_v31 = vpack.c.bf16 %v8277_v13, %v8277_v13  ;;  %v5707_v49 = vadd.f32 %v16577_v12, %v1323_v45  ;;  %v5324_v5 = vadd.f32 %v16603_v29, %v940_v32  ;;  %v5452_v20 = vadd.f32 %v16609_v0, %v1068_v9  ;;  %v16672_v58 = vpop.f32.mrf.mxu2 }
 0x5ce   : > { %9174 = vst.msk [vmem:[%s11330_s10 + $0x5dc] sm:$0xf] %vm8798_vm4, %v8661_v42  ;;  %v8406_v43 = vpack.c.bf16 %v7894_v23, %v7894_v23  ;;  %v5580_v3 = vadd.f32 %v16615_v4, %v1196_v33  ;;  %v5708_v12 = vadd.f32 %v16621_v51, %v1324_v37  ;;  %v5325_v29 = vadd.f32 %v4229_v1, %v941_v18  ;;  %v16676_v2 = vpop.f32.mrf.mxu3 }
 0x5cf   : > { %9302 = vst.msk [vmem:[%s11330_s10 + $0x7dc] sm:$0xf] %vm8798_vm4, %v8789_v31  ;;  %v5453_v4 = vadd.f32 %v4549_v54, %v1069_v19  ;;  %v5581_v25 = vadd.f32 %v4869_v55, %v1197_v38  ;;  %v5709_v61 = vadd.f32 %v5189_v39, %v1325_v28  ;;  %v5326_v10 = vadd.f32 %v4232_v60, %v942_v21 }
 0x5d0   : > { %8919 = vst.msk [vmem:[%s11330_s10 + $0x1e0] sm:$0xf] %vm8798_vm4, %v8406_v43  ;;  %v16697_v43 = vld [vmem:[%s16857_s2] ss:$0 sm:$0xff] }
 0x5d1   : > { %5963 = vst.msk [vmem:[#allocation2 + $0x7c0] sm:$0xff] %vm305_vm3, %v5450_v50 }
 0x5d2   : > { %6091 = vst.msk [vmem:[#allocation2 + $0xbc0] sm:$0xff] %vm305_vm3, %v5578_v26 }
 0x5d3   : > { %6219 = vst.msk [vmem:[#allocation2 + $0xfc0] sm:$0xff] %vm305_vm3, %v5706_v44 }
 0x5d4   : > { %5836 = vst.msk [vmem:[#allocation2 + $0x3c8] sm:$0xff] %vm305_vm3, %v5323_v6  ;;  %v16705_v6 = vpop.f32.mrf.mxu0  ;;  %v16716_v9 = vpop.f32.mrf.mxu1 }
 0x5d5   : > { %5964 = vst.msk [vmem:[#allocation2 + $0x7c8] sm:$0xff] %vm305_vm3, %v5451_v7  ;;  %v16712_v7 = vld [vmem:[%s16858_s3] ss:$0 sm:$0xff]  ;;  %v16722_v18 = vpop.f32.mrf.mxu2 }
 0x5d6   : > { %6092 = vst.msk [vmem:[#allocation2 + $0xbc8] sm:$0xff] %vm305_vm3, %v5579_v17 }
 0x5d7   : > { %6220 = vst.msk [vmem:[#allocation2 + $0xfc8] sm:$0xff] %vm305_vm3, %v5707_v49 }
 0x5d8   : > { %v6478_v36 = vld [vmem:[#allocation2 + $0x7c0] sm:$0xff]  ;;  %5837 = vst.msk [vmem:[#allocation2 + $0x3d0] sm:$0xff] %vm305_vm3, %v5324_v5 }
 0x5d9   : > { %v6994_v0 = vmul.f32 %v16301_v30, %v6478_v36  ;;  %v6606_v8 = vld [vmem:[#allocation2 + $0xbc0] sm:$0xff]  ;;  %5965 = vst.msk [vmem:[#allocation2 + $0x7d0] sm:$0xff] %vm305_vm3, %v5452_v20  ;;  %v16728_v36 = vpop.f32.mrf.mxu3 }
 0x5da   : > { %v7122_v27 = vmul.f32 %v16301_v30, %v6606_v8  ;;  %v6734_v51 = vld [vmem:[#allocation2 + $0xfc0] sm:$0xff]  ;;  %6093 = vst.msk [vmem:[#allocation2 + $0xbd0] sm:$0xff] %vm305_vm3, %v5580_v3 }
 0x5db   : > { %v7510_v16 = vadd.f32 %v16320_v11, %v6994_v0  ;;  %v7250_v57 = vmul.f32 %v16301_v30, %v6734_v51  ;;  %v6351_v48 = vld [vmem:[#allocation2 + $0x3c8] sm:$0xff]  ;;  %6221 = vst.msk [vmem:[#allocation2 + $0xfd0] sm:$0xff] %vm305_vm3, %v5708_v12 }
 0x5dc   : > { %v7638_v53 = vadd.f32 %v16320_v11, %v7122_v27  ;;  %v6867_v24 = vmul.f32 %v16301_v30, %v6351_v48  ;;  %v6479_v46 = vld [vmem:[#allocation2 + $0x7c8] sm:$0xff]  ;;  %5838 = vst.msk [vmem:[#allocation2 + $0x3d8] sm:$0xff] %vm305_vm3, %v5325_v29 }
 0x5dd   : > { %v8022_v22 = vmax.f32 %v7510_v16, 0.0  ;;  %v7766_v63 = vadd.f32 %v16320_v11, %v7250_v57  ;;  %v6995_v47 = vmul.f32 %v16301_v30, %v6479_v46  ;;  %v6607_v52 = vld [vmem:[#allocation2 + $0xbc8] sm:$0xff]  ;;  %5966 = vst.msk [vmem:[#allocation2 + $0x7d8] sm:$0xff] %vm305_vm3, %v5453_v4 }
 0x5de   : > { %v8150_v59 = vmax.f32 %v7638_v53, 0.0  ;;  %v7383_v14 = vadd.f32 %v16320_v11, %v6867_v24  ;;  %v7123_v62 = vmul.f32 %v16301_v30, %v6607_v52  ;;  %v6735_v13 = vld [vmem:[#allocation2 + $0xfc8] sm:$0xff]  ;;  %6094 = vst.msk [vmem:[#allocation2 + $0xbd8] sm:$0xff] %vm305_vm3, %v5581_v25 }
 0x5df   : > { %v8534_v34 = vpack.c.bf16 %v8022_v22, %v8022_v22  ;;  %v8278_v42 = vmax.f32 %v7766_v63, 0.0  ;;  %v7511_v23 = vadd.f32 %v16320_v11, %v6995_v47  ;;  %v7251_v35 = vmul.f32 %v16301_v30, %v6735_v13  ;;  %v6352_v31 = vld [vmem:[#allocation2 + $0x3d0] sm:$0xff]  ;;  %6222 = vst.msk [vmem:[#allocation2 + $0xfd8] sm:$0xff] %vm305_vm3, %v5709_v61 }
 0x5e0   : > { %v8662_v50 = vpack.c.bf16 %v8150_v59, %v8150_v59  ;;  %v7895_v41 = vmax.f32 %v7383_v14, 0.0  ;;  %v7639_v1 = vadd.f32 %v16320_v11, %v7123_v62  ;;  %v6868_v26 = vmul.f32 %v16697_v43, %v6352_v31  ;;  %v6480_v15 = vld [vmem:[#allocation2 + $0x7d0] sm:$0xff]  ;;  %5839 = vst.msk [vmem:[#allocation2 + $0x3e0] sm:$0xff] %vm305_vm3, %v5326_v10  ;;  %v4237_v31 = vpop.f32.mrf.mxu0 }
 0x5e1   : > { %9047 = vst.msk [vmem:[%s11330_s10 + $0x3e0] sm:$0xf] %vm8798_vm4, %v8534_v34  ;;  %v8790_v30 = vpack.c.bf16 %v8278_v42, %v8278_v42  ;;  %v8023_v54 = vmax.f32 %v7511_v23, 0.0  ;;  %v7767_v44 = vadd.f32 %v16320_v11, %v7251_v35  ;;  %v6996_v40 = vmul.f32 %v16697_v43, %v6480_v15  ;;  %v6608_v55 = vld [vmem:[#allocation2 + $0xbd0] sm:$0xff]  ;;  %v1070_v34 = vld [vmem:[#allocation2 + $0x7e0] sm:$0xff] }
 0x5e2   : > { %9175 = vst.msk [vmem:[%s11330_s10 + $0x5e0] sm:$0xf] %vm8798_vm4, %v8662_v50  ;;  %v8407_v45 = vpack.c.bf16 %v7895_v41, %v7895_v41  ;;  %v8151_v39 = vmax.f32 %v7639_v1, 0.0  ;;  %v7384_v32 = vadd.f32 %v16712_v7, %v6868_v26  ;;  %v7124_v17 = vmul.f32 %v16697_v43, %v6608_v55  ;;  %v6736_v11 = vld [vmem:[#allocation2 + $0xfd0] sm:$0xff]  ;;  %v1198_v35 = vld [vmem:[#allocation2 + $0xbe0] sm:$0xff]  ;;  %v4557_v26 = vpop.f32.mrf.mxu1 }
 0x5e3   : > { %9303 = vst.msk [vmem:[%s11330_s10 + $0x7e0] sm:$0xf] %vm8798_vm4, %v8790_v30  ;;  %v8535_v49 = vpack.c.bf16 %v8023_v54, %v8023_v54  ;;  %v8279_v33 = vmax.f32 %v7767_v44, 0.0  ;;  %v7512_v5 = vadd.f32 %v16712_v7, %v6996_v40  ;;  %v7252_v37 = vmul.f32 %v16697_v43, %v6736_v11  ;;  %v6353_v20 = vld [vmem:[#allocation2 + $0x3d8] sm:$0xff]  ;;  %v1326_v1 = vld [vmem:[#allocation2 + $0xfe0] sm:$0xff]  ;;  %v943_v54 = vld [vmem:[#allocation2 + $0x3e8] sm:$0xff]  ;;  %v4877_v44 = vpop.f32.mrf.mxu2 }
 0x5e4   : > { %8920 = vst.msk [vmem:[%s11330_s10 + $0x1e4] sm:$0xf] %vm8798_vm4, %v8407_v45  ;;  %v8663_v3 = vpack.c.bf16 %v8151_v39, %v8151_v39  ;;  %v7896_v19 = vmax.f32 %v7384_v32, 0.0  ;;  %v7640_v12 = vadd.f32 %v16712_v7, %v7124_v17  ;;  %v6869_v38 = vmul.f32 %v16697_v43, %v6353_v20  ;;  %v6481_v60 = vld [vmem:[#allocation2 + $0x7d8] sm:$0xff]  ;;  %v1071_v45 = vld [vmem:[#allocation2 + $0x7e8] sm:$0xff]  ;;  %v5197_v39 = vpop.f32.mrf.mxu3 }
 0x5e5   : > { %9048 = vst.msk [vmem:[%s11330_s10 + $0x3e4] sm:$0xf] %vm8798_vm4, %v8535_v49  ;;  %v8791_v29 = vpack.c.bf16 %v8279_v33, %v8279_v33  ;;  %v8024_v28 = vmax.f32 %v7512_v5, 0.0  ;;  %v7768_v0 = vadd.f32 %v16712_v7, %v7252_v37  ;;  %v6997_v8 = vmul.f32 %v16697_v43, %v6481_v60  ;;  %v6609_v4 = vld [vmem:[#allocation2 + $0xbd8] sm:$0xff]  ;;  %v1199_v17 = vld [vmem:[#allocation2 + $0xbe8] sm:$0xff]  ;;  %v944_v33 = vld [vmem:[#allocation2 + $0x3f0] sm:$0xff] }
 0x5e6   : > { %9176 = vst.msk [vmem:[%s11330_s10 + $0x5e4] sm:$0xf] %vm8798_vm4, %v8663_v3  ;;  %v8408_v21 = vpack.c.bf16 %v7896_v19, %v7896_v19  ;;  %v8152_v27 = vmax.f32 %v7640_v12, 0.0  ;;  %v7385_v51 = vadd.f32 %v16712_v7, %v6869_v38  ;;  %v7125_v25 = vmul.f32 %v16697_v43, %v6609_v4  ;;  %v6737_v16 = vld [vmem:[#allocation2 + $0xfd8] sm:$0xff]  ;;  %v1327_v49 = vld [vmem:[#allocation2 + $0xfe8] sm:$0xff]  ;;  %v1072_v5 = vld [vmem:[#allocation2 + $0x7f0] sm:$0xff] }
 0x5e7   : > { %9304 = vst.msk [vmem:[%s11330_s10 + $0x7e4] sm:$0xf] %vm8798_vm4, %v8791_v29  ;;  %v8536_v57 = vpack.c.bf16 %v8024_v28, %v8024_v28  ;;  %v8280_v48 = vmax.f32 %v7768_v0, 0.0  ;;  %v7513_v61 = vadd.f32 %v16712_v7, %v6997_v8  ;;  %v7253_v53 = vmul.f32 %v16697_v43, %v6737_v16  ;;  %v6354_v24 = vld [vmem:[#allocation2 + $0x3e0] sm:$0xff]  ;;  %v1200_v37 = vld [vmem:[#allocation2 + $0xbf0] sm:$0xff]  ;;  %v945_v19 = vld [vmem:[#allocation2 + $0x3f8] sm:$0xff] }
 0x5e8   : > { %8921 = vst.msk [vmem:[%s11330_s10 + $0x1e8] sm:$0xf] %vm8798_vm4, %v8408_v21  ;;  %v8664_v46 = vpack.c.bf16 %v8152_v27, %v8152_v27  ;;  %v7897_v10 = vmax.f32 %v7385_v51, 0.0  ;;  %v7641_v22 = vadd.f32 %v16712_v7, %v7125_v25  ;;  %v6870_v63 = vmul.f32 %v16697_v43, %v6354_v24  ;;  %v1073_v38 = vld [vmem:[#allocation2 + $0x7f8] sm:$0xff] }
 0x5e9   : > { %9049 = vst.msk [vmem:[%s11330_s10 + $0x3e8] sm:$0xf] %vm8798_vm4, %v8536_v57  ;;  %v8792_v47 = vpack.c.bf16 %v8280_v48, %v8280_v48  ;;  %v8025_v52 = vmax.f32 %v7513_v61, 0.0  ;;  %v7769_v59 = vadd.f32 %v16712_v7, %v7253_v53  ;;  %v5454_v30 = vadd.f32 %v16668_v56, %v1070_v34  ;;  %v1201_v29 = vld [vmem:[#allocation2 + $0xbf8] sm:$0xff] }
 0x5ea   : > { %9177 = vst.msk [vmem:[%s11330_s10 + $0x5e8] sm:$0xf] %vm8798_vm4, %v8664_v46  ;;  %v8409_v14 = vpack.c.bf16 %v7897_v10, %v7897_v10  ;;  %v8153_v62 = vmax.f32 %v7641_v22, 0.0  ;;  %v7386_v13 = vadd.f32 %v16712_v7, %v6870_v63  ;;  %v5582_v55 = vadd.f32 %v16672_v58, %v1198_v35  ;;  %v1329_v8 = vld [vmem:[#allocation2 + $0xff8] sm:$0xff] }
 0x5eb   : > { %9305 = vst.msk [vmem:[%s11330_s10 + $0x7e8] sm:$0xf] %vm8798_vm4, %v8792_v47  ;;  %v8537_v42 = vpack.c.bf16 %v8025_v52, %v8025_v52  ;;  %v8281_v23 = vmax.f32 %v7769_v59, 0.0  ;;  %v5710_v32 = vadd.f32 %v16676_v2, %v1326_v1  ;;  %v5327_v11 = vadd.f32 %v16705_v6, %v943_v54  ;;  %v1328_v6 = vld [vmem:[#allocation2 + $0xff0] sm:$0xff] }
 0x5ec   : > { %8922 = vst.msk [vmem:[%s11330_s10 + $0x1ec] sm:$0xf] %vm8798_vm4, %v8409_v14  ;;  %v8665_v50 = vpack.c.bf16 %v8153_v62, %v8153_v62  ;;  %v7898_v41 = vmax.f32 %v7386_v13, 0.0  ;;  %v5455_v56 = vadd.f32 %v16716_v9, %v1071_v45  ;;  %v5583_v58 = vadd.f32 %v16722_v18, %v1199_v17  ;;  %v4239_v9 = vpop.f32.mrf.mxu0  ;;  %v4559_v18 = vpop.f32.mrf.mxu1 }
 0x5ed   : > { %9050 = vst.msk [vmem:[%s11330_s10 + $0x3ec] sm:$0xf] %vm8798_vm4, %v8537_v42  ;;  %v8793_v15 = vpack.c.bf16 %v8281_v23, %v8281_v23  ;;  %v5711_v2 = vadd.f32 %v16728_v36, %v1327_v49  ;;  %v5328_v20 = vadd.f32 %v4237_v31, %v944_v33  ;;  %v5456_v3 = vadd.f32 %v4557_v26, %v1072_v5  ;;  %v4879_v36 = vpop.f32.mrf.mxu2  ;;  %v5199_v4 = vpop.f32.mrf.mxu3 }
 0x5ee   : > { %9178 = vst.msk [vmem:[%s11330_s10 + $0x5ec] sm:$0xf] %vm8798_vm4, %v8665_v50  ;;  %v8410_v40 = vpack.c.bf16 %v7898_v41, %v7898_v41  ;;  %v5584_v12 = vadd.f32 %v4877_v44, %v1200_v37  ;;  %v5712_v60 = vadd.f32 %v5197_v39, %v1328_v6  ;;  %v5329_v0 = vadd.f32 %v4239_v9, %v945_v19 }
 0x5ef   : > { %9306 = vst.msk [vmem:[%s11330_s10 + $0x7ec] sm:$0xf] %vm8798_vm4, %v8793_v15  ;;  %v5457_v51 = vadd.f32 %v4559_v18, %v1073_v38  ;;  %v5585_v57 = vadd.f32 %v4879_v36, %v1201_v29  ;;  %v5713_v24 = vadd.f32 %v5199_v4, %v1329_v8 }
 0x5f0   : > { %8923 = vst.msk [vmem:[%s11330_s10 + $0x1f0] sm:$0xf] %vm8798_vm4, %v8410_v40 }
 0x5f1   : > { %5967 = vst.msk [vmem:[#allocation2 + $0x7e0] sm:$0xff] %vm305_vm3, %v5454_v30 }
 0x5f2   : > { %6095 = vst.msk [vmem:[#allocation2 + $0xbe0] sm:$0xff] %vm305_vm3, %v5582_v55 }
 0x5f3   : > { %6223 = vst.msk [vmem:[#allocation2 + $0xfe0] sm:$0xff] %vm305_vm3, %v5710_v32 }
 0x5f4   : > { %5840 = vst.msk [vmem:[#allocation2 + $0x3e8] sm:$0xff] %vm305_vm3, %v5327_v11 }
 0x5f5   : > { %5968 = vst.msk [vmem:[#allocation2 + $0x7e8] sm:$0xff] %vm305_vm3, %v5455_v56 }
 0x5f6   : > { %6096 = vst.msk [vmem:[#allocation2 + $0xbe8] sm:$0xff] %vm305_vm3, %v5583_v58 }
 0x5f7   : > { %6224 = vst.msk [vmem:[#allocation2 + $0xfe8] sm:$0xff] %vm305_vm3, %v5711_v2 }
 0x5f8   : > { %v6482_v28 = vld [vmem:[#allocation2 + $0x7e0] sm:$0xff]  ;;  %5841 = vst.msk [vmem:[#allocation2 + $0x3f0] sm:$0xff] %vm305_vm3, %v5328_v20 }
 0x5f9   : > { %v6998_v21 = vmul.f32 %v16697_v43, %v6482_v28  ;;  %v6610_v27 = vld [vmem:[#allocation2 + $0xbe0] sm:$0xff]  ;;  %5969 = vst.msk [vmem:[#allocation2 + $0x7f0] sm:$0xff] %vm305_vm3, %v5456_v3 }
 0x5fa   : > { %v7126_v25 = vmul.f32 %v16697_v43, %v6610_v27  ;;  %v6738_v16 = vld [vmem:[#allocation2 + $0xfe0] sm:$0xff]  ;;  %6097 = vst.msk [vmem:[#allocation2 + $0xbf0] sm:$0xff] %vm305_vm3, %v5584_v12 }
 0x5fb   : > { %v7514_v48 = vadd.f32 %v16712_v7, %v6998_v21  ;;  %v7254_v61 = vmul.f32 %v16697_v43, %v6738_v16  ;;  %v6355_v53 = vld [vmem:[#allocation2 + $0x3e8] sm:$0xff]  ;;  %6225 = vst.msk [vmem:[#allocation2 + $0xff0] sm:$0xff] %vm305_vm3, %v5712_v60 }
 0x5fc   : > { %v7642_v46 = vadd.f32 %v16712_v7, %v7126_v25  ;;  %v6871_v10 = vmul.f32 %v16697_v43, %v6355_v53  ;;  %v6483_v22 = vld [vmem:[#allocation2 + $0x7e8] sm:$0xff]  ;;  %5842 = vst.msk [vmem:[#allocation2 + $0x3f8] sm:$0xff] %vm305_vm3, %v5329_v0 }
 0x5fd   : > { %v8026_v63 = vmax.f32 %v7514_v48, 0.0  ;;  %v7770_v47 = vadd.f32 %v16712_v7, %v7254_v61  ;;  %v6999_v52 = vmul.f32 %v16697_v43, %v6483_v22  ;;  %v6611_v59 = vld [vmem:[#allocation2 + $0xbe8] sm:$0xff]  ;;  %5970 = vst.msk [vmem:[#allocation2 + $0x7f8] sm:$0xff] %vm305_vm3, %v5457_v51 }
 0x5fe   : > { %v8154_v14 = vmax.f32 %v7642_v46, 0.0  ;;  %v7387_v62 = vadd.f32 %v16712_v7, %v6871_v10  ;;  %v7127_v13 = vmul.f32 %v16697_v43, %v6611_v59  ;;  %v6739_v34 = vld [vmem:[#allocation2 + $0xfe8] sm:$0xff]  ;;  %6098 = vst.msk [vmem:[#allocation2 + $0xbf8] sm:$0xff] %vm305_vm3, %v5585_v57 }
 0x5ff   : > { %v8538_v42 = vpack.c.bf16 %v8026_v63, %v8026_v63  ;;  %v8282_v23 = vmax.f32 %v7770_v47, 0.0  ;;  %v7515_v35 = vadd.f32 %v16712_v7, %v6999_v52  ;;  %v7255_v31 = vmul.f32 %v16697_v43, %v6739_v34  ;;  %v6356_v50 = vld [vmem:[#allocation2 + $0x3f0] sm:$0xff]  ;;  %6226 = vst.msk [vmem:[#allocation2 + $0xff8] sm:$0xff] %vm305_vm3, %v5713_v24 }
 0x600   : > { %v8666_v41 = vpack.c.bf16 %v8154_v14, %v8154_v14  ;;  %v7899_v1 = vmax.f32 %v7387_v62, 0.0  ;;  %v7643_v26 = vadd.f32 %v16712_v7, %v7127_v13  ;;  %v6872_v15 = vmul.f32 %v16697_v43, %v6356_v50  ;;  %v6484_v30 = vld [vmem:[#allocation2 + $0x7f0] sm:$0xff] }
 0x601   : > { %9051 = vst.msk [vmem:[%s11330_s10 + $0x3f0] sm:$0xf] %vm8798_vm4, %v8538_v42  ;;  %v8794_v54 = vpack.c.bf16 %v8282_v23, %v8282_v23  ;;  %v8027_v44 = vmax.f32 %v7515_v35, 0.0  ;;  %v7771_v40 = vadd.f32 %v16712_v7, %v7255_v31  ;;  %v7000_v55 = vmul.f32 %v16697_v43, %v6484_v30  ;;  %v6612_v45 = vld [vmem:[#allocation2 + $0xbf0] sm:$0xff] }
 0x602   : > { %9179 = vst.msk [vmem:[%s11330_s10 + $0x5f0] sm:$0xf] %vm8798_vm4, %v8666_v41  ;;  %v8411_v39 = vpack.c.bf16 %v7899_v1, %v7899_v1  ;;  %v8155_v32 = vmax.f32 %v7643_v26, 0.0  ;;  %v7388_v17 = vadd.f32 %v16712_v7, %v6872_v15  ;;  %v7128_v11 = vmul.f32 %v16697_v43, %v6612_v45  ;;  %v6740_v49 = vld [vmem:[#allocation2 + $0xff0] sm:$0xff] }
 0x603   : > { %9307 = vst.msk [vmem:[%s11330_s10 + $0x7f0] sm:$0xf] %vm8798_vm4, %v8794_v54  ;;  %v8539_v56 = vpack.c.bf16 %v8027_v44, %v8027_v44  ;;  %v8283_v33 = vmax.f32 %v7771_v40, 0.0  ;;  %v7516_v58 = vadd.f32 %v16712_v7, %v7000_v55  ;;  %v7256_v5 = vmul.f32 %v16697_v43, %v6740_v49  ;;  %v6357_v2 = vld [vmem:[#allocation2 + $0x3f8] sm:$0xff] }
 0x604   : > { %8924 = vst.msk [vmem:[%s11330_s10 + $0x1f4] sm:$0xf] %vm8798_vm4, %v8411_v39  ;;  %v8667_v37 = vpack.c.bf16 %v8155_v32, %v8155_v32  ;;  %v7900_v20 = vmax.f32 %v7388_v17, 0.0  ;;  %v7644_v6 = vadd.f32 %v16712_v7, %v7128_v11  ;;  %v6873_v3 = vmul.f32 %v16697_v43, %v6357_v2  ;;  %v6485_v19 = vld [vmem:[#allocation2 + $0x7f8] sm:$0xff] }
 0x605   : > { %9052 = vst.msk [vmem:[%s11330_s10 + $0x3f4] sm:$0xf] %vm8798_vm4, %v8539_v56  ;;  %v8795_v9 = vpack.c.bf16 %v8283_v33, %v8283_v33  ;;  %v8028_v12 = vmax.f32 %v7516_v58, 0.0  ;;  %v7772_v38 = vadd.f32 %v16712_v7, %v7256_v5  ;;  %v7001_v18 = vmul.f32 %v16697_v43, %v6485_v19  ;;  %v6613_v60 = vld [vmem:[#allocation2 + $0xbf8] sm:$0xff] }
 0x606   : > { %9180 = vst.msk [vmem:[%s11330_s10 + $0x5f4] sm:$0xf] %vm8798_vm4, %v8667_v37  ;;  %v8412_v29 = vpack.c.bf16 %v7900_v20, %v7900_v20  ;;  %v8156_v36 = vmax.f32 %v7644_v6, 0.0  ;;  %v7389_v28 = vadd.f32 %v16712_v7, %v6873_v3  ;;  %v7129_v0 = vmul.f32 %v16697_v43, %v6613_v60  ;;  %v6741_v8 = vld [vmem:[#allocation2 + $0xff8] sm:$0xff] }
 0x607   : > { %9308 = vst.msk [vmem:[%s11330_s10 + $0x7f4] sm:$0xf] %vm8798_vm4, %v8795_v9  ;;  %v8540_v4 = vpack.c.bf16 %v8028_v12, %v8028_v12  ;;  %v8284_v21 = vmax.f32 %v7772_v38, 0.0  ;;  %v7517_v27 = vadd.f32 %v16712_v7, %v7001_v18  ;;  %v7257_v51 = vmul.f32 %v16697_v43, %v6741_v8 }
 0x608   : > { %8925 = vst.msk [vmem:[%s11330_s10 + $0x1f8] sm:$0xf] %vm8798_vm4, %v8412_v29  ;;  %v8668_v25 = vpack.c.bf16 %v8156_v36, %v8156_v36  ;;  %v7901_v16 = vmax.f32 %v7389_v28, 0.0  ;;  %v7645_v57 = vadd.f32 %v16712_v7, %v7129_v0 }
 0x609   : > { %9053 = vst.msk [vmem:[%s11330_s10 + $0x3f8] sm:$0xf] %vm8798_vm4, %v8540_v4  ;;  %v8796_v48 = vpack.c.bf16 %v8284_v21, %v8284_v21  ;;  %v8029_v61 = vmax.f32 %v7517_v27, 0.0  ;;  %v7773_v53 = vadd.f32 %v16712_v7, %v7257_v51 }
 0x60a   : > { %9181 = vst.msk [vmem:[%s11330_s10 + $0x5f8] sm:$0xf] %vm8798_vm4, %v8668_v25  ;;  %v8413_v24 = vpack.c.bf16 %v7901_v16, %v7901_v16  ;;  %v8157_v46 = vmax.f32 %v7645_v57, 0.0 }
 0x60b   : > { %9309 = vst.msk [vmem:[%s11330_s10 + $0x7f8] sm:$0xf] %vm8798_vm4, %v8796_v48  ;;  %v8541_v43 = vpack.c.bf16 %v8029_v61, %v8029_v61  ;;  %v8285_v10 = vmax.f32 %v7773_v53, 0.0 }
 0x60c   : > { %8926 = vst.msk [vmem:[%s11330_s10 + $0x1fc] sm:$0xf] %vm8798_vm4, %v8413_v24  ;;  %v8669_v22 = vpack.c.bf16 %v8157_v46, %v8157_v46 }
 0x60d   : > { %9054 = vst.msk [vmem:[%s11330_s10 + $0x3fc] sm:$0xf] %vm8798_vm4, %v8541_v43  ;;  %v8797_v63 = vpack.c.bf16 %v8285_v10, %v8285_v10 }
 0x60e   : > { %9182 = vst.msk [vmem:[%s11330_s10 + $0x5fc] sm:$0xf] %vm8798_vm4, %v8669_v22 }
 0x60f   : > { %9310 = vst.msk [vmem:[%s11330_s10 + $0x7fc] sm:$0xf] %vm8798_vm4, %v8797_v63 }
 0x610 PF: > { %s14_s17 = sadd.s32 1, %s11072_s17   ;;  %s16860_s15 = smov %s11068_s16 }
 0x611   : > { %p11_p5 = scmp.ge.s32.totalorder %s14_s17, 18   ;;  %s16861_s16 = smov %s16863_s18 }
 0x613   :  { %13 = sbr.rel (!%p11_p5) target bundleno = 2 (0x2), region = 83 }

</bundles_post_ra>
